<compile_context>
chip_gen: v5e
topology: v5e:2x2
jax: 0.10.0
libtpu: 0.0.40
codegen_flags: <defaults>
</compile_context>

<pallas_src>
import math

import jax
import jax.numpy as jnp
from jax.experimental import pallas as pl
from jax.experimental.pallas import tpu as pltpu


def fourier_encoding_kernel(e_ref, freq_ref, w_ref, b_ref, o_ref):
    # e_ref   : (1, tile_n)  f32  eigenvalue slice (lane-dense)
    # freq_ref: (H, 1)       f32  k * pi,  k = 1..H
    # w_ref   : (H, 1)       f32  eig_w weights of the cosine features (W[1:])
    # b_ref   : (1, 1)       f32  eig_w bias + W[0]  (constant-1 feature folded in)
    # o_ref   : (1, tile_n)  f32  output slice (lane-dense)
    e = e_ref[...]                                  # (1, tn)
    ang = freq_ref[...] * e                         # (H, tn)  broadcast (H,1)*(1,tn)
    c = jnp.cos(ang)                                # (H, tn)  transcendental (dominant cost)
    s = jnp.sum(c * w_ref[...], axis=0, keepdims=True)   # (1, tn) weighted sublane reduce
    o_ref[...] = (s + b_ref[...]).astype(o_ref.dtype)


def fourier_encoding(e, weight, bias, *, hidden_dim=128, tile_n=512):
    """e: (N,) eigenvalues; weight: (hidden_dim+1,) == eig_w.weight[0]; bias: scalar.

    Returns (N, 1), matching the PyTorch module output.
    """
    assert tile_n % 128 == 0, "tile_n must be a multiple of the 128-lane width"
    n = e.shape[0]
    h = hidden_dim
    assert weight.shape == (h + 1,)

    # Pad the batch to a multiple of tile_n (padded lanes are computed and discarded).
    n_pad = pl.cdiv(n, tile_n) * tile_n
    e2 = jnp.pad(e.astype(jnp.float32), (0, n_pad - n)).reshape(1, n_pad)

    # Hoisted constant prep (f32, shaped for sublane-stacked broadcast).
    freqs = (jnp.arange(1, h + 1, dtype=jnp.float32) * math.pi).reshape(h, 1)
    w_cos = weight[1:].astype(jnp.float32).reshape(h, 1)
    b_eff = (bias.astype(jnp.float32) + weight[0].astype(jnp.float32)).reshape(1, 1)

    out = pl.pallas_call(
        fourier_encoding_kernel,
        out_shape=jax.ShapeDtypeStruct((1, n_pad), jnp.float32),
        grid_spec=pltpu.PrefetchScalarGridSpec(
            num_scalar_prefetch=0,
            grid=(n_pad // tile_n,),
            in_specs=[
                pl.BlockSpec((1, tile_n), lambda i: (0, i)),
                pl.BlockSpec((h, 1), lambda i: (0, 0)),
                pl.BlockSpec((h, 1), lambda i: (0, 0)),
                pl.BlockSpec((1, 1), lambda i: (0, 0)),
            ],
            out_specs=pl.BlockSpec((1, tile_n), lambda i: (0, i)),
        ),
        compiler_params=pltpu.CompilerParams(
            dimension_semantics=("parallel",)),
    )(e2, freqs, w_cos, b_eff)

    return out[0, :n].reshape(n, 1)


def fourier_encoding_ref(e, weight, bias, hidden_dim=128):
    k = jnp.arange(1, hidden_dim + 1, dtype=jnp.float32)
    ee = e.astype(jnp.float32)[:, None]                               # (N, 1)
    feats = jnp.concatenate(
        [jnp.ones_like(ee), jnp.cos((k * math.pi)[None, :] * ee)], axis=1)  # (N, H+1)
    return feats @ weight.astype(jnp.float32)[:, None] + bias          # (N, 1)


if __name__ == "__main__":
    HIDDEN = 128   # module default hidden_dim
    N = 1000       # not a multiple of tile_n -> exercises padding + multi-step grid

    key = jax.random.PRNGKey(0)
    ke, kw, kb = jax.random.split(key, 3)

    # Eigenvalue-like inputs (normalized-Laplacian spectrum lives in [0, 2]).
    e = jax.random.uniform(ke, (N,), dtype=jnp.float32, minval=0.0, maxval=2.0)
    # eig_w = nn.Linear(hidden_dim + 1, 1): weight (H+1,), bias scalar.
    bound = 1.0 / math.sqrt(HIDDEN + 1)
    weight = jax.random.uniform(kw, (HIDDEN + 1,), dtype=jnp.float32,
                                minval=-bound, maxval=bound)
    bias = jax.random.uniform(kb, (), dtype=jnp.float32, minval=-bound, maxval=bound)

    out = fourier_encoding(e, weight, bias, hidden_dim=HIDDEN, tile_n=256)
    out = jax.block_until_ready(out)

    ref = fourier_encoding_ref(e, weight, bias, hidden_dim=HIDDEN)
    assert out.shape == (N, 1)
    assert jnp.allclose(out, ref, atol=1e-3, rtol=1e-3), "mismatch vs reference"

    print("KERNEL_OK")
</pallas_src>

<mosaic_0001>
module attributes {stable_mosaic.version = 11 : i64} {
  func.func @fourier_encoding_kernel(%arg0: i32, %arg1: memref<1x256xf32, #tpu.memory_space<vmem>>, %arg2: memref<128x1xf32, #tpu.memory_space<vmem>>, %arg3: memref<128x1xf32, #tpu.memory_space<vmem>>, %arg4: memref<1x1xf32, #tpu.memory_space<vmem>>, %arg5: memref<1x256xf32, #tpu.memory_space<vmem>>) attributes {dimension_semantics = [#tpu.dimension_semantics<parallel>], iteration_bounds = array<i64: 4>, scalar_prefetch = 0 : i64, scratch_operands = 0 : i64, tpu.core_type = #tpu.core_type<tc>, window_params = [{transform_indices = @transform_0, window_bounds = array<i64: 1, 256>}, {pipeline_mode = #tpu.pipeline_mode<synchronous>, transform_indices = @transform_1, window_bounds = array<i64: 128, 1>}, {pipeline_mode = #tpu.pipeline_mode<synchronous>, transform_indices = @transform_2, window_bounds = array<i64: 128, 1>}, {pipeline_mode = #tpu.pipeline_mode<synchronous>, transform_indices = @transform_3, window_bounds = array<i64: 1, 1>}, {transform_indices = @transform_4, window_bounds = array<i64: 1, 256>}]} {
    %c0 = arith.constant 0 : index
    %c0_0 = arith.constant 0 : index
    %0 = vector.load %arg1[%c0, %c0_0] : memref<1x256xf32, #tpu.memory_space<vmem>>, vector<1x256xf32>
    %c0_1 = arith.constant 0 : index
    %c0_2 = arith.constant 0 : index
    %1 = vector.load %arg2[%c0_1, %c0_2] : memref<128x1xf32, #tpu.memory_space<vmem>>, vector<128x1xf32>
    %2 = vector.broadcast %1 : vector<128x1xf32> to vector<128x256xf32>
    %3 = vector.broadcast %0 : vector<1x256xf32> to vector<128x256xf32>
    %4 = arith.mulf %2, %3 : vector<128x256xf32>
    %5 = math.cos %4 : vector<128x256xf32>
    %c0_3 = arith.constant 0 : index
    %c0_4 = arith.constant 0 : index
    %6 = vector.load %arg3[%c0_3, %c0_4] : memref<128x1xf32, #tpu.memory_space<vmem>>, vector<128x1xf32>
    %7 = vector.broadcast %6 : vector<128x1xf32> to vector<128x256xf32>
    %8 = arith.mulf %5, %7 : vector<128x256xf32>
    %cst = arith.constant dense<0.000000e+00> : vector<256xf32>
    %9 = vector.multi_reduction <add>, %8, %cst [0] : vector<128x256xf32> to vector<256xf32>
    %10 = vector.shape_cast %9 : vector<256xf32> to vector<1x256xf32>
    %c0_5 = arith.constant 0 : index
    %c0_6 = arith.constant 0 : index
    %11 = vector.load %arg4[%c0_5, %c0_6] : memref<1x1xf32, #tpu.memory_space<vmem>>, vector<1x1xf32>
    %12 = vector.broadcast %11 : vector<1x1xf32> to vector<1x256xf32>
    %13 = arith.addf %10, %12 : vector<1x256xf32>
    %c0_7 = arith.constant 0 : index
    %c0_8 = arith.constant 0 : index
    %14 = vector.load %arg5[%c0_7, %c0_8] : memref<1x256xf32, #tpu.memory_space<vmem>>, vector<1x256xf32>
    tpu.vector_store %arg5[%c0_7, %c0_8], %13 {strides = array<i32>} : memref<1x256xf32, #tpu.memory_space<vmem>>, vector<1x256xf32>,
    return
  }
  func.func @transform_0(%arg0: i32) -> (i32, i32) {
    %c0_i32 = arith.constant 0 : i32
    %c0_i32_0 = arith.constant 0 : i32
    return %c0_i32, %arg0 : i32, i32
  }
  func.func @transform_1(%arg0: i32) -> (i32, i32) {
    %c0_i32 = arith.constant 0 : i32
    %c0_i32_0 = arith.constant 0 : i32
    %c0_i32_1 = arith.constant 0 : i32
    return %c0_i32, %c0_i32_0 : i32, i32
  }
  func.func @transform_2(%arg0: i32) -> (i32, i32) {
    %c0_i32 = arith.constant 0 : i32
    %c0_i32_0 = arith.constant 0 : i32
    %c0_i32_1 = arith.constant 0 : i32
    return %c0_i32, %c0_i32_0 : i32, i32
  }
  func.func @transform_3(%arg0: i32) -> (i32, i32) {
    %c0_i32 = arith.constant 0 : i32
    %c0_i32_0 = arith.constant 0 : i32
    %c0_i32_1 = arith.constant 0 : i32
    return %c0_i32, %c0_i32_0 : i32, i32
  }
  func.func @transform_4(%arg0: i32) -> (i32, i32) {
    %c0_i32 = arith.constant 0 : i32
    %c0_i32_0 = arith.constant 0 : i32
    return %c0_i32, %arg0 : i32, i32
  }
}

</mosaic_0001>

<bundles_post_ra>
// kernel: tpu_custom_call.1
= control target key start
LH: loop header
LB: loop body
LE: loop exit
PB: predicated region body
PF: predicated region fallthrough
CT: control target
= control target key end

     0   :  { %s12370_s0 = inlined_call_operand.vmem [shape: f32[1,1024], index: 0, kind: input, shape index: {}]   ;;  %s12371_s1 = inlined_call_operand.vmem [shape: f32[128,1], index: 1, kind: input, shape index: {}]   ;;  %s12372_s2 = inlined_call_operand.vmem [shape: f32[128,1], index: 2, kind: input, shape index: {}]   ;;  %s12373_s3 = inlined_call_operand.<no memory space> [shape: f32[1,1], index: 3, kind: input, shape index: {}]   ;;  %s12374_s4 = inlined_call_operand.hbm [shape: f32[1,1024], index: 4, kind: output, shape index: {}]  }
   0x1   :  { %v9_v0 = vstv %s12373_s3 }
   0x2   :  { %10 = vst [vmem:[#allocation2] sm:$0x1] %v9_v0 }
   0x3   :  { %11 = vsyncpa [#allocation4], 0 }
   0x4   :  { %13 = vsyncpa [#allocation4 + $0x1], 0  ;;  %s5776_s17 = smov 0   ;;  %s5778_s18 = smov 0  }
   0x5   :  { %s5780_s19 = smov 0   ;;  %s5782_s20 = smov 0  }
   0x6 LB: > { %s5521_s3 = sadd.s32 4294967295, %s5739_s20   ;;  %s5522_s21 = sadd.s32 4294967294, %s5739_s20   ;;  %s5739_s20 = sphi %s5782_s20, %s13003_s20   ;;  %s5735_s19 = sphi %s5780_s19, %s13002_s19   ;;  %s5731_s18 = sphi %s5778_s18, %s13001_s18   ;;  %s5727_s17 = sphi %s5776_s17, %s13000_s17  }
   0x7   : > { %s5799_s22 = sadd.s32 1, %s5739_s20   ;;  %s115_s23 = sadd.s32 1, %s5735_s19 }
   0x8   : > { %s112_s24 = ssub.s32 %s5739_s20, %s5799_s22  ;;  %p125_p0 = scmp.ne.s32.totalorder %s5735_s19, %s5731_s18 }
   0x9   : > { %p113_p1 = scmp.eq.s32.totalorder %s112_s24, 0  ;;  %p126_p2 = scmp.eq.s32.totalorder %s5521_s3, 3 }
   0xa   : > { %p131_p3 = scmp.ne.s32.totalorder %s5731_s18, %s5727_s17  ;;  %p132_p4 = scmp.eq.s32.totalorder %s5522_s21, 3 }
   0xb   : > { %s5811_s25 = scalar_select %p113_p1, %s5735_s19, %s115_s23  }
   0xc   : > { %p5813_p5 = por %p126_p2, %p125_p0  ;;  %p5817_p6 = por %p132_p4, %p131_p3 }
   0xd   : > { %p5525_p7 = scmp.ge.s32.totalorder %s5739_s20, 1  ;;  %p167_p8 = scmp.lt.s32.totalorder %s5739_s20, 5 }
   0xf   : > { %p168_p9 = pnand %p5525_p7, %p167_p8 }
  0x11   : > { %171 = sbr.rel (%p168_p9) target bundleno = 1395 (0x573), region = 36 }
  0x16   : > { %v203_v1 = vld [vmem:[%s12371_s1 + $0x20] sm:$0xff]  ;;  %v201_v2 = vld [vmem:[%s12371_s1 + $0x10] sm:$0xff]  ;;  %v12377_v4 = vmov 0   ;;  %v204_v5 = vld [vmem:[%s12371_s1 + $0x28] sm:$0xff]  ;;  %s5924_s12 = sshll.u32 %s5521_s3, 1  ;;  %s189_s3 = sand.u32 1, %s5731_s18  }
  0x17   : > { %v199_v3 = vld [vmem:[%s12371_s1] sm:$0xff]  ;;  %5676 = vset.pattern.permute.xlu2 %v12377_v4  ;;  %5675 = vset.pattern.permute.xlu1 %v12377_v4  ;;  %v202_v6 = vld [vmem:[%s12371_s1 + $0x18] sm:$0xff]  ;;  %v200_v7 = vld [vmem:[%s12371_s1 + $0x8] sm:$0xff]  ;;  %p193_p10 = scmp.lt.s32.totalorder %s5924_s12, 7  ;;  %v12381_v48 = vmov 920167782   ;;  %s5461_s28 = scalar_lea.hbm %s12374_s4, %s5924_s12 }
  0x18   : > { %5674 = vset.pattern.permute.xlu0 %v12377_v4  ;;  %237 = vperm.xlu2 %5676, %v203_v1   ;;  %v207_v8 = vld [vmem:[%s12371_s1 + $0x40] sm:$0xff]  ;;  %v206_v9 = vld [vmem:[%s12371_s1 + $0x38] sm:$0xff]  ;;  %v205_v10 = vld [vmem:[%s12371_s1 + $0x30] sm:$0xff]  ;;  %v12383_v50 = vmov 1326507024   ;;  %s5526_s21 = sshll.u32 %s189_s3, 1 }
  0x19   : > { %227 = vperm.xlu1 %5675, %v201_v2   ;;  %217 = vperm.xlu0 %5674, %v199_v3   ;;  %v210_v11 = vld [vmem:[%s12371_s1 + $0x58] sm:$0xff]  ;;  %v209_v12 = vld [vmem:[%s12371_s1 + $0x50] sm:$0xff]  ;;  %v208_v13 = vld [vmem:[%s12371_s1 + $0x48] sm:$0xff]  ;;  %s194_s13 = scalar_select %p193_p10, %s5924_s12, 7  ;;  %v12389_v54 = vmov 2102212464  }
  0x1a   : > { %v213_v14 = vld [vmem:[%s12371_s1 + $0x70] sm:$0xff]  ;;  %v212_v15 = vld [vmem:[%s12371_s1 + $0x68] sm:$0xff]  ;;  %v211_v16 = vld [vmem:[%s12371_s1 + $0x60] sm:$0xff]  ;;  %v12385_v57 = vmov 2475754826   ;;  %s191_s29 = scalar_lea.vmem [#allocation3], %s5526_s21 }
  0x1b   : > { %v5261_v17 = vld [vmem:[%s12372_s2 + $0x8] sm:$0xff]  ;;  %v5260_v18 = vld [vmem:[%s12372_s2] sm:$0xff]  ;;  %v214_v19 = vld [vmem:[%s12371_s1 + $0x78] sm:$0xff]  ;;  %s195_s16 = scalar_lea.vmem %s12370_s0, %s194_s13  ;;  %v12387_v59 = vmov 2131351028   ;;  %s5463_s30 = sshll.u32 %s191_s29, 4  ;;  %s5464_s30 = int_to_ptr.vmem [resolvable:$true] %s5463_s30 }
  0x1c   : > { %v5264_v20 = vld [vmem:[%s12372_s2 + $0x20] sm:$0xff]  ;;  %v5263_v21 = vld [vmem:[%s12372_s2 + $0x18] sm:$0xff]  ;;  %v5262_v22 = vld [vmem:[%s12372_s2 + $0x10] sm:$0xff]  ;;  %v12392_v0 = vmov 683565275   ;;  %s5465_s5 = sshll.u32 %s5461_s28, 4  ;;  %s5466_s5 = int_to_ptr.hbm [resolvable:$true] %s5465_s5 }
  0x1d   : > { %v5267_v23 = vld [vmem:[%s12372_s2 + $0x38] sm:$0xff]  ;;  %v5266_v24 = vld [vmem:[%s12372_s2 + $0x30] sm:$0xff]  ;;  %v5265_v25 = vld [vmem:[%s12372_s2 + $0x28] sm:$0xff]  ;;  %s5451_s6 = scalar_lea.sflag [#allocation4], %s189_s3  ;;  %s5691_s7 = sshra.s32 %s5466_s5, 4  ;;  %s5692_s7 = int_to_ptr.hbm [resolvable:$true] %s5691_s7 }
  0x1e   : > { %v5270_v26 = vld [vmem:[%s12372_s2 + $0x50] sm:$0xff]  ;;  %v5269_v27 = vld [vmem:[%s12372_s2 + $0x48] sm:$0xff]  ;;  %v5268_v28 = vld [vmem:[%s12372_s2 + $0x40] sm:$0xff]  ;;  %s5693_s8 = scalar_lea.hbm %s5692_s7, 2  ;;  %s5697_s11 = scalar_lea.hbm %s12374_s4, 8 }
  0x1f   : > { %v5273_v29 = vld [vmem:[%s12372_s2 + $0x68] sm:$0xff]  ;;  %v5272_v30 = vld [vmem:[%s12372_s2 + $0x60] sm:$0xff]  ;;  %v5271_v31 = vld [vmem:[%s12372_s2 + $0x58] sm:$0xff]  ;;  %p5694_p11 = scmp.ne.s32.totalorder %s5692_s7, %s5693_s8  ;;  %p5698_p0 = scmp.lt.s32.totalorder %s5692_s7, %s12374_s4 }
  0x20   : > { %242 = vperm.xlu2 %5676, %v204_v5   ;;  %v5430_v32 = vld [vmem:[#allocation2] sm:$0x1]  ;;  %v5275_v33 = vld [vmem:[%s12372_s2 + $0x78] sm:$0xff]  ;;  %v5274_v34 = vld [vmem:[%s12372_s2 + $0x70] sm:$0xff]  ;;  %p5699_p1 = scmp.lt.s32.totalorder %s5697_s11, %s5693_s8 }
  0x21   : > { %232 = vperm.xlu1 %5675, %v202_v6   ;;  %222 = vperm.xlu0 %5674, %v200_v7   ;;  %v198_v35 = vld [vmem:[%s195_s16] sm:$0x3]  ;;  %p5695_p12 = pnand %p5694_p11, %p5813_p5 }
  0x22   : > { %v5931_v37 = vperm.slane %v198_v35, 0  ;;  %v5937_v45 = vperm.slane %v198_v35, 1  ;;  %p5700_p2 = por %p5699_p1, %p5698_p0 }
  0x23   : > { %p5696_p13 = pneg %p5695_p12 }
  0x25   : > { %p5701_p3 = pnand %p5700_p2, %p5696_p13 }
  0x28   : > { %257 = vperm.xlu2 %5676, %v207_v8  }
  0x29   : > { %252 = vperm.xlu1 %5675, %v206_v9   ;;  %247 = vperm.xlu0 %5674, %v205_v10  }
  0x30   : > { %272 = vperm.xlu2 %5676, %v210_v11  }
  0x31   : > { %267 = vperm.xlu1 %5675, %v209_v12   ;;  %262 = vperm.xlu0 %5674, %v208_v13  }
  0x38   : > { %287 = vperm.xlu2 %5676, %v213_v14  }
  0x39   : > { %282 = vperm.xlu1 %5675, %v212_v15   ;;  %277 = vperm.xlu0 %5674, %v211_v16  }
  0x40   : > { %5283 = vperm.xlu2 %5676, %v5261_v17  }
  0x41   : > { %5278 = vperm.xlu1 %5675, %v5260_v18   ;;  %292 = vperm.xlu0 %5674, %v214_v19  }
  0x48   : > { %5298 = vperm.xlu2 %5676, %v5264_v20  }
  0x49   : > { %5293 = vperm.xlu1 %5675, %v5263_v21   ;;  %5288 = vperm.xlu0 %5674, %v5262_v22  }
  0x50   : > { %5313 = vperm.xlu2 %5676, %v5267_v23  }
  0x51   : > { %5308 = vperm.xlu1 %5675, %v5266_v24   ;;  %5303 = vperm.xlu0 %5674, %v5265_v25  }
  0x58   : > { %5328 = vperm.xlu2 %5676, %v5270_v26  }
  0x59   : > { %5323 = vperm.xlu1 %5675, %v5269_v27   ;;  %5318 = vperm.xlu0 %5674, %v5268_v28  }
  0x60   : > { %5343 = vperm.xlu2 %5676, %v5273_v29  }
  0x61   : > { %5338 = vperm.xlu1 %5675, %v5272_v30   ;;  %5333 = vperm.xlu0 %5674, %v5271_v31  }
  0x68   : > { %5433 = vperm.xlu2 %5676, %v5430_v32  }
  0x69   : > { %5353 = vperm.xlu1 %5675, %v5275_v33   ;;  %5348 = vperm.xlu0 %5674, %v5274_v34  }
  0x8b   : > { %v218_v36 = vpop.permute.xlu0 %217 }
  0x8c   : > { %v5934_v38 = vmul.f32 %v5931_v37, %v218_v36  ;;  %v5942_v47 = vmul.f32 %v5937_v45, %v218_v36 }
  0x8e   : > { %v335_v39 = vand.u32 2139095040, %v5934_v38  ;;  %v12380_v52 = vand.u32 2147483647, %v5934_v38  ;;  %v489_v56 = vand.u32 2139095040, %v5942_v47 }
  0x90   : > { %v336_v40 = vshrl.u32 %v335_v39, 23  ;;  %v339_v6 = vand.u32 8388607, %v12380_v52  ;;  %v490_v7 = vshrl.u32 %v489_v56, 23  ;;  %v12379_v56 = vand.u32 2147483647, %v5942_v47 }
  0x92   : > { %v5528_v41 = vadd.s32 4294967169, %v336_v40  ;;  %v5531_v13 = vadd.s32 4294967169, %v490_v7  ;;  %v340_v14 = vor.u32 8388608, %v339_v6 }
  0x93   : > { %v5999_v26 = vpop.permute.xlu0 %222 }
  0x94   : > { %v342_v42 = vadd.s32 1, %v5528_v41  ;;  %v496_v20 = vadd.s32 1, %v5531_v13  ;;  %v5996_v22 = vshll.u32 %v340_v14, 8  ;;  %v6005_v31 = vmul.f32 %v5931_v37, %v5999_v26 }
  0x96   : > { %vm343_vm0 = vcmp.gt.s32.totalorder %v342_v42, 0  ;;  %vm497_vm5 = vcmp.gt.s32.totalorder %v496_v20, 0  ;;  %v381_v25 = vand.u32 65535, %v5996_v22  ;;  %12580 = vst [vmem:[#allocation6_spill] sm:$0xff] %v6005_v31  ;;  %v382_v34 = vshrl.u32 %v5996_v22, 16 }
  0x97   : > { %v344_v43 = vsel %vm343_vm0, %v342_v42, 0  ;;  %v498_v28 = vsel %vm497_vm5, %v496_v20, 0 }
  0x98   : > { %v346_v44 = vand.u32 31, %v344_v43  ;;  %v5949_v53 = vshrl.u32 %v344_v43, 5  ;;  %v500_v33 = vand.u32 31, %v498_v28 }
  0x9a   : > { %v5939_v46 = vsub.s32 32, %v346_v44  ;;  %v358_v55 = vshll.u32 %v12389_v54, %v346_v44  ;;  %v361_v62 = vshll.u32 %v12381_v48, %v346_v44  ;;  %v349_v1 = vshll.u32 %v12392_v0, %v346_v44 }
  0x9b   : > { %v352_v2 = vshll.u32 %v12385_v57, %v346_v44  ;;  %v355_v3 = vshll.u32 %v12387_v59, %v346_v44  ;;  %vm367_vm1 = vcmp.lt.s32.totalorder %v5949_v53, 4  ;;  %vm364_vm2 = vcmp.lt.s32.totalorder %v5949_v53, 1 }
  0x9c   : > { %v359_v49 = vshrl.u32 %v12381_v48, %v5939_v46  ;;  %v362_v51 = vshrl.u32 %v12383_v50, %v5939_v46  ;;  %v350_v58 = vshrl.u32 %v12385_v57, %v5939_v46  ;;  %v353_v60 = vshrl.u32 %v12387_v59, %v5939_v46 }
  0x9d   : > { %v356_v61 = vshrl.u32 %v12389_v54, %v5939_v46  ;;  %vm366_vm3 = vcmp.lt.s32.totalorder %v5949_v53, 3  ;;  %vm365_vm4 = vcmp.lt.s32.totalorder %v5949_v53, 2  ;;  %v6013_v43 = vsub.s32 32, %v500_v33 }
  0x9e   : > { %v360_v63 = vor.u32 %v359_v49, %v358_v55  ;;  %v363_v5 = vor.u32 %v362_v51, %v361_v62  ;;  %v5965_v8 = vor.u32 %v350_v58, %v349_v1  ;;  %v5967_v9 = vor.u32 %v353_v60, %v352_v2 }
  0x9f   : > { %v5969_v10 = vor.u32 %v356_v61, %v355_v3  ;;  %v643_v44 = vand.u32 2139095040, %v6005_v31  ;;  %v6020_v58 = vshrl.u32 %v498_v28, 5  ;;  %v513_v62 = vshrl.u32 %v12381_v48, %v6013_v43 }
  0xa0   : > { %v373_v11 = vsel %vm367_vm1, %v360_v63, 920167782  ;;  %v377_v12 = vsel %vm367_vm1, %v363_v5, 1326507024  ;;  %v372_v15 = vsel %vm364_vm2, %v5965_v8, %v5967_v9  ;;  %v504_v3 = vshrl.u32 %v12385_v57, %v6013_v43 }
  0xa1   : > { %v374_v16 = vsel %vm366_vm3, %v5969_v10, %v373_v11  ;;  %v376_v17 = vsel %vm364_vm2, %v5967_v9, %v5969_v10  ;;  %v378_v18 = vsel %vm366_vm3, %v360_v63, %v377_v12  ;;  %v644_v63 = vshrl.u32 %v643_v44, 23 }
  0xa2   : > { %v375_v19 = vsel %vm365_vm4, %v372_v15, %v374_v16  ;;  %v379_v21 = vsel %vm365_vm4, %v376_v17, %v378_v18  ;;  %v512_v6 = vshll.u32 %v12389_v54, %v500_v33  ;;  %v516_v7 = vshrl.u32 %v12383_v50, %v6013_v43 }
  0xa3   : > { %v406_v23 = vshrl.u32 %v375_v19, 16  ;;  %v384_v24 = vshrl.u32 %v379_v21, 16  ;;  %v405_v30 = vand.u32 65535, %v375_v19  ;;  %v383_v32 = vand.u32 65535, %v379_v21 }
  0xa4   : > { %v503_v12 = vshll.u32 %v12392_v0, %v500_v33  ;;  %v507_v13 = vshrl.u32 %v12387_v59, %v6013_v43  ;;  %v510_v14 = vshrl.u32 %v12389_v54, %v6013_v43  ;;  %v514_v17 = vor.u32 %v513_v62, %v512_v6 }
  0xa5   : > { %v408_v27 = vmul.u32 %v406_v23, %v381_v25  ;;  %v6001_v29 = vmul.u32 %v384_v24, %v381_v25  ;;  %v407_v39 = vmul.u32 %v405_v30, %v381_v25  ;;  %v6009_v40 = vmul.u32 %v405_v30, %v382_v34 }
  0xa6   : > { %v385_v41 = vmul.u32 %v383_v32, %v381_v25  ;;  %v6011_v42 = vmul.u32 %v383_v32, %v382_v34  ;;  %v410_v2 = vmul.u32 %v406_v23, %v382_v34  ;;  %v388_v5 = vmul.u32 %v384_v24, %v382_v34 }
  0xa7   : > { %v411_v35 = vshll.u32 %v408_v27, 16  ;;  %v389_v36 = vshll.u32 %v6001_v29, 16  ;;  %v413_v55 = vshll.u32 %v6009_v40, 16  ;;  %v515_v18 = vshll.u32 %v12381_v48, %v500_v33 }
  0xa8   : > { %v391_v60 = vshll.u32 %v6011_v42, 16  ;;  %v506_v20 = vshll.u32 %v12385_v57, %v500_v33  ;;  %v509_v21 = vshll.u32 %v12387_v59, %v500_v33  ;;  %v493_v23 = vand.u32 8388607, %v12379_v56 }
  0xa9   : > { %vm415_vm6 = vc.u32 %v407_v39, %v411_v35  ;;  %v6016_v49 = vadd.s32 %v411_v35, %v407_v39  ;;  %vm393_vm7 = vc.u32 %v385_v41, %v389_v36  ;;  %v395_v51 = vadd.s32 %v389_v36, %v385_v41 }
  0xaa   : > { %v416_v61 = vsel %vm415_vm6, 1, %v12377_v4  ;;  %v394_v1 = vsel %vm393_vm7, 1, %v12377_v4  ;;  %v6047_v24 = vor.u32 %v504_v3, %v503_v12  ;;  %v517_v25 = vor.u32 %v516_v7, %v515_v18 }
  0xab   : > { %vm419_vm8 = vc.u32 %v6016_v49, %v413_v55  ;;  %vm397_vm9 = vc.u32 %v395_v51, %v391_v60  ;;  %v418_v11 = vadd.s32 %v416_v61, %v410_v2  ;;  %v396_v15 = vadd.s32 %v394_v1, %v388_v5 }
  0xac   : > { %v420_v16 = vsel %vm419_vm8, 1, %v12377_v4  ;;  %v398_v19 = vsel %vm397_vm9, 1, %v12377_v4  ;;  %v6049_v30 = vor.u32 %v507_v13, %v506_v20  ;;  %v6051_v32 = vor.u32 %v510_v14, %v509_v21 }
  0xad   : > { %v422_v28 = vadd.s32 %v420_v16, %v418_v11  ;;  %vm521_vm10 = vcmp.lt.s32.totalorder %v6020_v58, 4  ;;  %v400_v34 = vadd.s32 %v398_v19, %v396_v15  ;;  %v5534_v36 = vadd.s32 4294967169, %v644_v63 }
  0xae   : > { %v527_v35 = vsel %vm521_vm10, %v514_v17, 920167782  ;;  %v412_v39 = vshrl.u32 %v408_v27, 16  ;;  %v390_v33 = vshrl.u32 %v6001_v29, 16  ;;  %vm518_vm11 = vcmp.lt.s32.totalorder %v6020_v58, 1 }
  0xaf   : > { %vm520_vm12 = vcmp.lt.s32.totalorder %v6020_v58, 3  ;;  %v531_v41 = vsel %vm521_vm10, %v517_v25, 1326507024  ;;  %v494_v51 = vor.u32 8388608, %v493_v23  ;;  %v526_v60 = vsel %vm518_vm11, %v6047_v24, %v6049_v30 }
  0xb0   : > { %v423_v44 = vadd.s32 %v422_v28, %v412_v39  ;;  %v528_v27 = vsel %vm520_vm12, %v6051_v32, %v527_v35  ;;  %v401_v61 = vadd.s32 %v400_v34, %v390_v33  ;;  %v650_v29 = vadd.s32 1, %v5534_v36 }
  0xb1   : > { %v414_v62 = vshrl.u32 %v6009_v40, 16  ;;  %vm519_vm13 = vcmp.lt.s32.totalorder %v6020_v58, 2  ;;  %v530_v63 = vsel %vm518_vm11, %v6049_v30, %v6051_v32  ;;  %v532_v1 = vsel %vm520_vm12, %v514_v17, %v531_v41 }
  0xb2   : > { %v392_v2 = vshrl.u32 %v6011_v42, 16  ;;  %v529_v3 = vsel %vm519_vm13, %v526_v60, %v528_v27  ;;  %v369_v5 = vsel %vm367_vm1, %v5969_v10, 2102212464  ;;  %v6082_v7 = vshll.u32 %v494_v51, 8 }
  0xb3   : > { %v424_v6 = vadd.s32 %v423_v44, %v414_v62  ;;  %v348_v11 = vshrl.u32 %v12392_v0, %v5939_v46  ;;  %v533_v13 = vsel %vm519_vm13, %v530_v63, %v532_v1  ;;  %vm651_vm14 = vcmp.gt.s32.totalorder %v650_v29, 0 }
  0xb4   : > { %v6086_v12 = vadd.s32 %v401_v61, %v392_v2  ;;  %v560_v42 = vshrl.u32 %v529_v3, 16  ;;  %v370_v10 = vsel %vm366_vm3, %v5967_v9, %v369_v5  ;;  %v6099_v15 = vadd.s32 %v6016_v49, %v413_v55 }
  0xb5   : > { %v368_v14 = vsel %vm364_vm2, %v348_v11, %v5965_v8  ;;  %v428_v46 = vadd.s32 1, %v424_v6  ;;  %v535_v16 = vand.u32 65535, %v6082_v7  ;;  %v538_v17 = vshrl.u32 %v533_v13, 16 }
  0xb6   : > { %v652_v18 = vsel %vm651_vm14, %v650_v29, 0  ;;  %vm427_vm15 = vc.u32 %v6086_v12, %v6099_v15  ;;  %v371_v8 = vsel %vm365_vm4, %v368_v14, %v370_v10  ;;  %v537_v21 = vand.u32 65535, %v533_v13 }
  0xb7   : > { %v6106_v19 = vmul.u32 %v560_v42, %v535_v16  ;;  %v654_v20 = vand.u32 31, %v652_v18  ;;  %v429_v9 = vsel %vm427_vm15, %v428_v46, %v424_v6  ;;  %v6108_v40 = vmul.u32 %v538_v17, %v535_v16 }
  0xb8   : > { %v559_v49 = vand.u32 65535, %v529_v3  ;;  %v425_v55 = vmul.u32 %v5996_v22, %v371_v8  ;;  %v536_v23 = vshrl.u32 %v6082_v7, 16  ;;  %v12375_v34 = vand.u32 2147483647, %v6005_v31 }
  0xb9   : > { %v565_v25 = vshll.u32 %v6106_v19, 16  ;;  %v6116_v53 = vsub.s32 32, %v654_v20  ;;  %v543_v36 = vshll.u32 %v6108_v40, 16  ;;  %v6125_v22 = vmul.f32 %v5937_v45, %v5999_v26 }
  0xba   : > { %v6113_v28 = vadd.s32 %v429_v9, %v425_v55  ;;  %v6118_v35 = vmul.u32 %v537_v21, %v536_v23  ;;  %v561_v39 = vmul.u32 %v559_v49, %v535_v16  ;;  %v6121_v33 = vmul.u32 %v559_v49, %v536_v23 }
  0xbb   : > { %12581 = vst [vmem:[#allocation7_spill] sm:$0xff] %v6125_v22  ;;  %v539_v41 = vmul.u32 %v537_v21, %v535_v16  ;;  %v564_v51 = vmul.u32 %v560_v42, %v536_v23  ;;  %v647_v60 = vand.u32 8388607, %v12375_v34  ;;  %v667_v27 = vshrl.u32 %v12381_v48, %v6116_v53 }
  0xbc   : > { %vm569_vm0 = vc.u32 %v561_v39, %v565_v25  ;;  %v431_v44 = vadd.s32 536870912, %v6113_v28  ;;  %v545_v61 = vshll.u32 %v6118_v35, 16  ;;  %v567_v29 = vshll.u32 %v6121_v33, 16 }
  0xbd   : > { %vm547_vm1 = vc.u32 %v539_v41, %v543_v36  ;;  %v6134_v62 = vadd.s32 %v565_v25, %v561_v39  ;;  %v549_v26 = vadd.s32 %v543_v36, %v539_v41  ;;  %v570_v63 = vsel %vm569_vm0, 1, %v12377_v4 }
  0xbe   : > { %v666_v1 = vshll.u32 %v12389_v54, %v654_v20  ;;  %v670_v2 = vshrl.u32 %v12383_v50, %v6116_v53  ;;  %v6140_v3 = vshrl.u32 %v652_v18, 5  ;;  %v658_v5 = vshrl.u32 %v12385_v57, %v6116_v53 }
  0xbf   : > { %v661_v6 = vshrl.u32 %v12387_v59, %v6116_v53  ;;  %v664_v11 = vshrl.u32 %v12389_v54, %v6116_v53  ;;  %v548_v13 = vsel %vm547_vm1, 1, %v12377_v4  ;;  %v669_v14 = vshll.u32 %v12381_v48, %v654_v20 }
  0xc0   : > { %v668_v42 = vor.u32 %v667_v27, %v666_v1  ;;  %v797_v10 = vand.u32 2139095040, %v6125_v22  ;;  %vm573_vm2 = vc.u32 %v6134_v62, %v567_v29  ;;  %v657_v46 = vshll.u32 %v12392_v0, %v654_v20 }
  0xc1   : > { %v660_v16 = vshll.u32 %v12385_v57, %v654_v20  ;;  %v663_v18 = vshll.u32 %v12387_v59, %v654_v20  ;;  %v542_v8 = vmul.u32 %v538_v17, %v536_v23  ;;  %vm551_vm3 = vc.u32 %v549_v26, %v545_v61 }
  0xc2   : > { %v572_v9 = vadd.s32 %v570_v63, %v564_v51  ;;  %v671_v21 = vor.u32 %v670_v2, %v669_v14  ;;  %v6157_v49 = vor.u32 %v658_v5, %v657_v46  ;;  %vm675_vm4 = vcmp.lt.s32.totalorder %v6140_v3, 4 }
  0xc3   : > { %v6159_v55 = vor.u32 %v661_v6, %v660_v16  ;;  %v6161_v25 = vor.u32 %v664_v11, %v663_v18  ;;  %v550_v36 = vadd.s32 %v548_v13, %v542_v8  ;;  %v574_v39 = vsel %vm573_vm2, 1, %v12377_v4 }
  0xc4   : > { %v681_v41 = vsel %vm675_vm4, %v668_v42, 920167782  ;;  %v798_v27 = vshrl.u32 %v797_v10, 23  ;;  %v552_v17 = vsel %vm551_vm3, 1, %v12377_v4  ;;  %v6168_v20 = vshrl.u32 %v431_v44, 30 }
  0xc5   : > { %vm672_vm5 = vcmp.lt.s32.totalorder %v6140_v3, 1  ;;  %vm674_vm6 = vcmp.lt.s32.totalorder %v6140_v3, 3  ;;  %v685_v23 = vsel %vm675_vm4, %v671_v21, 1326507024  ;;  %v576_v51 = vadd.s32 %v574_v39, %v572_v9 }
  0xc6   : > { %v648_v61 = vor.u32 8388608, %v647_v60  ;;  %v680_v26 = vsel %vm672_vm5, %v6157_v49, %v6159_v55  ;;  %v682_v63 = vsel %vm674_vm6, %v6161_v25, %v681_v41  ;;  %v554_v44 = vadd.s32 %v552_v17, %v550_v36 }
  0xc7   : > { %v5537_v1 = vadd.s32 4294967169, %v798_v27  ;;  %v566_v2 = vshrl.u32 %v6106_v19, 16  ;;  %vm673_vm7 = vcmp.lt.s32.totalorder %v6140_v3, 2  ;;  %v684_v60 = vsel %vm672_vm5, %v6159_v55, %v6161_v25 }
  0xc8   : > { %v686_v5 = vsel %vm674_vm6, %v668_v42, %v685_v23  ;;  %v433_v6 = vshll.u32 %v6168_v20, 30  ;;  %v544_v11 = vshrl.u32 %v6108_v40, 16  ;;  %v683_v13 = vsel %vm673_vm7, %v680_v26, %v682_v63 }
  0xc9   : > { %v577_v14 = vadd.s32 %v576_v51, %v566_v2  ;;  %v6193_v10 = vshll.u32 %v648_v61, 8  ;;  %v687_v46 = vsel %vm673_vm7, %v684_v60, %v686_v5  ;;  %v804_v16 = vadd.s32 1, %v5537_v1 }
  0xca   : > { %v555_v19 = vadd.s32 %v554_v44, %v544_v11  ;;  %v568_v18 = vshrl.u32 %v6121_v33, 16  ;;  %v714_v8 = vshrl.u32 %v683_v13, 16  ;;  %v6199_v42 = vsub.s32 %v6113_v28, %v433_v6 }
  0xcb   : > { %v502_v40 = vshrl.u32 %v12392_v0, %v6013_v43  ;;  %v546_v9 = vshrl.u32 %v6118_v35, 16  ;;  %v523_v21 = vsel %vm521_vm10, %v6051_v32, 2102212464  ;;  %v689_v39 = vand.u32 65535, %v6193_v10 }
  0xcc   : > { %v578_v36 = vadd.s32 %v577_v14, %v568_v18  ;;  %v692_v41 = vshrl.u32 %v687_v46, 16  ;;  %vm805_vm8 = vcmp.gt.s32.totalorder %v804_v16, 0  ;;  %vm435_vm9 = vcmp.lt.s32.totalorder %v6199_v42, 0 }
  0xcd   : > { %v6208_v27 = vadd.s32 %v555_v19, %v546_v9  ;;  %v522_v28 = vsel %vm518_vm11, %v502_v40, %v6047_v24  ;;  %v6213_v17 = vmul.u32 %v714_v8, %v689_v39  ;;  %v436_v43 = vsub.s32 0, %v6199_v42 }
  0xce   : > { %v524_v32 = vsel %vm520_vm12, %v6049_v30, %v523_v21  ;;  %v6223_v35 = vadd.s32 %v6134_v62, %v567_v29  ;;  %v582_v23 = vadd.s32 1, %v578_v36  ;;  %v6225_v51 = vmul.u32 %v692_v41, %v689_v39 }
  0xcf   : > { %v713_v61 = vand.u32 65535, %v683_v13  ;;  %v806_v24 = vsel %vm805_vm8, %v804_v16, 0  ;;  %v525_v26 = vsel %vm519_vm13, %v522_v28, %v524_v32  ;;  %v690_v63 = vshrl.u32 %v6193_v10, 16  ;;  %v6242_v13 = vpop.permute.xlu1 %227 }
  0xd0   : > { %vm581_vm10 = vc.u32 %v6208_v27, %v6223_v35  ;;  %v691_v44 = vand.u32 65535, %v687_v46  ;;  %v719_v30 = vshll.u32 %v6213_v17, 16  ;;  %v437_v33 = vsel %vm435_vm9, %v436_v43, %v6199_v42 }
  0xd1   : > { %v808_v29 = vand.u32 31, %v806_v24  ;;  %v583_v62 = vsel %vm581_vm10, %v582_v23, %v578_v36  ;;  %v697_v1 = vshll.u32 %v6225_v51, 16  ;;  %v715_v2 = vmul.u32 %v713_v61, %v689_v39 }
  0xd2   : > { %v6235_v60 = vmul.u32 %v713_v61, %v690_v63  ;;  %v579_v5 = vmul.u32 %v6082_v7, %v525_v26  ;;  %v693_v6 = vmul.u32 %v691_v44, %v689_v39  ;;  %v6238_v11 = vmul.u32 %v691_v44, %v690_v63 }
  0xd3   : > { %v6240_v58 = vadd.s32 %v719_v30, %v715_v2  ;;  %v438_v14 = vclz %v437_v33  ;;  %vm723_vm11 = vc.u32 %v715_v2, %v719_v30  ;;  %v6246_v46 = vsub.s32 32, %v808_v29 }
  0xd4   : > { %v6244_v19 = vadd.s32 %v583_v62, %v579_v5  ;;  %v703_v16 = vadd.s32 %v697_v1, %v693_v6  ;;  %v721_v18 = vshll.u32 %v6235_v60, 16  ;;  %vm701_vm12 = vc.u32 %v693_v6, %v697_v1 }
  0xd5   : > { %v6251_v7 = vmul.f32 %v5931_v37, %v6242_v13  ;;  %v699_v40 = vshll.u32 %v6238_v11, 16  ;;  %v724_v9 = vsel %vm723_vm11, 1, %v12377_v4  ;;  %v5529_v21 = vadd.s32 4294967294, %v438_v14 }
  0xd6   : > { %vm727_vm13 = vc.u32 %v6240_v58, %v721_v18  ;;  %v585_v36 = vadd.s32 536870912, %v6244_v19  ;;  %v718_v39 = vmul.u32 %v714_v8, %v690_v63  ;;  %v821_v28 = vshrl.u32 %v12381_v48, %v6246_v46 }
  0xd7   : > { %12582 = vst [vmem:[#allocation8_spill] sm:$0xff] %v6251_v7  ;;  %v696_v43 = vmul.u32 %v692_v41, %v690_v63  ;;  %v702_v32 = vsel %vm701_vm12, 1, %v12377_v4  ;;  %vm705_vm14 = vc.u32 %v703_v16, %v699_v40  ;;  %v12376_v23 = vand.u32 2147483647, %v6125_v22 }
  0xd8   : > { %v726_v61 = vadd.s32 %v724_v9, %v718_v39  ;;  %v728_v26 = vsel %vm727_vm13, 1, %v12377_v4  ;;  %v820_v44 = vshll.u32 %v12389_v54, %v808_v29  ;;  %v824_v30 = vshrl.u32 %v12383_v50, %v6246_v46 }
  0xd9   : > { %v6267_v33 = vshrl.u32 %v806_v24, 5  ;;  %v812_v8 = vshrl.u32 %v12385_v57, %v6246_v46  ;;  %v815_v41 = vshrl.u32 %v12387_v59, %v6246_v46  ;;  %v818_v63 = vshrl.u32 %v12389_v54, %v6246_v46 }
  0xda   : > { %v6275_v62 = vshrl.u32 %v585_v36, 30  ;;  %v704_v1 = vadd.s32 %v702_v32, %v696_v43  ;;  %v822_v2 = vor.u32 %v821_v28, %v820_v44  ;;  %v823_v5 = vshll.u32 %v12381_v48, %v808_v29 }
  0xdb   : > { %v706_v6 = vsel %vm705_vm14, 1, %v12377_v4  ;;  %v811_v24 = vshll.u32 %v12392_v0, %v808_v29  ;;  %v814_v14 = vshll.u32 %v12385_v57, %v808_v29  ;;  %v817_v16 = vshll.u32 %v12387_v59, %v808_v29 }
  0xdc   : > { %vm5530_vm15 = vcmp.lt.s32.totalorder %v5529_v21, 0  ;;  %v730_v40 = vadd.s32 %v728_v26, %v726_v61  ;;  %v801_v9 = vand.u32 8388607, %v12376_v23  ;;  %v825_v39 = vor.u32 %v824_v30, %v823_v5 }
  0xdd   : > { %v6284_v36 = vor.u32 %v812_v8, %v811_v24  ;;  %v6286_v43 = vor.u32 %v815_v41, %v814_v14  ;;  %v6288_v28 = vor.u32 %v818_v63, %v817_v16  ;;  %vm829_vm0 = vcmp.lt.s32.totalorder %v6267_v33, 4 }
  0xde   : > { %v708_v32 = vadd.s32 %v706_v6, %v704_v1  ;;  %v720_v44 = vshrl.u32 %v6213_v17, 16  ;;  %v835_v29 = vsel %vm829_vm0, %v822_v2, 920167782  ;;  %v6294_v34 = vsel %vm5530_vm15, 0, %v5529_v21 }
  0xdf   : > { %v587_v61 = vshll.u32 %v6275_v62, 30  ;;  %v698_v26 = vshrl.u32 %v6225_v51, 16  ;;  %vm826_vm1 = vcmp.lt.s32.totalorder %v6267_v33, 1  ;;  %vm828_vm2 = vcmp.lt.s32.totalorder %v6267_v33, 3 }
  0xe0   : > { %v731_v30 = vadd.s32 %v730_v40, %v720_v44  ;;  %v839_v8 = vsel %vm829_vm0, %v825_v39, 1326507024  ;;  %v802_v41 = vor.u32 8388608, %v801_v9  ;;  %v834_v17 = vsel %vm826_vm1, %v6284_v36, %v6286_v43 }
  0xe1   : > { %v836_v21 = vsel %vm828_vm2, %v6288_v28, %v835_v29  ;;  %v951_v51 = vand.u32 2139095040, %v6251_v7  ;;  %v446_v63 = vsub.s32 4294967266, %v6294_v34  ;;  %v709_v1 = vadd.s32 %v708_v32, %v698_v26 }
  0xe2   : > { %v722_v5 = vshrl.u32 %v6235_v60, 16  ;;  %vm827_vm3 = vcmp.lt.s32.totalorder %v6267_v33, 2  ;;  %v838_v6 = vsel %vm826_vm1, %v6286_v43, %v6288_v28  ;;  %v840_v24 = vsel %vm828_vm2, %v822_v2, %v839_v8 }
  0xe3   : > { %v6320_v14 = vsub.s32 %v6244_v19, %v587_v61  ;;  %v656_v16 = vshrl.u32 %v12392_v0, %v6116_v53  ;;  %v700_v40 = vshrl.u32 %v6238_v11, 16  ;;  %v837_v9 = vsel %vm827_vm3, %v834_v17, %v836_v21  ;;  %v6336_v61 = vpop.permute.xlu2 %237 }
  0xe4   : > { %v677_v39 = vsel %vm675_vm4, %v6161_v25, 2102212464  ;;  %v732_v32 = vadd.s32 %v731_v30, %v722_v5  ;;  %v6330_v44 = vshll.u32 %v802_v41, 8  ;;  %v952_v29 = vshrl.u32 %v951_v51, 23 }
  0xe5   : > { %v6332_v2 = vadd.s32 %v709_v1, %v700_v40  ;;  %v841_v19 = vsel %vm827_vm3, %v838_v6, %v840_v24  ;;  %v447_v53 = vadd.s32 127, %v446_v63  ;;  %v676_v11 = vsel %vm672_vm5, %v656_v16, %v6157_v49 }
  0xe6   : > { %v868_v26 = vshrl.u32 %v837_v9, 16  ;;  %vm589_vm8 = vcmp.lt.s32.totalorder %v6320_v14, 0  ;;  %v590_v25 = vsub.s32 0, %v6320_v14  ;;  %v678_v30 = vsel %vm674_vm6, %v6159_v55, %v677_v39 }
  0xe7   : > { %v6349_v8 = vadd.s32 %v6240_v58, %v721_v18  ;;  %v736_v41 = vadd.s32 1, %v732_v32  ;;  %v843_v17 = vand.u32 65535, %v6330_v44  ;;  %v846_v21 = vshrl.u32 %v841_v19, 16 }
  0xe8   : > { %v5540_v51 = vadd.s32 4294967169, %v952_v29  ;;  %v442_v49 = vsub.s32 32, %v6294_v34  ;;  %v679_v63 = vsel %vm673_vm7, %v676_v11, %v678_v30  ;;  %v426_v55 = vadd.s32 %v6099_v15, %v6086_v12 }
  0xe9   : > { %vm735_vm4 = vc.u32 %v6332_v2, %v6349_v8  ;;  %v6357_v1 = vmul.u32 %v868_v26, %v843_v17  ;;  %v448_v60 = vshll.u32 %v447_v53, 23  ;;  %v591_v58 = vsel %vm589_vm8, %v590_v25, %v6320_v14 }
  0xea   : > { %v737_v18 = vsel %vm735_vm4, %v736_v41, %v732_v32  ;;  %v6362_v5 = vmul.u32 %v846_v21, %v843_v17  ;;  %v867_v6 = vand.u32 65535, %v837_v9  ;;  %v958_v24 = vadd.s32 1, %v5540_v51 }
  0xeb   : > { %v444_v16 = vshrl.u32 %v426_v55, %v442_v49  ;;  %v733_v40 = vmul.u32 %v6193_v10, %v679_v63  ;;  %v844_v39 = vshrl.u32 %v6330_v44, 16  ;;  %v845_v3 = vand.u32 65535, %v841_v19  ;;  %v6369_v25 = vpop.permute.xlu2 %242 }
  0xec   : > { %v873_v29 = vshll.u32 %v6357_v1, 16  ;;  %v443_v11 = vshll.u32 %v6199_v42, %v6294_v34  ;;  %v449_v12 = vor.u32 4788187, %v448_v60  ;;  %v592_v15 = vclz %v591_v58 }
  0xed   : > { %v738_v53 = vadd.s32 %v737_v18, %v733_v40  ;;  %v851_v32 = vshll.u32 %v6362_v5, 16  ;;  %v869_v9 = vmul.u32 %v867_v6, %v843_v17  ;;  %v6372_v30 = vmul.u32 %v867_v6, %v844_v39 }
  0xee   : > { %vm959_vm5 = vcmp.gt.s32.totalorder %v958_v24, 0  ;;  %v445_v10 = vor.u32 %v444_v16, %v443_v11  ;;  %v847_v41 = vmul.u32 %v845_v3, %v843_v17  ;;  %v6374_v51 = vmul.u32 %v845_v3, %v844_v39 }
  0xef   : > { %vm877_vm6 = vc.u32 %v869_v9, %v873_v29  ;;  %v6376_v19 = vadd.s32 %v873_v29, %v869_v9  ;;  %v5532_v49 = vadd.s32 4294967294, %v592_v15  ;;  %v739_v34 = vadd.s32 536870912, %v738_v53 }
  0xf0   : > { %v960_v42 = vsel %vm959_vm5, %v958_v24, 0  ;;  %v450_v63 = vand.u32 2147483647, %v449_v12  ;;  %vm855_vm7 = vc.u32 %v847_v41, %v851_v32  ;;  %v857_v55 = vadd.s32 %v851_v32, %v847_v41 }
  0xf1   : > { %v875_v60 = vshll.u32 %v6372_v30, 16  ;;  %v452_v58 = vcvt.s32.f32 %v445_v10  ;;  %v878_v18 = vsel %vm877_vm6, 1, %v12377_v4  ;;  %v853_v6 = vshll.u32 %v6374_v51, 16 }
  0xf2   : > { %v872_v16 = vmul.u32 %v868_v26, %v844_v39  ;;  %v962_v17 = vand.u32 31, %v960_v42  ;;  %vm5533_vm10 = vcmp.lt.s32.totalorder %v5532_v49, 0  ;;  %v6384_v40 = vshrl.u32 %v739_v34, 30 }
  0xf3   : > { %vm881_vm9 = vc.u32 %v6376_v19, %v875_v60  ;;  %v856_v24 = vsel %vm855_vm7, 1, %v12377_v4  ;;  %v6387_v3 = vmul.f32 %v452_v58, %v450_v63  ;;  %v850_v29 = vmul.u32 %v846_v21, %v844_v39  ;;  %v6390_v15 = vpop.permute.xlu2 %257 }
  0xf4   : > { %12583 = vst [vmem:[#allocation9_spill] sm:$0xff] %v6384_v40  ;;  %vm859_vm11 = vc.u32 %v857_v55, %v853_v6  ;;  %v880_v11 = vadd.s32 %v878_v18, %v872_v16  ;;  %v882_v12 = vsel %vm881_vm9, 1, %v12377_v4  ;;  %v6394_v26 = vmul.f32 %v5931_v37, %v6336_v61 }
  0xf5   : > { %v6396_v32 = vsel %vm5533_vm10, 0, %v5532_v49  ;;  %v858_v9 = vadd.s32 %v856_v24, %v850_v29  ;;  %v6398_v10 = vsub.s32 32, %v962_v17  ;;  %v6402_v41 = vmul.f32 %v5937_v45, %v6336_v61 }
  0xf6   : > { %12584 = vst [vmem:[#allocation10_spill] sm:$0xff] %v6394_v26  ;;  %v6406_v21 = vmul.f32 %v5931_v37, %v6369_v25  ;;  %v741_v39 = vshll.u32 %v6384_v40, 30  ;;  %v860_v34 = vsel %vm859_vm11, 1, %v12377_v4  ;;  %v6412_v63 = vmul.f32 %v5937_v45, %v6242_v13  ;;  %v6426_v4 = vpop.permute.xlu1 %232 }
  0xf7   : > { %12585 = vst [vmem:[#allocation11_spill] sm:$0xff] %v6402_v41  ;;  %v580_v55 = vadd.s32 %v6223_v35, %v6208_v27  ;;  %v884_v58 = vadd.s32 %v882_v12, %v880_v11  ;;  %v596_v61 = vsub.s32 32, %v6396_v32  ;;  %v600_v6 = vsub.s32 4294967266, %v6396_v32 }
  0xf8   : > { %12586 = vst [vmem:[#allocation12_spill] sm:$0xff] %v6406_v21  ;;  %v12391_v16 = vand.u32 2147483647, %v6251_v7  ;;  %v862_v24 = vadd.s32 %v860_v34, %v858_v9  ;;  %v874_v29 = vshrl.u32 %v6357_v1, 16  ;;  %v974_v13 = vshll.u32 %v12389_v54, %v962_v17 }
  0xf9   : > { %12587 = vst [vmem:[#allocation13_spill] sm:$0xff] %v6412_v63  ;;  %v975_v23 = vshrl.u32 %v12381_v48, %v6398_v10  ;;  %v6428_v27 = vsub.s32 %v738_v53, %v741_v39  ;;  %v852_v35 = vshrl.u32 %v6362_v5, 16  ;;  %v977_v11 = vshll.u32 %v12381_v48, %v962_v17  ;;  %v6445_v48 = vpop.permute.xlu0 %247 }
  0xfa   : > { %v978_v12 = vshrl.u32 %v12383_v50, %v6398_v10  ;;  %v885_v56 = vadd.s32 %v884_v58, %v874_v29  ;;  %v6434_v9 = vshrl.u32 %v960_v42, 5  ;;  %v965_v1 = vshll.u32 %v12392_v0, %v962_v17 }
  0xfb   : > { %v968_v34 = vshll.u32 %v12385_v57, %v962_v17  ;;  %v966_v52 = vshrl.u32 %v12385_v57, %v6398_v10  ;;  %v969_v53 = vshrl.u32 %v12387_v59, %v6398_v10  ;;  %v971_v5 = vshll.u32 %v12387_v59, %v962_v17  ;;  %v273_v49 = vpop.permute.xlu2 %272 }
  0xfc   : > { %v972_v39 = vshrl.u32 %v12389_v54, %v6398_v10  ;;  %v601_v58 = vadd.s32 127, %v600_v6  ;;  %v863_v42 = vadd.s32 %v862_v24, %v852_v35  ;;  %v876_v29 = vshrl.u32 %v6372_v30, 16 }
  0xfd   : > { %v976_v50 = vor.u32 %v975_v23, %v974_v13  ;;  %vm334_vm12 = vcmp.lt.s32.totalorder %v5934_v38, 0  ;;  %v744_v18 = vsub.s32 0, %v6428_v27  ;;  %v810_v57 = vshrl.u32 %v12392_v0, %v6246_v46 }
  0xfe   : > { %v955_v17 = vand.u32 8388607, %v12391_v16  ;;  %v979_v59 = vor.u32 %v978_v12, %v977_v11  ;;  %vm743_vm13 = vcmp.lt.s32.totalorder %v6428_v27, 0  ;;  %v831_v6 = vsel %vm829_vm0, %v6288_v28, 2102212464 }
  0xff   : > { %v854_v23 = vshrl.u32 %v6374_v51, 16  ;;  %v886_v24 = vadd.s32 %v885_v56, %v876_v29  ;;  %v6459_v13 = vor.u32 %v966_v52, %v965_v1  ;;  %v6461_v35 = vor.u32 %v969_v53, %v968_v34 }
 0x100   : > { %v6463_v54 = vor.u32 %v972_v39, %v971_v5  ;;  %vm983_vm14 = vcmp.lt.s32.totalorder %v6434_v9, 4  ;;  %v598_v46 = vshrl.u32 %v580_v55, %v596_v61  ;;  %v602_v11 = vshll.u32 %v601_v58, 23 }
 0x101   : > { %v6466_v12 = vadd.s32 %v863_v42, %v854_v23  ;;  %v989_v16 = vsel %vm983_vm14, %v976_v50, 920167782  ;;  %v745_v28 = vsel %vm743_vm13, %v744_v18, %v6428_v27  ;;  %v830_v52 = vsel %vm826_vm1, %v810_v57, %v6284_v36  ;;  %v253_v18 = vpop.permute.xlu1 %252 }
 0x102   : > { %v993_v56 = vsel %vm983_vm14, %v979_v59, 1326507024  ;;  %v1105_v51 = vand.u32 2139095040, %v6412_v63  ;;  %v832_v55 = vsel %vm828_vm2, %v6286_v43, %v831_v6  ;;  %v6483_v61 = vadd.s32 %v6376_v19, %v875_v60 }
 0x103   : > { %vm980_vm15 = vcmp.lt.s32.totalorder %v6434_v9, 1  ;;  %vm982_vm0 = vcmp.lt.s32.totalorder %v6434_v9, 3  ;;  %v890_v57 = vadd.s32 1, %v886_v24  ;;  %v956_v36 = vor.u32 8388608, %v955_v17  ;;  %v288_v23 = vpop.permute.xlu2 %287 }
 0x104   : > { %v988_v59 = vsel %vm980_vm15, %v6459_v13, %v6461_v35  ;;  %v990_v43 = vsel %vm982_vm0, %v6463_v54, %v989_v16  ;;  %v746_v30 = vclz %v745_v28  ;;  %vm889_vm1 = vc.u32 %v6466_v12, %v6483_v61  ;;  %v263_v16 = vpop.permute.xlu0 %262 }
 0x105   : > { %v992_v19 = vsel %vm980_vm15, %v6461_v35, %v6463_v54  ;;  %v994_v60 = vsel %vm982_vm0, %v976_v50, %v993_v56  ;;  %v603_v1 = vor.u32 4788187, %v602_v11  ;;  %v833_v34 = vsel %vm827_vm3, %v830_v52, %v832_v55 }
 0x106   : > { %vm981_vm2 = vcmp.lt.s32.totalorder %v6434_v9, 2  ;;  %v1106_v53 = vshrl.u32 %v1105_v51, 23  ;;  %v6507_v5 = vmul.f32 %v5937_v45, %v6369_v25  ;;  %v6511_v39 = vmul.f32 %v5931_v37, %v6390_v15 }
 0x107   : > { %v12590_v58 = vxor.u32 2147483648, %v6387_v3  ;;  %v6520_v33 = vsel %vm981_vm2, %v988_v59, %v990_v43  ;;  %v12591_v42 = vshll.u32 %v6320_v14, %v6396_v32  ;;  %v891_v25 = vsel %vm889_vm1, %v890_v57, %v886_v24 }
 0x108   : > { %12588 = vst [vmem:[#allocation14_spill] sm:$0xff] %v6507_v5  ;;  %v6527_v17 = vsel %vm981_vm2, %v992_v19, %v994_v60  ;;  %v6529_v6 = vshll.u32 %v956_v36, 8  ;;  %v6533_v11 = vmul.f32 %v5937_v45, %v6390_v15  ;;  %v5535_v14 = vadd.s32 4294967294, %v746_v30 }
 0x109   : > { %12589 = vst [vmem:[#allocation15_spill] sm:$0xff] %v6511_v39  ;;  %v455_v50 = vsel %vm334_vm12, %v12590_v58, %v6387_v3  ;;  %v599_v29 = vor.u32 %v598_v46, %v12591_v42  ;;  %v12593_v3 = vand.u32 2147483647, %v5934_v38  ;;  %v887_v32 = vmul.u32 %v6330_v44, %v833_v34  ;;  %v268_v60 = vpop.permute.xlu1 %267 }
 0x10a   : > { %12592 = vst [vmem:[#allocation16_spill] sm:$0xff] %v6533_v11  ;;  %v604_v46 = vand.u32 2147483647, %v603_v1  ;;  %v12395_v52 = vshrl.u32 %v6520_v33, 16  ;;  %v5543_v56 = vadd.s32 4294967169, %v1106_v53  ;;  %v6549_v15 = vmul.f32 %v5931_v37, %v273_v49 }
 0x10b   : > { %vm6537_vm3 = vcmp.le.f32.partialorder %v12593_v3, 0.7853982  ;;  %v6552_v51 = vmul.f32 %v5937_v45, %v273_v49  ;;  %v6554_v55 = vadd.s32 %v891_v25, %v887_v32  ;;  %v12394_v57 = vshrl.u32 %v6527_v17, 16 }
 0x10c   : > { %v6545_v24 = vsel %vm6537_vm3, %v5934_v38, %v455_v50  ;;  %12596 = vst [vmem:[#allocation17_spill] sm:$0xff] %v6549_v15  ;;  %v6558_v44 = vmul.f32 %v5931_v37, %v288_v23  ;;  %v6561_v36 = vmul.f32 %v5937_v45, %v288_v23  ;;  %v606_v59 = vcvt.s32.f32 %v599_v29 }
 0x10d   : > { %12597 = vst [vmem:[#allocation18_spill] sm:$0xff] %v6552_v51  ;;  %v997_v43 = vand.u32 65535, %v6529_v6  ;;  %v6566_v30 = vmul.f32 %v5931_v37, %v6426_v4  ;;  %v6570_v49 = vmul.f32 %v5937_v45, %v6426_v4  ;;  %v6574_v19 = vmul.f32 %v6545_v24, %v6545_v24 }
 0x10e   : > { %12598 = vst [vmem:[#allocation19_spill] sm:$0xff] %v6558_v44  ;;  %vm488_vm8 = vcmp.lt.s32.totalorder %v5942_v47, 0  ;;  %vm5536_vm4 = vcmp.lt.s32.totalorder %v5535_v14, 0  ;;  %v6579_v1 = vmul.f32 %v5931_v37, %v6445_v48  ;;  %v607_v34 = vmul.f32 %v606_v59, %v604_v46 }
 0x10f   : > { %12599 = vst [vmem:[#allocation20_spill] sm:$0xff] %v6561_v36  ;;  %v6583_v53 = vmul.u32 %v12395_v52, %v997_v43  ;;  %v1112_v58 = vadd.s32 1, %v5543_v56  ;;  %v6587_v4 = vmul.f32 %v5937_v45, %v6445_v48  ;;  %v6590_v50 = vmul.f32 %v5931_v37, %v253_v18  ;;  %v278_v56 = vpop.permute.xlu0 %277 }
 0x110   : > { %12600 = vst [vmem:[#allocation21_spill] sm:$0xff] %v6566_v30  ;;  %v893_v42 = vadd.s32 536870912, %v6554_v55  ;;  %v6595_v29 = vmul.u32 %v12394_v57, %v997_v43  ;;  %v6598_v25 = vmul.f32 %v5937_v45, %v253_v18  ;;  %v6601_v23 = vmul.f32 %v5931_v37, %v263_v16 }
 0x111   : > { %12601 = vst [vmem:[#allocation22_spill] sm:$0xff] %v6570_v49  ;;  %v12607_v3 = vand.u32 2147483647, %v5942_v47  ;;  %v749_v32 = vsel %vm5536_vm4, 0, %v5535_v14  ;;  %v1021_v46 = vand.u32 65535, %v6520_v33  ;;  %v6611_v59 = vmul.f32 %v5937_v45, %v263_v16 }
 0x112   : > { %12602 = vst [vmem:[#allocation23_spill] sm:$0xff] %v6579_v1  ;;  %v6614_v0 = vmul.f32 %v5931_v37, %v268_v60  ;;  %v468_v18 = vmul.f32 -0.00019511016, %v6574_v19  ;;  %v999_v57 = vand.u32 65535, %v6527_v17  ;;  %v608_v52 = vxor.u32 2147483648, %v607_v34 }
 0x113   : > { %12603 = vst [vmem:[#allocation24_spill] sm:$0xff] %v6587_v4  ;;  %vm6605_vm5 = vcmp.le.f32.partialorder %v12607_v3, 0.7853982  ;;  %v998_v3 = vshrl.u32 %v6529_v6, 16  ;;  %v1027_v36 = vshll.u32 %v6583_v53, 16  ;;  %vm1113_vm6 = vcmp.gt.s32.totalorder %v1112_v58, 0 }
 0x114   : > { %12604 = vst [vmem:[#allocation25_spill] sm:$0xff] %v6590_v50  ;;  %v6621_v14 = vmul.f32 %v5937_v45, %v268_v60  ;;  %v754_v44 = vsub.s32 4294967266, %v749_v32  ;;  %v6623_v51 = vshrl.u32 %v893_v42, 30  ;;  %v1005_v16 = vshll.u32 %v6595_v29, 16 }
 0x115   : > { %12605 = vst [vmem:[#allocation26_spill] sm:$0xff] %v6598_v25  ;;  %v6627_v15 = vmul.f32 %v5931_v37, %v278_v56  ;;  %v469_v11 = vadd.f32 0.008332121, %v468_v18  ;;  %v1001_v39 = vmul.u32 %v999_v57, %v997_v43  ;;  %v6632_v25 = vmul.u32 %v999_v57, %v998_v3 }
 0x116   : > { %12606 = vst [vmem:[#allocation27_spill] sm:$0xff] %v6601_v23  ;;  %v6630_v23 = vmul.u32 %v1021_v46, %v998_v3  ;;  %v1114_v50 = vsel %vm1113_vm6, %v1112_v58, 0  ;;  %v609_v60 = vsel %vm488_vm8, %v608_v52, %v607_v34  ;;  %v750_v42 = vsub.s32 32, %v749_v32  ;;  %v6642_v58 = vpop.permute.xlu1 %282 }
 0x117   : > { %12610 = vst [vmem:[#allocation28_spill] sm:$0xff] %v6611_v59  ;;  %v1023_v59 = vmul.u32 %v1021_v46, %v997_v43  ;;  %v755_v4 = vadd.s32 127, %v754_v44  ;;  %vm1009_vm9 = vc.u32 %v1001_v39, %v1005_v16  ;;  %v1011_v1 = vadd.s32 %v1005_v16, %v1001_v39 }
 0x118   : > { %12611 = vst [vmem:[#allocation29_spill] sm:$0xff] %v6614_v0  ;;  %v461_v0 = vmul.f32 -0.001358992, %v6574_v19  ;;  %v734_v46 = vadd.s32 %v6349_v8, %v6332_v2  ;;  %v12413_v57 = vshll.u32 %v6630_v23, 16  ;;  %v1116_v43 = vand.u32 31, %v1114_v50 }
 0x119   : > { %12612 = vst [vmem:[#allocation30_spill] sm:$0xff] %v6621_v14  ;;  %vm1031_vm7 = vc.u32 %v1023_v59, %v1027_v36  ;;  %v6636_v14 = vadd.s32 %v1027_v36, %v1023_v59  ;;  %v470_v52 = vmul.f32 %v469_v11, %v6574_v19  ;;  %v6648_v36 = vsel %vm6605_vm5, %v5942_v47, %v609_v60 }
 0x11a   : > { %12613 = vst [vmem:[#allocation31_spill] sm:$0xff] %v6623_v51  ;;  %v462_v5 = vadd.f32 0.041655596, %v461_v0  ;;  %v1007_v44 = vshll.u32 %v6632_v25, 16  ;;  %v12615_v34 = vmov 0   ;;  %v752_v0 = vshrl.u32 %v734_v46, %v750_v42 }
 0x11b   : > { %12614 = vst [vmem:[#allocation32_spill] sm:$0xff] %v6627_v15  ;;  %v895_v15 = vshll.u32 %v6623_v51, 30  ;;  %v1032_v39 = vsel %vm1031_vm7, 1, %v12615_v34  ;;  %v1010_v59 = vsel %vm1009_vm9, 1, %v12615_v34  ;;  %v12616_v2 = vshrl.u32 %v6520_v33, 16 }
 0x11c   : > { %vm1035_vm10 = vc.u32 %v6636_v14, %v12413_v57  ;;  %v756_v11 = vshll.u32 %v755_v4, 23  ;;  %v12617_v16 = vshrl.u32 %v6527_v17, 16  ;;  %vm1013_vm11 = vc.u32 %v1011_v1, %v1007_v44 }
 0x11d   : > { %v1026_v8 = vmul.u32 %v12616_v2, %v998_v3  ;;  %v6659_v18 = vsub.s32 %v6554_v55, %v895_v15  ;;  %v6664_v21 = vmul.f32 %v5937_v45, %v278_v56  ;;  %v6668_v42 = vmul.f32 %v5931_v37, %v6642_v58 }
 0x11e   : > { %v1004_v60 = vmul.u32 %v12617_v16, %v998_v3  ;;  %v6670_v46 = vsub.s32 32, %v1116_v43  ;;  %v751_v4 = vshll.u32 %v6428_v27, %v749_v32  ;;  %v1036_v55 = vsel %vm1035_vm10, 1, %v12615_v34 }
 0x11f   : > { %12618 = vst [vmem:[#allocation33_spill] sm:$0xff] %v6664_v21  ;;  %v1034_v33 = vadd.s32 %v1032_v39, %v1026_v8  ;;  %v6676_v17 = vmul.f32 %v462_v5, %v6574_v19  ;;  %v6678_v1 = vadd.f32 -0.16666654, %v470_v52  ;;  %v6682_v56 = vmul.f32 %v6648_v36, %v6648_v36 }
 0x120   : > { %12619 = vst [vmem:[#allocation34_spill] sm:$0xff] %v6668_v42  ;;  %v1012_v15 = vadd.s32 %v1010_v59, %v1004_v60  ;;  %v1014_v3 = vsel %vm1013_vm11, 1, %v12615_v34  ;;  %v753_v44 = vor.u32 %v752_v0, %v751_v4  ;;  %v757_v39 = vor.u32 4788187, %v756_v11 }
 0x121   : > { %vm897_vm13 = vcmp.lt.s32.totalorder %v6659_v18, 0  ;;  %v898_v32 = vsub.s32 0, %v6659_v18  ;;  %v1038_v59 = vadd.s32 %v1036_v55, %v1034_v33  ;;  %v12620_v8 = vmov 2102212464  }
 0x122   : > { %v1128_v5 = vshll.u32 %v12620_v8, %v1116_v43  ;;  %v12621_v52 = vmov 920167782   ;;  %v1006_v60 = vshrl.u32 %v6595_v29, 16  ;;  %v1016_v2 = vadd.s32 %v1014_v3, %v1012_v15 }
 0x123   : > { %v1129_v16 = vshrl.u32 %v12621_v52, %v6670_v46  ;;  %v1131_v57 = vshll.u32 %v12621_v52, %v1116_v43  ;;  %v12622_v0 = vmov 1326507024   ;;  %v1028_v4 = vshrl.u32 %v6583_v53, 16 }
 0x124   : > { %v1132_v11 = vshrl.u32 %v12622_v0, %v6670_v46  ;;  %v6696_v42 = vshrl.u32 %v1114_v50, 5  ;;  %v12623_v27 = vmov 683565275   ;;  %v12624_v33 = vmov 2475754826  }
 0x125   : > { %v1119_v21 = vshll.u32 %v12623_v27, %v1116_v43  ;;  %v1122_v55 = vshll.u32 %v12624_v33, %v1116_v43  ;;  %v1120_v41 = vshrl.u32 %v12624_v33, %v6670_v46  ;;  %v12625_v7 = vmov 2131351028  }
 0x126   : > { %v1123_v29 = vshrl.u32 %v12625_v7, %v6670_v46  ;;  %v1125_v15 = vshll.u32 %v12625_v7, %v1116_v43  ;;  %v1126_v3 = vshrl.u32 %v12620_v8, %v6670_v46  ;;  %v758_v26 = vand.u32 2147483647, %v757_v39 }
 0x127   : > { %v760_v51 = vcvt.s32.f32 %v753_v44  ;;  %v1039_v53 = vadd.s32 %v1038_v59, %v1028_v4  ;;  %v1130_v50 = vor.u32 %v1129_v16, %v1128_v5  ;;  %v964_v40 = vshrl.u32 %v12623_v27, %v6398_v10 }
 0x128   : > { %v985_v22 = vsel %vm983_vm14, %v6463_v54, 2102212464  ;;  %v1017_v33 = vadd.s32 %v1016_v2, %v1006_v60  ;;  %v1133_v49 = vor.u32 %v1132_v11, %v1131_v57  ;;  %v899_v43 = vsel %vm897_vm13, %v898_v32, %v6659_v18 }
 0x129   : > { %v1008_v7 = vshrl.u32 %v6632_v25, 16  ;;  %v1030_v39 = vshrl.u32 %v6630_v23, 16  ;;  %v12626_v44 = vand.u32 2147483647, %v6412_v63  ;;  %v6719_v5 = vor.u32 %v1120_v41, %v1119_v21 }
 0x12a   : > { %v6721_v10 = vor.u32 %v1123_v29, %v1122_v55  ;;  %v6723_v16 = vor.u32 %v1126_v3, %v1125_v15  ;;  %vm1137_vm14 = vcmp.lt.s32.totalorder %v6696_v42, 4  ;;  %v622_v54 = vmul.f32 -0.00019511016, %v6682_v56 }
 0x12b   : > { %v1109_v59 = vand.u32 8388607, %v12626_v44  ;;  %v1040_v57 = vadd.s32 %v1039_v53, %v1030_v39  ;;  %v1143_v2 = vsel %vm1137_vm14, %v1130_v50, 920167782  ;;  %v1259_v25 = vand.u32 2139095040, %v6566_v30 }
 0x12c   : > { %v761_v32 = vmul.f32 %v760_v51, %v758_v26  ;;  %v984_v41 = vsel %vm980_vm15, %v964_v40, %v6459_v13  ;;  %v6733_v21 = vadd.s32 %v1017_v33, %v1008_v7  ;;  %v1147_v60 = vsel %vm1137_vm14, %v1133_v49, 1326507024 }
 0x12d   : > { %v900_v11 = vclz %v899_v43  ;;  %v986_v4 = vsel %vm982_vm0, %v6461_v35, %v985_v22  ;;  %vm1134_vm1 = vcmp.lt.s32.totalorder %v6696_v42, 1  ;;  %vm1136_vm4 = vcmp.lt.s32.totalorder %v6696_v42, 3 }
 0x12e   : > { %vm642_vm6 = vcmp.lt.s32.totalorder %v6005_v31, 0  ;;  %v12627_v26 = vshll.u32 %v6630_v23, 16  ;;  %v1110_v7 = vor.u32 8388608, %v1109_v59  ;;  %v1142_v13 = vsel %vm1134_vm1, %v6719_v5, %v6721_v10 }
 0x12f   : > { %v1144_v22 = vsel %vm1136_vm4, %v6723_v16, %v1143_v2  ;;  %v1044_v35 = vadd.s32 1, %v1040_v57  ;;  %v1146_v51 = vsel %vm1134_vm1, %v6721_v10, %v6723_v16  ;;  %v1148_v49 = vsel %vm1136_vm4, %v1130_v50, %v1147_v60 }
 0x130   : > { %v6746_v40 = vadd.s32 %v6636_v14, %v12627_v26  ;;  %v1260_v23 = vshrl.u32 %v1259_v25, 23  ;;  %v12628_v14 = vsub.s32 4, %v6168_v20  ;;  %v615_v55 = vmul.f32 -0.001358992, %v6682_v56 }
 0x131   : > { %vm1135_vm0 = vcmp.lt.s32.totalorder %v6696_v42, 2  ;;  %v623_v29 = vadd.f32 0.008332121, %v622_v54  ;;  %v12629_v15 = vand.u32 2147483647, %v6005_v31  ;;  %v5538_v53 = vadd.s32 4294967294, %v900_v11 }
 0x132   : > { %v457_v33 = vsel %vm334_vm12, %v12628_v14, %v6168_v20  ;;  %vm1043_vm15 = vc.u32 %v6733_v21, %v6746_v40  ;;  %v987_v50 = vsel %vm981_vm2, %v984_v41, %v986_v4  ;;  %v6780_v20 = vsel %vm1135_vm0, %v1142_v13, %v1144_v22  ;;  %v293_v41 = vpop.permute.xlu0 %292 }
 0x133   : > { %vm6772_vm7 = vcmp.le.f32.partialorder %v12629_v15, 0.7853982  ;;  %v464_v43 = vadd.f32 -0.4999988, %v6676_v17  ;;  %v610_v39 = vsub.s32 4, %v6275_v62  ;;  %v6786_v44 = vsel %vm1135_vm0, %v1146_v51, %v1148_v49 }
 0x134   : > { %v6788_v59 = vshll.u32 %v1110_v7, 8  ;;  %v472_v54 = vmul.f32 %v6678_v1, %v6574_v19  ;;  %v762_v2 = vxor.u32 2147483648, %v761_v32  ;;  %v1045_v9 = vsel %vm1043_vm15, %v1044_v35, %v1040_v57 }
 0x135   : > { %v5546_v25 = vadd.s32 4294967169, %v1260_v23  ;;  %v6794_v60 = vmul.f32 %v5937_v45, %v6642_v58  ;;  %v616_v17 = vadd.f32 0.041655596, %v615_v55  ;;  %v1041_v11 = vmul.u32 %v6529_v6, %v987_v50 }
 0x136   : > { %v12429_v4 = vshrl.u32 %v6780_v20, 16  ;;  %v459_v26 = vsel %vm6537_vm3, 0, %v457_v33  ;;  %v624_v7 = vmul.f32 %v623_v29, %v6682_v56  ;;  %vm5539_vm12 = vcmp.lt.s32.totalorder %v5538_v53, 0 }
 0x137   : > { %12632 = vst [vmem:[#allocation35_spill] sm:$0xff] %v6794_v60  ;;  %v1154_v1 = vshrl.u32 %v6786_v44, 16  ;;  %v465_v57 = vmul.f32 %v464_v43, %v6574_v19  ;;  %v6806_v58 = vsel %vm488_vm8, %v610_v39, %v6275_v62  ;;  %v6808_v13 = vadd.s32 %v1045_v9, %v1041_v11 }
 0x138   : > { %v1151_v6 = vand.u32 65535, %v6788_v59  ;;  %v6812_v22 = vmul.f32 %v5931_v37, %v293_v41  ;;  %v473_v28 = vadd.f32 1.0, %v472_v54  ;;  %v763_v35 = vsel %vm642_vm6, %v762_v2, %v761_v32 }
 0x139   : > { %v1266_v51 = vadd.s32 1, %v5546_v25  ;;  %v6817_v49 = vmul.f32 %v5937_v45, %v293_v41  ;;  %v617_v19 = vmul.f32 %v616_v17, %v6682_v56  ;;  %v903_v23 = vsel %vm5539_vm12, 0, %v5538_v53 }
 0x13a   : > { %12633 = vst [vmem:[#allocation36_spill] sm:$0xff] %v6812_v22  ;;  %v6822_v62 = vmul.u32 %v12429_v4, %v1151_v6  ;;  %v6824_v14 = vand.u32 3, %v459_v26  ;;  %v613_v37 = vsel %vm6605_vm5, 0, %v6806_v58  ;;  %v625_v33 = vadd.f32 -0.16666654, %v624_v7 }
 0x13b   : > { %12634 = vst [vmem:[#allocation37_spill] sm:$0xff] %v6817_v49  ;;  %v6829_v55 = vmul.u32 %v1154_v1, %v1151_v6  ;;  %v6831_v32 = vadd.f32 1.0, %v465_v57  ;;  %v6836_v45 = vsel %vm6772_vm7, %v6005_v31, %v763_v35  ;;  %v1047_v29 = vadd.s32 536870912, %v6808_v13 }
 0x13c   : > { %v1175_v15 = vand.u32 65535, %v6780_v20  ;;  %v6841_v53 = vmul.f32 %v473_v28, %v6545_v24  ;;  %v904_v50 = vsub.s32 32, %v903_v23  ;;  %v1153_v48 = vand.u32 65535, %v6786_v44 }
 0x13d   : > { %vm1267_vm2 = vcmp.gt.s32.totalorder %v1266_v51, 0  ;;  %v618_v43 = vadd.f32 -0.4999988, %v617_v19  ;;  %v908_v39 = vsub.s32 4294967266, %v903_v23  ;;  %v1152_v54 = vshrl.u32 %v6788_v59, 16 }
 0x13e   : > { %v1181_v2 = vshll.u32 %v6822_v62, 16  ;;  %v626_v9 = vmul.f32 %v625_v33, %v6682_v56  ;;  %v6849_v25 = vmul.f32 %v6836_v45, %v6836_v45  ;;  %v888_v24 = vadd.s32 %v6483_v61, %v6466_v12 }
 0x13f   : > { %v1159_v41 = vshll.u32 %v6829_v55, 16  ;;  %vm481_vm3 = vcmp.eq.s32.totalorder %v6824_v14, 2  ;;  %v6855_v44 = vshrl.u32 %v1047_v29, 30  ;;  %v1177_v17 = vmul.u32 %v1175_v15, %v1151_v6 }
 0x140   : > { %v6857_v11 = vmul.u32 %v1175_v15, %v1152_v54  ;;  %v1268_v26 = vsel %vm1267_vm2, %v1266_v51, 0  ;;  %v482_v7 = vxor.u32 2147483648, %v6831_v32  ;;  %v906_v57 = vshrl.u32 %v888_v24, %v904_v50 }
 0x141   : > { %12635 = vst [vmem:[#allocation38_spill] sm:$0xff] %v6855_v44  ;;  %v1155_v58 = vmul.u32 %v1153_v48, %v1151_v6  ;;  %v6860_v28 = vmul.u32 %v1153_v48, %v1152_v54  ;;  %v619_v35 = vmul.f32 %v618_v43, %v6682_v56  ;;  %v909_v19 = vadd.s32 127, %v908_v39 }
 0x142   : > { %vm1185_vm8 = vc.u32 %v1177_v17, %v1181_v2  ;;  %v6863_v12 = vadd.s32 %v1181_v2, %v1177_v17  ;;  %v905_v61 = vshll.u32 %v6659_v18, %v903_v23  ;;  %v1270_v29 = vand.u32 31, %v1268_v26 }
 0x143   : > { %vm1163_vm5 = vc.u32 %v1155_v58, %v1159_v41  ;;  %v1165_v33 = vadd.s32 %v1159_v41, %v1155_v58  ;;  %v627_v15 = vadd.f32 1.0, %v626_v9  ;;  %v769_v51 = vmul.f32 -0.001358992, %v6849_v25 }
 0x144   : > { %v1049_v4 = vshll.u32 %v6855_v44, 30  ;;  %v12431_v6 = vshll.u32 %v6857_v11, 16  ;;  %v776_v50 = vmul.f32 -0.00019511016, %v6849_v25  ;;  %v6870_v48 = vor.u32 %v906_v57, %v905_v61 }
 0x145   : > { %v1161_v56 = vshll.u32 %v6860_v28, 16  ;;  %v1186_v43 = vsel %vm1185_vm8, 1, %v12615_v34  ;;  %v910_v39 = vshll.u32 %v909_v19, 23  ;;  %v1164_v18 = vsel %vm1163_vm5, 1, %v12615_v34 }
 0x146   : > { %v12636_v23 = vshrl.u32 %v6780_v20, 16  ;;  %vm1189_vm9 = vc.u32 %v6863_v12, %v12431_v6  ;;  %v1158_v9 = vmul.u32 %v1154_v1, %v1152_v54  ;;  %v12430_v24 = vand.u32 2147483647, %v6566_v30 }
 0x147   : > { %vm1167_vm10 = vc.u32 %v1165_v33, %v1161_v56  ;;  %v6881_v41 = vsub.s32 32, %v1270_v29  ;;  %v6884_v57 = vand.u32 3, %v613_v37  ;;  %v6887_v58 = vsub.s32 %v6808_v13, %v1049_v4 }
 0x148   : > { %v1180_v2 = vmul.u32 %v12636_v23, %v1152_v54  ;;  %v6892_v20 = vsel %vm481_vm3, %v482_v7, %v6841_v53  ;;  %v6894_v61 = vadd.f32 1.0, %v619_v35  ;;  %v1166_v1 = vadd.s32 %v1164_v18, %v1158_v9  ;;  %v12638_v18 = vld [vmem:[#allocation22_spill] sm:$0xff] }
 0x149   : > { %12637 = vst [vmem:[#allocation39_spill] sm:$0xff] %v6881_v41  ;;  %v1190_v54 = vsel %vm1189_vm9, 1, %v12615_v34  ;;  %v6898_v33 = vmul.f32 %v627_v15, %v6648_v36  ;;  %v6900_v56 = vadd.f32 0.041655596, %v769_v51  ;;  %v6902_v37 = vadd.f32 0.008332121, %v776_v50 }
 0x14a   : > { %v1188_v19 = vadd.s32 %v1186_v43, %v1180_v2  ;;  %v1168_v4 = vsel %vm1167_vm10, 1, %v12615_v34  ;;  %v911_v13 = vor.u32 4788187, %v910_v39  ;;  %v914_v43 = vcvt.s32.f32 %v6870_v48 }
 0x14b   : > { %v6908_v7 = vand.u32 8388607, %v12430_v24  ;;  %v1286_v35 = vshrl.u32 %v12622_v0, %v6881_v41  ;;  %vm1051_vm11 = vcmp.lt.s32.totalorder %v6887_v58, 0  ;;  %v1052_v36 = vsub.s32 0, %v6887_v58 }
 0x14c   : > { %v1192_v15 = vadd.s32 %v1190_v54, %v1188_v19  ;;  %v1283_v51 = vshrl.u32 %v12621_v52, %v6881_v41  ;;  %v1170_v50 = vadd.s32 %v1168_v4, %v1166_v1  ;;  %v1182_v39 = vshrl.u32 %v6822_v62, 16 }
 0x14d   : > { %v1285_v48 = vshll.u32 %v12621_v52, %v1270_v29  ;;  %v1413_v23 = vand.u32 2139095040, %v12638_v18  ;;  %v6919_v2 = vshrl.u32 %v1268_v26, 5  ;;  %v12639_v9 = vmov 2131351028  }
 0x14e   : > { %v1277_v24 = vshrl.u32 %v12639_v9, %v6881_v41  ;;  %v1280_v17 = vshrl.u32 %v12620_v8, %v6881_v41  ;;  %v1282_v19 = vshll.u32 %v12620_v8, %v1270_v29  ;;  %v1118_v54 = vshrl.u32 %v12623_v27, %v6670_v46 }
 0x14f   : > { %v1160_v1 = vshrl.u32 %v6829_v55, 16  ;;  %v12640_v62 = vmov 2475754826   ;;  %v1287_v6 = vor.u32 %v1286_v35, %v1285_v48  ;;  %v1193_v49 = vadd.s32 %v1192_v15, %v1182_v39 }
 0x150   : > { %v1274_v4 = vshrl.u32 %v12640_v62, %v6881_v41  ;;  %v1276_v26 = vshll.u32 %v12640_v62, %v1270_v29  ;;  %v1279_v22 = vshll.u32 %v12639_v9, %v1270_v29  ;;  %v1284_v60 = vor.u32 %v1283_v51, %v1282_v19 }
 0x151   : > { %vm478_vm13 = vcmp.eq.s32.totalorder %v6824_v14, 0  ;;  %v1053_v30 = vsel %vm1051_vm11, %v1052_v36, %v6887_v58  ;;  %v1171_v63 = vadd.s32 %v1170_v50, %v1160_v1  ;;  %v1273_v46 = vshll.u32 %v12623_v27, %v1270_v29 }
 0x152   : > { %v1414_v55 = vshrl.u32 %v1413_v23, 23  ;;  %v1184_v44 = vshrl.u32 %v6857_v11, 16  ;;  %v6939_v41 = vor.u32 %v1277_v24, %v1276_v26  ;;  %v6941_v35 = vor.u32 %v1280_v17, %v1279_v22 }
 0x153   : > { %vm1291_vm15 = vcmp.lt.s32.totalorder %v6919_v2, 4  ;;  %v912_v15 = vand.u32 2147483647, %v911_v13  ;;  %v1162_v51 = vshrl.u32 %v6860_v28, 16  ;;  %v6945_v39 = vor.u32 %v1274_v4, %v1273_v46 }
 0x154   : > { %v1301_v36 = vsel %vm1291_vm15, %v1287_v6, 1326507024  ;;  %v1054_v50 = vclz %v1053_v30  ;;  %v1139_v29 = vsel %vm1137_vm14, %v6723_v16, 2102212464  ;;  %v1194_v48 = vadd.s32 %v1193_v49, %v1184_v44 }
 0x155   : > { %v1297_v22 = vsel %vm1291_vm15, %v1284_v60, 920167782  ;;  %vm477_vm12 = vcmp.lt.s32.totalorder %v6824_v14, 2  ;;  %v6955_v24 = vadd.s32 %v1171_v63, %v1162_v51  ;;  %vm1288_vm2 = vcmp.lt.s32.totalorder %v6919_v2, 1 }
 0x156   : > { %vm1290_vm3 = vcmp.lt.s32.totalorder %v6919_v2, 3  ;;  %v5549_v28 = vadd.s32 4294967169, %v1414_v55  ;;  %vm632_vm8 = vcmp.eq.s32.totalorder %v6884_v57, 0  ;;  %v1138_v30 = vsel %vm1134_vm1, %v1118_v54, %v6719_v5  ;;  %v12643_v54 = vld [vmem:[#allocation7_spill] sm:$0xff] }
 0x157   : > { %v1264_v16 = vor.u32 8388608, %v6908_v7  ;;  %v1300_v49 = vsel %vm1288_vm2, %v6939_v41, %v6941_v35  ;;  %v1302_v63 = vsel %vm1290_vm3, %v1284_v60, %v1301_v36  ;;  %v1140_v44 = vsel %vm1136_vm4, %v6721_v10, %v1139_v29 }
 0x158   : > { %v12641_v6 = vshll.u32 %v6857_v11, 16  ;;  %v1296_v5 = vsel %vm1288_vm2, %v6945_v39, %v6939_v41  ;;  %v1298_v13 = vsel %vm1290_vm3, %v6941_v35, %v1297_v22  ;;  %vm475_vm14 = vweird.f32 %v5934_v38 }
 0x159   : > { %v915_v60 = vmul.f32 %v914_v43, %v912_v15  ;;  %v5541_v7 = vadd.s32 4294967294, %v1054_v50  ;;  %v1198_v23 = vadd.s32 1, %v1194_v48  ;;  %vm12442_vm1 = vcmp.lt.s32.totalorder %v6919_v2, 2 }
 0x15a   : > { %v6976_v17 = vadd.s32 %v6863_v12, %v12641_v6  ;;  %vm631_vm4 = vcmp.lt.s32.totalorder %v6884_v57, 2  ;;  %v778_v10 = vmul.f32 %v6902_v37, %v6849_v25  ;;  %v6994_v11 = vsel %vm12442_vm1, %v1300_v49, %v1302_v63 }
 0x15b   : > { %v1420_v12 = vadd.s32 1, %v5549_v28  ;;  %v12642_v19 = vxor.u32 2147483648, %v6841_v53  ;;  %v12644_v1 = vand.u32 2147483647, %v12643_v54  ;;  %v1141_v37 = vsel %vm1135_vm0, %v1138_v30, %v1140_v44 }
 0x15c   : > { %vm1197_vm5 = vc.u32 %v6955_v24, %v6976_v17  ;;  %v7011_v26 = vsel %vm12442_vm1, %v1296_v5, %v1298_v13  ;;  %v7013_v46 = vshll.u32 %v1264_v16, 8  ;;  %v633_v53 = vxor.u32 2147483648, %v6898_v33 }
 0x15d   : > { %v480_v43 = vsel %vm478_vm13, %v6831_v32, %v12642_v19  ;;  %vm7003_vm9 = vcmp.le.f32.partialorder %v12644_v1, 0.7853982  ;;  %v636_v55 = vxor.u32 2147483648, %v6894_v61  ;;  %v12647_v32 = vld [vmem:[#allocation9_spill] sm:$0xff]  ;;  %v771_v51 = vmul.f32 %v6900_v56, %v6849_v25 }
 0x15e   : > { %v764_v15 = vsub.s32 4, %v12647_v32  ;;  %vm629_vm10 = vweird.f32 %v5942_v47  ;;  %v916_v36 = vxor.u32 2147483648, %v915_v60  ;;  %vm5542_vm11 = vcmp.lt.s32.totalorder %v5541_v7, 0 }
 0x15f   : > { %v1199_v42 = vsel %vm1197_vm5, %v1198_v23, %v1194_v48  ;;  %v1308_v50 = vshrl.u32 %v6994_v11, 16  ;;  %v779_v29 = vadd.f32 -0.16666654, %v778_v10  ;;  %v1195_v22 = vmul.u32 %v6788_v59, %v1141_v37 }
 0x160   : > { %v1330_v28 = vshrl.u32 %v7011_v26, 16  ;;  %vm1421_vm0 = vcmp.gt.s32.totalorder %v1420_v12, 0  ;;  %v484_v30 = vsel %vm477_vm12, %v480_v43, %v6892_v20  ;;  %vm635_vm13 = vcmp.eq.s32.totalorder %v6884_v57, 2  ;;  %v12649_v43 = vld [vmem:[#allocation31_spill] sm:$0xff] }
 0x161   : > { %vm796_vm1 = vcmp.lt.s32.totalorder %v12643_v54, 0  ;;  %v1305_v56 = vand.u32 65535, %v7013_v46  ;;  %v634_v48 = vsel %vm632_vm8, %v6894_v61, %v633_v53  ;;  %v765_v59 = vsel %vm642_vm6, %v764_v15, %v12647_v32 }
 0x162   : > { %v7036_v16 = vsel %vm5542_vm11, 0, %v5541_v7  ;;  %v7038_v49 = vadd.s32 %v1199_v42, %v1195_v22  ;;  %v772_v14 = vadd.f32 -0.4999988, %v771_v51  ;;  %v917_v20 = vsel %vm796_vm1, %v916_v36, %v915_v60 }
 0x163   : > { %v7044_v63 = vmul.u32 %v1308_v50, %v1305_v56  ;;  %v1422_v44 = vsel %vm1421_vm0, %v1420_v12, 0  ;;  %v7048_v61 = vsel %vm475_vm14, nan, %v484_v30  ;;  %v637_v6 = vsel %vm635_vm13, %v636_v55, %v6898_v33 }
 0x164   : > { %12648 = vst [vmem:[#allocation9_spill] sm:$0xff] %v7048_v61  ;;  %v780_v5 = vmul.f32 %v779_v29, %v6849_v25  ;;  %v7052_v13 = vmul.u32 %v1330_v28, %v1305_v56  ;;  %v638_v7 = vsel %vm631_vm4, %v634_v48, %v637_v6  ;;  %v767_v60 = vsel %vm6772_vm7, 0, %v765_v59 }
 0x165   : > { %v1062_v23 = vsub.s32 4294967266, %v7036_v16  ;;  %v1307_v10 = vand.u32 65535, %v6994_v11  ;;  %v7063_v38 = vsel %vm7003_vm9, %v12643_v54, %v917_v20  ;;  %v1201_v33 = vadd.s32 536870912, %v7038_v49 }
 0x166   : > { %v1329_v12 = vand.u32 65535, %v7011_v26  ;;  %v1424_v19 = vand.u32 31, %v1422_v44  ;;  %v773_v57 = vmul.f32 %v772_v14, %v6849_v25  ;;  %v918_v1 = vsub.s32 4, %v12649_v43 }
 0x167   : > { %v1306_v3 = vshrl.u32 %v7013_v46, 16  ;;  %v1313_v37 = vshll.u32 %v7044_v63, 16  ;;  %v7073_v53 = vsel %vm629_vm10, nan, %v638_v7  ;;  %v781_v55 = vadd.f32 1.0, %v780_v5 }
 0x168   : > { %12650 = vst [vmem:[#allocation31_spill] sm:$0xff] %v7073_v53  ;;  %v7075_v32 = vand.u32 3, %v767_v60  ;;  %v1335_v15 = vshll.u32 %v7052_v13, 16  ;;  %v7080_v26 = vmul.f32 %v7063_v38, %v7063_v38  ;;  %v1063_v25 = vadd.s32 127, %v1062_v23 }
 0x169   : > { %v1309_v51 = vmul.u32 %v1307_v10, %v1305_v56  ;;  %v7082_v36 = vmul.u32 %v1307_v10, %v1306_v3  ;;  %v7084_v42 = vshrl.u32 %v1201_v33, 30  ;;  %v1331_v29 = vmul.u32 %v1329_v12, %v1305_v56 }
 0x16a   : > { %v7086_v22 = vmul.u32 %v1329_v12, %v1306_v3  ;;  %v7088_v47 = vsub.s32 32, %v1424_v19  ;;  %v7090_v30 = vadd.f32 1.0, %v773_v57  ;;  %v7095_v48 = vsel %vm796_vm1, %v918_v1, %v12649_v43 }
 0x16b   : > { %12651 = vst [vmem:[#allocation40_spill] sm:$0xff] %v7084_v42  ;;  %vm1317_vm6 = vc.u32 %v1309_v51, %v1313_v37  ;;  %v1319_v59 = vadd.s32 %v1313_v37, %v1309_v51  ;;  %v7098_v14 = vmul.f32 %v781_v55, %v6836_v45  ;;  %v1042_v20 = vadd.s32 %v6746_v40, %v6733_v21 }
 0x16c   : > { %vm1339_vm7 = vc.u32 %v1331_v29, %v1335_v15  ;;  %v7102_v56 = vadd.s32 %v1335_v15, %v1331_v29  ;;  %v7105_v6 = vmul.f32 -0.001358992, %v7080_v26  ;;  %v1058_v5 = vsub.s32 32, %v7036_v16 }
 0x16d   : > { %v1064_v7 = vshll.u32 %v1063_v25, 23  ;;  %v1315_v60 = vshll.u32 %v7082_v36, 16  ;;  %v1203_v23 = vshll.u32 %v7084_v42, 30  ;;  %v1318_v10 = vsel %vm1317_vm6, 1, %v12615_v34 }
 0x16e   : > { %v12443_v45 = vshll.u32 %v7086_v22, 16  ;;  %v1437_v21 = vshrl.u32 %v12621_v52, %v7088_v47  ;;  %v1334_v33 = vmul.u32 %v1330_v28, %v1306_v3  ;;  %v1340_v12 = vsel %vm1339_vm7, 1, %v12615_v34 }
 0x16f   : > { %vm7114_vm12 = vc.u32 %v1319_v59, %v1315_v60  ;;  %v1440_v57 = vshrl.u32 %v12622_v0, %v7088_v47  ;;  %v7129_v37 = vshrl.u32 %v1422_v44, 5  ;;  %v1436_v55 = vshll.u32 %v12620_v8, %v1424_v19  ;;  %v12656_v44 = vld [vmem:[#allocation10_spill] sm:$0xff] }
 0x170   : > { %vm7124_vm8 = vc.u32 %v7102_v56, %v12443_v45  ;;  %v1428_v28 = vshrl.u32 %v12640_v62, %v7088_v47  ;;  %v1431_v15 = vshrl.u32 %v12639_v9, %v7088_v47  ;;  %v1434_v25 = vshrl.u32 %v12620_v8, %v7088_v47 }
 0x171   : > { %v1439_v51 = vshll.u32 %v12621_v52, %v1424_v19  ;;  %v1312_v29 = vmul.u32 %v1308_v50, %v1306_v3  ;;  %v1342_v59 = vadd.s32 %v1340_v12, %v1334_v33  ;;  %v1438_v60 = vor.u32 %v1437_v21, %v1436_v55 }
 0x172   : > { %v1567_v45 = vand.u32 2139095040, %v12656_v44  ;;  %v1427_v1 = vshll.u32 %v12623_v27, %v1424_v19  ;;  %v1430_v53 = vshll.u32 %v12640_v62, %v1424_v19  ;;  %v1433_v61 = vshll.u32 %v12639_v9, %v1424_v19 }
 0x173   : > { %v1441_v42 = vor.u32 %v1440_v57, %v1439_v51  ;;  %v1320_v54 = vadd.s32 %v1318_v10, %v1312_v29  ;;  %v1322_v31 = vsel %vm7114_vm12, 1, %v12615_v34  ;;  %v1344_v11 = vsel %vm7124_vm8, 1, %v12615_v34 }
 0x174   : > { %v12657_v50 = vand.u32 2147483647, %v12638_v18  ;;  %v7153_v21 = vor.u32 %v1428_v28, %v1427_v1  ;;  %v7155_v33 = vor.u32 %v1431_v15, %v1430_v53  ;;  %v7157_v12 = vor.u32 %v1434_v25, %v1433_v61 }
 0x175   : > { %vm1445_vm14 = vcmp.lt.s32.totalorder %v7129_v37, 4  ;;  %v930_v19 = vmul.f32 -0.00019511016, %v7080_v26  ;;  %v1059_v10 = vshll.u32 %v6887_v58, %v7036_v16  ;;  %v1568_v57 = vshrl.u32 %v1567_v45, 23 }
 0x176   : > { %v1417_v3 = vand.u32 8388607, %v12657_v50  ;;  %v1451_v40 = vsel %vm1445_vm14, %v1438_v60, 920167782  ;;  %v1060_v43 = vshrl.u32 %v1042_v20, %v1058_v5  ;;  %v1065_v55 = vor.u32 4788187, %v1064_v7 }
 0x177   : > { %v1346_v51 = vadd.s32 %v1344_v11, %v1342_v59  ;;  %v1455_v53 = vsel %vm1445_vm14, %v1441_v42, 1326507024  ;;  %v7168_v61 = vsub.s32 %v7038_v49, %v1203_v23  ;;  %v1324_v1 = vadd.s32 %v1322_v31, %v1320_v54 }
 0x178   : > { %vm1442_vm1 = vcmp.lt.s32.totalorder %v7129_v37, 1  ;;  %vm1444_vm4 = vcmp.lt.s32.totalorder %v7129_v37, 3  ;;  %v1336_v58 = vshrl.u32 %v7052_v13, 16  ;;  %v1418_v16 = vor.u32 8388608, %v1417_v3 }
 0x179   : > { %v1450_v20 = vsel %vm1442_vm1, %v7153_v21, %v7155_v33  ;;  %v1452_v42 = vsel %vm1444_vm4, %v7157_v12, %v1451_v40  ;;  %v1314_v49 = vshrl.u32 %v7044_v63, 16  ;;  %v1454_v31 = vsel %vm1442_vm1, %v7155_v33, %v7157_v12 }
 0x17a   : > { %v1456_v54 = vsel %vm1444_vm4, %v1438_v60, %v1455_v53  ;;  %v5552_v13 = vadd.s32 4294967169, %v1568_v57  ;;  %v931_v5 = vadd.f32 0.008332121, %v930_v19  ;;  %v1061_v7 = vor.u32 %v1060_v43, %v1059_v10  ;;  %v12658_v43 = vld [vmem:[#allocation8_spill] sm:$0xff] }
 0x17b   : > { %v1347_v23 = vadd.s32 %v1346_v51, %v1336_v58  ;;  %vm1443_vm5 = vcmp.lt.s32.totalorder %v7129_v37, 2  ;;  %v1066_v45 = vand.u32 2147483647, %v1065_v55  ;;  %v1206_v28 = vsub.s32 0, %v7168_v61  ;;  %v12659_v51 = vld [vmem:[#allocation39_spill] sm:$0xff] }
 0x17c   : > { %v1325_v15 = vadd.s32 %v1324_v1, %v1314_v49  ;;  %v7191_v63 = vsel %vm1443_vm5, %v1450_v20, %v1452_v42  ;;  %vm786_vm10 = vcmp.eq.s32.totalorder %v7075_v32, 0  ;;  %vm789_vm11 = vcmp.eq.s32.totalorder %v7075_v32, 2 }
 0x17d   : > { %vm1205_vm0 = vcmp.lt.s32.totalorder %v7168_v61, 0  ;;  %v1338_v25 = vshrl.u32 %v7086_v22, 16  ;;  %v7199_v29 = vsel %vm1443_vm5, %v1454_v31, %v1456_v54  ;;  %v7201_v59 = vshll.u32 %v1418_v16, 8 }
 0x17e   : > { %v790_v60 = vxor.u32 2147483648, %v7090_v30  ;;  %v924_v11 = vadd.f32 0.041655596, %v7105_v6  ;;  %v1316_v50 = vshrl.u32 %v7082_v36, 16  ;;  %v1574_v3 = vadd.s32 1, %v5552_v13 }
 0x17f   : > { %v1068_v19 = vcvt.s32.f32 %v1061_v7  ;;  %v1293_v10 = vsel %vm1291_vm15, %v6941_v35, 2102212464  ;;  %v1348_v40 = vadd.s32 %v1347_v23, %v1338_v25  ;;  %v1484_v57 = vshrl.u32 %v7191_v63, 16 }
 0x180   : > { %vm950_vm13 = vcmp.lt.s32.totalorder %v12658_v43, 0  ;;  %v1207_v55 = vsel %vm1205_vm0, %v1206_v28, %v7168_v61  ;;  %v1272_v53 = vshrl.u32 %v12623_v27, %v12659_v51  ;;  %v7214_v1 = vadd.s32 %v1325_v15, %v1316_v50 }
 0x181   : > { %v1462_v36 = vshrl.u32 %v7199_v29, 16  ;;  %vm785_vm6 = vcmp.lt.s32.totalorder %v7075_v32, 2  ;;  %v787_v6 = vxor.u32 2147483648, %v7098_v14  ;;  %v932_v35 = vmul.f32 %v931_v5, %v7080_v26 }
 0x182   : > { %v1069_v58 = vmul.f32 %v1068_v19, %v1066_v45  ;;  %v1459_v16 = vand.u32 65535, %v7201_v59  ;;  %v1292_v20 = vsel %vm1288_vm2, %v1272_v53, %v6945_v39  ;;  %v1294_v42 = vsel %vm1290_vm3, %v6939_v41, %v1293_v10 }
 0x183   : > { %v12660_v49 = vshll.u32 %v7086_v22, 16  ;;  %vm1575_vm15 = vcmp.gt.s32.totalorder %v1574_v3, 0  ;;  %v921_v54 = vsel %vm7003_vm9, 0, %v7095_v48  ;;  %v12661_v13 = vand.u32 2147483647, %v12658_v43 }
 0x184   : > { %v1208_v39 = vclz %v1207_v55  ;;  %v1352_v7 = vadd.s32 1, %v1348_v40  ;;  %v7243_v41 = vmul.u32 %v1484_v57, %v1459_v16  ;;  %v925_v22 = vmul.f32 %v924_v11, %v7080_v26 }
 0x185   : > { %v7230_v31 = vadd.s32 %v7102_v56, %v12660_v49  ;;  %vm7237_vm7 = vcmp.le.f32.partialorder %v12661_v13, 0.7853982  ;;  %v12664_v56 = vld [vmem:[#allocation38_spill] sm:$0xff]  ;;  %v7251_v4 = vmul.u32 %v1462_v36, %v1459_v16  ;;  %v933_v48 = vadd.f32 -0.16666654, %v932_v35 }
 0x186   : > { %v1072_v23 = vsub.s32 4, %v12664_v56  ;;  %vm12665_vm3 = vcmp.lt.s32.totalorder %v6919_v2, 2  ;;  %v1483_v28 = vand.u32 65535, %v7191_v63  ;;  %v1576_v15 = vsel %vm1575_vm15, %v1574_v3, 0 }
 0x187   : > { %vm1351_vm2 = vc.u32 %v7214_v1, %v7230_v31  ;;  %v1295_v45 = vsel %vm12665_vm3, %v1292_v20, %v1294_v42  ;;  %v788_v25 = vsel %vm786_vm10, %v7090_v30, %v787_v6  ;;  %v791_v11 = vsel %vm789_vm11, %v790_v60, %v7098_v14 }
 0x188   : > { %v1070_v50 = vxor.u32 2147483648, %v1069_v58  ;;  %v1461_v19 = vand.u32 65535, %v7199_v29  ;;  %v5544_v10 = vadd.s32 4294967294, %v1208_v39  ;;  %v1353_v55 = vsel %vm1351_vm2, %v1352_v7, %v1348_v40 }
 0x189   : > { %v1460_v51 = vshrl.u32 %v7201_v59, 16  ;;  %v1489_v2 = vshll.u32 %v7243_v41, 16  ;;  %v926_v53 = vadd.f32 -0.4999988, %v925_v22  ;;  %v1349_v3 = vmul.u32 %v7013_v46, %v1295_v45 }
 0x18a   : > { %v1467_v35 = vshll.u32 %v7251_v4, 16  ;;  %v1578_v20 = vand.u32 31, %v1576_v15  ;;  %v934_v30 = vmul.f32 %v933_v48, %v7080_v26  ;;  %v7271_v14 = vsel %vm950_vm13, %v1072_v23, %v12664_v56 }
 0x18b   : > { %v1485_v60 = vmul.u32 %v1483_v28, %v1459_v16  ;;  %v7273_v6 = vmul.u32 %v1483_v28, %v1460_v51  ;;  %v7277_v40 = vsel %vm785_vm6, %v788_v25, %v791_v11  ;;  %v7279_v42 = vand.u32 3, %v921_v54 }
 0x18c   : > { %v7281_v46 = vadd.s32 %v1353_v55, %v1349_v3  ;;  %v1463_v49 = vmul.u32 %v1461_v19, %v1459_v16  ;;  %v1071_v13 = vsel %vm950_vm13, %v1070_v50, %v1069_v58  ;;  %vm5545_vm9 = vcmp.lt.s32.totalorder %v5544_v10, 0 }
 0x18d   : > { %v7285_v39 = vmul.u32 %v1461_v19, %v1460_v51  ;;  %v7287_v7 = vadd.s32 %v1489_v2, %v1485_v60  ;;  %vm1493_vm8 = vc.u32 %v1485_v60, %v1489_v2  ;;  %v7292_v32 = vsub.s32 32, %v1578_v20 }
 0x18e   : > { %vm1471_vm12 = vc.u32 %v1463_v49, %v1467_v35  ;;  %v7295_v54 = vmul.f32 %v926_v53, %v7080_v26  ;;  %v935_v16 = vadd.f32 1.0, %v934_v30  ;;  %v1473_v56 = vadd.s32 %v1467_v35, %v1463_v49 }
 0x18f   : > { %v12449_v58 = vshll.u32 %v7273_v6, 16  ;;  %v7301_v23 = vsel %vm7237_vm7, %v12658_v43, %v1071_v13  ;;  %v7303_v48 = vsel %vm5545_vm9, 0, %v5544_v10  ;;  %v1355_v45 = vadd.s32 536870912, %v7281_v46 }
 0x190   : > { %v12450_v28 = vand.u32 2147483647, %v12656_v44  ;;  %v1469_v25 = vshll.u32 %v7285_v39, 16  ;;  %v1472_v26 = vsel %vm1471_vm12, 1, %v12615_v34  ;;  %v1494_v11 = vsel %vm1493_vm8, 1, %v12615_v34 }
 0x191   : > { %vm1497_vm10 = vc.u32 %v7287_v7, %v12449_v58  ;;  %v1466_v50 = vmul.u32 %v1462_v36, %v1460_v51  ;;  %v1488_v19 = vmul.u32 %v1484_v57, %v1460_v51  ;;  %v1593_v10 = vshll.u32 %v12621_v52, %v1578_v20 }
 0x192   : > { %v1594_v55 = vshrl.u32 %v12622_v0, %v7292_v32  ;;  %vm1475_vm11 = vc.u32 %v1473_v56, %v1469_v25  ;;  %v7320_v2 = vshrl.u32 %v1576_v15, 5  ;;  %v1590_v53 = vshll.u32 %v12620_v8, %v1578_v20 }
 0x193   : > { %v1591_v3 = vshrl.u32 %v12621_v52, %v7292_v32  ;;  %v7325_v35 = vshrl.u32 %v1355_v45, 30  ;;  %v1474_v29 = vadd.s32 %v1472_v26, %v1466_v50  ;;  %v1496_v36 = vadd.s32 %v1494_v11, %v1488_v19  ;;  %v12667_v26 = vld [vmem:[#allocation11_spill] sm:$0xff] }
 0x194   : > { %v1498_v63 = vsel %vm1497_vm10, 1, %v12615_v34  ;;  %v1584_v57 = vshll.u32 %v12640_v62, %v1578_v20  ;;  %v1585_v51 = vshrl.u32 %v12639_v9, %v7292_v32  ;;  %v1587_v30 = vshll.u32 %v12639_v9, %v1578_v20 }
 0x195   : > { %12666 = vst [vmem:[#allocation39_spill] sm:$0xff] %v7325_v35  ;;  %v1588_v15 = vshrl.u32 %v12620_v8, %v7292_v32  ;;  %v1476_v60 = vsel %vm1475_vm11, 1, %v12615_v34  ;;  %v1581_v49 = vshll.u32 %v12623_v27, %v1578_v20  ;;  %v1582_v13 = vshrl.u32 %v12640_v62, %v7292_v32 }
 0x196   : > { %v1595_v56 = vor.u32 %v1594_v55, %v1593_v10  ;;  %v1571_v45 = vand.u32 8388607, %v12450_v28  ;;  %v1592_v25 = vor.u32 %v1591_v3, %v1590_v53  ;;  %vm1599_vm0 = vcmp.lt.s32.totalorder %v7320_v2, 4 }
 0x197   : > { %v1721_v11 = vand.u32 2139095040, %v12667_v26  ;;  %v7344_v50 = vmul.f32 %v7301_v23, %v7301_v23  ;;  %v1216_v19 = vsub.s32 4294967266, %v7303_v48  ;;  %v1357_v20 = vshll.u32 %v7325_v35, 30 }
 0x198   : > { %v1500_v22 = vadd.s32 %v1498_v63, %v1496_v36  ;;  %v1478_v58 = vadd.s32 %v1476_v60, %v1474_v29  ;;  %v1490_v10 = vshrl.u32 %v7243_v41, 16  ;;  %v7349_v55 = vor.u32 %v1585_v51, %v1584_v57 }
 0x199   : > { %v7351_v28 = vor.u32 %v1588_v15, %v1587_v30  ;;  %v7353_v53 = vor.u32 %v1582_v13, %v1581_v49  ;;  %vm1596_vm13 = vcmp.lt.s32.totalorder %v7320_v2, 1  ;;  %vm1598_vm6 = vcmp.lt.s32.totalorder %v7320_v2, 3 }
 0x19a   : > { %v1609_v3 = vsel %vm1599_vm0, %v1595_v56, 1326507024  ;;  %v1468_v44 = vshrl.u32 %v7251_v4, 16  ;;  %v1572_v43 = vor.u32 8388608, %v1571_v45  ;;  %v1605_v29 = vsel %vm1599_vm0, %v1592_v25, 920167782 }
 0x19b   : > { %v1722_v41 = vshrl.u32 %v1721_v11, 23  ;;  %v7363_v36 = vmul.f32 %v935_v16, %v7063_v38  ;;  %v1077_v63 = vmul.f32 -0.001358992, %v7344_v50  ;;  %v1217_v57 = vadd.s32 127, %v1216_v19 }
 0x19c   : > { %v1501_v51 = vadd.s32 %v1500_v22, %v1490_v10  ;;  %v1479_v30 = vadd.s32 %v1478_v58, %v1468_v44  ;;  %vm1597_vm15 = vcmp.lt.s32.totalorder %v7320_v2, 2  ;;  %v1608_v4 = vsel %vm1596_vm13, %v7349_v55, %v7351_v28 }
 0x19d   : > { %v1610_v15 = vsel %vm1598_vm6, %v1592_v25, %v1609_v3  ;;  %v7374_v60 = vsub.s32 %v7281_v46, %v1357_v20  ;;  %v1492_v38 = vshrl.u32 %v7273_v6, 16  ;;  %v1604_v44 = vsel %vm1596_vm13, %v7353_v53, %v7349_v55 }
 0x19e   : > { %v1606_v22 = vsel %vm1598_vm6, %v7351_v28, %v1605_v29  ;;  %v1447_v16 = vsel %vm1445_vm14, %v7157_v12, 2102212464  ;;  %v1470_v58 = vshrl.u32 %v7285_v39, 16  ;;  %v7388_v49 = vshll.u32 %v1572_v43, 8 }
 0x19f   : > { %v5555_v46 = vadd.s32 4294967169, %v1722_v41  ;;  %v1212_v13 = vsub.s32 32, %v7303_v48  ;;  %v1426_v56 = vshrl.u32 %v12623_v27, %v7088_v47  ;;  %v1502_v45 = vadd.s32 %v1501_v51, %v1492_v38 }
 0x1a0   : > { %v7395_v25 = vsel %vm1597_vm15, %v1608_v4, %v1610_v15  ;;  %vm940_vm2 = vcmp.eq.s32.totalorder %v7279_v42, 0  ;;  %v1196_v12 = vadd.s32 %v6976_v17, %v6955_v24  ;;  %v1218_v11 = vshll.u32 %v1217_v57, 23 }
 0x1a1   : > { %v7400_v39 = vadd.s32 %v1479_v30, %v1470_v58  ;;  %v7404_v43 = vsel %vm1597_vm15, %v1604_v44, %v1606_v22  ;;  %vm1359_vm14 = vcmp.lt.s32.totalorder %v7374_v60, 0  ;;  %v1360_v47 = vsub.s32 0, %v7374_v60  ;;  %v12670_v30 = vld [vmem:[#allocation6_spill] sm:$0xff] }
 0x1a2   : > { %v1446_v19 = vsel %vm1442_vm1, %v1426_v56, %v7153_v21  ;;  %v1448_v20 = vsel %vm1444_vm4, %v7155_v33, %v1447_v16  ;;  %v12668_v24 = vshll.u32 %v7273_v6, 16  ;;  %v1613_v10 = vand.u32 65535, %v7388_v49  ;;  %v12671_v16 = vld [vmem:[#allocation7_spill] sm:$0xff] }
 0x1a3   : > { %v1616_v3 = vshrl.u32 %v7395_v25, 16  ;;  %v1728_v29 = vadd.s32 1, %v5555_v46  ;;  %v928_v41 = vadd.f32 1.0, %v7295_v54  ;;  %vm943_vm3 = vcmp.eq.s32.totalorder %v7279_v42, 2 }
 0x1a4   : > { %v7417_v17 = vadd.s32 %v7287_v7, %v12668_v24  ;;  %v1214_v57 = vshrl.u32 %v1196_v12, %v1212_v13  ;;  %v1506_v21 = vadd.s32 1, %v1502_v45  ;;  %v1638_v51 = vshrl.u32 %v7404_v43, 16 }
 0x1a5   : > { %vm783_vm1 = vweird.f32 %v12670_v30  ;;  %vm939_vm4 = vcmp.lt.s32.totalorder %v7279_v42, 2  ;;  %v941_v33 = vxor.u32 2147483648, %v7363_v36  ;;  %v1078_v6 = vadd.f32 0.041655596, %v1077_v63 }
 0x1a6   : > { %12669 = vst [vmem:[#allocation38_spill] sm:$0xff] %v7417_v17  ;;  %v1084_v7 = vmul.f32 -0.00019511016, %v7344_v50  ;;  %vm1505_vm9 = vc.u32 %v7400_v39, %v7417_v17  ;;  %v1213_v54 = vshll.u32 %v7168_v61, %v7303_v48  ;;  %v1219_v4 = vor.u32 4788187, %v1218_v11 }
 0x1a7   : > { %v1361_v15 = vsel %vm1359_vm14, %v1360_v47, %v7374_v60  ;;  %v1449_v38 = vsel %vm1443_vm5, %v1446_v19, %v1448_v20  ;;  %v1614_v44 = vshrl.u32 %v7388_v49, 16  ;;  %v1615_v63 = vand.u32 65535, %v7395_v25 }
 0x1a8   : > { %v7441_v22 = vmul.u32 %v1616_v3, %v1613_v10  ;;  %vm1729_vm12 = vcmp.gt.s32.totalorder %v1728_v29, 0  ;;  %vm937_vm8 = vweird.f32 %v12671_v16  ;;  %v1215_v61 = vor.u32 %v1214_v57, %v1213_v54 }
 0x1a9   : > { %v1507_v48 = vsel %vm1505_vm9, %v1506_v21, %v1502_v45  ;;  %v1637_v58 = vand.u32 65535, %v7404_v43  ;;  %v7445_v46 = vmul.u32 %v1638_v51, %v1613_v10  ;;  %v944_v13 = vxor.u32 2147483648, %v928_v41 }
 0x1aa   : > { %v1085_v37 = vadd.f32 0.008332121, %v1084_v7  ;;  %v1362_v56 = vclz %v1361_v15  ;;  %v1503_v12 = vmul.u32 %v7201_v59, %v1449_v38  ;;  %v942_v11 = vsel %vm940_vm2, %v928_v41, %v941_v33 }
 0x1ab   : > { %v1079_v47 = vmul.f32 %v1078_v6, %v7344_v50  ;;  %v1220_v19 = vand.u32 2147483647, %v1219_v4  ;;  %v1730_v20 = vsel %vm1729_vm12, %v1728_v29, 0  ;;  %v1617_v57 = vmul.u32 %v1615_v63, %v1613_v10 }
 0x1ac   : > { %v7451_v24 = vadd.s32 %v1507_v48, %v1503_v12  ;;  %v7453_v45 = vmul.u32 %v1615_v63, %v1614_v44  ;;  %v1621_v43 = vshll.u32 %v7441_v22, 16  ;;  %v1222_v21 = vcvt.s32.f32 %v1215_v61 }
 0x1ad   : > { %v1639_v54 = vmul.u32 %v1637_v58, %v1613_v10  ;;  %v7456_v7 = vmul.u32 %v1637_v58, %v1614_v44  ;;  %v1643_v59 = vshll.u32 %v7445_v46, 16  ;;  %v945_v41 = vsel %vm943_vm3, %v944_v13, %v7363_v36  ;;  %v12674_v13 = vld [vmem:[#allocation13_spill] sm:$0xff] }
 0x1ae   : > { %v1086_v33 = vmul.f32 %v1085_v37, %v7344_v50  ;;  %v5547_v29 = vadd.s32 4294967294, %v1362_v56  ;;  %v1732_v6 = vand.u32 31, %v1730_v20  ;;  %v7466_v4 = vsel %vm783_vm1, nan, %v7277_v40 }
 0x1af   : > { %12672 = vst [vmem:[#allocation6_spill] sm:$0xff] %v7466_v4  ;;  %v946_v10 = vsel %vm939_vm4, %v942_v11, %v945_v41  ;;  %v1080_v15 = vadd.f32 -0.4999988, %v1079_v47  ;;  %v1223_v38 = vmul.f32 %v1222_v21, %v1220_v19  ;;  %v12673_v63 = vsel %vm7237_vm7, 0, %v7271_v14  ;;  %v12676_v19 = vld [vmem:[#allocation12_spill] sm:$0xff] }
 0x1b0   : > { %v7474_v61 = vand.u32 3, %v12673_v63  ;;  %v1509_v36 = vadd.s32 536870912, %v7451_v24  ;;  %v1623_v48 = vshll.u32 %v7453_v45, 16  ;;  %v1627_v58 = vadd.s32 %v1621_v43, %v1617_v57 }
 0x1b1   : > { %vm1104_vm5 = vcmp.lt.s32.totalorder %v12674_v13, 0  ;;  %vm1625_vm10 = vc.u32 %v1617_v57, %v1621_v43  ;;  %v12453_v40 = vshll.u32 %v7456_v7, 16  ;;  %vm1647_vm11 = vc.u32 %v1639_v54, %v1643_v59 }
 0x1b2   : > { %v7480_v42 = vadd.s32 %v1643_v59, %v1639_v54  ;;  %v7484_v5 = vsel %vm937_vm8, nan, %v946_v10  ;;  %v7486_v14 = vadd.f32 -0.16666654, %v1086_v33  ;;  %vm5548_vm7 = vcmp.lt.s32.totalorder %v5547_v29, 0 }
 0x1b3   : > { %12675 = vst [vmem:[#allocation7_spill] sm:$0xff] %v7484_v5  ;;  %v7488_v30 = vsub.s32 32, %v1732_v6  ;;  %v7491_v37 = vmul.f32 %v1080_v15, %v7344_v50  ;;  %v1224_v56 = vxor.u32 2147483648, %v1223_v38  ;;  %v1620_v12 = vmul.u32 %v1616_v3, %v1614_v44 }
 0x1b4   : > { %v1642_v11 = vmul.u32 %v1638_v51, %v1614_v44  ;;  %v1626_v47 = vsel %vm1625_vm10, 1, %v12615_v34  ;;  %vm1629_vm2 = vc.u32 %v1627_v58, %v1623_v48  ;;  %v1648_v16 = vsel %vm1647_vm11, 1, %v12615_v34 }
 0x1b5   : > { %v1875_v57 = vand.u32 2139095040, %v12676_v19  ;;  %v7498_v43 = vsel %vm5548_vm7, 0, %v5547_v29  ;;  %v7500_v21 = vshrl.u32 %v1509_v36, 30  ;;  %vm1651_vm14 = vc.u32 %v7480_v42, %v12453_v40 }
 0x1b6   : > { %v1744_v25 = vshll.u32 %v12620_v8, %v1732_v6  ;;  %v1745_v3 = vshrl.u32 %v12621_v52, %v7488_v30  ;;  %v1747_v51 = vshll.u32 %v12621_v52, %v1732_v6  ;;  %v1748_v44 = vshrl.u32 %v12622_v0, %v7488_v30 }
 0x1b7   : > { %12677 = vst [vmem:[#allocation41_spill] sm:$0xff] %v7500_v21  ;;  %v1628_v59 = vadd.s32 %v1626_v47, %v1620_v12  ;;  %v1630_v41 = vsel %vm1629_vm2, 1, %v12615_v34  ;;  %v1650_v33 = vadd.s32 %v1648_v16, %v1642_v11  ;;  %v7513_v29 = vshrl.u32 %v1730_v20, 5 }
 0x1b8   : > { %v1652_v10 = vsel %vm1651_vm14, 1, %v12615_v34  ;;  %v1735_v15 = vshll.u32 %v12623_v27, %v1732_v6  ;;  %v1738_v63 = vshll.u32 %v12640_v62, %v1732_v6  ;;  %v1876_v36 = vshrl.u32 %v1875_v57, 23 }
 0x1b9   : > { %v1736_v48 = vshrl.u32 %v12640_v62, %v7488_v30  ;;  %v1739_v58 = vshrl.u32 %v12639_v9, %v7488_v30  ;;  %v1741_v12 = vshll.u32 %v12639_v9, %v1732_v6  ;;  %v1742_v11 = vshrl.u32 %v12620_v8, %v7488_v30 }
 0x1ba   : > { %v12678_v20 = vand.u32 2147483647, %v12674_v13  ;;  %v1225_v16 = vsel %vm1104_vm5, %v1224_v56, %v1223_v38  ;;  %v1350_v57 = vadd.s32 %v7230_v31, %v7214_v1  ;;  %v1746_v40 = vor.u32 %v1745_v3, %v1744_v25 }
 0x1bb   : > { %v1749_v54 = vor.u32 %v1748_v44, %v1747_v51  ;;  %v1370_v5 = vsub.s32 4294967266, %v7498_v43  ;;  %v1511_v6 = vshll.u32 %v7500_v21, 30  ;;  %v12681_v4 = vand.u32 2147483647, %v12667_v26 }
 0x1bc   : > { %vm7527_vm3 = vcmp.le.f32.partialorder %v12678_v20, 0.7853982  ;;  %vm1753_vm1 = vcmp.lt.s32.totalorder %v7513_v29, 4  ;;  %v1622_v20 = vshrl.u32 %v7441_v22, 16  ;;  %v1632_v35 = vadd.s32 %v1630_v41, %v1628_v59 }
 0x1bd   : > { %v1725_v18 = vand.u32 8388607, %v12681_v4  ;;  %v1644_v17 = vshrl.u32 %v7445_v46, 16  ;;  %v1654_v38 = vadd.s32 %v1652_v10, %v1650_v33  ;;  %v7542_v56 = vor.u32 %v1736_v48, %v1735_v15 }
 0x1be   : > { %v7544_v1 = vor.u32 %v1739_v58, %v1738_v63  ;;  %v7546_v31 = vor.u32 %v1742_v11, %v1741_v12  ;;  %v5558_v25 = vadd.s32 4294967169, %v1876_v36  ;;  %vm1750_vm4 = vcmp.lt.s32.totalorder %v7513_v29, 1  ;;  %v12682_v63 = vld [vmem:[#allocation40_spill] sm:$0xff] }
 0x1bf   : > { %vm1752_vm9 = vcmp.lt.s32.totalorder %v7513_v29, 3  ;;  %v1759_v4 = vsel %vm1753_vm1, %v1746_v40, 920167782  ;;  %v1763_v22 = vsel %vm1753_vm1, %v1749_v54, 1326507024  ;;  %v1366_v46 = vsub.s32 32, %v7498_v43 }
 0x1c0   : > { %v1371_v3 = vadd.s32 127, %v1370_v5  ;;  %v1580_v51 = vshrl.u32 %v12623_v27, %v7292_v32  ;;  %v1726_v44 = vor.u32 8388608, %v1725_v18  ;;  %v7558_v59 = vsub.s32 %v7451_v24, %v1511_v6 }
 0x1c1   : > { %v1601_v41 = vsel %vm1599_vm0, %v7351_v28, 2102212464  ;;  %v1624_v33 = vshrl.u32 %v7453_v45, 16  ;;  %vm1751_vm12 = vcmp.lt.s32.totalorder %v7513_v29, 2  ;;  %v1758_v5 = vsel %vm1750_vm4, %v7542_v56, %v7544_v1 }
 0x1c2   : > { %v1760_v18 = vsel %vm1752_vm9, %v7546_v31, %v1759_v4  ;;  %v1762_v32 = vsel %vm1750_vm4, %v7544_v1, %v7546_v31  ;;  %v1764_v28 = vsel %vm1752_vm9, %v1746_v40, %v1763_v22  ;;  %v1633_v24 = vadd.s32 %v1632_v35, %v1622_v20 }
 0x1c3   : > { %v1646_v45 = vshrl.u32 %v7456_v7, 16  ;;  %v1655_v54 = vadd.s32 %v1654_v38, %v1644_v17  ;;  %v1882_v10 = vadd.s32 1, %v5558_v25  ;;  %v1088_v15 = vmul.f32 %v7486_v14, %v7344_v50 }
 0x1c4   : > { %v1226_v36 = vsub.s32 4, %v12682_v63  ;;  %v7585_v48 = vsel %vm7527_vm3, %v12674_v13, %v1225_v16  ;;  %v7587_v58 = vshll.u32 %v1726_v44, 8  ;;  %v1367_v40 = vshll.u32 %v7374_v60, %v7498_v43 }
 0x1c5   : > { %12683 = vst [vmem:[#allocation40_spill] sm:$0xff] %v7585_v48  ;;  %v1368_v35 = vshrl.u32 %v1350_v57, %v1366_v46  ;;  %v1761_v17 = vsel %vm1751_vm12, %v1758_v5, %v1760_v18  ;;  %v1765_v12 = vsel %vm1751_vm12, %v1762_v32, %v1764_v28  ;;  %v1372_v50 = vshll.u32 %v1371_v3, 23 }
 0x1c6   : > { %v1514_v14 = vsub.s32 0, %v7558_v59  ;;  %v1600_v11 = vsel %vm1596_vm13, %v1580_v51, %v7353_v53  ;;  %v1602_v16 = vsel %vm1598_vm6, %v7349_v55, %v1601_v41  ;;  %v7602_v6 = vadd.s32 %v1633_v24, %v1624_v33 }
 0x1c7   : > { %v12684_v60 = vshll.u32 %v7456_v7, 16  ;;  %v1656_v57 = vadd.s32 %v1655_v54, %v1646_v45  ;;  %vm1883_vm0 = vcmp.gt.s32.totalorder %v1882_v10, 0  ;;  %vm1513_vm8 = vcmp.lt.s32.totalorder %v7558_v59, 0 }
 0x1c8   : > { %v1767_v20 = vand.u32 65535, %v7587_v58  ;;  %v1770_v38 = vshrl.u32 %v1765_v12, 16  ;;  %v1792_v25 = vshrl.u32 %v1761_v17, 16  ;;  %v7612_v53 = vadd.f32 1.0, %v7491_v37 }
 0x1c9   : > { %v7607_v43 = vadd.s32 %v7480_v42, %v12684_v60  ;;  %v1089_v4 = vadd.f32 1.0, %v1088_v15  ;;  %vm1097_vm13 = vcmp.eq.s32.totalorder %v7474_v61, 2  ;;  %v1227_v55 = vsel %vm1104_vm5, %v1226_v36, %v12682_v63 }
 0x1ca   : > { %v7620_v7 = vmul.f32 %v7585_v48, %v7585_v48  ;;  %v1369_v42 = vor.u32 %v1368_v35, %v1367_v40  ;;  %v1373_v22 = vor.u32 4788187, %v1372_v50  ;;  %v1603_v46 = vsel %vm1597_vm15, %v1600_v11, %v1602_v16 }
 0x1cb   : > { %v1884_v3 = vsel %vm1883_vm0, %v1882_v10, 0  ;;  %v1515_v37 = vsel %vm1513_vm8, %v1514_v14, %v7558_v59  ;;  %vm1659_vm6 = vc.u32 %v7602_v6, %v7607_v43  ;;  %v1660_v51 = vadd.s32 1, %v1656_v57 }
 0x1cc   : > { %v1791_v44 = vand.u32 65535, %v1761_v17  ;;  %v1768_v41 = vshrl.u32 %v7587_v58, 16  ;;  %v1769_v33 = vand.u32 65535, %v1765_v12  ;;  %v7628_v5 = vmul.u32 %v1770_v38, %v1767_v20 }
 0x1cd   : > { %v7630_v18 = vmul.u32 %v1792_v25, %v1767_v20  ;;  %v7633_v32 = vmul.f32 %v1089_v4, %v7301_v23  ;;  %v1098_v2 = vxor.u32 2147483648, %v7612_v53  ;;  %v1229_v28 = vsel %vm7527_vm3, 0, %v1227_v55 }
 0x1ce   : > { %v1886_v24 = vand.u32 31, %v1884_v3  ;;  %v1231_v45 = vmul.f32 -0.001358992, %v7620_v7  ;;  %v1238_v54 = vmul.f32 -0.00019511016, %v7620_v7  ;;  %v1376_v15 = vcvt.s32.f32 %v1369_v42 }
 0x1cf   : > { %v1374_v10 = vand.u32 2147483647, %v1373_v22  ;;  %v1516_v63 = vclz %v1515_v37  ;;  %v1657_v36 = vmul.u32 %v7388_v49, %v1603_v46  ;;  %v1661_v23 = vsel %vm1659_vm6, %v1660_v51, %v1656_v57 }
 0x1d0   : > { %v1793_v40 = vmul.u32 %v1791_v44, %v1767_v20  ;;  %v1771_v35 = vmul.u32 %v1769_v33, %v1767_v20  ;;  %v1775_v17 = vshll.u32 %v7628_v5, 16  ;;  %v7645_v47 = vmul.u32 %v1791_v44, %v1768_v41 }
 0x1d1   : > { %v1797_v12 = vshll.u32 %v7630_v18, 16  ;;  %v7649_v14 = vand.u32 3, %v1229_v28  ;;  %v7651_v11 = vmul.u32 %v1769_v33, %v1768_v41  ;;  %v7653_v16 = vsub.s32 32, %v1886_v24 }
 0x1d2   : > { %v7658_v49 = vsel %vm1097_vm13, %v1098_v2, %v7633_v32  ;;  %v7660_v60 = vadd.f32 0.041655596, %v1231_v45  ;;  %v7662_v57 = vadd.f32 0.008332121, %v1238_v54  ;;  %v7664_v20 = vmul.f32 %v1376_v15, %v1374_v10 }
 0x1d3   : > { %v5550_v4 = vadd.s32 4294967294, %v1516_v63  ;;  %v7666_v55 = vadd.s32 %v1661_v23, %v1657_v36  ;;  %v1796_v42 = vmul.u32 %v1792_v25, %v1768_v41  ;;  %v12464_v22 = vand.u32 2147483647, %v12676_v19 }
 0x1d4   : > { %v1774_v46 = vmul.u32 %v1770_v38, %v1768_v41  ;;  %vm1779_vm15 = vc.u32 %v1771_v35, %v1775_v17  ;;  %v12462_v37 = vshll.u32 %v7645_v47, 16  ;;  %vm1801_vm5 = vc.u32 %v1793_v40, %v1797_v12  ;;  %v12685_v41 = vld [vmem:[#allocation14_spill] sm:$0xff] }
 0x1d5   : > { %v1777_v51 = vshll.u32 %v7651_v11, 16  ;;  %v7671_v44 = vadd.s32 %v1797_v12, %v1793_v40  ;;  %v1901_v33 = vshll.u32 %v12621_v52, %v1886_v24  ;;  %v1902_v2 = vshrl.u32 %v12622_v0, %v7653_v16 }
 0x1d6   : > { %v7676_v28 = vshrl.u32 %v1884_v3, 5  ;;  %v1898_v25 = vshll.u32 %v12620_v8, %v1886_v24  ;;  %v1899_v38 = vshrl.u32 %v12621_v52, %v7653_v16  ;;  %v2029_v45 = vand.u32 2139095040, %v12685_v41 }
 0x1d7   : > { %v1780_v54 = vsel %vm1779_vm15, 1, %v12615_v34  ;;  %v1781_v10 = vadd.s32 %v1775_v17, %v1771_v35  ;;  %v1802_v15 = vsel %vm1801_vm5, 1, %v12615_v34  ;;  %v1892_v63 = vshll.u32 %v12640_v62, %v1886_v24 }
 0x1d8   : > { %v1893_v36 = vshrl.u32 %v12639_v9, %v7653_v16  ;;  %v1895_v3 = vshll.u32 %v12639_v9, %v1886_v24  ;;  %v1896_v23 = vshrl.u32 %v12620_v8, %v7653_v16  ;;  %v2030_v40 = vshrl.u32 %v2029_v45, 23 }
 0x1d9   : > { %vm1094_vm10 = vcmp.eq.s32.totalorder %v7474_v61, 0  ;;  %vm1805_vm11 = vc.u32 %v7671_v44, %v12462_v37  ;;  %v1889_v35 = vshll.u32 %v12623_v27, %v1886_v24  ;;  %v1890_v17 = vshrl.u32 %v12640_v62, %v7653_v16  ;;  %v12686_v37 = vld [vmem:[#allocation21_spill] sm:$0xff] }
 0x1da   : > { %v1903_v12 = vor.u32 %v1902_v2, %v1901_v33  ;;  %vm5551_vm7 = vcmp.lt.s32.totalorder %v5550_v4, 0  ;;  %v1879_v50 = vand.u32 8388607, %v12464_v22  ;;  %v1900_v26 = vor.u32 %v1899_v38, %v1898_v25 }
 0x1db   : > { %vm1907_vm2 = vcmp.lt.s32.totalorder %v7676_v28, 4  ;;  %v1663_v45 = vadd.s32 536870912, %v7666_v55  ;;  %vm1783_vm14 = vc.u32 %v1781_v10, %v1777_v51  ;;  %v1804_v13 = vadd.s32 %v1802_v15, %v1796_v42 }
 0x1dc   : > { %v5561_v21 = vadd.s32 4294967169, %v2030_v40  ;;  %vm1093_vm3 = vcmp.lt.s32.totalorder %v7474_v61, 2  ;;  %vm1258_vm0 = vcmp.lt.s32.totalorder %v12686_v37, 0  ;;  %v1782_v24 = vadd.s32 %v1780_v54, %v1774_v46 }
 0x1dd   : > { %v1806_v48 = vsel %vm1805_vm11, 1, %v12615_v34  ;;  %v7704_v33 = vor.u32 %v1893_v36, %v1892_v63  ;;  %v7706_v2 = vor.u32 %v1896_v23, %v1895_v3  ;;  %v7708_v22 = vor.u32 %v1890_v17, %v1889_v35 }
 0x1de   : > { %vm1904_vm8 = vcmp.lt.s32.totalorder %v7676_v28, 1  ;;  %vm1906_vm13 = vcmp.lt.s32.totalorder %v7676_v28, 3  ;;  %v1917_v42 = vsel %vm1907_vm2, %v1903_v12, 1326507024  ;;  %v1378_v51 = vxor.u32 2147483648, %v7664_v20 }
 0x1df   : > { %v1784_v25 = vsel %vm1783_vm14, 1, %v12615_v34  ;;  %v1880_v46 = vor.u32 8388608, %v1879_v50  ;;  %v1913_v38 = vsel %vm1907_vm2, %v1900_v26, 920167782  ;;  %v12687_v54 = vand.u32 2147483647, %v12686_v37 }
 0x1e0   : > { %v7725_v15 = vsel %vm5551_vm7, 0, %v5550_v4  ;;  %v7727_v63 = vshrl.u32 %v1663_v45, 30  ;;  %v1798_v36 = vshrl.u32 %v7630_v18, 16  ;;  %v2036_v3 = vadd.s32 1, %v5561_v21 }
 0x1e1   : > { %vm7720_vm6 = vcmp.le.f32.partialorder %v12687_v54, 0.7853982  ;;  %v1808_v23 = vadd.s32 %v1806_v48, %v1804_v13  ;;  %vm1905_vm15 = vcmp.lt.s32.totalorder %v7676_v28, 2  ;;  %v1916_v50 = vsel %vm1904_vm8, %v7704_v33, %v7706_v2 }
 0x1e2   : > { %12690 = vst [vmem:[#allocation21_spill] sm:$0xff] %v7727_v63  ;;  %v1918_v40 = vsel %vm1906_vm13, %v1900_v26, %v1917_v42  ;;  %v1776_v35 = vshrl.u32 %v7628_v5, 16  ;;  %v1786_v4 = vadd.s32 %v1784_v25, %v1782_v24  ;;  %v1912_v18 = vsel %vm1904_vm8, %v7708_v22, %v7704_v33 }
 0x1e3   : > { %v1914_v13 = vsel %vm1906_vm13, %v7706_v2, %v1913_v38  ;;  %v12691_v21 = vxor.u32 2147483648, %v7633_v32  ;;  %v1233_v26 = vmul.f32 %v7660_v60, %v7620_v7  ;;  %v1240_v5 = vmul.f32 %v7662_v57, %v7620_v7 }
 0x1e4   : > { %v7754_v17 = vshll.u32 %v1880_v46, 8  ;;  %v1524_v12 = vsub.s32 4294967266, %v7725_v15  ;;  %v1734_v45 = vshrl.u32 %v12623_v27, %v7488_v30  ;;  %v7761_v32 = vsel %vm1905_vm15, %v1916_v50, %v1918_v40 }
 0x1e5   : > { %v1096_v48 = vsel %vm1094_vm10, %v7612_v53, %v12691_v21  ;;  %vm2037_vm5 = vcmp.gt.s32.totalorder %v2036_v3, 0  ;;  %v1665_v53 = vshll.u32 %v7727_v63, 30  ;;  %v1800_v24 = vshrl.u32 %v7645_v47, 16 }
 0x1e6   : > { %v1809_v60 = vadd.s32 %v1808_v23, %v1798_v36  ;;  %v7767_v57 = vsel %vm1905_vm15, %v1912_v18, %v1914_v13  ;;  %v7772_v42 = vsel %vm1093_vm3, %v1096_v48, %v7658_v49  ;;  %v1379_v30 = vsel %vm1258_vm0, %v1378_v51, %v7664_v20 }
 0x1e7   : > { %v1778_v25 = vshrl.u32 %v7651_v11, 16  ;;  %v1787_v46 = vadd.s32 %v1786_v4, %v1776_v35  ;;  %v1755_v38 = vsel %vm1753_vm1, %v7546_v31, 2102212464  ;;  %v1921_v54 = vand.u32 65535, %v7754_v17 }
 0x1e8   : > { %v12466_v36 = vshrl.u32 %v7761_v32, 16  ;;  %v2038_v23 = vsel %vm2037_vm5, %v2036_v3, 0  ;;  %v7783_v50 = vadd.f32 -0.4999988, %v1233_v26  ;;  %v1241_v61 = vadd.f32 -0.16666654, %v1240_v5 }
 0x1e9   : > { %v1525_v49 = vadd.s32 127, %v1524_v12  ;;  %v12465_v40 = vshrl.u32 %v7767_v57, 16  ;;  %v7789_v11 = vsel %vm7720_vm6, %v12686_v37, %v1379_v30  ;;  %v7792_v20 = vsub.s32 %v7666_v55, %v1665_v53  ;;  %v12695_v12 = vld [vmem:[#allocation38_spill] sm:$0xff] }
 0x1ea   : > { %v1754_v31 = vsel %vm1750_vm4, %v1734_v45, %v7542_v56  ;;  %v1810_v51 = vadd.s32 %v1809_v60, %v1800_v24  ;;  %v1756_v3 = vsel %vm1752_vm9, %v7544_v1, %v1755_v38  ;;  %v7800_v35 = vadd.s32 %v1787_v46, %v1778_v25 }
 0x1eb   : > { %v12693_v4 = vshll.u32 %v7645_v47, 16  ;;  %v2040_v13 = vand.u32 31, %v2038_v23  ;;  %v1922_v55 = vshrl.u32 %v7754_v17, 16  ;;  %v1923_v21 = vand.u32 65535, %v7761_v32 }
 0x1ec   : > { %12692 = vst [vmem:[#allocation42_spill] sm:$0xff] %v7800_v35  ;;  %v7811_v56 = vmul.u32 %v12466_v36, %v1921_v54  ;;  %v1945_v48 = vand.u32 65535, %v7767_v57  ;;  %v7815_v1 = vmul.f32 %v1241_v61, %v7620_v7  ;;  %v1520_v26 = vsub.s32 32, %v7725_v15 }
 0x1ed   : > { %v7805_v18 = vadd.s32 %v7671_v44, %v12693_v4  ;;  %v1526_v47 = vshll.u32 %v1525_v49, 23  ;;  %v7820_v44 = vmul.u32 %v12465_v40, %v1921_v54  ;;  %v7824_v5 = vmul.f32 %v7789_v11, %v7789_v11 }
 0x1ee   : > { %v1504_v45 = vadd.s32 %v12695_v12, %v7400_v39  ;;  %v1668_v53 = vsub.s32 0, %v7792_v20  ;;  %v1814_v24 = vadd.s32 1, %v1810_v51  ;;  %vm1667_vm1 = vcmp.lt.s32.totalorder %v7792_v20, 0 }
 0x1ef   : > { %12694 = vst [vmem:[#allocation43_spill] sm:$0xff] %v7805_v18  ;;  %v1757_v60 = vsel %vm1751_vm12, %v1754_v31, %v1756_v3  ;;  %vm1813_vm4 = vc.u32 %v7800_v35, %v7805_v18  ;;  %v7834_v30 = vsub.s32 32, %v2040_v13  ;;  %v1521_v25 = vshll.u32 %v7558_v59, %v7725_v15 }
 0x1f0   : > { %v1925_v46 = vmul.u32 %v1923_v21, %v1921_v54  ;;  %v1929_v38 = vshll.u32 %v7811_v56, 16  ;;  %v7839_v39 = vmul.u32 %v1945_v48, %v1922_v55  ;;  %v1522_v61 = vshrl.u32 %v1504_v45, %v1520_v26 }
 0x1f1   : > { %v7841_v49 = vor.u32 4788187, %v1526_v47  ;;  %v1947_v4 = vmul.u32 %v1945_v48, %v1921_v54  ;;  %v1951_v29 = vshll.u32 %v7820_v44, 16  ;;  %v1669_v31 = vsel %vm1667_vm1, %v1668_v53, %v7792_v20 }
 0x1f2   : > { %v1811_v3 = vmul.u32 %v7587_v58, %v1757_v60  ;;  %v1815_v12 = vsel %vm1813_vm4, %v1814_v24, %v1810_v51  ;;  %v2052_v59 = vshll.u32 %v12620_v8, %v2040_v13  ;;  %v2053_v15 = vshrl.u32 %v12621_v52, %v7834_v30 }
 0x1f3   : > { %v2055_v36 = vshll.u32 %v12621_v52, %v2040_v13  ;;  %v2056_v26 = vshrl.u32 %v12622_v0, %v7834_v30  ;;  %v7853_v54 = vmul.u32 %v1923_v21, %v1922_v55  ;;  %vm7855_vm9 = vc.u32 %v1925_v46, %v1929_v38 }
 0x1f4   : > { %v7860_v51 = vshrl.u32 %v2038_v23, 5  ;;  %vm7862_vm12 = vc.u32 %v1947_v4, %v1951_v29  ;;  %v7866_v45 = vadd.s32 %v1951_v29, %v1947_v4  ;;  %v2043_v53 = vshll.u32 %v12623_v27, %v2040_v13 }
 0x1f5   : > { %v2046_v24 = vshll.u32 %v12640_v62, %v2040_v13  ;;  %v2044_v21 = vshrl.u32 %v12640_v62, %v7834_v30  ;;  %v2047_v60 = vshrl.u32 %v12639_v9, %v7834_v30  ;;  %v2049_v58 = vshll.u32 %v12639_v9, %v2040_v13 }
 0x1f6   : > { %v2050_v23 = vshrl.u32 %v12620_v8, %v7834_v30  ;;  %v1670_v40 = vclz %v1669_v31  ;;  %v7877_v19 = vadd.s32 %v1815_v12, %v1811_v3  ;;  %v2054_v4 = vor.u32 %v2053_v15, %v2052_v59 }
 0x1f7   : > { %v2057_v29 = vor.u32 %v2056_v26, %v2055_v36  ;;  %v1931_v63 = vshll.u32 %v7853_v54, 16  ;;  %v1935_v18 = vadd.s32 %v1929_v38, %v1925_v46  ;;  %v12700_v35 = vand.u32 2147483647, %v12685_v41 }
 0x1f8   : > { %vm2061_vm10 = vcmp.lt.s32.totalorder %v7860_v51, 4  ;;  %v12701_v62 = vshrl.u32 %v7761_v32, 16  ;;  %v1934_v13 = vsel %vm7855_vm9, 1, %v12615_v34  ;;  %v12702_v31 = vshrl.u32 %v7767_v57, 16 }
 0x1f9   : > { %v2033_v0 = vand.u32 8388607, %v12700_v35  ;;  %v1956_v36 = vsel %vm7862_vm12, 1, %v12615_v34  ;;  %v12703_v46 = vshll.u32 %v7839_v39, 16  ;;  %v7896_v35 = vor.u32 %v2044_v21, %v2043_v53 }
 0x1fa   : > { %v1928_v52 = vmul.u32 %v12701_v62, %v1922_v55  ;;  %v1950_v3 = vmul.u32 %v12702_v31, %v1922_v55  ;;  %v7898_v38 = vor.u32 %v2047_v60, %v2046_v24  ;;  %v7900_v62 = vor.u32 %v2050_v23, %v2049_v58 }
 0x1fb   : > { %vm1959_vm11 = vc.u32 %v7866_v45, %v12703_v46  ;;  %vm2058_vm7 = vcmp.lt.s32.totalorder %v7860_v51, 1  ;;  %vm2060_vm14 = vcmp.lt.s32.totalorder %v7860_v51, 3  ;;  %v2067_v32 = vsel %vm2061_vm10, %v2054_v4, 920167782 }
 0x1fc   : > { %v2071_v57 = vsel %vm2061_vm10, %v2057_v29, 1326507024  ;;  %v5553_v55 = vadd.s32 4294967294, %v1670_v40  ;;  %v1817_v12 = vadd.s32 536870912, %v7877_v19  ;;  %vm1937_vm3 = vc.u32 %v1935_v18, %v1931_v63 }
 0x1fd   : > { %v2034_v59 = vor.u32 8388608, %v2033_v0  ;;  %v1936_v15 = vadd.s32 %v1934_v13, %v1928_v52  ;;  %v1958_v26 = vadd.s32 %v1956_v36, %v1950_v3  ;;  %v1960_v48 = vsel %vm1959_vm11, 1, %v12615_v34 }
 0x1fe   : > { %vm2059_vm5 = vcmp.lt.s32.totalorder %v7860_v51, 2  ;;  %v2066_v58 = vsel %vm2058_vm7, %v7896_v35, %v7898_v38  ;;  %v2068_v47 = vsel %vm2060_vm14, %v7900_v62, %v2067_v32  ;;  %v2070_v0 = vsel %vm2058_vm7, %v7898_v38, %v7900_v62 }
 0x1ff   : > { %v2072_v52 = vsel %vm2060_vm14, %v2054_v4, %v2071_v57  ;;  %v1385_v63 = vmul.f32 -0.001358992, %v7824_v5  ;;  %v1392_v40 = vmul.f32 -0.00019511016, %v7824_v5  ;;  %v1523_v18 = vor.u32 %v1522_v61, %v1521_v25  ;;  %v12705_v61 = vld [vmem:[#allocation39_spill] sm:$0xff] }
 0x200   : > { %v1938_v53 = vsel %vm1937_vm3, 1, %v12615_v34  ;;  %v1528_v24 = vand.u32 2147483647, %v7841_v49  ;;  %vm5554_vm1 = vcmp.lt.s32.totalorder %v5553_v55, 0  ;;  %v7928_v21 = vshrl.u32 %v1817_v12, 30 }
 0x201   : > { %v7930_v60 = vshll.u32 %v2034_v59, 8  ;;  %v1952_v23 = vshrl.u32 %v7820_v44, 16  ;;  %v1962_v29 = vadd.s32 %v1960_v48, %v1958_v26  ;;  %v7935_v4 = vsel %vm2059_vm5, %v2066_v58, %v2068_v47  ;;  %v12707_v47 = vld [vmem:[#allocation23_spill] sm:$0xff] }
 0x202   : > { %12704 = vst [vmem:[#allocation38_spill] sm:$0xff] %v7928_v21  ;;  %v7939_v13 = vsel %vm2059_vm5, %v2070_v0, %v2072_v52  ;;  %v7943_v25 = vmul.f32 %v7783_v50, %v7620_v7  ;;  %v1930_v31 = vshrl.u32 %v7811_v56, 16  ;;  %v1940_v3 = vadd.s32 %v1938_v53, %v1936_v15  ;;  %v12706_v50 = vld [vmem:[#allocation22_spill] sm:$0xff] }
 0x203   : > { %v7948_v44 = vadd.f32 1.0, %v7815_v1  ;;  %v1386_v36 = vadd.f32 0.041655596, %v1385_v63  ;;  %v1530_v46 = vcvt.s32.f32 %v1523_v18  ;;  %v7950_v32 = vsel %vm5554_vm1, 0, %v5553_v55 }
 0x204   : > { %v1393_v57 = vadd.f32 0.008332121, %v1392_v40  ;;  %v2075_v12 = vand.u32 65535, %v7930_v60  ;;  %v2078_v59 = vshrl.u32 %v7939_v13, 16  ;;  %v2100_v7 = vshrl.u32 %v7935_v4, 16 }
 0x205   : > { %vm1412_vm4 = vcmp.lt.s32.totalorder %v12706_v50, 0  ;;  %v1531_v26 = vmul.f32 %v1530_v46, %v1528_v24  ;;  %v1819_v56 = vshll.u32 %v7928_v21, 30  ;;  %v1954_v15 = vshrl.u32 %v7839_v39, 16  ;;  %v12712_v21 = vld [vmem:[#allocation8_spill] sm:$0xff] }
 0x206   : > { %v1963_v1 = vadd.s32 %v1962_v29, %v1952_v23  ;;  %v1678_v48 = vsub.s32 4294967266, %v7950_v32  ;;  %v1932_v55 = vshrl.u32 %v7853_v54, 16  ;;  %v1941_v58 = vadd.s32 %v1940_v3, %v1930_v31 }
 0x207   : > { %v2183_v0 = vand.u32 2139095040, %v12707_v47  ;;  %v1888_v52 = vshrl.u32 %v12623_v27, %v7653_v16  ;;  %v2076_v63 = vshrl.u32 %v7930_v60, 16  ;;  %v2077_v40 = vand.u32 65535, %v7939_v13 }
 0x208   : > { %v2099_v18 = vand.u32 65535, %v7935_v4  ;;  %v1387_v53 = vmul.f32 %v1386_v36, %v7824_v5  ;;  %v1909_v24 = vsel %vm1907_vm2, %v7706_v2, 2102212464  ;;  %v7970_v23 = vmul.u32 %v2078_v59, %v2075_v12 }
 0x209   : > { %v7972_v54 = vmul.u32 %v2100_v7, %v2075_v12  ;;  %v1394_v29 = vmul.f32 %v1393_v57, %v7824_v5  ;;  %v1532_v31 = vxor.u32 2147483648, %v1531_v26  ;;  %v7976_v16 = vsub.s32 %v7877_v19, %v1819_v56 }
 0x20a   : > { %v1964_v3 = vadd.s32 %v1963_v1, %v1954_v15  ;;  %v12708_v13 = vand.u32 2147483647, %v12706_v50  ;;  %v1679_v36 = vadd.s32 127, %v1678_v48  ;;  %v7984_v46 = vadd.s32 %v1941_v58, %v1932_v55 }
 0x20b   : > { %v12711_v2 = vshll.u32 %v7839_v39, 16  ;;  %v2184_v57 = vshrl.u32 %v2183_v0, 23  ;;  %v1908_v19 = vsel %vm1904_vm8, %v1888_v52, %v7708_v22  ;;  %v1910_v56 = vsel %vm1906_vm13, %v7704_v33, %v1909_v24 }
 0x20c   : > { %vm7980_vm9 = vcmp.le.f32.partialorder %v12708_v13, 0.7853982  ;;  %v7997_v15 = vmul.u32 %v2077_v40, %v2076_v63  ;;  %v7999_v1 = vmul.u32 %v2099_v18, %v2076_v63  ;;  %v2079_v48 = vmul.u32 %v2077_v40, %v2075_v12 }
 0x20d   : > { %v7989_v49 = vadd.s32 %v7866_v45, %v12711_v2  ;;  %v2083_v55 = vshll.u32 %v7970_v23, 16  ;;  %v2101_v39 = vmul.u32 %v2099_v18, %v2075_v12  ;;  %v2105_v45 = vshll.u32 %v7972_v54, 16 }
 0x20e   : > { %v1658_v58 = vadd.s32 %v7607_v43, %v7602_v6  ;;  %v1674_v0 = vsub.s32 32, %v7950_v32  ;;  %v1822_v22 = vsub.s32 0, %v7976_v16  ;;  %v1968_v52 = vadd.s32 1, %v1964_v3 }
 0x20f   : > { %v1533_v33 = vsel %vm1412_vm4, %v1532_v31, %v1531_v26  ;;  %vm1821_vm2 = vcmp.lt.s32.totalorder %v7976_v16, 0  ;;  %vm1967_vm8 = vc.u32 %v7984_v46, %v7989_v49  ;;  %v5564_v40 = vadd.s32 4294967169, %v2184_v57 }
 0x210   : > { %v1680_v12 = vshll.u32 %v1679_v36, 23  ;;  %v1911_v18 = vsel %vm1905_vm15, %v1908_v19, %v1910_v56  ;;  %v2085_v6 = vshll.u32 %v7997_v15, 16  ;;  %v2107_v43 = vshll.u32 %v7999_v1, 16 }
 0x211   : > { %vm2087_vm13 = vc.u32 %v2079_v48, %v2083_v55  ;;  %v2089_v24 = vadd.s32 %v2083_v55, %v2079_v48  ;;  %vm2109_vm12 = vc.u32 %v2101_v39, %v2105_v45  ;;  %v8016_v13 = vadd.s32 %v2105_v45, %v2101_v39 }
 0x212   : > { %v1395_v26 = vadd.f32 -0.16666654, %v1394_v29  ;;  %v1676_v31 = vshrl.u32 %v1658_v58, %v1674_v0  ;;  %v1823_v2 = vsel %vm1821_vm2, %v1822_v22, %v7976_v16  ;;  %v1969_v41 = vsel %vm1967_vm8, %v1968_v52, %v1964_v3 }
 0x213   : > { %vm1091_vm11 = vweird.f32 %v12712_v21  ;;  %v1965_v36 = vmul.u32 %v7754_v17, %v1911_v18  ;;  %v2082_v28 = vmul.u32 %v2078_v59, %v2076_v63  ;;  %v2104_v57 = vmul.u32 %v2100_v7, %v2076_v63  ;;  %v12713_v17 = vld [vmem:[#allocation40_spill] sm:$0xff] }
 0x214   : > { %v2190_v19 = vadd.s32 1, %v5564_v40  ;;  %v8024_v56 = vsel %vm7980_vm9, %v12706_v50, %v1533_v33  ;;  %v1675_v48 = vshll.u32 %v7792_v20, %v7950_v32  ;;  %v2088_v29 = vsel %vm2087_vm13, 1, %v12615_v34 }
 0x215   : > { %v2110_v55 = vsel %vm2109_vm12, 1, %v12615_v34  ;;  %vm1248_vm15 = vcmp.eq.s32.totalorder %v7649_v14, 0  ;;  %v1681_v3 = vor.u32 4788187, %v1680_v12  ;;  %v8031_v39 = vadd.s32 %v1969_v41, %v1965_v36 }
 0x216   : > { %vm2091_vm3 = vc.u32 %v2089_v24, %v2085_v6  ;;  %vm2113_vm1 = vc.u32 %v8016_v13, %v2107_v43  ;;  %v1244_v59 = vmul.f32 %v7948_v44, %v12713_v17  ;;  %v12714_v20 = vsub.s32 4, %v12705_v61 }
 0x217   : > { %v1677_v7 = vor.u32 %v1676_v31, %v1675_v48  ;;  %v1824_v63 = vclz %v1823_v2  ;;  %v1388_v45 = vadd.f32 -0.4999988, %v1387_v53  ;;  %v2090_v58 = vadd.s32 %v2088_v29, %v2082_v28 }
 0x218   : > { %v1381_v32 = vsel %vm1258_vm0, %v12714_v20, %v12705_v61  ;;  %v2112_v41 = vadd.s32 %v2110_v55, %v2104_v57  ;;  %vm2191_vm2 = vcmp.gt.s32.totalorder %v2190_v19, 0  ;;  %vm1251_vm8 = vcmp.eq.s32.totalorder %v7649_v14, 2 }
 0x219   : > { %v1396_v0 = vmul.f32 %v1395_v26, %v7824_v5  ;;  %v8047_v22 = vmul.f32 %v8024_v56, %v8024_v56  ;;  %v2092_v44 = vsel %vm2091_vm3, 1, %v12615_v34  ;;  %v2114_v52 = vsel %vm2113_vm1, 1, %v12615_v34 }
 0x21a   : > { %v1236_v61 = vadd.f32 1.0, %v7943_v25  ;;  %vm1247_vm0 = vcmp.lt.s32.totalorder %v7649_v14, 2  ;;  %v1383_v53 = vsel %vm7720_vm6, 0, %v1381_v32  ;;  %v1682_v33 = vand.u32 2147483647, %v1681_v3  ;;  %v12717_v3 = vld [vmem:[#allocation10_spill] sm:$0xff] }
 0x21b   : > { %v1971_v40 = vadd.s32 536870912, %v8031_v39  ;;  %v1249_v12 = vxor.u32 2147483648, %v1244_v59  ;;  %v1684_v18 = vcvt.s32.f32 %v1677_v7  ;;  %v5556_v6 = vadd.s32 4294967294, %v1824_v63 }
 0x21c   : > { %v2192_v24 = vsel %vm2191_vm2, %v2190_v19, 0  ;;  %v2084_v26 = vshrl.u32 %v7970_v23, 16  ;;  %v2094_v31 = vadd.s32 %v2092_v44, %v2090_v58  ;;  %v2106_v2 = vshrl.u32 %v7972_v54, 16  ;;  %v12718_v44 = vld [vmem:[#allocation41_spill] sm:$0xff] }
 0x21d   : > { %v2116_v36 = vadd.s32 %v2114_v52, %v2112_v41  ;;  %v8061_v25 = vsel %vm1091_vm11, nan, %v7772_v42  ;;  %v1389_v10 = vmul.f32 %v1388_v45, %v7824_v5  ;;  %v1397_v28 = vadd.f32 1.0, %v1396_v0 }
 0x21e   : > { %12715 = vst [vmem:[#allocation39_spill] sm:$0xff] %v8061_v25  ;;  %v1539_v57 = vmul.f32 -0.001358992, %v8047_v22  ;;  %v1252_v48 = vxor.u32 2147483648, %v1236_v61  ;;  %v1685_v29 = vmul.f32 %v1684_v18, %v1682_v33  ;;  %v8065_v55 = vshrl.u32 %v1971_v40, 30 }
 0x21f   : > { %v2194_v19 = vand.u32 31, %v2192_v24  ;;  %v1250_v23 = vsel %vm1248_vm15, %v1236_v61, %v1249_v12  ;;  %v8069_v54 = vand.u32 3, %v1383_v53  ;;  %vm1566_vm6 = vcmp.lt.s32.totalorder %v12717_v3, 0 }
 0x220   : > { %12716 = vst [vmem:[#allocation22_spill] sm:$0xff] %v8065_v55  ;;  %vm5557_vm13 = vcmp.lt.s32.totalorder %v5556_v6, 0  ;;  %v2086_v42 = vshrl.u32 %v7997_v15, 16  ;;  %v2095_v21 = vadd.s32 %v2094_v31, %v2084_v26  ;;  %v2108_v5 = vshrl.u32 %v7999_v1, 16 }
 0x221   : > { %v2117_v17 = vadd.s32 %v2116_v36, %v2106_v2  ;;  %v8074_v20 = vadd.f32 1.0, %v1389_v10  ;;  %v8077_v32 = vmul.f32 %v1397_v28, %v7789_v11  ;;  %v1540_v7 = vadd.f32 0.041655596, %v1539_v57 }
 0x222   : > { %v1546_v63 = vmul.f32 -0.00019511016, %v8047_v22  ;;  %v1253_v45 = vsel %vm1251_vm8, %v1252_v48, %v1244_v59  ;;  %v1686_v58 = vxor.u32 2147483648, %v1685_v29  ;;  %v1973_v41 = vshll.u32 %v8065_v55, 30 }
 0x223   : > { %v8083_v0 = vsub.s32 32, %v2194_v19  ;;  %v8087_v15 = vsel %vm1247_vm0, %v1250_v23, %v1253_v45  ;;  %v1534_v52 = vsub.s32 4, %v12718_v44  ;;  %v8090_v61 = vsel %vm5557_vm13, 0, %v5556_v6 }
 0x224   : > { %v2042_v11 = vshrl.u32 %v12623_v27, %v7834_v30  ;;  %v2063_v59 = vsel %vm2061_vm10, %v7900_v62, 2102212464  ;;  %v8097_v53 = vadd.s32 %v2095_v21, %v2086_v42  ;;  %v8102_v33 = vadd.s32 %v8016_v13, %v2107_v43 }
 0x225   : > { %v2118_v14 = vadd.s32 %v2117_v17, %v2108_v5  ;;  %v1403_v40 = vxor.u32 2147483648, %v8077_v32  ;;  %v1406_v12 = vxor.u32 2147483648, %v8074_v20  ;;  %v8107_v18 = vmul.f32 %v1540_v7, %v8047_v22 }
 0x226   : > { %v1547_v30 = vadd.f32 0.008332121, %v1546_v63  ;;  %v12719_v6 = vand.u32 2147483647, %v12717_v3  ;;  %v1687_v1 = vsel %vm1566_vm6, %v1686_v58, %v1685_v29  ;;  %v8118_v43 = vsub.s32 %v8031_v39, %v1973_v41  ;;  %v12725_v63 = vld [vmem:[#allocation24_spill] sm:$0xff] }
 0x227   : > { %v12722_v13 = vmov 920167782   ;;  %v12723_v31 = vmov 1326507024   ;;  %v1832_v36 = vsub.s32 4294967266, %v8090_v61  ;;  %v2062_v10 = vsel %vm2058_vm7, %v2042_v11, %v7896_v35 }
 0x228   : > { %vm8111_vm12 = vcmp.le.f32.partialorder %v12719_v6, 0.7853982  ;;  %v2207_v26 = vshrl.u32 %v12722_v13, %v8083_v0  ;;  %v2210_v2 = vshrl.u32 %v12723_v31, %v8083_v0  ;;  %v2064_v28 = vsel %vm2060_vm14, %v7898_v38, %v2063_v59 }
 0x229   : > { %v12478_v57 = vand.u32 2147483647, %v12707_v47  ;;  %vm2121_vm10 = vc.u32 %v8097_v53, %v8102_v33  ;;  %v2122_v39 = vadd.s32 1, %v2118_v14  ;;  %v2206_v48 = vshll.u32 %v12620_v8, %v2194_v19 }
 0x22a   : > { %v2209_v29 = vshll.u32 %v12722_v13, %v2194_v19  ;;  %v8136_v23 = vshrl.u32 %v2192_v24, 5  ;;  %v12724_v42 = vmov 2475754826   ;;  %v2201_v35 = vshrl.u32 %v12639_v9, %v8083_v0 }
 0x22b   : > { %v2198_v21 = vshrl.u32 %v12724_v42, %v8083_v0  ;;  %v2204_v38 = vshrl.u32 %v12620_v8, %v8083_v0  ;;  %vm1402_vm7 = vcmp.eq.s32.totalorder %v8069_v54, 0  ;;  %v1976_v5 = vsub.s32 0, %v8118_v43 }
 0x22c   : > { %v2208_v17 = vor.u32 %v2207_v26, %v2206_v48  ;;  %v2211_v7 = vor.u32 %v2210_v2, %v2209_v29  ;;  %v2337_v45 = vand.u32 2139095040, %v12725_v63  ;;  %v2065_v24 = vsel %vm2059_vm5, %v2062_v10, %v2064_v28 }
 0x22d   : > { %v2197_v58 = vshll.u32 %v12623_v27, %v2194_v19  ;;  %v2200_v41 = vshll.u32 %v12724_v42, %v2194_v19  ;;  %v2203_v11 = vshll.u32 %v12639_v9, %v2194_v19  ;;  %vm1405_vm14 = vcmp.eq.s32.totalorder %v8069_v54, 2 }
 0x22e   : > { %v1833_v59 = vadd.s32 127, %v1832_v36  ;;  %vm1975_vm11 = vcmp.lt.s32.totalorder %v8118_v43, 0  ;;  %v2123_v6 = vsel %vm2121_vm10, %v2122_v39, %v2118_v14  ;;  %v2187_v26 = vand.u32 8388607, %v12478_v57 }
 0x22f   : > { %v8159_v51 = vor.u32 %v2198_v21, %v2197_v58  ;;  %v8161_v2 = vor.u32 %v2201_v35, %v2200_v41  ;;  %v8163_v10 = vor.u32 %v2204_v38, %v2203_v11  ;;  %vm2215_vm5 = vcmp.lt.s32.totalorder %v8136_v23, 4  ;;  %v12726_v35 = vld [vmem:[#allocation13_spill] sm:$0xff] }
 0x230   : > { %vm1401_vm15 = vcmp.lt.s32.totalorder %v8069_v54, 2  ;;  %v2119_v19 = vmul.u32 %v7930_v60, %v2065_v24  ;;  %v2221_v36 = vsel %vm2215_vm5, %v2208_v17, 920167782  ;;  %v2225_v14 = vsel %vm2215_vm5, %v2211_v7, 1326507024  ;;  %v12728_v24 = vld [vmem:[#allocation43_spill] sm:$0xff] }
 0x231   : > { %v2338_v28 = vshrl.u32 %v2337_v45, 23  ;;  %v1548_v39 = vmul.f32 %v1547_v30, %v8047_v22  ;;  %v8176_v48 = vsel %vm8111_vm12, %v12717_v3, %v1687_v1  ;;  %v1828_v29 = vsub.s32 32, %v8090_v61  ;;  %v12727_v45 = vld [vmem:[#allocation42_spill] sm:$0xff] }
 0x232   : > { %v1977_v21 = vsel %vm1975_vm11, %v1976_v5, %v8118_v43  ;;  %vm1245_vm3 = vweird.f32 %v12726_v35  ;;  %v8181_v60 = vadd.s32 %v2123_v6, %v2119_v19  ;;  %v2188_v38 = vor.u32 8388608, %v2187_v26 }
 0x233   : > { %vm2212_vm1 = vcmp.lt.s32.totalorder %v8136_v23, 1  ;;  %vm2214_vm2 = vcmp.lt.s32.totalorder %v8136_v23, 3  ;;  %vm1399_vm8 = vweird.f32 %v12686_v37  ;;  %v1812_v58 = vadd.s32 %v12728_v24, %v12727_v45 }
 0x234   : > { %v2220_v30 = vsel %vm2212_vm1, %v8159_v51, %v8161_v2  ;;  %v2222_v1 = vsel %vm2214_vm2, %v8163_v10, %v2221_v36  ;;  %v2224_v5 = vsel %vm2212_vm1, %v8161_v2, %v8163_v10  ;;  %v2226_v7 = vsel %vm2214_vm2, %v2208_v17, %v2225_v14 }
 0x235   : > { %v1834_v41 = vshll.u32 %v1833_v59, 23  ;;  %v1978_v11 = vclz %v1977_v21  ;;  %v5567_v6 = vadd.s32 4294967169, %v2338_v28  ;;  %v1404_v26 = vsel %vm1402_vm7, %v8074_v20, %v1403_v40 }
 0x236   : > { %v1535_v17 = vsel %vm1412_vm4, %v1534_v52, %v12718_v44  ;;  %v8213_v19 = vmul.f32 %v8176_v48, %v8176_v48  ;;  %vm2213_vm0 = vcmp.lt.s32.totalorder %v8136_v23, 2  ;;  %v1830_v59 = vshrl.u32 %v1812_v58, %v1828_v29 }
 0x237   : > { %v2125_v36 = vadd.s32 536870912, %v8181_v60  ;;  %v8219_v14 = vsel %vm2213_vm0, %v2220_v30, %v2222_v1  ;;  %v8223_v40 = vsel %vm2213_vm0, %v2224_v5, %v2226_v7  ;;  %v1407_v44 = vsel %vm1405_vm14, %v1406_v12, %v8077_v32  ;;  %v12729_v12 = vld [vmem:[#allocation21_spill] sm:$0xff] }
 0x238   : > { %v1542_v52 = vadd.f32 -0.4999988, %v8107_v18  ;;  %v1549_v28 = vadd.f32 -0.16666654, %v1548_v39  ;;  %v8231_v29 = vshll.u32 %v2188_v38, 8  ;;  %v1829_v21 = vshll.u32 %v7976_v16, %v8090_v61 }
 0x239   : > { %v1835_v30 = vor.u32 4788187, %v1834_v41  ;;  %v5559_v1 = vadd.s32 4294967294, %v1978_v11  ;;  %v2344_v45 = vadd.s32 1, %v5567_v6  ;;  %v1408_v5 = vsel %vm1401_vm15, %v1404_v26, %v1407_v44 }
 0x23a   : > { %v1537_v20 = vsel %vm7980_vm9, 0, %v1535_v17  ;;  %v12480_v7 = vshrl.u32 %v8223_v40, 16  ;;  %v12479_v32 = vshrl.u32 %v8219_v14, 16  ;;  %v1688_v18 = vsub.s32 4, %v12729_v12 }
 0x23b   : > { %v1693_v39 = vmul.f32 -0.001358992, %v8213_v19  ;;  %v1831_v38 = vor.u32 %v1830_v59, %v1829_v21  ;;  %v8243_v24 = vshrl.u32 %v2125_v36, 30  ;;  %v8248_v16 = vsel %vm1245_vm3, nan, %v8087_v15  ;;  %v12733_v59 = vld [vmem:[#allocation11_spill] sm:$0xff] }
 0x23c   : > { %12731 = vst [vmem:[#allocation40_spill] sm:$0xff] %v8248_v16  ;;  %v1543_v54 = vmul.f32 %v1542_v52, %v8047_v22  ;;  %v1550_v4 = vmul.f32 %v1549_v28, %v8047_v22  ;;  %v2229_v61 = vand.u32 65535, %v8231_v29  ;;  %v1700_v58 = vmul.f32 -0.00019511016, %v8213_v19 }
 0x23d   : > { %12730 = vst [vmem:[#allocation8_spill] sm:$0xff] %v8243_v24  ;;  %v1836_v41 = vand.u32 2147483647, %v1835_v30  ;;  %vm5560_vm4 = vcmp.lt.s32.totalorder %v5559_v1, 0  ;;  %vm2345_vm9 = vcmp.gt.s32.totalorder %v2344_v45, 0  ;;  %v8256_v11 = vsel %vm1399_vm8, nan, %v1408_v5 }
 0x23e   : > { %12732 = vst [vmem:[#allocation41_spill] sm:$0xff] %v8256_v11  ;;  %v8258_v6 = vand.u32 3, %v1537_v20  ;;  %v8262_v15 = vmul.u32 %v12480_v7, %v2229_v61  ;;  %v8266_v22 = vmul.u32 %v12479_v32, %v2229_v61  ;;  %v8271_v35 = vsel %vm1566_vm6, %v1688_v18, %v12729_v12 }
 0x23f   : > { %v1694_v26 = vadd.f32 0.041655596, %v1693_v39  ;;  %v1838_v17 = vcvt.s32.f32 %v1831_v38  ;;  %v2127_v37 = vshll.u32 %v8243_v24, 30  ;;  %vm1720_vm13 = vcmp.lt.s32.totalorder %v12733_v59, 0 }
 0x240   : > { %v8275_v36 = vsel %vm5560_vm4, 0, %v5559_v1  ;;  %v2231_v44 = vand.u32 65535, %v8223_v40  ;;  %v2253_v52 = vand.u32 65535, %v8219_v14  ;;  %v2346_v28 = vsel %vm2345_vm9, %v2344_v45, 0 }
 0x241   : > { %v8279_v21 = vadd.f32 1.0, %v1543_v54  ;;  %v1551_v30 = vadd.f32 1.0, %v1550_v4  ;;  %v1701_v5 = vadd.f32 0.008332121, %v1700_v58  ;;  %v1839_v20 = vmul.f32 %v1838_v17, %v1836_v41 }
 0x242   : > { %v2230_v18 = vshrl.u32 %v8231_v29, 16  ;;  %v2237_v39 = vshll.u32 %v8262_v15, 16  ;;  %v2259_v1 = vshll.u32 %v8266_v22, 16  ;;  %v1695_v38 = vmul.f32 %v1694_v26, %v8213_v19 }
 0x243   : > { %v1986_v57 = vsub.s32 4294967266, %v8275_v36  ;;  %v8290_v45 = vsub.s32 %v8181_v60, %v2127_v37  ;;  %v2348_v54 = vand.u32 31, %v2346_v28  ;;  %v2233_v4 = vmul.u32 %v2231_v44, %v2229_v61 }
 0x244   : > { %v8292_v58 = vmul.u32 %v2231_v44, %v2230_v18  ;;  %v2255_v41 = vmul.u32 %v2253_v52, %v2229_v61  ;;  %v8294_v17 = vmul.u32 %v2253_v52, %v2230_v18  ;;  %v8297_v12 = vmul.f32 %v1551_v30, %v8024_v56 }
 0x245   : > { %v1702_v7 = vmul.f32 %v1701_v5, %v8213_v19  ;;  %v1840_v26 = vxor.u32 2147483648, %v1839_v20  ;;  %vm2241_vm6 = vc.u32 %v2233_v4, %v2237_v39  ;;  %v2243_v11 = vadd.s32 %v2237_v39, %v2233_v4 }
 0x246   : > { %vm2263_vm10 = vc.u32 %v2255_v41, %v2259_v1  ;;  %v8301_v60 = vadd.s32 %v2259_v1, %v2255_v41  ;;  %v8303_v37 = vadd.f32 -0.4999988, %v1695_v38  ;;  %v1982_v44 = vsub.s32 32, %v8275_v36 }
 0x247   : > { %v1987_v61 = vadd.s32 127, %v1986_v57  ;;  %v8306_v52 = vsub.s32 32, %v2348_v54  ;;  %v1966_v56 = vadd.s32 %v7989_v49, %v7984_v46  ;;  %v2130_v30 = vsub.s32 0, %v8290_v45 }
 0x248   : > { %v2239_v5 = vshll.u32 %v8292_v58, 16  ;;  %v12481_v32 = vshll.u32 %v8294_v17, 16  ;;  %v1841_v39 = vsel %vm1720_vm13, %v1840_v26, %v1839_v20  ;;  %vm2129_vm7 = vcmp.lt.s32.totalorder %v8290_v45, 0 }
 0x249   : > { %v2242_v1 = vsel %vm2241_vm6, 1, %v12615_v34  ;;  %v2264_v57 = vsel %vm2263_vm10, 1, %v12615_v34  ;;  %v12734_v38 = vshrl.u32 %v8223_v40, 16  ;;  %v12735_v49 = vshrl.u32 %v8219_v14, 16 }
 0x24a   : > { %vm2245_vm14 = vc.u32 %v2243_v11, %v2239_v5  ;;  %vm2267_vm11 = vc.u32 %v8301_v60, %v12481_v32  ;;  %v12736_v41 = vand.u32 2147483647, %v12733_v59  ;;  %v1983_v26 = vshll.u32 %v8118_v43, %v8275_v36 }
 0x24b   : > { %v2236_v4 = vmul.u32 %v12734_v38, %v2230_v18  ;;  %v2258_v46 = vmul.u32 %v12735_v49, %v2230_v18  ;;  %v1984_v16 = vshrl.u32 %v1966_v56, %v1982_v44  ;;  %v1988_v40 = vshll.u32 %v1987_v61, 23 }
 0x24c   : > { %vm8327_vm15 = vcmp.le.f32.partialorder %v12736_v41, 0.7853982  ;;  %v2361_v11 = vshrl.u32 %v12722_v13, %v8306_v52  ;;  %v2131_v14 = vsel %vm2129_vm7, %v2130_v30, %v8290_v45  ;;  %v2246_v49 = vsel %vm2245_vm14, 1, %v12615_v34 }
 0x24d   : > { %v2244_v18 = vadd.s32 %v2242_v1, %v2236_v4  ;;  %v2266_v5 = vadd.s32 %v2264_v57, %v2258_v46  ;;  %v2268_v41 = vsel %vm2267_vm11, 1, %v12615_v34  ;;  %v2360_v32 = vshll.u32 %v12620_v8, %v2348_v54 }
 0x24e   : > { %v2364_v43 = vshrl.u32 %v12723_v31, %v8306_v52  ;;  %v8342_v36 = vshrl.u32 %v2346_v28, 5  ;;  %v2352_v44 = vshrl.u32 %v12724_v42, %v8306_v52  ;;  %v2355_v61 = vshrl.u32 %v12639_v9, %v8306_v52 }
 0x24f   : > { %v2358_v56 = vshrl.u32 %v12620_v8, %v8306_v52  ;;  %v1989_v30 = vor.u32 4788187, %v1988_v40  ;;  %v2132_v1 = vclz %v2131_v14  ;;  %v2362_v57 = vor.u32 %v2361_v11, %v2360_v32 }
 0x250   : > { %v2363_v4 = vshll.u32 %v12722_v13, %v2348_v54  ;;  %v2270_v46 = vadd.s32 %v2268_v41, %v2266_v5  ;;  %v2351_v38 = vshll.u32 %v12623_v27, %v2348_v54  ;;  %v2354_v28 = vshll.u32 %v12724_v42, %v2348_v54 }
 0x251   : > { %v2357_v25 = vshll.u32 %v12639_v9, %v2348_v54  ;;  %v2248_v47 = vadd.s32 %v2246_v49, %v2244_v18  ;;  %v2260_v24 = vshrl.u32 %v8266_v22, 16  ;;  %v12739_v3 = vand.u32 2147483647, %v12725_v63 }
 0x252   : > { %v2365_v55 = vor.u32 %v2364_v43, %v2363_v4  ;;  %v8357_v8 = vor.u32 %v2352_v44, %v2351_v38  ;;  %v8359_v40 = vor.u32 %v2355_v61, %v2354_v28  ;;  %vm2369_vm3 = vcmp.lt.s32.totalorder %v8342_v36, 4 }
 0x253   : > { %v2341_v31 = vand.u32 8388607, %v12739_v3  ;;  %v8361_v32 = vor.u32 %v2358_v56, %v2357_v25  ;;  %v1703_v11 = vadd.f32 -0.16666654, %v1702_v7  ;;  %v1985_v14 = vor.u32 %v1984_v16, %v1983_v26 }
 0x254   : > { %v2238_v5 = vshrl.u32 %v8262_v15, 16  ;;  %v2375_v54 = vsel %vm2369_vm3, %v2362_v57, 920167782  ;;  %v8370_v3 = vsel %vm8327_vm15, %v12733_v59, %v1841_v39  ;;  %v1990_v22 = vand.u32 2147483647, %v1989_v30  ;;  %v12740_v30 = vld [vmem:[#allocation12_spill] sm:$0xff] }
 0x255   : > { %v5562_v18 = vadd.s32 4294967294, %v2132_v1  ;;  %v2271_v38 = vadd.s32 %v2270_v46, %v2260_v24  ;;  %vm2366_vm8 = vcmp.lt.s32.totalorder %v8342_v36, 1  ;;  %vm2368_vm4 = vcmp.lt.s32.totalorder %v8342_v36, 3 }
 0x256   : > { %v2249_v49 = vadd.s32 %v2248_v47, %v2238_v5  ;;  %v2379_v25 = vsel %vm2369_vm3, %v2365_v55, 1326507024  ;;  %vm1556_vm9 = vcmp.eq.s32.totalorder %v8258_v6, 0  ;;  %vm1559_vm6 = vcmp.eq.s32.totalorder %v8258_v6, 2 }
 0x257   : > { %v2262_v7 = vshrl.u32 %v8294_v17, 16  ;;  %v2342_v16 = vor.u32 8388608, %v2341_v31  ;;  %v2374_v24 = vsel %vm2366_vm8, %v8357_v8, %v8359_v40  ;;  %v2376_v47 = vsel %vm2368_vm4, %v8361_v32, %v2375_v54 }
 0x258   : > { %v8388_v15 = vmul.f32 %v8370_v3, %v8370_v3  ;;  %v1992_v55 = vcvt.s32.f32 %v1985_v14  ;;  %v2217_v39 = vsel %vm2215_vm5, %v8163_v10, 2102212464  ;;  %v2240_v31 = vshrl.u32 %v8292_v58, 16 }
 0x259   : > { %v2272_v26 = vadd.s32 %v2271_v38, %v2262_v7  ;;  %vm2367_vm10 = vcmp.lt.s32.totalorder %v8342_v36, 2  ;;  %v2378_v41 = vsel %vm2366_vm8, %v8359_v40, %v8361_v32  ;;  %v2380_v43 = vsel %vm2368_vm4, %v2362_v57, %v2379_v25  ;;  %v12747_v25 = vld [vmem:[#allocation38_spill] sm:$0xff] }
 0x25a   : > { %vm1555_vm7 = vcmp.lt.s32.totalorder %v8258_v6, 2  ;;  %vm5563_vm14 = vcmp.lt.s32.totalorder %v5562_v18, 0  ;;  %v2196_v44 = vshrl.u32 %v12623_v27, %v8083_v0  ;;  %v8404_v10 = vadd.s32 %v2249_v49, %v2240_v31 }
 0x25b   : > { %v8408_v58 = vsel %vm2367_vm10, %v2374_v24, %v2376_v47  ;;  %v1557_v61 = vxor.u32 2147483648, %v8297_v12  ;;  %v1704_v56 = vmul.f32 %v1703_v11, %v8213_v19  ;;  %vm1874_vm5 = vcmp.lt.s32.totalorder %v12740_v30, 0 }
 0x25c   : > { %v1993_v1 = vmul.f32 %v1992_v55, %v1990_v22  ;;  %v8413_v57 = vshll.u32 %v2342_v16, 8  ;;  %v2216_v4 = vsel %vm2212_vm1, %v2196_v44, %v8159_v51  ;;  %v2218_v0 = vsel %vm2214_vm2, %v8161_v2, %v2217_v39  ;;  %v12742_v22 = vld [vmem:[#allocation25_spill] sm:$0xff] }
 0x25d   : > { %v12741_v46 = vshll.u32 %v8294_v17, 16  ;;  %v8428_v11 = vsel %vm2367_vm10, %v2378_v41, %v2380_v43  ;;  %v8430_v14 = vsel %vm5563_vm14, 0, %v5562_v18  ;;  %v2276_v5 = vadd.s32 1, %v2272_v26 }
 0x25e   : > { %v2408_v54 = vshrl.u32 %v8408_v58, 16  ;;  %v2491_v51 = vand.u32 2139095040, %v12742_v22  ;;  %v1697_v38 = vmul.f32 %v8303_v37, %v8213_v19  ;;  %v12743_v2 = vsel %vm8111_vm12, 0, %v8271_v35 }
 0x25f   : > { %v8424_v28 = vadd.s32 %v8301_v60, %v12741_v46  ;;  %v8440_v17 = vand.u32 3, %v12743_v2  ;;  %v1854_v60 = vmul.f32 -0.00019511016, %v8388_v15  ;;  %v12744_v49 = vand.u32 2147483647, %v12740_v30 }
 0x260   : > { %v1842_v7 = vsub.s32 4, %v12747_v25  ;;  %v2219_v62 = vsel %vm2213_vm0, %v2216_v4, %v2218_v0  ;;  %v2383_v19 = vand.u32 65535, %v8413_v57  ;;  %v2386_v35 = vshrl.u32 %v8428_v11, 16 }
 0x261   : > { %vm8445_vm1 = vcmp.le.f32.partialorder %v12744_v49, 0.7853982  ;;  %vm2275_vm2 = vc.u32 %v8404_v10, %v8424_v28  ;;  %v1558_v37 = vsel %vm1556_vm9, %v8279_v21, %v1557_v61  ;;  %v12748_v16 = vxor.u32 2147483648, %v8279_v21 }
 0x262   : > { %v1994_v47 = vxor.u32 2147483648, %v1993_v1  ;;  %v2140_v55 = vsub.s32 4294967266, %v8430_v14  ;;  %v1705_v39 = vadd.f32 1.0, %v1704_v56  ;;  %v2277_v23 = vsel %vm2275_vm2, %v2276_v5, %v2272_v26 }
 0x263   : > { %v1561_v24 = vsel %vm1559_vm6, %v12748_v16, %v8297_v12  ;;  %v8467_v31 = vmul.u32 %v2408_v54, %v2383_v19  ;;  %v2492_v41 = vshrl.u32 %v2491_v51, 23  ;;  %v8469_v43 = vadd.f32 1.0, %v1697_v38 }
 0x264   : > { %v1847_v44 = vmul.f32 -0.001358992, %v8388_v15  ;;  %v1855_v61 = vadd.f32 0.008332121, %v1854_v60  ;;  %v2273_v21 = vmul.u32 %v8231_v29, %v2219_v62  ;;  %v8475_v12 = vsel %vm1555_vm7, %v1558_v37, %v1561_v24 }
 0x265   : > { %v8480_v26 = vsel %vm1720_vm13, %v1842_v7, %v12747_v25  ;;  %v8484_v56 = vmul.u32 %v2386_v35, %v2383_v19  ;;  %v2407_v4 = vand.u32 65535, %v8408_v58  ;;  %v1995_v0 = vsel %vm1874_vm5, %v1994_v47, %v1993_v1 }
 0x266   : > { %v2141_v46 = vadd.s32 127, %v2140_v55  ;;  %v8489_v29 = vadd.s32 %v2277_v23, %v2273_v21  ;;  %v2385_v6 = vand.u32 65535, %v8428_v11  ;;  %v8493_v5 = vmul.f32 %v1705_v39, %v8176_v48 }
 0x267   : > { %v2384_v51 = vshrl.u32 %v8413_v57, 16  ;;  %v2413_v38 = vshll.u32 %v8467_v31, 16  ;;  %v5570_v2 = vadd.s32 4294967169, %v2492_v41  ;;  %v1848_v49 = vadd.f32 0.041655596, %v1847_v44 }
 0x268   : > { %v1856_v25 = vmul.f32 %v1855_v61, %v8388_v15  ;;  %v2136_v1 = vsub.s32 32, %v8430_v14  ;;  %v8503_v7 = vsel %vm8445_vm1, %v12740_v30, %v1995_v0  ;;  %v2391_v48 = vshll.u32 %v8484_v56, 16 }
 0x269   : > { %v2409_v62 = vmul.u32 %v2407_v4, %v2383_v19  ;;  %v8506_v37 = vmul.u32 %v2407_v4, %v2384_v51  ;;  %v2120_v16 = vadd.s32 %v8102_v33, %v8097_v53  ;;  %v2142_v24 = vshll.u32 %v2141_v46, 23 }
 0x26a   : > { %v2279_v47 = vadd.s32 536870912, %v8489_v29  ;;  %v2387_v55 = vmul.u32 %v2385_v6, %v2383_v19  ;;  %v8511_v39 = vmul.u32 %v2385_v6, %v2384_v51  ;;  %v2498_v41 = vadd.s32 1, %v5570_v2 }
 0x26b   : > { %vm2417_vm12 = vc.u32 %v2409_v62, %v2413_v38  ;;  %v8513_v23 = vadd.s32 %v2413_v38, %v2409_v62  ;;  %vm1553_vm0 = vweird.f32 %v12706_v50  ;;  %v1845_v44 = vsel %vm8327_vm15, 0, %v8480_v26 }
 0x26c   : > { %v1849_v61 = vmul.f32 %v1848_v49, %v8388_v15  ;;  %v8522_v53 = vmul.f32 %v8503_v7, %v8503_v7  ;;  %v2138_v33 = vshrl.u32 %v2120_v16, %v2136_v1  ;;  %v1857_v19 = vadd.f32 -0.16666654, %v1856_v25 }
 0x26d   : > { %vm2395_vm13 = vc.u32 %v2387_v55, %v2391_v48  ;;  %v2397_v21 = vadd.s32 %v2391_v48, %v2387_v55  ;;  %v12490_v4 = vshll.u32 %v8506_v37, 16  ;;  %v2137_v0 = vshll.u32 %v8290_v45, %v8430_v14  ;;  %v12749_v55 = vld [vmem:[#allocation22_spill] sm:$0xff] }
 0x26e   : > { %v2143_v46 = vor.u32 4788187, %v2142_v24  ;;  %v8527_v6 = vshrl.u32 %v2279_v47, 30  ;;  %v2418_v20 = vsel %vm2417_vm12, 1, %v12615_v34  ;;  %vm1710_vm11 = vcmp.eq.s32.totalorder %v8440_v17, 0 }
 0x26f   : > { %v2393_v26 = vshll.u32 %v8511_v39, 16  ;;  %v2412_v38 = vmul.u32 %v2408_v54, %v2384_v51  ;;  %vm2421_vm15 = vc.u32 %v8513_v23, %v12490_v4  ;;  %vm2499_vm9 = vcmp.gt.s32.totalorder %v2498_v41, 0 }
 0x270   : > { %v2001_v2 = vmul.f32 -0.001358992, %v8522_v53  ;;  %v2008_v45 = vmul.f32 -0.00019511016, %v8522_v53  ;;  %v2139_v14 = vor.u32 %v2138_v33, %v2137_v0  ;;  %v2396_v49 = vsel %vm2395_vm13, 1, %v12615_v34 }
 0x271   : > { %v1850_v25 = vadd.f32 -0.4999988, %v1849_v61  ;;  %v2390_v1 = vmul.u32 %v2386_v35, %v2384_v51  ;;  %vm2399_vm6 = vc.u32 %v2397_v21, %v2393_v26  ;;  %v2420_v48 = vadd.s32 %v2418_v20, %v2412_v38 }
 0x272   : > { %v2144_v58 = vand.u32 2147483647, %v2143_v46  ;;  %v2281_v54 = vshll.u32 %v8527_v6, 30  ;;  %v2422_v62 = vsel %vm2421_vm15, 1, %v12615_v34  ;;  %v2500_v16 = vsel %vm2499_vm9, %v2498_v41, 0 }
 0x273   : > { %v1711_v24 = vxor.u32 2147483648, %v8493_v5  ;;  %v1858_v47 = vmul.f32 %v1857_v19, %v8388_v15  ;;  %v1996_v33 = vsub.s32 4, %v12749_v55  ;;  %v2398_v0 = vadd.s32 %v2396_v49, %v2390_v1 }
 0x274   : > { %v2002_v4 = vadd.f32 0.041655596, %v2001_v2  ;;  %v2009_v61 = vadd.f32 0.008332121, %v2008_v45  ;;  %v2146_v60 = vcvt.s32.f32 %v2139_v14  ;;  %v2400_v11 = vsel %vm2399_vm6, 1, %v12615_v34  ;;  %v12752_v45 = vld [vmem:[#allocation14_spill] sm:$0xff] }
 0x275   : > { %v8551_v35 = vsel %vm1553_vm0, nan, %v8475_v12  ;;  %vm1713_vm7 = vcmp.eq.s32.totalorder %v8440_v17, 2  ;;  %v2424_v51 = vadd.s32 %v2422_v62, %v2420_v48  ;;  %v2502_v41 = vand.u32 31, %v2500_v16 }
 0x276   : > { %12750 = vst [vmem:[#allocation24_spill] sm:$0xff] %v8551_v35  ;;  %v1851_v21 = vmul.f32 %v1850_v25, %v8388_v15  ;;  %v8555_v19 = vand.u32 3, %v1845_v44  ;;  %v2147_v46 = vmul.f32 %v2146_v60, %v2144_v58  ;;  %v8558_v20 = vsub.s32 %v8489_v29, %v2281_v54  ;;  %v12767_v35 = vld [vmem:[#allocation23_spill] sm:$0xff] }
 0x277   : > { %v1859_v26 = vadd.f32 1.0, %v1858_v47  ;;  %v8563_v38 = vsel %vm1874_vm5, %v1996_v33, %v12749_v55  ;;  %v2402_v50 = vadd.s32 %v2400_v11, %v2398_v0  ;;  %v2414_v12 = vshrl.u32 %v8467_v31, 16 }
 0x278   : > { %v8569_v2 = vsel %vm1710_vm11, %v8469_v43, %v1711_v24  ;;  %v12751_v15 = vxor.u32 2147483648, %v8469_v43  ;;  %v2003_v29 = vmul.f32 %v2002_v4, %v8522_v53  ;;  %v2010_v44 = vmul.f32 %v2009_v61, %v8522_v53 }
 0x279   : > { %vm2028_vm14 = vcmp.lt.s32.totalorder %v12752_v45, 0  ;;  %v2392_v14 = vshrl.u32 %v8484_v56, 16  ;;  %v2425_v49 = vadd.s32 %v2424_v51, %v2414_v12  ;;  %v8580_v31 = vsub.s32 32, %v2502_v41 }
 0x27a   : > { %v8574_v60 = vsel %vm1713_vm7, %v12751_v15, %v8493_v5  ;;  %v8582_v25 = vadd.f32 1.0, %v1851_v21  ;;  %v1999_v1 = vsel %vm8445_vm1, 0, %v8563_v38  ;;  %v2148_v43 = vxor.u32 2147483648, %v2147_v46 }
 0x27b   : > { %v2284_v5 = vsub.s32 0, %v8558_v20  ;;  %v8589_v4 = vmul.f32 %v1859_v26, %v8370_v3  ;;  %vm2283_vm5 = vcmp.lt.s32.totalorder %v8558_v20, 0  ;;  %v2403_v48 = vadd.s32 %v2402_v50, %v2392_v14 }
 0x27c   : > { %v2416_v56 = vshrl.u32 %v8506_v37, 16  ;;  %v2004_v58 = vadd.f32 -0.4999988, %v2003_v29  ;;  %v2011_v54 = vadd.f32 -0.16666654, %v2010_v44  ;;  %v2350_v62 = vshrl.u32 %v12623_v27, %v8306_v52 }
 0x27d   : > { %v2371_v24 = vsel %vm2369_vm3, %v8361_v32, 2102212464  ;;  %v12753_v47 = vand.u32 2147483647, %v12752_v45  ;;  %v2394_v3 = vshrl.u32 %v8511_v39, 16  ;;  %v2515_v61 = vshrl.u32 %v12722_v13, %v8580_v31 }
 0x27e   : > { %v2426_v33 = vadd.s32 %v2425_v49, %v2416_v56  ;;  %v12491_v0 = vand.u32 2147483647, %v12742_v22  ;;  %v2149_v52 = vsel %vm2028_vm14, %v2148_v43, %v2147_v46  ;;  %v2285_v11 = vsel %vm2283_vm5, %v2284_v5, %v8558_v20 }
 0x27f   : > { %vm8600_vm2 = vcmp.le.f32.partialorder %v12753_v47, 0.7853982  ;;  %v2370_v32 = vsel %vm2366_vm8, %v2350_v62, %v8357_v8  ;;  %v12756_v51 = vmov 1326507024   ;;  %v2372_v39 = vsel %vm2368_vm4, %v8359_v40, %v2371_v24 }
 0x280   : > { %v2518_v21 = vshrl.u32 %v12756_v51, %v8580_v31  ;;  %v8619_v26 = vadd.s32 %v2403_v48, %v2394_v3  ;;  %v8621_v50 = vshrl.u32 %v2500_v16, 5  ;;  %v12757_v12 = vmov 2102212464  }
 0x281   : > { %v2514_v15 = vshll.u32 %v12757_v12, %v2502_v41  ;;  %v2506_v46 = vshrl.u32 %v12724_v42, %v8580_v31  ;;  %v2509_v29 = vshrl.u32 %v12639_v9, %v8580_v31  ;;  %v2512_v8 = vshrl.u32 %v12757_v12, %v8580_v31 }
 0x282   : > { %v2517_v44 = vshll.u32 %v12722_v13, %v2502_v41  ;;  %v2286_v14 = vclz %v2285_v11  ;;  %v12758_v40 = vshll.u32 %v8506_v37, 16  ;;  %v2430_v16 = vadd.s32 1, %v2426_v33 }
 0x283   : > { %v2516_v43 = vor.u32 %v2515_v61, %v2514_v15  ;;  %vm1709_vm3 = vcmp.lt.s32.totalorder %v8440_v17, 2  ;;  %v2505_v5 = vshll.u32 %v12623_v27, %v2502_v41  ;;  %v2508_v48 = vshll.u32 %v12724_v42, %v2502_v41 }
 0x284   : > { %v8634_v49 = vadd.s32 %v8513_v23, %v12758_v40  ;;  %v2511_v56 = vshll.u32 %v12639_v9, %v2502_v41  ;;  %v2519_v62 = vor.u32 %v2518_v21, %v2517_v44  ;;  %vm1864_vm8 = vcmp.eq.s32.totalorder %v8555_v19, 0  ;;  %v12759_v23 = vld [vmem:[#allocation26_spill] sm:$0xff] }
 0x285   : > { %v2373_v24 = vsel %vm2367_vm10, %v2370_v32, %v2372_v39  ;;  %v2495_v37 = vand.u32 8388607, %v12491_v0  ;;  %v2645_v47 = vand.u32 2139095040, %v12759_v23  ;;  %v8648_v3 = vor.u32 %v2506_v46, %v2505_v5 }
 0x286   : > { %vm2429_vm4 = vc.u32 %v8619_v26, %v8634_v49  ;;  %v8650_v61 = vor.u32 %v2509_v29, %v2508_v48  ;;  %v8652_v11 = vor.u32 %v2512_v8, %v2511_v56  ;;  %vm2523_vm12 = vcmp.lt.s32.totalorder %v8621_v50, 4  ;;  %v12760_v8 = vld [vmem:[#allocation10_spill] sm:$0xff] }
 0x287   : > { %v1865_v41 = vxor.u32 2147483648, %v8589_v4  ;;  %v1868_v36 = vxor.u32 2147483648, %v8582_v25  ;;  %v2012_v32 = vmul.f32 %v2011_v54, %v8522_v53  ;;  %v2529_v21 = vsel %vm2523_vm12, %v2516_v43, 920167782 }
 0x288   : > { %vm1863_vm10 = vcmp.lt.s32.totalorder %v8555_v19, 2  ;;  %v8664_v39 = vsel %vm8600_vm2, %v12752_v45, %v2149_v52  ;;  %v5565_v15 = vadd.s32 4294967294, %v2286_v14  ;;  %v2431_v46 = vsel %vm2429_vm4, %v2430_v16, %v2426_v33  ;;  %v12761_v16 = vld [vmem:[#allocation8_spill] sm:$0xff] }
 0x289   : > { %v2533_v29 = vsel %vm2523_vm12, %v2519_v62, 1326507024  ;;  %vm1707_vm0 = vweird.f32 %v12760_v8  ;;  %v2427_v44 = vmul.u32 %v8413_v57, %v2373_v24  ;;  %vm2520_vm13 = vcmp.lt.s32.totalorder %v8621_v50, 1 }
 0x28a   : > { %vm2522_vm11 = vcmp.lt.s32.totalorder %v8621_v50, 3  ;;  %v2646_v54 = vshrl.u32 %v2645_v47, 23  ;;  %v2005_v40 = vmul.f32 %v2004_v58, %v8522_v53  ;;  %v2496_v5 = vor.u32 8388608, %v2495_v37 }
 0x28b   : > { %v2528_v33 = vsel %vm2520_vm13, %v8648_v3, %v8650_v61  ;;  %v2530_v52 = vsel %vm2522_vm11, %v8652_v11, %v2529_v21  ;;  %vm1861_vm15 = vweird.f32 %v12733_v59  ;;  %v2013_v57 = vadd.f32 1.0, %v2012_v32 }
 0x28c   : > { %v8681_v14 = vadd.s32 %v2431_v46, %v2427_v44  ;;  %v2532_v53 = vsel %vm2520_vm13, %v8650_v61, %v8652_v11  ;;  %v2534_v58 = vsel %vm2522_vm11, %v2516_v43, %v2533_v29  ;;  %v2150_v48 = vsub.s32 4, %v12761_v16 }
 0x28d   : > { %v8692_v56 = vmul.f32 %v8664_v39, %v8664_v39  ;;  %vm5566_vm9 = vcmp.lt.s32.totalorder %v5565_v15, 0  ;;  %vm2521_vm6 = vcmp.lt.s32.totalorder %v8621_v50, 2  ;;  %v1716_v62 = vsel %vm1709_vm3, %v8569_v2, %v8574_v60 }
 0x28e   : > { %vm1867_vm7 = vcmp.eq.s32.totalorder %v8555_v19, 2  ;;  %v8702_v24 = vsel %vm2521_vm6, %v2528_v33, %v2530_v52  ;;  %v5573_v43 = vadd.s32 4294967169, %v2646_v54  ;;  %v1866_v37 = vsel %vm1864_vm8, %v8582_v25, %v1865_v41 }
 0x28f   : > { %v2006_v47 = vadd.f32 1.0, %v2005_v40  ;;  %v8709_v32 = vsel %vm2521_vm6, %v2532_v53, %v2534_v58  ;;  %v8711_v21 = vshll.u32 %v2496_v5, 8  ;;  %v2014_v17 = vmul.f32 %v2013_v57, %v8503_v7 }
 0x290   : > { %v2016_v2 = vand.u32 3, %v1999_v1  ;;  %v2289_v60 = vsel %vm5566_vm9, 0, %v5565_v15  ;;  %v2433_v46 = vadd.s32 536870912, %v8681_v14  ;;  %v1869_v29 = vsel %vm1867_vm7, %v1868_v36, %v8589_v4 }
 0x291   : > { %v2151_v25 = vsel %vm2028_vm14, %v2150_v48, %v12761_v16  ;;  %v2155_v41 = vmul.f32 -0.001358992, %v8692_v56  ;;  %v12493_v44 = vshrl.u32 %v8702_v24, 16  ;;  %v1870_v7 = vsel %vm1863_vm10, %v1866_v37, %v1869_v29 }
 0x292   : > { %v2162_v18 = vmul.f32 -0.00019511016, %v8692_v56  ;;  %v12492_v38 = vshrl.u32 %v8709_v32, 16  ;;  %v2652_v1 = vadd.s32 1, %v5573_v43  ;;  %v8731_v15 = vsel %vm1707_vm0, nan, %v1716_v62 }
 0x293   : > { %12762 = vst [vmem:[#allocation13_spill] sm:$0xff] %v8731_v15  ;;  %v2022_v4 = vxor.u32 2147483648, %v2006_v47  ;;  %v2294_v36 = vsub.s32 4294967266, %v2289_v60  ;;  %v2537_v54 = vand.u32 65535, %v8711_v21  ;;  %vm2017_vm1 = vcmp.lt.s32.totalorder %v2016_v2, 2 }
 0x294   : > { %vm2018_vm14 = vcmp.eq.s32.totalorder %v2016_v2, 0  ;;  %v2019_v40 = vxor.u32 2147483648, %v2014_v17  ;;  %v2153_v19 = vsel %vm8600_vm2, 0, %v2151_v25  ;;  %v8736_v5 = vshrl.u32 %v2433_v46, 30 }
 0x295   : > { %v8740_v33 = vsel %vm1861_vm15, nan, %v1870_v7  ;;  %vm2021_vm5 = vcmp.eq.s32.totalorder %v2016_v2, 2  ;;  %v2156_v8 = vadd.f32 0.041655596, %v2155_v41  ;;  %v8744_v52 = vmul.u32 %v12493_v44, %v2537_v54 }
 0x296   : > { %12763 = vst [vmem:[#allocation42_spill] sm:$0xff] %v8740_v33  ;;  %v2163_v57 = vadd.f32 0.008332121, %v2162_v18  ;;  %v2290_v53 = vsub.s32 32, %v2289_v60  ;;  %v8748_v58 = vmul.u32 %v12492_v38, %v2537_v54  ;;  %vm2653_vm3 = vcmp.gt.s32.totalorder %v2652_v1, 0 }
 0x297   : > { %v2023_v55 = vsel %vm2021_vm5, %v2022_v4, %v2014_v17  ;;  %v8750_v16 = vand.u32 3, %v2153_v19  ;;  %v2295_v48 = vadd.s32 127, %v2294_v36  ;;  %v2561_v59 = vand.u32 65535, %v8702_v24  ;;  %v12764_v17 = vld [vmem:[#allocation15_spill] sm:$0xff] }
 0x298   : > { %v2020_v62 = vsel %vm2018_vm14, %v2006_v47, %v2019_v40  ;;  %v2274_v43 = vadd.s32 %v8424_v28, %v8404_v10  ;;  %v2435_v37 = vshll.u32 %v8736_v5, 30  ;;  %v2539_v46 = vand.u32 65535, %v8709_v32 }
 0x299   : > { %v2538_v29 = vshrl.u32 %v8711_v21, 16  ;;  %v2567_v25 = vshll.u32 %v8744_v52, 16  ;;  %v2654_v41 = vsel %vm2653_vm3, %v2652_v1, 0  ;;  %v2799_v7 = vand.u32 2139095040, %v12764_v17 }
 0x29a   : > { %v2157_v18 = vmul.f32 %v2156_v8, %v8692_v56  ;;  %v2164_v4 = vmul.f32 %v2163_v57, %v8692_v56  ;;  %v2292_v36 = vshrl.u32 %v2274_v43, %v2290_v53  ;;  %v2545_v47 = vshll.u32 %v8748_v58, 16 }
 0x29b   : > { %v2291_v10 = vshll.u32 %v8558_v20, %v2289_v60  ;;  %v2296_v28 = vshll.u32 %v2295_v48, 23  ;;  %v2563_v40 = vmul.u32 %v2561_v59, %v2537_v54  ;;  %v8765_v19 = vmul.u32 %v2561_v59, %v2538_v29 }
 0x29c   : > { %v8768_v0 = vsub.s32 %v8681_v14, %v2435_v37  ;;  %v2541_v38 = vmul.u32 %v2539_v46, %v2537_v54  ;;  %v8770_v1 = vmul.u32 %v2539_v46, %v2538_v29  ;;  %v2656_v44 = vand.u32 31, %v2654_v41 }
 0x29d   : > { %v8773_v8 = vsel %vm2017_vm1, %v2020_v62, %v2023_v55  ;;  %vm2571_vm2 = vc.u32 %v2563_v40, %v2567_v25  ;;  %v8775_v57 = vadd.s32 %v2567_v25, %v2563_v40  ;;  %v2800_v53 = vshrl.u32 %v2799_v7, 23 }
 0x29e   : > { %v2158_v43 = vadd.f32 -0.4999988, %v2157_v18  ;;  %v2165_v20 = vadd.f32 -0.16666654, %v2164_v4  ;;  %v2293_v60 = vor.u32 %v2292_v36, %v2291_v10  ;;  %v2551_v48 = vadd.s32 %v2545_v47, %v2541_v38 }
 0x29f   : > { %v2297_v59 = vor.u32 4788187, %v2296_v28  ;;  %vm2549_vm8 = vc.u32 %v2541_v38, %v2545_v47  ;;  %v12495_v14 = vshll.u32 %v8765_v19, 16  ;;  %v12494_v54 = vand.u32 2147483647, %v12759_v23 }
 0x2a0   : > { %v2438_v37 = vsub.s32 0, %v8768_v0  ;;  %v2547_v2 = vshll.u32 %v8770_v1, 16  ;;  %v2572_v55 = vsel %vm2571_vm2, 1, %v12615_v34  ;;  %v8782_v62 = vsub.s32 32, %v2656_v44 }
 0x2a1   : > { %vm2437_vm4 = vcmp.lt.s32.totalorder %v8768_v0, 0  ;;  %v12765_v46 = vshrl.u32 %v8702_v24, 16  ;;  %vm2575_vm10 = vc.u32 %v8775_v57, %v12495_v14  ;;  %v5576_v38 = vadd.s32 4294967169, %v2800_v53 }
 0x2a2   : > { %v8791_v7 = vmul.f32 %v2158_v43, %v8692_v56  ;;  %v2166_v18 = vmul.f32 %v2165_v20, %v8692_v56  ;;  %v2550_v4 = vsel %vm2549_vm8, 1, %v12615_v34  ;;  %vm2553_vm0 = vc.u32 %v2551_v48, %v2547_v2 }
 0x2a3   : > { %v2566_v25 = vmul.u32 %v12765_v46, %v2538_v29  ;;  %v2298_v36 = vand.u32 2147483647, %v2297_v59  ;;  %v2300_v47 = vcvt.s32.f32 %v2293_v60  ;;  %v12766_v10 = vshrl.u32 %v8709_v32, 16 }
 0x2a4   : > { %v2439_v40 = vsel %vm2437_vm4, %v2438_v37, %v8768_v0  ;;  %v2576_v46 = vsel %vm2575_vm10, 1, %v12615_v34  ;;  %v2669_v53 = vshrl.u32 %v12722_v13, %v8782_v62  ;;  %v2672_v43 = vshrl.u32 %v12756_v51, %v8782_v62 }
 0x2a5   : > { %v2544_v28 = vmul.u32 %v12766_v10, %v2538_v29  ;;  %v2574_v24 = vadd.s32 %v2572_v55, %v2566_v25  ;;  %v2554_v20 = vsel %vm2553_vm0, 1, %v12615_v34  ;;  %v2649_v60 = vand.u32 8388607, %v12494_v54 }
 0x2a6   : > { %v2806_v48 = vadd.s32 1, %v5576_v38  ;;  %v2660_v32 = vshrl.u32 %v12724_v42, %v8782_v62  ;;  %v2663_v29 = vshrl.u32 %v12639_v9, %v8782_v62  ;;  %v2668_v59 = vshll.u32 %v12757_v12, %v2656_v44 }
 0x2a7   : > { %v2552_v56 = vadd.s32 %v2550_v4, %v2544_v28  ;;  %v2671_v37 = vshll.u32 %v12722_v13, %v2656_v44  ;;  %v2440_v2 = vclz %v2439_v40  ;;  %v2578_v55 = vadd.s32 %v2576_v46, %v2574_v24 }
 0x2a8   : > { %v8812_v25 = vshrl.u32 %v2654_v41, 5  ;;  %v2666_v4 = vshrl.u32 %v12757_v12, %v8782_v62  ;;  %v2659_v10 = vshll.u32 %v12623_v27, %v2656_v44  ;;  %v2662_v38 = vshll.u32 %v12724_v42, %v2656_v44 }
 0x2a9   : > { %v2670_v28 = vor.u32 %v2669_v53, %v2668_v59  ;;  %v2673_v54 = vor.u32 %v2672_v43, %v2671_v37  ;;  %vm2015_vm15 = vweird.f32 %v12740_v30  ;;  %v2301_v14 = vmul.f32 %v2300_v47, %v2298_v36 }
 0x2aa   : > { %v2556_v33 = vadd.s32 %v2554_v20, %v2552_v56  ;;  %v2665_v15 = vshll.u32 %v12639_v9, %v2656_v44  ;;  %vm2807_vm9 = vcmp.gt.s32.totalorder %v2806_v48, 0  ;;  %v2568_v24 = vshrl.u32 %v8744_v52, 16 }
 0x2ab   : > { %v2650_v41 = vor.u32 8388608, %v2649_v60  ;;  %v8821_v40 = vor.u32 %v2660_v32, %v2659_v10  ;;  %v8823_v46 = vor.u32 %v2663_v29, %v2662_v38  ;;  %vm2182_vm7 = vcmp.lt.s32.totalorder %v12767_v35, 0 }
 0x2ac   : > { %v5568_v23 = vadd.s32 4294967294, %v2440_v2  ;;  %v2546_v53 = vshrl.u32 %v8748_v58, 16  ;;  %v8827_v43 = vor.u32 %v2666_v4, %v2665_v15  ;;  %vm2677_vm1 = vcmp.lt.s32.totalorder %v8812_v25, 4 }
 0x2ad   : > { %v2579_v36 = vadd.s32 %v2578_v55, %v2568_v24  ;;  %v2683_v44 = vsel %vm2677_vm1, %v2670_v28, 920167782  ;;  %v2687_v52 = vsel %vm2677_vm1, %v2673_v54, 1326507024  ;;  %v2808_v47 = vsel %vm2807_vm9, %v2806_v48, 0 }
 0x2ae   : > { %v2504_v56 = vshrl.u32 %v12623_v27, %v8580_v31  ;;  %v2525_v20 = vsel %vm2523_vm12, %v8652_v11, 2102212464  ;;  %v2557_v58 = vadd.s32 %v2556_v33, %v2546_v53  ;;  %vm2674_vm14 = vcmp.lt.s32.totalorder %v8812_v25, 1 }
 0x2af   : > { %v2548_v15 = vshrl.u32 %v8770_v1, 16  ;;  %v2570_v60 = vshrl.u32 %v8765_v19, 16  ;;  %vm2676_vm5 = vcmp.lt.s32.totalorder %v8812_v25, 3  ;;  %v2682_v54 = vsel %vm2674_vm14, %v8821_v40, %v8823_v46 }
 0x2b0   : > { %v2684_v31 = vsel %vm2676_vm5, %v8827_v43, %v2683_v44  ;;  %v2686_v11 = vsel %vm2674_vm14, %v8823_v46, %v8827_v43  ;;  %v2688_v33 = vsel %vm2676_vm5, %v2670_v28, %v2687_v52  ;;  %v2810_v1 = vand.u32 31, %v2808_v47 }
 0x2b1   : > { %v2167_v48 = vadd.f32 1.0, %v2166_v18  ;;  %v2304_v32 = vsub.s32 4, %v8527_v6  ;;  %vm5569_vm12 = vcmp.lt.s32.totalorder %v5568_v23, 0  ;;  %v2580_v29 = vadd.s32 %v2579_v36, %v2570_v60 }
 0x2b2   : > { %v2524_v59 = vsel %vm2520_vm13, %v2504_v56, %v8648_v3  ;;  %v2526_v37 = vsel %vm2522_vm11, %v8650_v61, %v2525_v20  ;;  %v8863_v2 = vadd.s32 %v2557_v58, %v2548_v15  ;;  %vm2675_vm3 = vcmp.lt.s32.totalorder %v8812_v25, 2 }
 0x2b3   : > { %v8869_v18 = vsel %vm2015_vm15, nan, %v8773_v8  ;;  %v2302_v55 = vxor.u32 2147483648, %v2301_v14  ;;  %v8873_v4 = vsel %vm2675_vm3, %v2682_v54, %v2684_v31  ;;  %v2689_v3 = vsel %vm2675_vm3, %v2686_v11, %v2688_v33 }
 0x2b4   : > { %12768 = vst [vmem:[#allocation43_spill] sm:$0xff] %v8869_v18  ;;  %v8877_v10 = vsel %vm5569_vm12, 0, %v5568_v23  ;;  %v12769_v61 = vshll.u32 %v8765_v19, 16  ;;  %v8884_v28 = vshll.u32 %v2650_v41, 8  ;;  %v8886_v30 = vsub.s32 32, %v2810_v1 }
 0x2b5   : > { %v8889_v8 = vadd.f32 1.0, %v8791_v7  ;;  %v8894_v24 = vsel %vm2182_vm7, %v2304_v32, %v8527_v6  ;;  %v2527_v23 = vsel %vm2521_vm6, %v2524_v59, %v2526_v37  ;;  %v2584_v53 = vadd.s32 1, %v2580_v29 }
 0x2b6   : > { %v8882_v38 = vadd.s32 %v8775_v57, %v12769_v61  ;;  %v8899_v19 = vmul.f32 %v2167_v48, %v8664_v39  ;;  %v2694_v57 = vshrl.u32 %v2689_v3, 16  ;;  %v2716_v41 = vshrl.u32 %v8873_v4, 16 }
 0x2b7   : > { %v8906_v7 = vsel %vm2182_vm7, %v2302_v55, %v2301_v14  ;;  %v8910_v6 = vadd.s32 %v8634_v49, %v8619_v26  ;;  %v2448_v50 = vsub.s32 4294967266, %v8877_v10  ;;  %v12497_v36 = vand.u32 2147483647, %v12764_v17 }
 0x2b8   : > { %vm2583_vm13 = vc.u32 %v8863_v2, %v8882_v38  ;;  %v2581_v39 = vmul.u32 %v8711_v21, %v2527_v23  ;;  %v2691_v44 = vand.u32 65535, %v8884_v28  ;;  %v2825_v52 = vshll.u32 %v12722_v13, %v2810_v1 }
 0x2b9   : > { %v2826_v56 = vshrl.u32 %v12756_v51, %v8886_v30  ;;  %v2585_v20 = vsel %vm2583_vm13, %v2584_v53, %v2580_v29  ;;  %v8919_v14 = vshrl.u32 %v2808_v47, 5  ;;  %v2822_v58 = vshll.u32 %v12757_v12, %v2810_v1 }
 0x2ba   : > { %v2823_v26 = vshrl.u32 %v12722_v13, %v8886_v30  ;;  %v2693_v49 = vand.u32 65535, %v2689_v3  ;;  %v8924_v15 = vmul.u32 %v2694_v57, %v2691_v44  ;;  %v2715_v21 = vand.u32 65535, %v8873_v4 }
 0x2bb   : > { %v8927_v60 = vmul.u32 %v2716_v41, %v2691_v44  ;;  %v2816_v54 = vshll.u32 %v12724_v42, %v2810_v1  ;;  %v2817_v31 = vshrl.u32 %v12639_v9, %v8886_v30  ;;  %v2819_v47 = vshll.u32 %v12639_v9, %v2810_v1 }
 0x2bc   : > { %v2820_v11 = vshrl.u32 %v12757_v12, %v8886_v30  ;;  %v2692_v33 = vshrl.u32 %v8884_v28, 16  ;;  %v2813_v48 = vshll.u32 %v12623_v27, %v2810_v1  ;;  %v2814_v32 = vshrl.u32 %v12724_v42, %v8886_v30 }
 0x2bd   : > { %v2827_v29 = vor.u32 %v2826_v56, %v2825_v52  ;;  %v8939_v59 = vadd.s32 %v2585_v20, %v2581_v39  ;;  %v2803_v37 = vand.u32 8388607, %v12497_v36  ;;  %v2824_v55 = vor.u32 %v2823_v26, %v2822_v58 }
 0x2be   : > { %vm2831_vm11 = vcmp.lt.s32.totalorder %v8919_v14, 4  ;;  %v12770_v4 = vand.u32 2147483647, %v12767_v35  ;;  %v2695_v61 = vmul.u32 %v2693_v49, %v2691_v44  ;;  %v8950_v1 = vmul.u32 %v2693_v49, %v2692_v33 }
 0x2bf   : > { %v2699_v23 = vshll.u32 %v8924_v15, 16  ;;  %v2721_v53 = vshll.u32 %v8927_v60, 16  ;;  %v2717_v39 = vmul.u32 %v2715_v21, %v2691_v44  ;;  %v8954_v52 = vmul.u32 %v2715_v21, %v2692_v33 }
 0x2c0   : > { %vm8946_vm6 = vcmp.le.f32.partialorder %v12770_v4, 0.7853982  ;;  %v8956_v56 = vor.u32 %v2817_v31, %v2816_v54  ;;  %v8958_v20 = vor.u32 %v2820_v11, %v2819_v47  ;;  %v8960_v58 = vor.u32 %v2814_v32, %v2813_v48 }
 0x2c1   : > { %vm2828_vm2 = vcmp.lt.s32.totalorder %v8919_v14, 1  ;;  %vm2830_vm8 = vcmp.lt.s32.totalorder %v8919_v14, 3  ;;  %v2841_v26 = vsel %vm2831_vm11, %v2827_v29, 1326507024  ;;  %v2587_v49 = vadd.s32 536870912, %v8939_v59  ;;  %v12773_v29 = vld [vmem:[#allocation16_spill] sm:$0xff] }
 0x2c2   : > { %v2698_v4 = vmul.u32 %v2694_v57, %v2692_v33  ;;  %v2804_v36 = vor.u32 8388608, %v2803_v37  ;;  %v2837_v44 = vsel %vm2831_vm11, %v2824_v55, 920167782  ;;  %vm2703_vm4 = vc.u32 %v2695_v61, %v2699_v23 }
 0x2c3   : > { %v2705_v21 = vadd.s32 %v2699_v23, %v2695_v61  ;;  %vm2725_vm10 = vc.u32 %v2717_v39, %v2721_v53  ;;  %v8969_v54 = vadd.s32 %v2721_v53, %v2717_v39  ;;  %v2701_v31 = vshll.u32 %v8950_v1, 16 }
 0x2c4   : > { %vm2829_vm0 = vcmp.lt.s32.totalorder %v8919_v14, 2  ;;  %v2840_v47 = vsel %vm2828_vm2, %v8956_v56, %v8958_v20  ;;  %v2842_v57 = vsel %vm2830_vm8, %v2824_v55, %v2841_v26  ;;  %v12498_v11 = vshll.u32 %v8954_v52, 16 }
 0x2c5   : > { %v2836_v48 = vsel %vm2828_vm2, %v8960_v58, %v8956_v56  ;;  %v2838_v32 = vsel %vm2830_vm8, %v8958_v20, %v2837_v44  ;;  %v2953_v37 = vand.u32 2139095040, %v12773_v29  ;;  %v2704_v61 = vsel %vm2703_vm4, 1, %v12615_v34 }
 0x2c6   : > { %v2720_v23 = vmul.u32 %v2716_v41, %v2692_v33  ;;  %v2726_v53 = vsel %vm2725_vm10, 1, %v12615_v34  ;;  %v8990_v39 = vshll.u32 %v2804_v36, 8  ;;  %vm2707_vm15 = vc.u32 %v2705_v21, %v2701_v31 }
 0x2c7   : > { %vm2729_vm9 = vc.u32 %v8969_v54, %v12498_v11  ;;  %v8997_v55 = vsel %vm2829_vm0, %v2840_v47, %v2842_v57  ;;  %v2954_v26 = vshrl.u32 %v2953_v37, 23  ;;  %v9003_v44 = vsel %vm8946_vm6, %v12767_v35, %v8906_v7 }
 0x2c8   : > { %v2444_v41 = vsub.s32 32, %v8877_v10  ;;  %v2449_v36 = vadd.s32 127, %v2448_v50  ;;  %v9010_v33 = vsel %vm2829_vm0, %v2836_v48, %v2838_v32  ;;  %v9012_v21 = vshrl.u32 %v2587_v49, 30 }
 0x2c9   : > { %v2706_v31 = vadd.s32 %v2704_v61, %v2698_v4  ;;  %v2728_v47 = vadd.s32 %v2726_v53, %v2720_v23  ;;  %v5579_v57 = vadd.s32 4294967169, %v2954_v26  ;;  %v2708_v37 = vsel %vm2707_vm15, 1, %v12615_v34 }
 0x2ca   : > { %12774 = vst [vmem:[#allocation21_spill] sm:$0xff] %v9012_v21  ;;  %v2730_v11 = vsel %vm2729_vm9, 1, %v12615_v34  ;;  %v2845_v7 = vand.u32 65535, %v8990_v39  ;;  %v9021_v50 = vmul.f32 %v9003_v44, %v9003_v44  ;;  %v2445_v4 = vshll.u32 %v8768_v0, %v8877_v10 }
 0x2cb   : > { %v2960_v48 = vadd.s32 1, %v5579_v57  ;;  %v2446_v32 = vshrl.u32 %v8910_v6, %v2444_v41  ;;  %v2450_v61 = vshll.u32 %v2449_v36, 23  ;;  %v2658_v23 = vshrl.u32 %v12623_v27, %v8782_v62 }
 0x2cc   : > { %v2589_v53 = vshll.u32 %v9012_v21, 30  ;;  %v2710_v26 = vadd.s32 %v2708_v37, %v2706_v31  ;;  %v2732_v17 = vadd.s32 %v2730_v11, %v2728_v47  ;;  %v2679_v18 = vsel %vm2677_vm1, %v8827_v43, 2102212464 }
 0x2cd   : > { %vm2961_vm7 = vcmp.gt.s32.totalorder %v2960_v48, 0  ;;  %v2846_v57 = vshrl.u32 %v8990_v39, 16  ;;  %v2847_v49 = vand.u32 65535, %v8997_v55  ;;  %v12775_v0 = vshrl.u32 %v8997_v55, 16 }
 0x2ce   : > { %v2700_v6 = vshrl.u32 %v8924_v15, 16  ;;  %v2722_v62 = vshrl.u32 %v8927_v60, 16  ;;  %v2869_v41 = vand.u32 65535, %v9010_v33  ;;  %v12776_v11 = vshrl.u32 %v9010_v33, 16 }
 0x2cf   : > { %v9037_v10 = vmul.u32 %v12775_v0, %v2845_v7  ;;  %v2447_v31 = vor.u32 %v2446_v32, %v2445_v4  ;;  %v2451_v43 = vor.u32 4788187, %v2450_v61  ;;  %v2678_v47 = vsel %vm2674_vm14, %v2658_v23, %v8821_v40 }
 0x2d0   : > { %v9044_v36 = vmul.u32 %v12776_v11, %v2845_v7  ;;  %v2962_v37 = vsel %vm2961_vm7, %v2960_v48, 0  ;;  %v9050_v0 = vsub.s32 %v8939_v59, %v2589_v53  ;;  %v2680_v15 = vsel %vm2676_vm5, %v8823_v46, %v2679_v18 }
 0x2d1   : > { %v2711_v60 = vadd.s32 %v2710_v26, %v2700_v6  ;;  %v2733_v21 = vadd.s32 %v2732_v17, %v2722_v62  ;;  %v2702_v35 = vshrl.u32 %v8950_v1, 16  ;;  %v2849_v11 = vmul.u32 %v2847_v49, %v2845_v7 }
 0x2d2   : > { %v9056_v22 = vmul.u32 %v2847_v49, %v2846_v57  ;;  %v2853_v4 = vshll.u32 %v9037_v10, 16  ;;  %v2724_v32 = vshrl.u32 %v8954_v52, 16  ;;  %v2871_v40 = vmul.u32 %v2869_v41, %v2845_v7 }
 0x2d3   : > { %v2875_v48 = vshll.u32 %v9044_v36, 16  ;;  %v2964_v59 = vand.u32 31, %v2962_v37  ;;  %v2173_v61 = vxor.u32 2147483648, %v8899_v19  ;;  %v9063_v23 = vmul.f32 -0.001358992, %v9021_v50 }
 0x2d4   : > { %v2452_v46 = vand.u32 2147483647, %v2451_v43  ;;  %v9065_v17 = vmul.u32 %v2869_v41, %v2846_v57  ;;  %v2454_v18 = vcvt.s32.f32 %v2447_v31  ;;  %v2592_v1 = vsub.s32 0, %v9050_v0 }
 0x2d5   : > { %v9068_v49 = vadd.s32 %v2711_v60, %v2702_v35  ;;  %v2734_v53 = vadd.s32 %v2733_v21, %v2724_v32  ;;  %vm2591_vm1 = vcmp.lt.s32.totalorder %v9050_v0, 0  ;;  %v2681_v7 = vsel %vm2675_vm3, %v2678_v47, %v2680_v15 }
 0x2d6   : > { %v2855_v26 = vshll.u32 %v9056_v22, 16  ;;  %v2859_v6 = vadd.s32 %v2853_v4, %v2849_v11  ;;  %v12778_v62 = vshll.u32 %v8954_v52, 16  ;;  %vm2857_vm14 = vc.u32 %v2849_v11, %v2853_v4 }
 0x2d7   : > { %12777 = vst [vmem:[#allocation11_spill] sm:$0xff] %v9068_v49  ;;  %vm2879_vm5 = vc.u32 %v2871_v40, %v2875_v48  ;;  %v9079_v41 = vsub.s32 32, %v2964_v59  ;;  %vm2172_vm12 = vcmp.eq.s32.totalorder %v8750_v16, 0  ;;  %v2316_v35 = vmul.f32 -0.00019511016, %v9021_v50 }
 0x2d8   : > { %v9077_v43 = vadd.s32 %v8969_v54, %v12778_v62  ;;  %v2455_v21 = vmul.f32 %v2454_v18, %v2452_v46  ;;  %v12504_v25 = vshll.u32 %v9065_v17, 16  ;;  %v9084_v31 = vadd.s32 %v2875_v48, %v2871_v40 }
 0x2d9   : > { %v2593_v47 = vsel %vm2591_vm1, %v2592_v1, %v9050_v0  ;;  %v2735_v52 = vmul.u32 %v8884_v28, %v2681_v7  ;;  %v2738_v54 = vadd.s32 1, %v2734_v53  ;;  %v2858_v15 = vsel %vm2857_vm14, 1, %v12615_v34 }
 0x2da   : > { %12779 = vst [vmem:[#allocation12_spill] sm:$0xff] %v9077_v43  ;;  %vm2737_vm3 = vc.u32 %v9068_v49, %v9077_v43  ;;  %vm2861_vm13 = vc.u32 %v2859_v6, %v2855_v26  ;;  %v2880_v60 = vsel %vm2879_vm5, 1, %v12615_v34  ;;  %v12506_v11 = vand.u32 2147483647, %v12773_v29 }
 0x2db   : > { %v12780_v4 = vshrl.u32 %v8997_v55, 16  ;;  %v12781_v40 = vshrl.u32 %v9010_v33, 16  ;;  %v2979_v46 = vshll.u32 %v12722_v13, %v2964_v59  ;;  %v2980_v28 = vshrl.u32 %v12756_v51, %v9079_v41 }
 0x2dc   : > { %vm2336_vm4 = vcmp.lt.s32.totalorder %v12725_v63, 0  ;;  %vm2883_vm10 = vc.u32 %v9084_v31, %v12504_v25  ;;  %v9104_v18 = vshrl.u32 %v2962_v37, 5  ;;  %v2976_v1 = vshll.u32 %v12757_v12, %v2964_v59 }
 0x2dd   : > { %v2852_v32 = vmul.u32 %v12780_v4, %v2846_v57  ;;  %v2874_v48 = vmul.u32 %v12781_v40, %v2846_v57  ;;  %v2977_v55 = vshrl.u32 %v12722_v13, %v9079_v41  ;;  %v2739_v33 = vsel %vm2737_vm3, %v2738_v54, %v2734_v53 }
 0x2de   : > { %v2862_v7 = vsel %vm2861_vm13, 1, %v12615_v34  ;;  %v2970_v6 = vshll.u32 %v12724_v42, %v2964_v59  ;;  %v2971_v62 = vshrl.u32 %v12639_v9, %v9079_v41  ;;  %v2973_v4 = vshll.u32 %v12639_v9, %v2964_v59 }
 0x2df   : > { %v2860_v57 = vadd.s32 %v2858_v15, %v2852_v32  ;;  %v2882_v26 = vadd.s32 %v2880_v60, %v2874_v48  ;;  %v2974_v37 = vshrl.u32 %v12757_v12, %v9079_v41  ;;  %vm2175_vm15 = vcmp.eq.s32.totalorder %v8750_v16, 2 }
 0x2e0   : > { %v2884_v40 = vsel %vm2883_vm10, 1, %v12615_v34  ;;  %v2967_v53 = vshll.u32 %v12623_v27, %v2964_v59  ;;  %v2968_v54 = vshrl.u32 %v12724_v42, %v9079_v41  ;;  %v2981_v15 = vor.u32 %v2980_v28, %v2979_v46 }
 0x2e1   : > { %v2317_v60 = vadd.f32 0.008332121, %v2316_v35  ;;  %v2957_v32 = vand.u32 8388607, %v12506_v11  ;;  %v2978_v48 = vor.u32 %v2977_v55, %v2976_v1  ;;  %vm2985_vm9 = vcmp.lt.s32.totalorder %v9104_v18, 4 }
 0x2e2   : > { %vm2171_vm7 = vcmp.lt.s32.totalorder %v8750_v16, 2  ;;  %v2174_v25 = vsel %vm2172_vm12, %v8889_v8, %v2173_v61  ;;  %v12782_v43 = vand.u32 2147483647, %v12725_v63  ;;  %v2456_v46 = vxor.u32 2147483648, %v2455_v21 }
 0x2e3   : > { %v2594_v35 = vclz %v2593_v47  ;;  %v9134_v28 = vadd.s32 %v2739_v33, %v2735_v52  ;;  %v2864_v11 = vadd.s32 %v2862_v7, %v2860_v57  ;;  %v2886_v1 = vadd.s32 %v2884_v40, %v2882_v26 }
 0x2e4   : > { %vm9130_vm1 = vcmp.le.f32.partialorder %v12782_v43, 0.7853982  ;;  %v9136_v55 = vor.u32 %v2971_v62, %v2970_v6  ;;  %v9138_v29 = vor.u32 %v2974_v37, %v2973_v4  ;;  %v9140_v49 = vor.u32 %v2968_v54, %v2967_v53 }
 0x2e5   : > { %vm2982_vm14 = vcmp.lt.s32.totalorder %v9104_v18, 1  ;;  %vm2984_vm5 = vcmp.lt.s32.totalorder %v9104_v18, 3  ;;  %v2995_v61 = vsel %vm2985_vm9, %v2981_v15, 1326507024  ;;  %v2310_v43 = vadd.f32 0.041655596, %v9063_v23 }
 0x2e6   : > { %v2318_v47 = vmul.f32 %v2317_v60, %v9021_v50  ;;  %v2958_v52 = vor.u32 8388608, %v2957_v32  ;;  %v2991_v33 = vsel %vm2985_vm9, %v2978_v48, 920167782  ;;  %v2457_v57 = vsel %vm2336_vm4, %v2456_v46, %v2455_v21 }
 0x2e7   : > { %v5571_v7 = vadd.s32 4294967294, %v2594_v35  ;;  %v2854_v26 = vshrl.u32 %v9037_v10, 16  ;;  %v2876_v6 = vshrl.u32 %v9044_v36, 16  ;;  %v2741_v62 = vadd.s32 536870912, %v9134_v28 }
 0x2e8   : > { %vm2983_vm12 = vcmp.lt.s32.totalorder %v9104_v18, 2  ;;  %v2994_v23 = vsel %vm2982_vm14, %v9136_v55, %v9138_v29  ;;  %v2996_v4 = vsel %vm2984_vm5, %v2978_v48, %v2995_v61  ;;  %v2990_v10 = vsel %vm2982_vm14, %v9140_v49, %v9136_v55 }
 0x2e9   : > { %v2865_v37 = vadd.s32 %v2864_v11, %v2854_v26  ;;  %v2887_v40 = vadd.s32 %v2886_v1, %v2876_v6  ;;  %v2992_v36 = vsel %vm2984_vm5, %v9138_v29, %v2991_v33  ;;  %v12785_v21 = vxor.u32 2147483648, %v8889_v8 }
 0x2ea   : > { %v2311_v54 = vmul.f32 %v2310_v43, %v9021_v50  ;;  %v9178_v15 = vshll.u32 %v2958_v52, 8  ;;  %v2319_v60 = vadd.f32 -0.16666654, %v2318_v47  ;;  %v2856_v32 = vshrl.u32 %v9056_v22, 16 }
 0x2eb   : > { %v2177_v53 = vsel %vm2175_vm15, %v12785_v21, %v8899_v19  ;;  %v2878_v48 = vshrl.u32 %v9065_v17, 16  ;;  %v9184_v46 = vsel %vm2983_vm12, %v2994_v23, %v2996_v4  ;;  %v9193_v19 = vsel %vm9130_vm1, %v12725_v63, %v2457_v57  ;;  %v12787_v4 = vld [vmem:[#allocation27_spill] sm:$0xff] }
 0x2ec   : > { %v9188_v8 = vsel %vm2171_vm7, %v2174_v25, %v2177_v53  ;;  %v2812_v35 = vshrl.u32 %v12623_v27, %v8886_v30  ;;  %v9199_v22 = vsel %vm2983_vm12, %v2990_v10, %v2992_v36  ;;  %vm5572_vm3 = vcmp.lt.s32.totalorder %v5571_v7, 0 }
 0x2ed   : > { %v9201_v1 = vshrl.u32 %v2741_v62, 30  ;;  %v9203_v61 = vadd.s32 %v2865_v37, %v2856_v32  ;;  %v2888_v16 = vadd.s32 %v2887_v40, %v2878_v48  ;;  %v2458_v25 = vsub.s32 4, %v8736_v5 }
 0x2ee   : > { %v2833_v43 = vsel %vm2831_vm11, %v8958_v20, 2102212464  ;;  %v2999_v47 = vand.u32 65535, %v9178_v15  ;;  %v3002_v30 = vshrl.u32 %v9184_v46, 16  ;;  %v2312_v52 = vadd.f32 -0.4999988, %v2311_v54 }
 0x2ef   : > { %v2320_v33 = vmul.f32 %v2319_v60, %v9021_v50  ;;  %v12786_v57 = vshll.u32 %v9065_v17, 16  ;;  %v3024_v6 = vshrl.u32 %v9199_v22, 16  ;;  %v9220_v62 = vmul.f32 %v9193_v19, %v9193_v19 }
 0x2f0   : > { %v9222_v23 = vsel %vm5572_vm3, 0, %v5571_v7  ;;  %v2832_v20 = vsel %vm2828_vm2, %v2812_v35, %v8960_v58  ;;  %v3107_v37 = vand.u32 2139095040, %v12787_v4  ;;  %v2743_v40 = vshll.u32 %v9201_v1, 30 }
 0x2f1   : > { %v9215_v26 = vadd.s32 %v9084_v31, %v12786_v57  ;;  %v2834_v17 = vsel %vm2830_vm8, %v8956_v56, %v2833_v43  ;;  %v2892_v31 = vadd.s32 1, %v2888_v16  ;;  %v3000_v10 = vshrl.u32 %v9178_v15, 16 }
 0x2f2   : > { %v3001_v7 = vand.u32 65535, %v9184_v46  ;;  %v9238_v36 = vmul.u32 %v3002_v30, %v2999_v47  ;;  %v3108_v58 = vshrl.u32 %v3107_v37, 23  ;;  %v2313_v21 = vmul.f32 %v2312_v52, %v9021_v50 }
 0x2f3   : > { %vm2891_vm11 = vc.u32 %v9203_v61, %v9215_v26  ;;  %v9244_v53 = vsel %vm2336_vm4, %v2458_v25, %v8736_v5  ;;  %v3023_v56 = vand.u32 65535, %v9199_v22  ;;  %v9249_v54 = vmul.u32 %v3024_v6, %v2999_v47 }
 0x2f4   : > { %v2321_v60 = vadd.f32 1.0, %v2320_v33  ;;  %v2602_v32 = vsub.s32 4294967266, %v9222_v23  ;;  %v2835_v48 = vsel %vm2829_vm0, %v2832_v20, %v2834_v17  ;;  %v5582_v35 = vadd.s32 4294967169, %v3108_v58 }
 0x2f5   : > { %v2463_v50 = vmul.f32 -0.001358992, %v9220_v62  ;;  %v2470_v43 = vmul.f32 -0.00019511016, %v9220_v62  ;;  %v9257_v5 = vsub.s32 %v9134_v28, %v2743_v40  ;;  %v2893_v25 = vsel %vm2891_vm11, %v2892_v31, %v2888_v16 }
 0x2f6   : > { %v3003_v52 = vmul.u32 %v3001_v7, %v2999_v47  ;;  %v9262_v57 = vmul.u32 %v3001_v7, %v3000_v10  ;;  %v3007_v33 = vshll.u32 %v9238_v36, 16  ;;  %v3114_v37 = vadd.s32 1, %v5582_v35 }
 0x2f7   : > { %v2889_v14 = vmul.u32 %v8990_v39, %v2835_v48  ;;  %v3025_v20 = vmul.u32 %v3023_v56, %v2999_v47  ;;  %v9266_v17 = vmul.u32 %v3023_v56, %v3000_v10  ;;  %v3029_v58 = vshll.u32 %v9249_v54, 16 }
 0x2f8   : > { %v2582_v28 = vadd.s32 %v8882_v38, %v8863_v2  ;;  %v2598_v40 = vsub.s32 32, %v9222_v23  ;;  %v2603_v11 = vadd.s32 127, %v2602_v32  ;;  %vm3115_vm2 = vcmp.gt.s32.totalorder %v3114_v37, 0 }
 0x2f9   : > { %vm2169_vm8 = vweird.f32 %v12752_v45  ;;  %v2464_v16 = vadd.f32 0.041655596, %v2463_v50  ;;  %v2471_v31 = vadd.f32 0.008332121, %v2470_v43  ;;  %v9273_v7 = vadd.s32 %v2893_v25, %v2889_v14 }
 0x2fa   : > { %v3116_v35 = vsel %vm3115_vm2, %v3114_v37, 0  ;;  %v2746_v39 = vsub.s32 0, %v9257_v5  ;;  %v3009_v47 = vshll.u32 %v9262_v57, 16  ;;  %vm3011_vm0 = vc.u32 %v3003_v52, %v3007_v33 }
 0x2fb   : > { %v3013_v56 = vadd.s32 %v3007_v33, %v3003_v52  ;;  %vm2745_vm13 = vcmp.lt.s32.totalorder %v9257_v5, 0  ;;  %v12509_v2 = vshll.u32 %v9266_v17, 16  ;;  %vm3033_vm4 = vc.u32 %v3025_v20, %v3029_v58 }
 0x2fc   : > { %v9279_v38 = vadd.s32 %v3029_v58, %v3025_v20  ;;  %v9281_v32 = vadd.f32 1.0, %v2313_v21  ;;  %v2600_v48 = vshrl.u32 %v2582_v28, %v2598_v40  ;;  %v2604_v50 = vshll.u32 %v2603_v11, 23 }
 0x2fd   : > { %v3118_v43 = vand.u32 31, %v3116_v35  ;;  %v9284_v25 = vmul.f32 %v2321_v60, %v9003_v44  ;;  %v2599_v37 = vshll.u32 %v9050_v0, %v9222_v23  ;;  %v2895_v52 = vadd.s32 536870912, %v9273_v7 }
 0x2fe   : > { %v3012_v33 = vsel %vm3011_vm0, 1, %v12615_v34  ;;  %v2747_v14 = vsel %vm2745_vm13, %v2746_v39, %v9257_v5  ;;  %v3006_v20 = vmul.u32 %v3002_v30, %v3000_v10  ;;  %vm3015_vm10 = vc.u32 %v3013_v56, %v3009_v47 }
 0x2ff   : > { %v3034_v21 = vsel %vm3033_vm4, 1, %v12615_v34  ;;  %v2465_v11 = vmul.f32 %v2464_v16, %v9220_v62  ;;  %v2472_v44 = vmul.f32 %v2471_v31, %v9220_v62  ;;  %v3028_v60 = vmul.u32 %v3024_v6, %v3000_v10 }
 0x300   : > { %vm3037_vm15 = vc.u32 %v9279_v38, %v12509_v2  ;;  %v9301_v0 = vor.u32 %v2600_v48, %v2599_v37  ;;  %v9303_v23 = vor.u32 4788187, %v2604_v50  ;;  %v3014_v46 = vadd.s32 %v3012_v33, %v3006_v20 }
 0x301   : > { %v9305_v30 = vsub.s32 32, %v3118_v43  ;;  %v2748_v58 = vclz %v2747_v14  ;;  %v9307_v28 = vshrl.u32 %v2895_v52, 30  ;;  %v3016_v40 = vsel %vm3015_vm10, 1, %v12615_v34 }
 0x302   : > { %v3036_v16 = vadd.s32 %v3034_v21, %v3028_v60  ;;  %v9313_v22 = vsel %vm2169_vm8, nan, %v9188_v8  ;;  %v12790_v6 = vsel %vm8946_vm6, 0, %v8894_v24  ;;  %v3038_v39 = vsel %vm3037_vm15, 1, %v12615_v34 }
 0x303   : > { %12788 = vst [vmem:[#allocation38_spill] sm:$0xff] %v9307_v28  ;;  %v9319_v10 = vand.u32 3, %v12790_v6  ;;  %v9327_v48 = vadd.f32 -0.4999988, %v2465_v11  ;;  %v9329_v45 = vadd.f32 -0.16666654, %v2472_v44  ;;  %v2608_v24 = vcvt.s32.f32 %v9301_v0 }
 0x304   : > { %12789 = vst [vmem:[#allocation22_spill] sm:$0xff] %v9313_v22  ;;  %v2606_v3 = vand.u32 2147483647, %v9303_v23  ;;  %v3018_v8 = vadd.s32 %v3016_v40, %v3014_v46  ;;  %v3134_v50 = vshrl.u32 %v12756_v51, %v9305_v30  ;;  %v5574_v37 = vadd.s32 4294967294, %v2748_v58  ;;  %v12791_v44 = vld [vmem:[#allocation28_spill] sm:$0xff] }
 0x305   : > { %v2897_v52 = vshll.u32 %v9307_v28, 30  ;;  %v3040_v33 = vadd.s32 %v3038_v39, %v3036_v16  ;;  %v12510_v14 = vand.u32 2147483647, %v12787_v4  ;;  %v3008_v20 = vshrl.u32 %v9238_v36, 16 }
 0x306   : > { %v3131_v21 = vshrl.u32 %v12722_v13, %v9305_v30  ;;  %v3133_v11 = vshll.u32 %v12722_v13, %v3118_v43  ;;  %v3261_v60 = vand.u32 2139095040, %v12791_v44  ;;  %v3030_v0 = vshrl.u32 %v9249_v54, 16 }
 0x307   : > { %v9343_v23 = vshrl.u32 %v3116_v35, 5  ;;  %v3125_v46 = vshrl.u32 %v12639_v9, %v9305_v30  ;;  %v3128_v58 = vshrl.u32 %v12757_v12, %v9305_v30  ;;  %v3010_v40 = vshrl.u32 %v9262_v57, 16 }
 0x308   : > { %v3019_v36 = vadd.s32 %v3018_v8, %v3008_v20  ;;  %v3130_v16 = vshll.u32 %v12757_v12, %v3118_v43  ;;  %v3135_v6 = vor.u32 %v3134_v50, %v3133_v11  ;;  %v3041_v39 = vadd.s32 %v3040_v33, %v3030_v0 }
 0x309   : > { %v3122_v31 = vshrl.u32 %v12724_v42, %v9305_v30  ;;  %v3124_v54 = vshll.u32 %v12724_v42, %v3118_v43  ;;  %v3127_v35 = vshll.u32 %v12639_v9, %v3118_v43  ;;  %v3032_v56 = vshrl.u32 %v9266_v17, 16 }
 0x30a   : > { %v3111_v47 = vand.u32 8388607, %v12510_v14  ;;  %v3132_v2 = vor.u32 %v3131_v21, %v3130_v16  ;;  %v3262_v22 = vshrl.u32 %v3261_v60, 23  ;;  %vm2326_vm6 = vcmp.eq.s32.totalorder %v9319_v10, 0 }
 0x30b   : > { %vm2329_vm7 = vcmp.eq.s32.totalorder %v9319_v10, 2  ;;  %v3121_v57 = vshll.u32 %v12623_v27, %v3118_v43  ;;  %v9361_v8 = vor.u32 %v3125_v46, %v3124_v54  ;;  %v9363_v50 = vor.u32 %v3128_v58, %v3127_v35 }
 0x30c   : > { %vm3139_vm3 = vcmp.lt.s32.totalorder %v9343_v23, 4  ;;  %vm5575_vm11 = vcmp.lt.s32.totalorder %v5574_v37, 0  ;;  %v9367_v33 = vsub.s32 %v9273_v7, %v2897_v52  ;;  %v2966_v20 = vshrl.u32 %v12623_v27, %v9079_v41  ;;  %v12792_v52 = vld [vmem:[#allocation25_spill] sm:$0xff] }
 0x30d   : > { %v3149_v21 = vsel %vm3139_vm3, %v3135_v6, 1326507024  ;;  %v2987_v43 = vsel %vm2985_vm9, %v9138_v29, 2102212464  ;;  %v9376_v11 = vadd.s32 %v3019_v36, %v3010_v40  ;;  %v3042_v60 = vadd.s32 %v3041_v39, %v3032_v56 }
 0x30e   : > { %v9378_v0 = vor.u32 %v3122_v31, %v3121_v57  ;;  %vm2325_vm2 = vcmp.lt.s32.totalorder %v9319_v10, 2  ;;  %vm3136_vm8 = vcmp.lt.s32.totalorder %v9343_v23, 1  ;;  %vm3138_vm0 = vcmp.lt.s32.totalorder %v9343_v23, 3 }
 0x30f   : > { %v3145_v41 = vsel %vm3139_vm3, %v3132_v2, 920167782  ;;  %v5585_v7 = vadd.s32 4294967169, %v3262_v22  ;;  %vm2490_vm13 = vcmp.lt.s32.totalorder %v12792_v52, 0  ;;  %v2609_v46 = vmul.f32 %v2608_v24, %v2606_v3  ;;  %v12794_v24 = vld [vmem:[#allocation23_spill] sm:$0xff] }
 0x310   : > { %v3112_v58 = vor.u32 8388608, %v3111_v47  ;;  %v3148_v29 = vsel %vm3136_vm8, %v9361_v8, %v9363_v50  ;;  %v3150_v31 = vsel %vm3138_vm0, %v3132_v2, %v3149_v21  ;;  %v2751_v56 = vsel %vm5575_vm11, 0, %v5574_v37 }
 0x311   : > { %v2986_v40 = vsel %vm2982_vm14, %v2966_v20, %v9140_v49  ;;  %v2988_v22 = vsel %vm2984_vm5, %v9136_v55, %v2987_v43  ;;  %v12793_v47 = vshll.u32 %v9266_v17, 16  ;;  %vm2323_vm9 = vweird.f32 %v12794_v24 }
 0x312   : > { %v3046_v36 = vadd.s32 1, %v3042_v60  ;;  %vm3137_vm4 = vcmp.lt.s32.totalorder %v9343_v23, 2  ;;  %v3144_v2 = vsel %vm3136_vm8, %v9378_v0, %v9361_v8  ;;  %v3146_v49 = vsel %vm3138_vm0, %v9363_v50, %v3145_v41 }
 0x313   : > { %v9402_v3 = vadd.s32 %v9279_v38, %v12793_v47  ;;  %v12795_v55 = vand.u32 2147483647, %v12792_v52  ;;  %v2900_v38 = vsub.s32 0, %v9367_v33  ;;  %v9424_v37 = vsel %vm3137_vm4, %v3148_v29, %v3150_v31 }
 0x314   : > { %v3268_v16 = vadd.s32 1, %v5585_v7  ;;  %v2756_v6 = vsub.s32 4294967266, %v2751_v56  ;;  %vm2899_vm10 = vcmp.lt.s32.totalorder %v9367_v33, 0  ;;  %v2989_v39 = vsel %vm2983_vm12, %v2986_v40, %v2988_v22 }
 0x315   : > { %vm9415_vm14 = vcmp.le.f32.partialorder %v12795_v55, 0.7853982  ;;  %vm3045_vm5 = vc.u32 %v9376_v11, %v9402_v3  ;;  %v9429_v54 = vshll.u32 %v3112_v58, 8  ;;  %v12798_v35 = vxor.u32 2147483648, %v9284_v25 }
 0x316   : > { %v12799_v20 = vxor.u32 2147483648, %v9281_v32  ;;  %v2610_v43 = vxor.u32 2147483648, %v2609_v46  ;;  %v9443_v41 = vsel %vm3137_vm4, %v3144_v2, %v3146_v49  ;;  %v2467_v18 = vmul.f32 %v9327_v48, %v9220_v62  ;;  %v12802_v2 = vld [vmem:[#allocation12_spill] sm:$0xff] }
 0x317   : > { %v2328_v57 = vsel %vm2326_vm6, %v9281_v32, %v12798_v35  ;;  %v2474_v7 = vmul.f32 %v9329_v45, %v9220_v62  ;;  %v3047_v58 = vsel %vm3045_vm5, %v3046_v36, %v3042_v60  ;;  %v3156_v29 = vshrl.u32 %v9424_v37, 16  ;;  %v12800_v45 = vld [vmem:[#allocation21_spill] sm:$0xff]  ;;  %v12801_v36 = vld [vmem:[#allocation11_spill] sm:$0xff] }
 0x318   : > { %v2331_v21 = vsel %vm2329_vm7, %v12799_v20, %v9284_v25  ;;  %v2752_v31 = vsub.s32 32, %v2751_v56  ;;  %v2901_v32 = vsel %vm2899_vm10, %v2900_v38, %v9367_v33  ;;  %v3043_v40 = vmul.u32 %v9178_v15, %v2989_v39 }
 0x319   : > { %vm3269_vm12 = vcmp.gt.s32.totalorder %v3268_v16, 0  ;;  %v2332_v25 = vsel %vm2325_vm2, %v2328_v57, %v2331_v21  ;;  %v2757_v22 = vadd.s32 127, %v2756_v6  ;;  %v3153_v47 = vand.u32 65535, %v9429_v54 }
 0x31a   : > { %v3178_v48 = vshrl.u32 %v9443_v41, 16  ;;  %v2611_v62 = vsel %vm2490_vm13, %v2610_v43, %v2609_v46  ;;  %v2612_v60 = vsub.s32 4, %v12800_v45  ;;  %v2736_v49 = vadd.s32 %v12802_v2, %v12801_v36 }
 0x31b   : > { %v3048_v55 = vadd.s32 %v3047_v58, %v3043_v40  ;;  %v12803_v15 = vsel %vm9130_vm1, 0, %v9244_v53  ;;  %v2902_v38 = vclz %v2901_v32  ;;  %v9469_v6 = vmul.u32 %v3156_v29, %v3153_v47 }
 0x31c   : > { %v9465_v10 = vand.u32 3, %v12803_v15  ;;  %v3270_v39 = vsel %vm3269_vm12, %v3268_v16, 0  ;;  %v9473_v46 = vsel %vm2323_vm9, nan, %v2332_v25  ;;  %v9475_v35 = vadd.f32 1.0, %v2467_v18 }
 0x31d   : > { %12804 = vst [vmem:[#allocation14_spill] sm:$0xff] %v9473_v46  ;;  %v2475_v57 = vadd.f32 1.0, %v2474_v7  ;;  %v2754_v20 = vshrl.u32 %v2736_v49, %v2752_v31  ;;  %v9480_v59 = vsel %vm9415_vm14, %v12792_v52, %v2611_v62  ;;  %v2758_v53 = vshll.u32 %v2757_v22, 23 }
 0x31e   : > { %v3155_v21 = vand.u32 65535, %v9424_v37  ;;  %v9483_v43 = vmul.u32 %v3178_v48, %v3153_v47  ;;  %v9488_v24 = vsel %vm2490_vm13, %v2612_v60, %v12800_v45  ;;  %v2753_v16 = vshll.u32 %v9257_v5, %v2751_v56 }
 0x31f   : > { %v3049_v18 = vadd.s32 536870912, %v3048_v55  ;;  %v3272_v7 = vand.u32 31, %v3270_v39  ;;  %v5577_v58 = vadd.s32 4294967294, %v2902_v38  ;;  %v3154_v31 = vshrl.u32 %v9429_v54, 16 }
 0x320   : > { %v3161_v32 = vshll.u32 %v9469_v6, 16  ;;  %v3177_v40 = vand.u32 65535, %v9443_v41  ;;  %v9495_v25 = vmul.f32 %v2475_v57, %v9193_v19  ;;  %v2484_v22 = vxor.u32 2147483648, %v9475_v35 }
 0x321   : > { %v9500_v62 = vmul.f32 %v9480_v59, %v9480_v59  ;;  %v2755_v45 = vor.u32 %v2754_v20, %v2753_v16  ;;  %v2759_v5 = vor.u32 4788187, %v2758_v53  ;;  %v3157_v56 = vmul.u32 %v3155_v21, %v3153_v47 }
 0x322   : > { %v9502_v60 = vmul.u32 %v3155_v21, %v3154_v31  ;;  %v3183_v36 = vshll.u32 %v9483_v43, 16  ;;  %v9508_v2 = vshrl.u32 %v3049_v18, 30  ;;  %v12511_v19 = vand.u32 2147483647, %v12791_v44 }
 0x323   : > { %v9511_v49 = vsub.s32 32, %v3272_v7  ;;  %vm5578_vm1 = vcmp.lt.s32.totalorder %v5577_v58, 0  ;;  %v3167_v15 = vadd.s32 %v3161_v32, %v3157_v56  ;;  %v3179_v38 = vmul.u32 %v3177_v40, %v3153_v47 }
 0x324   : > { %12805 = vst [vmem:[#allocation10_spill] sm:$0xff] %v9508_v2  ;;  %v9513_v57 = vmul.u32 %v3177_v40, %v3154_v31  ;;  %v9517_v53 = vmul.f32 -0.001358992, %v9500_v62  ;;  %v2762_v21 = vcvt.s32.f32 %v2755_v45  ;;  %vm3165_vm15 = vc.u32 %v3157_v56, %v3161_v32 }
 0x325   : > { %vm2483_vm6 = vcmp.eq.s32.totalorder %v9465_v10, 2  ;;  %v2760_v16 = vand.u32 2147483647, %v2759_v5  ;;  %v3163_v18 = vshll.u32 %v9502_v60, 16  ;;  %vm3187_vm7 = vc.u32 %v3179_v38, %v3183_v36 }
 0x326   : > { %v9521_v14 = vadd.s32 %v3183_v36, %v3179_v38  ;;  %v9523_v41 = vsel %vm5578_vm1, 0, %v5577_v58  ;;  %v3051_v47 = vshll.u32 %v9508_v2, 30  ;;  %v9528_v40 = vand.u32 8388607, %v12511_v19 }
 0x327   : > { %v3285_v45 = vshrl.u32 %v12722_v13, %v9511_v49  ;;  %v3166_v32 = vsel %vm3165_vm15, 1, %v12615_v34  ;;  %vm9533_vm11 = vc.u32 %v3167_v15, %v3163_v18  ;;  %v3182_v56 = vmul.u32 %v3178_v48, %v3154_v31 }
 0x328   : > { %v12516_v36 = vshll.u32 %v9513_v57, 16  ;;  %v3188_v58 = vsel %vm3187_vm7, 1, %v12615_v34  ;;  %v9539_v38 = vshrl.u32 %v3270_v39, 5  ;;  %v3284_v20 = vshll.u32 %v12757_v12, %v3272_v7 }
 0x329   : > { %v3288_v19 = vshrl.u32 %v12756_v51, %v9511_v49  ;;  %v3276_v15 = vshrl.u32 %v12724_v42, %v9511_v49  ;;  %v3279_v48 = vshrl.u32 %v12639_v9, %v9511_v49  ;;  %v3282_v18 = vshrl.u32 %v12757_v12, %v9511_v49 }
 0x32a   : > { %vm3191_vm2 = vc.u32 %v9521_v14, %v12516_v36  ;;  %v9553_v39 = vsub.s32 %v3048_v55, %v3051_v47  ;;  %v3160_v46 = vmul.u32 %v3156_v29, %v3154_v31  ;;  %v3286_v44 = vor.u32 %v3285_v45, %v3284_v20  ;;  %v12808_v45 = vld [vmem:[#allocation26_spill] sm:$0xff] }
 0x32b   : > { %v3287_v4 = vshll.u32 %v12722_v13, %v3272_v7  ;;  %v3190_v2 = vadd.s32 %v3188_v58, %v3182_v56  ;;  %v3275_v36 = vshll.u32 %v12623_v27, %v3272_v7  ;;  %v3278_v28 = vshll.u32 %v12724_v42, %v3272_v7 }
 0x32c   : > { %v3281_v52 = vshll.u32 %v12639_v9, %v3272_v7  ;;  %v3168_v51 = vadd.s32 %v3166_v32, %v3160_v46  ;;  %v3170_v12 = vsel %vm9533_vm11, 1, %v12615_v34  ;;  %v3192_v55 = vsel %vm3191_vm2, 1, %v12615_v34 }
 0x32d   : > { %v3289_v47 = vor.u32 %v3288_v19, %v3287_v4  ;;  %v9565_v37 = vor.u32 %v3276_v15, %v3275_v36  ;;  %v9567_v29 = vor.u32 %v3279_v48, %v3278_v28  ;;  %vm3293_vm13 = vcmp.lt.s32.totalorder %v9539_v38, 4 }
 0x32e   : > { %v9569_v31 = vor.u32 %v3282_v18, %v3281_v52  ;;  %v9575_v7 = vsel %vm2483_vm6, %v2484_v22, %v9495_v25  ;;  %v2624_v46 = vmul.f32 -0.00019511016, %v9500_v62  ;;  %v3054_v20 = vsub.s32 0, %v9553_v39 }
 0x32f   : > { %v3299_v4 = vsel %vm3293_vm13, %v3286_v44, 920167782  ;;  %v2763_v19 = vmul.f32 %v2762_v21, %v2760_v16  ;;  %v2910_v28 = vsub.s32 4294967266, %v9523_v41  ;;  %vm3053_vm9 = vcmp.lt.s32.totalorder %v9553_v39, 0 }
 0x330   : > { %v3194_v52 = vadd.s32 %v3192_v55, %v3190_v2  ;;  %vm2644_vm5 = vcmp.lt.s32.totalorder %v12808_v45, 0  ;;  %v3172_v32 = vadd.s32 %v3170_v12, %v3168_v51  ;;  %vm3290_vm10 = vcmp.lt.s32.totalorder %v9539_v38, 1 }
 0x331   : > { %vm3292_vm12 = vcmp.lt.s32.totalorder %v9539_v38, 3  ;;  %v3303_v22 = vsel %vm3293_vm13, %v3289_v47, 1326507024  ;;  %v3184_v5 = vshrl.u32 %v9483_v43, 16  ;;  %v3266_v56 = vor.u32 8388608, %v9528_v40 }
 0x332   : > { %v3298_v21 = vsel %vm3290_vm10, %v9565_v37, %v9567_v29  ;;  %v3300_v51 = vsel %vm3292_vm12, %v9569_v31, %v3299_v4  ;;  %v2625_v12 = vadd.f32 0.008332121, %v2624_v46  ;;  %v12809_v2 = vsel %vm9415_vm14, 0, %v9488_v24 }
 0x333   : > { %v9601_v16 = vand.u32 3, %v12809_v2  ;;  %v3055_v43 = vsel %vm3053_vm9, %v3054_v20, %v9553_v39  ;;  %v3162_v40 = vshrl.u32 %v9469_v6, 16  ;;  %v12810_v36 = vand.u32 2147483647, %v12808_v45 }
 0x334   : > { %v3195_v15 = vadd.s32 %v3194_v52, %v3184_v5  ;;  %vm3291_vm15 = vcmp.lt.s32.totalorder %v9539_v38, 2  ;;  %v3302_v17 = vsel %vm3290_vm10, %v9567_v29, %v9569_v31  ;;  %v3304_v24 = vsel %vm3292_vm12, %v3286_v44, %v3303_v22 }
 0x335   : > { %vm9607_vm1 = vcmp.le.f32.partialorder %v12810_v36, 0.7853982  ;;  %v2618_v48 = vadd.f32 0.041655596, %v9517_v53  ;;  %v2911_v6 = vadd.s32 127, %v2910_v28  ;;  %v3173_v18 = vadd.s32 %v3172_v32, %v3162_v40 }
 0x336   : > { %v9621_v55 = vsel %vm3291_vm15, %v3298_v21, %v3300_v51  ;;  %vm2480_vm14 = vcmp.eq.s32.totalorder %v9465_v10, 0  ;;  %v2764_v47 = vxor.u32 2147483648, %v2763_v19  ;;  %v2906_v46 = vsub.s32 32, %v9523_v41 }
 0x337   : > { %v3186_v20 = vshrl.u32 %v9513_v57, 16  ;;  %v9626_v4 = vshll.u32 %v3266_v56, 8  ;;  %v2626_v52 = vmul.f32 %v2625_v12, %v9500_v62  ;;  %v3056_v44 = vclz %v3055_v43 }
 0x338   : > { %v3164_v53 = vshrl.u32 %v9502_v60, 16  ;;  %v9632_v28 = vsel %vm3291_vm15, %v3302_v17, %v3304_v24  ;;  %v2890_v32 = vadd.s32 %v9215_v26, %v9203_v61  ;;  %v3141_v22 = vsel %vm3139_vm3, %v9363_v50, 2102212464 }
 0x339   : > { %v3196_v5 = vadd.s32 %v3195_v15, %v3186_v20  ;;  %v3332_v56 = vshrl.u32 %v9621_v55, 16  ;;  %v2619_v21 = vmul.f32 %v2618_v48, %v9500_v62  ;;  %v2912_v51 = vshll.u32 %v2911_v6, 23  ;;  %v12814_v48 = vld [vmem:[#allocation29_spill] sm:$0xff] }
 0x33a   : > { %v3120_v60 = vshrl.u32 %v12623_v27, %v9305_v30  ;;  %v9643_v12 = vadd.s32 %v3173_v18, %v3164_v53  ;;  %v2765_v2 = vsel %vm2644_vm5, %v2764_v47, %v2763_v19  ;;  %v2908_v43 = vshrl.u32 %v2890_v32, %v2906_v46 }
 0x33b   : > { %v3307_v61 = vand.u32 65535, %v9626_v4  ;;  %v3310_v26 = vshrl.u32 %v9632_v28, 16  ;;  %v5580_v50 = vadd.s32 4294967294, %v3056_v44  ;;  %v3142_v36 = vsel %vm3138_vm0, %v9361_v8, %v3141_v22 }
 0x33c   : > { %v3140_v40 = vsel %vm3136_vm8, %v3120_v60, %v9378_v0  ;;  %v12813_v30 = vshll.u32 %v9513_v57, 16  ;;  %vm2479_vm3 = vcmp.lt.s32.totalorder %v9465_v10, 2  ;;  %v2627_v19 = vadd.f32 -0.16666654, %v2626_v52 }
 0x33d   : > { %v3200_v17 = vadd.s32 1, %v3196_v5  ;;  %v9663_v24 = vmul.u32 %v3332_v56, %v3307_v61  ;;  %v3415_v6 = vand.u32 2139095040, %v12814_v48  ;;  %v9669_v0 = vsel %vm9607_vm1, %v12808_v45, %v2765_v2 }
 0x33e   : > { %v9658_v15 = vadd.s32 %v9521_v14, %v12813_v30  ;;  %v2907_v8 = vshll.u32 %v9367_v33, %v9523_v41  ;;  %v2913_v14 = vor.u32 4788187, %v2912_v51  ;;  %v3143_v57 = vsel %vm3137_vm4, %v3140_v40, %v3142_v36 }
 0x33f   : > { %v9679_v18 = vmul.u32 %v3310_v26, %v3307_v61  ;;  %v3331_v47 = vand.u32 65535, %v9621_v55  ;;  %v3416_v46 = vshrl.u32 %v3415_v6, 23  ;;  %v12815_v20 = vxor.u32 2147483648, %v9495_v25 }
 0x340   : > { %vm3199_vm8 = vc.u32 %v9643_v12, %v9658_v15  ;;  %v2909_v41 = vor.u32 %v2908_v43, %v2907_v8  ;;  %vm5581_vm0 = vcmp.lt.s32.totalorder %v5580_v50, 0  ;;  %v3309_v52 = vand.u32 65535, %v9632_v28 }
 0x341   : > { %v2482_v33 = vsel %vm2480_vm14, %v9475_v35, %v12815_v20  ;;  %v3201_v44 = vsel %vm3199_vm8, %v3200_v17, %v3196_v5  ;;  %v3308_v23 = vshrl.u32 %v9626_v4, 16  ;;  %v3337_v53 = vshll.u32 %v9663_v24, 16 }
 0x342   : > { %v5588_v32 = vadd.s32 4294967169, %v3416_v46  ;;  %v2620_v22 = vadd.f32 -0.4999988, %v2619_v21  ;;  %v2628_v51 = vmul.f32 %v2627_v19, %v9500_v62  ;;  %v9693_v25 = vmul.f32 %v9669_v0, %v9669_v0 }
 0x343   : > { %v3197_v60 = vmul.u32 %v9429_v54, %v3143_v57  ;;  %v2914_v35 = vand.u32 2147483647, %v2913_v14  ;;  %v3315_v2 = vshll.u32 %v9679_v18, 16  ;;  %v3333_v43 = vmul.u32 %v3331_v47, %v3307_v61 }
 0x344   : > { %v9697_v40 = vmul.u32 %v3331_v47, %v3308_v23  ;;  %vm2477_vm4 = vweird.f32 %v12725_v63  ;;  %v2916_v5 = vcvt.s32.f32 %v2909_v41  ;;  %v9701_v36 = vsel %vm5581_vm0, 0, %v5580_v50  ;;  %v12816_v50 = vld [vmem:[#allocation15_spill] sm:$0xff] }
 0x345   : > { %v9703_v21 = vadd.s32 %v3201_v44, %v3197_v60  ;;  %v3311_v30 = vmul.u32 %v3309_v52, %v3307_v61  ;;  %v9705_v19 = vmul.u32 %v3309_v52, %v3308_v23  ;;  %vm3341_vm6 = vc.u32 %v3333_v43, %v3337_v53 }
 0x346   : > { %v9707_v17 = vadd.s32 %v3337_v53, %v3333_v43  ;;  %v3422_v54 = vadd.s32 1, %v5588_v32  ;;  %v2486_v6 = vsel %vm2479_vm3, %v2482_v33, %v9575_v7  ;;  %v2621_v8 = vmul.f32 %v2620_v22, %v9500_v62 }
 0x347   : > { %v2629_v14 = vadd.f32 1.0, %v2628_v51  ;;  %v2766_v57 = vsub.s32 4, %v9201_v1  ;;  %vm2798_vm7 = vcmp.lt.s32.totalorder %v12816_v50, 0  ;;  %v2917_v47 = vmul.f32 %v2916_v5, %v2914_v35 }
 0x348   : > { %vm3319_vm11 = vc.u32 %v3311_v30, %v3315_v2  ;;  %v3321_v61 = vadd.s32 %v3315_v2, %v3311_v30  ;;  %v3339_v46 = vshll.u32 %v9697_v40, 16  ;;  %v2771_v20 = vmul.f32 -0.001358992, %v9693_v25 }
 0x349   : > { %v3064_v41 = vsub.s32 4294967266, %v9701_v36  ;;  %v3203_v52 = vadd.s32 536870912, %v9703_v21  ;;  %v3342_v10 = vsel %vm3341_vm6, 1, %v12615_v34  ;;  %v12817_v62 = vand.u32 2147483647, %v12816_v50 }
 0x34a   : > { %v3317_v33 = vshll.u32 %v9705_v19, 16  ;;  %v3336_v44 = vmul.u32 %v3332_v56, %v3308_v23  ;;  %vm3345_vm9 = vc.u32 %v9707_v17, %v3339_v46  ;;  %vm3423_vm14 = vcmp.gt.s32.totalorder %v3422_v54, 0 }
 0x34b   : > { %vm9722_vm2 = vcmp.le.f32.partialorder %v12817_v62, 0.7853982  ;;  %v9732_v53 = vadd.f32 1.0, %v2621_v8  ;;  %v9737_v32 = vsel %vm2644_vm5, %v2766_v57, %v9201_v1  ;;  %v2778_v22 = vmul.f32 -0.00019511016, %v9693_v25 }
 0x34c   : > { %v3320_v51 = vsel %vm3319_vm11, 1, %v12615_v34  ;;  %v2918_v60 = vxor.u32 2147483648, %v2917_v47  ;;  %v3314_v55 = vmul.u32 %v3310_v26, %v3308_v23  ;;  %vm3323_vm3 = vc.u32 %v3321_v61, %v3317_v33 }
 0x34d   : > { %v3344_v56 = vadd.s32 %v3342_v10, %v3336_v44  ;;  %v3065_v35 = vadd.s32 127, %v3064_v41  ;;  %v9743_v2 = vshrl.u32 %v3203_v52, 30  ;;  %v3346_v43 = vsel %vm3345_vm9, 1, %v12615_v34  ;;  %v12822_v52 = vld [vmem:[#allocation30_spill] sm:$0xff] }
 0x34e   : > { %v3424_v5 = vsel %vm3423_vm14, %v3422_v54, 0  ;;  %v9748_v1 = vsel %vm2477_vm4, nan, %v2486_v6  ;;  %v9751_v30 = vmul.f32 %v2629_v14, %v9480_v59  ;;  %vm2634_vm5 = vcmp.eq.s32.totalorder %v9601_v16, 0 }
 0x34f   : > { %12820 = vst [vmem:[#allocation8_spill] sm:$0xff] %v9743_v2  ;;  %v2772_v8 = vadd.f32 0.041655596, %v2771_v20  ;;  %v3322_v28 = vadd.s32 %v3320_v51, %v3314_v55  ;;  %v2769_v26 = vsel %vm9607_vm1, 0, %v9737_v32  ;;  %v2779_v23 = vadd.f32 0.008332121, %v2778_v22 }
 0x350   : > { %12821 = vst [vmem:[#allocation23_spill] sm:$0xff] %v9748_v1  ;;  %v3060_v57 = vsub.s32 32, %v9701_v36  ;;  %v3324_v54 = vsel %vm3323_vm3, 1, %v12615_v34  ;;  %v2638_v63 = vxor.u32 2147483648, %v9732_v53  ;;  %v2919_v6 = vsel %vm2798_vm7, %v2918_v60, %v2917_v47 }
 0x351   : > { %v3348_v59 = vadd.s32 %v3346_v43, %v3344_v56  ;;  %v3426_v14 = vand.u32 31, %v3424_v5  ;;  %v3044_v61 = vadd.s32 %v9402_v3, %v9376_v11  ;;  %v3066_v20 = vshll.u32 %v3065_v35, 23 }
 0x352   : > { %v3205_v41 = vshll.u32 %v9743_v2, 30  ;;  %v3569_v10 = vand.u32 2139095040, %v12822_v52  ;;  %v2635_v62 = vxor.u32 2147483648, %v9751_v30  ;;  %v2773_v33 = vmul.f32 %v2772_v8, %v9693_v25 }
 0x353   : > { %v3326_v44 = vadd.s32 %v3324_v54, %v3322_v28  ;;  %v3338_v22 = vshrl.u32 %v9663_v24, 16  ;;  %v2780_v51 = vmul.f32 %v2779_v23, %v9693_v25  ;;  %v9773_v47 = vsel %vm9722_vm2, %v12816_v50, %v2919_v6 }
 0x354   : > { %v3062_v11 = vshrl.u32 %v3044_v61, %v3060_v57  ;;  %v3295_v3 = vsel %vm3293_vm13, %v9569_v31, 2102212464  ;;  %v3274_v60 = vshrl.u32 %v12623_v27, %v9511_v49  ;;  %v3316_v55 = vshrl.u32 %v9679_v18, 16 }
 0x355   : > { %v3349_v56 = vadd.s32 %v3348_v59, %v3338_v22  ;;  %v9781_v35 = vsub.s32 32, %v3426_v14  ;;  %v3061_v24 = vshll.u32 %v9553_v39, %v9701_v36  ;;  %v3067_v43 = vor.u32 4788187, %v3066_v20 }
 0x356   : > { %v9786_v8 = vsub.s32 %v9703_v21, %v3205_v41  ;;  %v3570_v28 = vshrl.u32 %v3569_v10, 23  ;;  %v3294_v31 = vsel %vm3290_vm10, %v3274_v60, %v9565_v37  ;;  %v3296_v49 = vsel %vm3292_vm12, %v9567_v29, %v3295_v3 }
 0x357   : > { %v3327_v18 = vadd.s32 %v3326_v44, %v3316_v55  ;;  %v3340_v23 = vshrl.u32 %v9697_v40, 16  ;;  %v9798_v39 = vsel %vm2634_vm5, %v9732_v53, %v2635_v62  ;;  %v2774_v36 = vadd.f32 -0.4999988, %v2773_v33 }
 0x358   : > { %v2781_v21 = vadd.f32 -0.16666654, %v2780_v51  ;;  %v9802_v57 = vmul.f32 %v9773_v47, %v9773_v47  ;;  %v3063_v54 = vor.u32 %v3062_v11, %v3061_v24  ;;  %v3318_v37 = vshrl.u32 %v9705_v19, 16 }
 0x359   : > { %v3350_v6 = vadd.s32 %v3349_v56, %v3340_v23  ;;  %v3439_v29 = vshrl.u32 %v12722_v13, %v9781_v35  ;;  %v3068_v59 = vand.u32 2147483647, %v3067_v43  ;;  %v3208_v61 = vsub.s32 0, %v9786_v8 }
 0x35a   : > { %v3297_v20 = vsel %vm3291_vm15, %v3294_v31, %v3296_v49  ;;  %v5591_v41 = vadd.s32 4294967169, %v3570_v28  ;;  %v9810_v10 = vadd.s32 %v3327_v18, %v3318_v37  ;;  %v12522_v62 = vand.u32 2147483647, %v12814_v48 }
 0x35b   : > { %v12823_v33 = vmov 2102212464   ;;  %v12824_v22 = vmov 1326507024   ;;  %v9816_v51 = vshrl.u32 %v3424_v5, 5  ;;  %v3430_v11 = vshrl.u32 %v12724_v42, %v9781_v35 }
 0x35c   : > { %v3438_v44 = vshll.u32 %v12823_v33, %v3426_v14  ;;  %v3442_v19 = vshrl.u32 %v12824_v22, %v9781_v35  ;;  %v3433_v3 = vshrl.u32 %v12639_v9, %v9781_v35  ;;  %v3436_v38 = vshrl.u32 %v12823_v33, %v9781_v35 }
 0x35d   : > { %v9827_v60 = vadd.s32 %v9707_v17, %v3339_v46  ;;  %v3354_v55 = vadd.s32 1, %v3350_v6  ;;  %v3441_v24 = vshll.u32 %v12722_v13, %v3426_v14  ;;  %v3429_v5 = vshll.u32 %v12623_v27, %v3426_v14 }
 0x35e   : > { %v3440_v56 = vor.u32 %v3439_v29, %v3438_v44  ;;  %v3432_v43 = vshll.u32 %v12724_v42, %v3426_v14  ;;  %v3435_v28 = vshll.u32 %v12639_v9, %v3426_v14  ;;  %v3576_v31 = vadd.s32 1, %v5591_v41 }
 0x35f   : > { %vm3207_vm13 = vcmp.lt.s32.totalorder %v9786_v8, 0  ;;  %vm3353_vm10 = vc.u32 %v9810_v10, %v9827_v60  ;;  %v3419_v40 = vand.u32 8388607, %v12522_v62  ;;  %v3443_v17 = vor.u32 %v3442_v19, %v3441_v24 }
 0x360   : > { %vm2637_vm12 = vcmp.eq.s32.totalorder %v9601_v16, 2  ;;  %v9839_v46 = vor.u32 %v3430_v11, %v3429_v5  ;;  %v9841_v49 = vor.u32 %v3433_v3, %v3432_v43  ;;  %v9843_v18 = vor.u32 %v3436_v38, %v3435_v28  ;;  %v12825_v3 = vld [vmem:[#allocation25_spill] sm:$0xff] }
 0x361   : > { %vm3447_vm15 = vcmp.lt.s32.totalorder %v9816_v51, 4  ;;  %vm2633_vm8 = vcmp.lt.s32.totalorder %v9601_v16, 2  ;;  %v2782_v14 = vmul.f32 %v2781_v21, %v9693_v25  ;;  %v2925_v23 = vmul.f32 -0.001358992, %v9802_v57 }
 0x362   : > { %v2932_v37 = vmul.f32 -0.00019511016, %v9802_v57  ;;  %v3453_v29 = vsel %vm3447_vm15, %v3440_v56, 920167782  ;;  %v3070_v41 = vcvt.s32.f32 %v3063_v54  ;;  %v3209_v44 = vsel %vm3207_vm13, %v3208_v61, %v9786_v8 }
 0x363   : > { %v3355_v19 = vsel %vm3353_vm10, %v3354_v55, %v3350_v6  ;;  %vm3577_vm0 = vcmp.gt.s32.totalorder %v3576_v31, 0  ;;  %v3351_v11 = vmul.u32 %v9626_v4, %v3297_v20  ;;  %vm3444_vm4 = vcmp.lt.s32.totalorder %v9816_v51, 1  ;;  %v12826_v6 = vld [vmem:[#allocation38_spill] sm:$0xff] }
 0x364   : > { %vm3446_vm6 = vcmp.lt.s32.totalorder %v9816_v51, 3  ;;  %v3457_v21 = vsel %vm3447_vm15, %v3443_v17, 1326507024  ;;  %vm2631_vm11 = vweird.f32 %v12825_v3  ;;  %v3071_v38 = vmul.f32 %v3070_v41, %v3068_v59 }
 0x365   : > { %v3420_v24 = vor.u32 8388608, %v3419_v40  ;;  %v3452_v54 = vsel %vm3444_vm4, %v9839_v46, %v9841_v49  ;;  %v3454_v4 = vsel %vm3446_vm6, %v9843_v18, %v3453_v29  ;;  %v2920_v61 = vsub.s32 4, %v12826_v6 }
 0x366   : > { %v3210_v20 = vclz %v3209_v44  ;;  %v9867_v55 = vadd.s32 %v3355_v19, %v3351_v11  ;;  %v3578_v5 = vsel %vm3577_vm0, %v3576_v31, 0  ;;  %v2775_v43 = vmul.f32 %v2774_v36, %v9693_v25 }
 0x367   : > { %vm3445_vm9 = vcmp.lt.s32.totalorder %v9816_v51, 2  ;;  %v3456_v59 = vsel %vm3444_vm4, %v9841_v49, %v9843_v18  ;;  %v3458_v28 = vsel %vm3446_vm6, %v3440_v56, %v3457_v21  ;;  %v2783_v40 = vadd.f32 1.0, %v2782_v14 }
 0x368   : > { %v2926_v17 = vadd.f32 0.041655596, %v2925_v23  ;;  %v2933_v29 = vadd.f32 0.008332121, %v2932_v37  ;;  %v9879_v41 = vsel %vm3445_vm9, %v3452_v54, %v3454_v4  ;;  %v9885_v25 = vand.u32 3, %v2769_v26  ;;  %v12827_v37 = vld [vmem:[#allocation16_spill] sm:$0xff] }
 0x369   : > { %v3072_v36 = vxor.u32 2147483648, %v3071_v38  ;;  %v9887_v31 = vshll.u32 %v3420_v24, 8  ;;  %v3580_v44 = vand.u32 31, %v3578_v5  ;;  %v2639_v56 = vsel %vm2637_vm12, %v2638_v63, %v9751_v30 }
 0x36a   : > { %v5583_v14 = vadd.s32 4294967294, %v3210_v20  ;;  %v3357_v23 = vadd.s32 536870912, %v9867_v55  ;;  %v9897_v58 = vsel %vm3445_vm9, %v3456_v59, %v3458_v28  ;;  %v2640_v32 = vsel %vm2633_vm8, %v9798_v39, %v2639_v56 }
 0x36b   : > { %v9902_v26 = vadd.f32 1.0, %v2775_v43  ;;  %vm2952_vm1 = vcmp.lt.s32.totalorder %v12827_v37, 0  ;;  %v3486_v53 = vshrl.u32 %v9879_v41, 16  ;;  %v9907_v19 = vmul.f32 %v2783_v40, %v9669_v0 }
 0x36c   : > { %v9912_v30 = vsel %vm2798_vm7, %v2920_v61, %v12826_v6  ;;  %v2927_v63 = vmul.f32 %v2926_v17, %v9802_v57  ;;  %v2934_v11 = vmul.f32 %v2933_v29, %v9802_v57  ;;  %v3073_v16 = vsel %vm2952_vm1, %v3072_v36, %v3071_v38 }
 0x36d   : > { %v3461_v39 = vand.u32 65535, %v9887_v31  ;;  %v12524_v21 = vshrl.u32 %v9897_v58, 16  ;;  %v9920_v24 = vsub.s32 32, %v3580_v44  ;;  %v9924_v0 = vsel %vm2631_vm11, nan, %v2640_v32 }
 0x36e   : > { %12828 = vst [vmem:[#allocation21_spill] sm:$0xff] %v9924_v0  ;;  %vm5584_vm14 = vcmp.lt.s32.totalorder %v5583_v14, 0  ;;  %v9926_v54 = vshrl.u32 %v3357_v23, 30  ;;  %v12523_v4 = vand.u32 2147483647, %v12822_v52  ;;  %v3485_v36 = vand.u32 65535, %v9879_v41 }
 0x36f   : > { %v12830_v61 = vand.u32 2147483647, %v12827_v37  ;;  %v9939_v3 = vmul.u32 %v3486_v53, %v3461_v39  ;;  %v9942_v59 = vadd.f32 -0.4999988, %v2927_v63  ;;  %v9944_v28 = vadd.f32 -0.16666654, %v2934_v11 }
 0x370   : > { %12829 = vst [vmem:[#allocation11_spill] sm:$0xff] %v9926_v54  ;;  %v9951_v17 = vsel %vm5584_vm14, 0, %v5583_v14  ;;  %v9955_v29 = vmul.u32 %v12524_v21, %v3461_v39  ;;  %v3593_v56 = vshrl.u32 %v12722_v13, %v9920_v24  ;;  %v3359_v23 = vshll.u32 %v9926_v54, 30 }
 0x371   : > { %vm9935_vm7 = vcmp.le.f32.partialorder %v12830_v61, 0.7853982  ;;  %v3462_v32 = vshrl.u32 %v9887_v31, 16  ;;  %v3573_v63 = vand.u32 8388607, %v12523_v4  ;;  %v3596_v14 = vshrl.u32 %v12824_v22, %v9920_v24 }
 0x372   : > { %v9949_v40 = vsel %vm9935_vm7, %v12827_v37, %v3073_v16  ;;  %v3463_v11 = vand.u32 65535, %v9897_v58  ;;  %v3491_v16 = vshll.u32 %v9939_v3, 16  ;;  %v9968_v61 = vshrl.u32 %v3578_v5, 5 }
 0x373   : > { %12833 = vst [vmem:[#allocation12_spill] sm:$0xff] %v9949_v40  ;;  %v3592_v41 = vshll.u32 %v12823_v33, %v3580_v44  ;;  %v3584_v62 = vshrl.u32 %v12724_v42, %v9920_v24  ;;  %v3587_v38 = vshrl.u32 %v12639_v9, %v9920_v24  ;;  %v3590_v4 = vshrl.u32 %v12823_v33, %v9920_v24 }
 0x374   : > { %v3595_v6 = vshll.u32 %v12722_v13, %v3580_v44  ;;  %v3469_v43 = vshll.u32 %v9955_v29, 16  ;;  %v3487_v21 = vmul.u32 %v3485_v36, %v3461_v39  ;;  %v9979_v0 = vmul.u32 %v3485_v36, %v3462_v32 }
 0x375   : > { %v3594_v5 = vor.u32 %v3593_v56, %v3592_v41  ;;  %v3583_v1 = vshll.u32 %v12623_v27, %v3580_v44  ;;  %v3586_v52 = vshll.u32 %v12724_v42, %v3580_v44  ;;  %v3589_v48 = vshll.u32 %v12639_v9, %v3580_v44 }
 0x376   : > { %v3597_v54 = vor.u32 %v3596_v14, %v3595_v6  ;;  %v3465_v50 = vmul.u32 %v3463_v11, %v3461_v39  ;;  %v9984_v2 = vmul.u32 %v3463_v11, %v3462_v32  ;;  %vm9986_vm3 = vc.u32 %v3487_v21, %v3491_v16 }
 0x377   : > { %v9990_v22 = vadd.s32 %v3491_v16, %v3487_v21  ;;  %vm2788_vm5 = vcmp.eq.s32.totalorder %v9885_v25, 0  ;;  %vm2791_vm13 = vcmp.eq.s32.totalorder %v9885_v25, 2  ;;  %v9994_v36 = vor.u32 %v3584_v62, %v3583_v1 }
 0x378   : > { %v9996_v56 = vor.u32 %v3587_v38, %v3586_v52  ;;  %v9998_v41 = vor.u32 %v3590_v4, %v3589_v48  ;;  %vm3601_vm10 = vcmp.lt.s32.totalorder %v9968_v61, 4  ;;  %vm3473_vm12 = vc.u32 %v3465_v50, %v3469_v43 }
 0x379   : > { %v3475_v44 = vadd.s32 %v3469_v43, %v3465_v50  ;;  %v3574_v39 = vor.u32 8388608, %v3573_v63  ;;  %v3607_v6 = vsel %vm3601_vm10, %v3594_v5, 920167782  ;;  %v10004_v21 = vsub.s32 %v9867_v55, %v3359_v23 }
 0x37a   : > { %v3490_v14 = vmul.u32 %v3486_v53, %v3462_v32  ;;  %v12534_v11 = vshll.u32 %v9979_v0, 16  ;;  %v3611_v1 = vsel %vm3601_vm10, %v3597_v54, 1326507024  ;;  %v3471_v48 = vshll.u32 %v9984_v2, 16 }
 0x37b   : > { %v3496_v52 = vsel %vm9986_vm3, 1, %v12615_v34  ;;  %vm3598_vm8 = vcmp.lt.s32.totalorder %v9968_v61, 1  ;;  %vm3600_vm0 = vcmp.lt.s32.totalorder %v9968_v61, 3  ;;  %v3474_v50 = vsel %vm3473_vm12, 1, %v12615_v34 }
 0x37c   : > { %vm3499_vm11 = vc.u32 %v9990_v22, %v12534_v11  ;;  %v3606_v62 = vsel %vm3598_vm8, %v9994_v36, %v9996_v56  ;;  %v3608_v33 = vsel %vm3600_vm0, %v9998_v41, %v3607_v6  ;;  %v12836_v55 = vshrl.u32 %v9897_v58, 16 }
 0x37d   : > { %vm3477_vm14 = vc.u32 %v3475_v44, %v3471_v48  ;;  %v3610_v54 = vsel %vm3598_vm8, %v9996_v56, %v9998_v41  ;;  %v3612_v4 = vsel %vm3600_vm0, %v3594_v5, %v3611_v1  ;;  %v10036_v38 = vmul.f32 %v9949_v40, %v9949_v40 }
 0x37e   : > { %v3468_v53 = vmul.u32 %v12836_v55, %v3462_v32  ;;  %v3362_v43 = vsub.s32 0, %v10004_v21  ;;  %v3498_v23 = vadd.s32 %v3496_v52, %v3490_v14  ;;  %vm3599_vm3 = vcmp.lt.s32.totalorder %v9968_v61, 2 }
 0x37f   : > { %vm3361_vm12 = vcmp.lt.s32.totalorder %v10004_v21, 0  ;;  %v3500_v32 = vsel %vm3499_vm11, 1, %v12615_v34  ;;  %v10044_v63 = vsel %vm3599_vm3, %v3606_v62, %v3608_v33  ;;  %v3218_v16 = vsub.s32 4294967266, %v9951_v17 }
 0x380   : > { %v3476_v58 = vadd.s32 %v3474_v50, %v3468_v53  ;;  %v3478_v5 = vsel %vm3477_vm14, 1, %v12615_v34  ;;  %v10050_v44 = vsel %vm3599_vm3, %v3610_v54, %v3612_v4  ;;  %v10052_v6 = vshll.u32 %v3574_v39, 8 }
 0x381   : > { %v12837_v14 = vxor.u32 2147483648, %v9907_v19  ;;  %v12838_v48 = vxor.u32 2147483648, %v9902_v26  ;;  %v10070_v50 = vmul.f32 %v9942_v59, %v9802_v57  ;;  %v12839_v39 = vsel %vm9722_vm2, 0, %v9912_v30  ;;  %v12840_v59 = vld [vmem:[#allocation17_spill] sm:$0xff] }
 0x382   : > { %v10076_v62 = vand.u32 3, %v12839_v39  ;;  %v3079_v33 = vmul.f32 -0.001358992, %v10036_v38  ;;  %v3363_v55 = vsel %vm3361_vm12, %v3362_v43, %v10004_v21  ;;  %v3502_v53 = vadd.s32 %v3500_v32, %v3498_v23  ;;  %v12841_v43 = vld [vmem:[#allocation10_spill] sm:$0xff] }
 0x383   : > { %v10059_v1 = vsel %vm2788_vm5, %v9902_v26, %v12837_v14  ;;  %v10066_v52 = vsel %vm2791_vm13, %v12838_v48, %v9907_v19  ;;  %v3214_v19 = vsub.s32 32, %v9951_v17  ;;  %v3480_v54 = vadd.s32 %v3478_v5, %v3476_v58 }
 0x384   : > { %v3723_v14 = vand.u32 2139095040, %v12840_v59  ;;  %v10086_v7 = vmul.f32 %v9944_v28, %v9802_v57  ;;  %v3219_v30 = vadd.s32 127, %v3218_v16  ;;  %v3492_v48 = vshrl.u32 %v9939_v3, 16 }
 0x385   : > { %v3615_v39 = vand.u32 65535, %v10052_v6  ;;  %v3198_v32 = vadd.s32 %v9658_v15, %v9643_v12  ;;  %v3364_v11 = vclz %v3363_v55  ;;  %v3470_v58 = vshrl.u32 %v9955_v29, 16 }
 0x386   : > { %v10094_v5 = vadd.f32 0.041655596, %v3079_v33  ;;  %v3086_v4 = vmul.f32 -0.00019511016, %v10036_v38  ;;  %v3503_v26 = vadd.s32 %v3502_v53, %v3492_v48  ;;  %v12842_v57 = vshrl.u32 %v10044_v63, 16 }
 0x387   : > { %v3216_v3 = vshrl.u32 %v3198_v32, %v3214_v19  ;;  %v3481_v16 = vadd.s32 %v3480_v54, %v3470_v58  ;;  %v12843_v40 = vshrl.u32 %v10050_v44, 16  ;;  %v3724_v9 = vshrl.u32 %v3723_v14, 23 }
 0x388   : > { %v10099_v28 = vmul.u32 %v12842_v57, %v3615_v39  ;;  %v3215_v12 = vshll.u32 %v9786_v8, %v9951_v17  ;;  %v3220_v15 = vshll.u32 %v3219_v30, 23  ;;  %v3494_v29 = vshrl.u32 %v9979_v0, 16 }
 0x389   : > { %v10103_v23 = vmul.u32 %v12843_v40, %v3615_v39  ;;  %v3639_v33 = vand.u32 65535, %v10044_v63  ;;  %v5586_v55 = vadd.s32 4294967294, %v3364_v11  ;;  %v3428_v53 = vshrl.u32 %v12623_v27, %v9781_v35 }
 0x38a   : > { %v3472_v19 = vshrl.u32 %v9984_v2, 16  ;;  %v3617_v54 = vand.u32 65535, %v10050_v44  ;;  %v3449_v40 = vsel %vm3447_vm15, %v9843_v18, 2102212464  ;;  %v3504_v14 = vadd.s32 %v3503_v26, %v3494_v29 }
 0x38b   : > { %v3616_v8 = vshrl.u32 %v10052_v6, 16  ;;  %v3645_v17 = vshll.u32 %v10099_v28, 16  ;;  %vm2787_vm2 = vcmp.lt.s32.totalorder %v9885_v25, 2  ;;  %v3217_v30 = vor.u32 %v3216_v3, %v3215_v12 }
 0x38c   : > { %v10119_v11 = vadd.s32 %v3481_v16, %v3472_v19  ;;  %v3623_v35 = vshll.u32 %v10103_v23, 16  ;;  %v5594_v48 = vadd.s32 4294967169, %v3724_v9  ;;  %v3221_v2 = vor.u32 4788187, %v3220_v15 }
 0x38d   : > { %v3448_v32 = vsel %vm3444_vm4, %v3428_v53, %v9839_v46  ;;  %v3641_v58 = vmul.u32 %v3639_v33, %v3615_v39  ;;  %v10125_v18 = vmul.u32 %v3639_v33, %v3616_v8  ;;  %v3450_v26 = vsel %vm3446_vm6, %v9841_v49, %v3449_v40 }
 0x38e   : > { %v12844_v57 = vshll.u32 %v9979_v0, 16  ;;  %v3619_v16 = vmul.u32 %v3617_v54, %v3615_v39  ;;  %v10135_v12 = vmul.u32 %v3617_v54, %v3616_v8  ;;  %vm2785_vm15 = vweird.f32 %v12808_v45 }
 0x38f   : > { %vm5587_vm5 = vcmp.lt.s32.totalorder %v5586_v55, 0  ;;  %v3508_v9 = vadd.s32 1, %v3504_v14  ;;  %vm3649_vm4 = vc.u32 %v3641_v58, %v3645_v17  ;;  %v10138_v46 = vadd.s32 %v3645_v17, %v3641_v58 }
 0x390   : > { %v10133_v3 = vadd.s32 %v9990_v22, %v12844_v57  ;;  %vm3627_vm11 = vc.u32 %v3619_v16, %v3623_v35  ;;  %v3629_v49 = vadd.s32 %v3623_v35, %v3619_v16  ;;  %v3730_v15 = vadd.s32 1, %v5594_v48  ;;  %v12849_v16 = vld [vmem:[#allocation27_spill] sm:$0xff] }
 0x391   : > { %v3087_v0 = vadd.f32 0.008332121, %v3086_v4  ;;  %v3222_v29 = vand.u32 2147483647, %v3221_v2  ;;  %v3451_v22 = vsel %vm3445_vm9, %v3448_v32, %v3450_v26  ;;  %v3647_v39 = vshll.u32 %v10125_v18, 16 }
 0x392   : > { %vm3507_vm13 = vc.u32 %v10119_v11, %v10133_v3  ;;  %v3224_v33 = vcvt.s32.f32 %v3217_v30  ;;  %v10145_v53 = vsel %vm5587_vm5, 0, %v5586_v55  ;;  %v3625_v19 = vshll.u32 %v10135_v12, 16 }
 0x393   : > { %v3650_v54 = vsel %vm3649_vm4, 1, %v12615_v34  ;;  %v3509_v40 = vsel %vm3507_vm13, %v3508_v9, %v3504_v14  ;;  %v3628_v17 = vsel %vm3627_vm11, 1, %v12615_v34  ;;  %v12845_v35 = vshrl.u32 %v10044_v63, 16 }
 0x394   : > { %vm3653_vm6 = vc.u32 %v10138_v46, %v3647_v39  ;;  %v3505_v51 = vmul.u32 %v9887_v31, %v3451_v22  ;;  %v12846_v4 = vshrl.u32 %v10050_v44, 16  ;;  %vm3631_vm9 = vc.u32 %v3629_v49, %v3625_v19 }
 0x395   : > { %v3644_v48 = vmul.u32 %v12845_v35, %v3616_v8  ;;  %vm3731_vm14 = vcmp.gt.s32.totalorder %v3730_v15, 0  ;;  %v2794_v14 = vsel %vm2787_vm2, %v10059_v1, %v10066_v52  ;;  %v2937_v30 = vadd.f32 1.0, %v10086_v7 }
 0x396   : > { %v3622_v55 = vmul.u32 %v12846_v4, %v3616_v8  ;;  %v3225_v63 = vmul.f32 %v3224_v33, %v3222_v29  ;;  %v12847_v32 = vsub.s32 4, %v12841_v43  ;;  %v10168_v58 = vadd.s32 %v3509_v40, %v3505_v51 }
 0x397   : > { %v3652_v2 = vadd.s32 %v3650_v54, %v3644_v48  ;;  %v3654_v8 = vsel %vm3653_vm6, 1, %v12615_v34  ;;  %v3081_v26 = vmul.f32 %v10094_v5, %v10036_v38  ;;  %v3372_v25 = vsub.s32 4294967266, %v10145_v53 }
 0x398   : > { %v3075_v31 = vsel %vm2952_vm1, %v12847_v32, %v12841_v43  ;;  %v3630_v44 = vadd.s32 %v3628_v17, %v3622_v55  ;;  %v3632_v1 = vsel %vm3631_vm9, 1, %v12615_v34  ;;  %v3732_v52 = vsel %vm3731_vm14, %v3730_v15, 0 }
 0x399   : > { %v10177_v7 = vsel %vm2785_vm15, nan, %v2794_v14  ;;  %v10180_v57 = vadd.f32 1.0, %v10070_v50  ;;  %v3088_v43 = vmul.f32 %v3087_v0, %v10036_v38  ;;  %v12850_v9 = vand.u32 2147483647, %v12849_v16 }
 0x39a   : > { %12848 = vst [vmem:[#allocation26_spill] sm:$0xff] %v10177_v7  ;;  %v3077_v5 = vsel %vm9935_vm7, 0, %v3075_v31  ;;  %vm3106_vm12 = vcmp.lt.s32.totalorder %v12849_v16, 0  ;;  %v3226_v15 = vxor.u32 2147483648, %v3225_v63  ;;  %v3656_v45 = vadd.s32 %v3654_v8, %v3652_v2 }
 0x39b   : > { %vm10185_vm1 = vcmp.le.f32.partialorder %v12850_v9, 0.7853982  ;;  %v10193_v29 = vmul.f32 %v2937_v30, %v9773_v47  ;;  %v3511_v50 = vadd.s32 536870912, %v10168_v58  ;;  %v3634_v22 = vadd.s32 %v3632_v1, %v3630_v44 }
 0x39c   : > { %v3734_v0 = vand.u32 31, %v3732_v52  ;;  %v3082_v33 = vadd.f32 -0.4999988, %v3081_v26  ;;  %v3368_v19 = vsub.s32 32, %v10145_v53  ;;  %v3373_v54 = vadd.s32 127, %v3372_v25 }
 0x39d   : > { %v3646_v40 = vshrl.u32 %v10099_v28, 16  ;;  %v2946_v20 = vxor.u32 2147483648, %v10180_v57  ;;  %v3089_v17 = vadd.f32 -0.16666654, %v3088_v43  ;;  %v10199_v35 = vand.u32 3, %v3077_v5 }
 0x39e   : > { %v3624_v48 = vshrl.u32 %v10103_v23, 16  ;;  %v3227_v47 = vsel %vm3106_vm12, %v3226_v15, %v3225_v63  ;;  %v3352_v51 = vadd.s32 %v9827_v60, %v9810_v10  ;;  %v3603_v4 = vsel %vm3601_vm10, %v9998_v41, 2102212464 }
 0x39f   : > { %v3657_v55 = vadd.s32 %v3656_v45, %v3646_v40  ;;  %v10209_v14 = vshrl.u32 %v3511_v50, 30  ;;  %v3582_v28 = vshrl.u32 %v12623_v27, %v9920_v24  ;;  %v10213_v2 = vsub.s32 32, %v3734_v0 }
 0x3a0   : > { %v3635_v30 = vadd.s32 %v3634_v22, %v3624_v48  ;;  %v10216_v23 = vmul.f32 %v3082_v33, %v10036_v38  ;;  %v3370_v63 = vshrl.u32 %v3352_v51, %v3368_v19  ;;  %v3374_v32 = vshll.u32 %v3373_v54, 23 }
 0x3a1   : > { %v3648_v10 = vshrl.u32 %v10125_v18, 16  ;;  %v3090_v60 = vmul.f32 %v3089_v17, %v10036_v38  ;;  %v3602_v41 = vsel %vm3598_vm8, %v3582_v28, %v9994_v36  ;;  %v3604_v24 = vsel %vm3600_vm0, %v9996_v56, %v3603_v4 }
 0x3a2   : > { %v3626_v31 = vshrl.u32 %v10135_v12, 16  ;;  %v10230_v44 = vsel %vm10185_vm1, %v12849_v16, %v3227_v47  ;;  %v3369_v8 = vshll.u32 %v10004_v21, %v10145_v53  ;;  %v12537_v38 = vand.u32 2147483647, %v12840_v59 }
 0x3a3   : > { %v3658_v26 = vadd.s32 %v3657_v55, %v3648_v10  ;;  %v3513_v25 = vshll.u32 %v10209_v14, 30  ;;  %v3749_v1 = vshll.u32 %v12722_v13, %v3734_v0  ;;  %v12853_v56 = vmov 1326507024   ;;  %v12856_v10 = vld [vmem:[#allocation12_spill] sm:$0xff] }
 0x3a4   : > { %v10236_v36 = vadd.s32 %v3635_v30, %v3626_v31  ;;  %v3750_v12 = vshrl.u32 %v12853_v56, %v10213_v2  ;;  %vm2945_vm7 = vcmp.eq.s32.totalorder %v10076_v62, 2  ;;  %v3371_v43 = vor.u32 %v3370_v63, %v3369_v8 }
 0x3a5   : > { %v3375_v9 = vor.u32 4788187, %v3374_v32  ;;  %v3605_v5 = vsel %vm3599_vm3, %v3602_v41, %v3604_v24  ;;  %v10244_v21 = vshrl.u32 %v3732_v52, 5  ;;  %v10249_v53 = vadd.s32 %v10138_v46, %v3647_v39  ;;  %v12857_v41 = vld [vmem:[#allocation28_spill] sm:$0xff] }
 0x3a6   : > { %v3740_v15 = vshll.u32 %v12724_v42, %v3734_v0  ;;  %v12854_v45 = vmov 2102212464   ;;  %v3747_v22 = vshrl.u32 %v12722_v13, %v10213_v2  ;;  %v3662_v33 = vadd.s32 1, %v3658_v26 }
 0x3a7   : > { %v3746_v50 = vshll.u32 %v12854_v45, %v3734_v0  ;;  %v12855_v19 = vmov 2131351028   ;;  %v3744_v52 = vshrl.u32 %v12854_v45, %v10213_v2  ;;  %v3091_v18 = vadd.f32 1.0, %v3090_v60 }
 0x3a8   : > { %v3741_v54 = vshrl.u32 %v12855_v19, %v10213_v2  ;;  %v3743_v61 = vshll.u32 %v12855_v19, %v3734_v0  ;;  %v10261_v46 = vsub.s32 %v10168_v58, %v3513_v25  ;;  %vm3661_vm10 = vc.u32 %v10236_v36, %v10249_v53 }
 0x3a9   : > { %v3751_v39 = vor.u32 %v3750_v12, %v3749_v1  ;;  %v10267_v40 = vmul.f32 %v10230_v44, %v10230_v44  ;;  %v3737_v17 = vshll.u32 %v12623_v27, %v3734_v0  ;;  %v3738_v48 = vshrl.u32 %v12724_v42, %v10213_v2  ;;  %v12858_v1 = vld [vmem:[#allocation8_spill] sm:$0xff] }
 0x3aa   : > { %vm3755_vm8 = vcmp.lt.s32.totalorder %v10244_v21, 4  ;;  %v3376_v47 = vand.u32 2147483647, %v3375_v9  ;;  %v3378_v51 = vcvt.s32.f32 %v3371_v43  ;;  %v3659_v58 = vmul.u32 %v10052_v6, %v3605_v5 }
 0x3ab   : > { %v3748_v4 = vor.u32 %v3747_v22, %v3746_v50  ;;  %vm2942_vm0 = vcmp.eq.s32.totalorder %v10076_v62, 0  ;;  %v3663_v55 = vsel %vm3661_vm10, %v3662_v33, %v3658_v26  ;;  %v3727_v28 = vand.u32 8388607, %v12537_v38  ;;  %v12862_v33 = vld [vmem:[#allocation18_spill] sm:$0xff] }
 0x3ac   : > { %v10277_v30 = vor.u32 %v3741_v54, %v3740_v15  ;;  %v10279_v63 = vor.u32 %v3744_v52, %v3743_v61  ;;  %v3516_v0 = vsub.s32 0, %v10261_v46  ;;  %vm3752_vm3 = vcmp.lt.s32.totalorder %v10244_v21, 1 }
 0x3ad   : > { %vm3754_vm2 = vcmp.lt.s32.totalorder %v10244_v21, 3  ;;  %v3765_v6 = vsel %vm3755_vm8, %v3751_v39, 1326507024  ;;  %v2943_v32 = vxor.u32 2147483648, %v10193_v29  ;;  %v3092_v60 = vmul.f32 %v3091_v18, %v12856_v10 }
 0x3ae   : > { %vm3260_vm15 = vcmp.lt.s32.totalorder %v12857_v41, 0  ;;  %vm3515_vm5 = vcmp.lt.s32.totalorder %v10261_v46, 0  ;;  %v10290_v24 = vor.u32 %v3738_v48, %v3737_v17  ;;  %v2947_v31 = vsel %vm2945_vm7, %v2946_v20, %v10193_v29 }
 0x3af   : > { %v3379_v8 = vmul.f32 %v3378_v51, %v3376_v47  ;;  %v10297_v26 = vadd.s32 %v3663_v55, %v3659_v58  ;;  %v3761_v25 = vsel %vm3755_vm8, %v3748_v4, 920167782  ;;  %vm2941_vm4 = vcmp.lt.s32.totalorder %v10076_v62, 2  ;;  %v12863_v47 = vld [vmem:[#allocation15_spill] sm:$0xff] }
 0x3b0   : > { %v3228_v12 = vsub.s32 4, %v12858_v1  ;;  %v3728_v43 = vor.u32 8388608, %v3727_v28  ;;  %v3764_v9 = vsel %vm3752_vm3, %v10277_v30, %v10279_v63  ;;  %v3766_v5 = vsel %vm3754_vm2, %v3748_v4, %v3765_v6 }
 0x3b1   : > { %v3084_v29 = vadd.f32 1.0, %v10216_v23  ;;  %v3240_v20 = vmul.f32 -0.00019511016, %v10267_v40  ;;  %v12859_v15 = vand.u32 2147483647, %v12857_v41  ;;  %v3517_v22 = vsel %vm3515_vm5, %v3516_v0, %v10261_v46 }
 0x3b2   : > { %v3877_v54 = vand.u32 2139095040, %v12862_v33  ;;  %vm3095_vm11 = vcmp.lt.s32.totalorder %v10199_v35, 2  ;;  %v3097_v61 = vxor.u32 2147483648, %v3092_v60  ;;  %vm3753_vm6 = vcmp.lt.s32.totalorder %v10244_v21, 2 }
 0x3b3   : > { %vm10313_vm13 = vcmp.le.f32.partialorder %v12859_v15, 0.7853982  ;;  %v3760_v23 = vsel %vm3752_vm3, %v10290_v24, %v10277_v30  ;;  %v3762_v52 = vsel %vm3754_vm2, %v10279_v63, %v3761_v25  ;;  %v3380_v18 = vxor.u32 2147483648, %v3379_v8 }
 0x3b4   : > { %v3665_v39 = vadd.s32 536870912, %v10297_v26  ;;  %v10331_v17 = vsel %vm3753_vm6, %v3764_v9, %v3766_v5  ;;  %v3878_v48 = vshrl.u32 %v3877_v54, 23  ;;  %vm2939_vm9 = vweird.f32 %v12863_v47 }
 0x3b5   : > { %vm3096_vm14 = vcmp.eq.s32.totalorder %v10199_v35, 0  ;;  %v3233_v51 = vmul.f32 -0.001358992, %v10267_v40  ;;  %v3518_v58 = vclz %v3517_v22  ;;  %v10336_v4 = vshll.u32 %v3728_v43, 8 }
 0x3b6   : > { %v2944_v55 = vsel %vm2942_vm0, %v10180_v57, %v2943_v32  ;;  %v3241_v28 = vadd.f32 0.008332121, %v3240_v20  ;;  %v10343_v0 = vsel %vm3753_vm6, %v3760_v23, %v3762_v52  ;;  %v5597_v6 = vadd.s32 4294967169, %v3878_v48  ;;  %v12864_v57 = vld [vmem:[#allocation11_spill] sm:$0xff] }
 0x3b7   : > { %vm3093_vm7 = vweird.f32 %v12827_v37  ;;  %v3098_v10 = vsel %vm3096_vm14, %v3084_v29, %v3097_v61  ;;  %v3100_v25 = vxor.u32 2147483648, %v3084_v29  ;;  %v3229_v9 = vsel %vm3106_vm12, %v3228_v12, %v12858_v1 }
 0x3b8   : > { %v3772_v43 = vshrl.u32 %v10331_v17, 16  ;;  %v3381_v5 = vsel %vm3260_vm15, %v3380_v18, %v3379_v8  ;;  %v3382_v32 = vsub.s32 4, %v12864_v57  ;;  %v10353_v20 = vshrl.u32 %v3665_v39, 30 }
 0x3b9   : > { %v3884_v15 = vadd.s32 1, %v5597_v6  ;;  %v3234_v22 = vadd.f32 0.041655596, %v3233_v51  ;;  %v5589_v54 = vadd.s32 4294967294, %v3518_v58  ;;  %v3769_v23 = vand.u32 65535, %v10336_v4 }
 0x3ba   : > { %12865 = vst [vmem:[#allocation25_spill] sm:$0xff] %v10353_v20  ;;  %v12538_v29 = vshrl.u32 %v10343_v0, 16  ;;  %v2948_v61 = vsel %vm2941_vm4, %v2944_v55, %v2947_v31  ;;  %vm3099_vm12 = vcmp.eq.s32.totalorder %v10199_v35, 2  ;;  %v3242_v1 = vmul.f32 %v3241_v28, %v10267_v40 }
 0x3bb   : > { %vm3885_vm10 = vcmp.gt.s32.totalorder %v3884_v15, 0  ;;  %v3101_v8 = vsel %vm3099_vm12, %v3100_v25, %v3092_v60  ;;  %v10364_v12 = vsel %vm10313_vm13, %v12857_v41, %v3381_v5  ;;  %v10366_v52 = vmul.u32 %v3772_v43, %v3769_v23 }
 0x3bc   : > { %v3886_v18 = vsel %vm3885_vm10, %v3884_v15, 0  ;;  %v3102_v39 = vsel %vm3095_vm11, %v3098_v10, %v3101_v8  ;;  %v3231_v62 = vsel %vm10185_vm1, 0, %v3229_v9  ;;  %v3383_v31 = vsel %vm3260_vm15, %v3382_v32, %v12864_v57 }
 0x3bd   : > { %v3667_v60 = vshll.u32 %v10353_v20, 30  ;;  %v3235_v48 = vmul.f32 %v3234_v22, %v10267_v40  ;;  %vm5590_vm0 = vcmp.lt.s32.totalorder %v5589_v54, 0  ;;  %v3771_v51 = vand.u32 65535, %v10331_v17 }
 0x3be   : > { %v10380_v58 = vmul.u32 %v12538_v29, %v3769_v23  ;;  %v10384_v35 = vsel %vm2939_vm9, nan, %v2948_v61  ;;  %v3243_v49 = vadd.f32 -0.16666654, %v3242_v1  ;;  %v10388_v55 = vmul.f32 %v10364_v12, %v10364_v12 }
 0x3bf   : > { %12866 = vst [vmem:[#allocation38_spill] sm:$0xff] %v10384_v35  ;;  %v3888_v28 = vand.u32 31, %v3886_v18  ;;  %v3385_v6 = vsel %vm10313_vm13, 0, %v3383_v31  ;;  %v3770_v10 = vshrl.u32 %v10336_v4, 16  ;;  %v3777_v17 = vshll.u32 %v10366_v52, 16 }
 0x3c0   : > { %v3793_v25 = vand.u32 65535, %v10343_v0  ;;  %v10397_v47 = vsel %vm3093_vm7, nan, %v3102_v39  ;;  %v10399_v9 = vand.u32 3, %v3231_v62  ;;  %v10401_v5 = vsel %vm5590_vm0, 0, %v5589_v54 }
 0x3c1   : > { %12867 = vst [vmem:[#allocation16_spill] sm:$0xff] %v10397_v47  ;;  %v10404_v57 = vsub.s32 %v10297_v26, %v3667_v60  ;;  %v3236_v32 = vadd.f32 -0.4999988, %v3235_v48  ;;  %v3773_v50 = vmul.u32 %v3771_v51, %v3769_v23  ;;  %v10406_v15 = vmul.u32 %v3771_v51, %v3770_v10 }
 0x3c2   : > { %v3799_v22 = vshll.u32 %v10380_v58, 16  ;;  %v10410_v61 = vmul.f32 %v3243_v49, %v10267_v40  ;;  %v3387_v37 = vmul.f32 -0.001358992, %v10388_v55  ;;  %v10413_v1 = vand.u32 3, %v3385_v6 }
 0x3c3   : > { %v10415_v8 = vsub.s32 32, %v3888_v28  ;;  %v3394_v54 = vmul.f32 -0.00019511016, %v10388_v55  ;;  %v3526_v26 = vsub.s32 4294967266, %v10401_v5  ;;  %v3783_v39 = vadd.s32 %v3777_v17, %v3773_v50 }
 0x3c4   : > { %12868 = vst [vmem:[#allocation10_spill] sm:$0xff] %v10413_v1  ;;  %v3795_v62 = vmul.u32 %v3793_v25, %v3769_v23  ;;  %vm3669_vm1 = vcmp.lt.s32.totalorder %v10404_v57, 0  ;;  %vm3781_vm15 = vc.u32 %v3773_v50, %v3777_v17  ;;  %v10420_v31 = vmul.u32 %v3793_v25, %v3770_v10 }
 0x3c5   : > { %v3670_v48 = vsub.s32 0, %v10404_v57  ;;  %v3779_v51 = vshll.u32 %v10406_v15, 16  ;;  %v3900_v6 = vshll.u32 %v12854_v45, %v3888_v28  ;;  %v3901_v38 = vshrl.u32 %v12722_v13, %v10415_v8 }
 0x3c6   : > { %vm3803_vm5 = vc.u32 %v3795_v62, %v3799_v22  ;;  %v10425_v49 = vadd.s32 %v3799_v22, %v3795_v62  ;;  %v3903_v23 = vshll.u32 %v12722_v13, %v3888_v28  ;;  %v3904_v17 = vshrl.u32 %v12853_v56, %v10415_v8 }
 0x3c7   : > { %v3776_v25 = vmul.u32 %v3772_v43, %v3770_v10  ;;  %v3782_v50 = vsel %vm3781_vm15, 1, %v12615_v34  ;;  %vm10434_vm4 = vc.u32 %v3783_v39, %v3779_v51  ;;  %v10438_v29 = vshrl.u32 %v3886_v18, 5 }
 0x3c8   : > { %v3804_v62 = vsel %vm3803_vm5, 1, %v12615_v34  ;;  %v3891_v47 = vshll.u32 %v12623_v27, %v3888_v28  ;;  %v3894_v7 = vshll.u32 %v12724_v42, %v3888_v28  ;;  %v3892_v35 = vshrl.u32 %v12724_v42, %v10415_v8 }
 0x3c9   : > { %v3895_v43 = vshrl.u32 %v12855_v19, %v10415_v8  ;;  %v3897_v39 = vshll.u32 %v12855_v19, %v3888_v28  ;;  %v3898_v18 = vshrl.u32 %v12854_v45, %v10415_v8  ;;  %v12871_v51 = vshrl.u32 %v10343_v0, 16 }
 0x3ca   : > { %v12872_v59 = vshll.u32 %v10420_v31, 16  ;;  %v3902_v41 = vor.u32 %v3901_v38, %v3900_v6  ;;  %v3905_v20 = vor.u32 %v3904_v17, %v3903_v23  ;;  %v3522_v1 = vsub.s32 32, %v10401_v5 }
 0x3cb   : > { %v3798_v22 = vmul.u32 %v12871_v51, %v3770_v10  ;;  %v3527_v16 = vadd.s32 127, %v3526_v26  ;;  %v3671_v56 = vsel %vm3669_vm1, %v3670_v48, %v10404_v57  ;;  %vm3909_vm11 = vcmp.lt.s32.totalorder %v10438_v29, 4 }
 0x3cc   : > { %vm3807_vm13 = vc.u32 %v10425_v49, %v12872_v59  ;;  %v3784_v28 = vadd.s32 %v3782_v50, %v3776_v25  ;;  %v3786_v0 = vsel %vm10434_vm4, 1, %v12615_v34  ;;  %v12873_v51 = vand.u32 2147483647, %v12862_v33 }
 0x3cd   : > { %v3806_v10 = vadd.s32 %v3804_v62, %v3798_v22  ;;  %v3808_v38 = vsel %vm3807_vm13, 1, %v12615_v34  ;;  %v10467_v6 = vor.u32 %v3892_v35, %v3891_v47  ;;  %v10469_v26 = vor.u32 %v3895_v43, %v3894_v7 }
 0x3ce   : > { %v3881_v59 = vand.u32 8388607, %v12873_v51  ;;  %v10471_v23 = vor.u32 %v3898_v18, %v3897_v39  ;;  %vm3906_vm9 = vcmp.lt.s32.totalorder %v10438_v29, 1  ;;  %vm3908_vm14 = vcmp.lt.s32.totalorder %v10438_v29, 3 }
 0x3cf   : > { %v3915_v60 = vsel %vm3909_vm11, %v3902_v41, 920167782  ;;  %v3919_v48 = vsel %vm3909_vm11, %v3905_v20, 1326507024  ;;  %v3237_v17 = vmul.f32 %v3236_v32, %v10267_v40  ;;  %v3388_v25 = vadd.f32 0.041655596, %v3387_v37 }
 0x3d0   : > { %v3506_v35 = vadd.s32 %v10133_v3, %v10119_v11  ;;  %v3672_v7 = vclz %v3671_v56  ;;  %v3528_v47 = vshll.u32 %v3527_v16, 23  ;;  %v3788_v50 = vadd.s32 %v3786_v0, %v3784_v28 }
 0x3d1   : > { %v3810_v22 = vadd.s32 %v3808_v38, %v3806_v10  ;;  %v3882_v62 = vor.u32 8388608, %v3881_v59  ;;  %v3914_v43 = vsel %vm3906_vm9, %v10467_v6, %v10469_v26  ;;  %v3916_v20 = vsel %vm3908_vm14, %v10471_v23, %v3915_v60 }
 0x3d2   : > { %v3918_v40 = vsel %vm3906_vm9, %v10469_v26, %v10471_v23  ;;  %v3920_v11 = vsel %vm3908_vm14, %v3902_v41, %v3919_v48  ;;  %v3245_v3 = vadd.f32 1.0, %v10410_v61  ;;  %v3395_v16 = vadd.f32 0.008332121, %v3394_v54 }
 0x3d3   : > { %v3524_v56 = vshrl.u32 %v3506_v35, %v3522_v1  ;;  %v3800_v32 = vshrl.u32 %v10380_v58, 16  ;;  %v3523_v37 = vshll.u32 %v10261_v46, %v10401_v5  ;;  %v5592_v39 = vadd.s32 4294967294, %v3672_v7 }
 0x3d4   : > { %v3778_v18 = vshrl.u32 %v10366_v52, 16  ;;  %vm3907_vm7 = vcmp.lt.s32.totalorder %v10438_v29, 2  ;;  %v3529_v28 = vor.u32 4788187, %v3528_v47  ;;  %v10509_v61 = vadd.f32 1.0, %v3237_v17 }
 0x3d5   : > { %v3811_v0 = vadd.s32 %v3810_v22, %v3800_v32  ;;  %v10503_v10 = vsel %vm3907_vm7, %v3914_v43, %v3916_v20  ;;  %v10507_v41 = vsel %vm3907_vm7, %v3918_v40, %v3920_v11  ;;  %vm3253_vm12 = vcmp.eq.s32.totalorder %v10399_v9, 2 }
 0x3d6   : > { %v3389_v46 = vmul.f32 %v3388_v25, %v10388_v55  ;;  %v3789_v58 = vadd.s32 %v3788_v50, %v3778_v18  ;;  %v10513_v52 = vshll.u32 %v3882_v62, 8  ;;  %v3525_v5 = vor.u32 %v3524_v56, %v3523_v37  ;;  %v12874_v62 = vld [vmem:[#allocation29_spill] sm:$0xff] }
 0x3d7   : > { %v3736_v1 = vshrl.u32 %v12623_v27, %v10213_v2  ;;  %v3757_v54 = vsel %vm3755_vm8, %v10279_v63, 2102212464  ;;  %v3802_v51 = vshrl.u32 %v10420_v31, 16  ;;  %vm5593_vm10 = vcmp.lt.s32.totalorder %v5592_v39, 0 }
 0x3d8   : > { %v3780_v59 = vshrl.u32 %v10406_v15, 16  ;;  %v3926_v38 = vshrl.u32 %v10507_v41, 16  ;;  %v3948_v60 = vshrl.u32 %v10503_v10, 16  ;;  %v10525_v48 = vmul.f32 %v3245_v3, %v10230_v44  ;;  %v12876_v3 = vld [vmem:[#allocation32_spill] sm:$0xff] }
 0x3d9   : > { %v3396_v17 = vmul.f32 %v3395_v16, %v10388_v55  ;;  %v3530_v25 = vand.u32 2147483647, %v3529_v28  ;;  %v3812_v2 = vadd.s32 %v3811_v0, %v3802_v51  ;;  %v3254_v35 = vxor.u32 2147483648, %v10509_v61 }
 0x3da   : > { %v3390_v7 = vadd.f32 -0.4999988, %v3389_v46  ;;  %v10529_v63 = vadd.s32 %v3789_v58, %v3780_v59  ;;  %v3923_v47 = vand.u32 65535, %v10513_v52  ;;  %v3532_v50 = vcvt.s32.f32 %v3525_v5 }
 0x3db   : > { %v10532_v15 = vsel %vm5593_vm10, 0, %v5592_v39  ;;  %v3756_v22 = vsel %vm3752_vm3, %v3736_v1, %v10290_v24  ;;  %v3758_v44 = vsel %vm3754_vm2, %v10277_v30, %v3757_v54  ;;  %vm3414_vm8 = vcmp.lt.s32.totalorder %v12874_v62, 0 }
 0x3dc   : > { %v12875_v43 = vshll.u32 %v10420_v31, 16  ;;  %v10546_v40 = vmul.u32 %v3926_v38, %v3923_v47  ;;  %v10550_v11 = vmul.u32 %v3948_v60, %v3923_v47  ;;  %v4031_v16 = vand.u32 2139095040, %v12876_v3 }
 0x3dd   : > { %v3251_v24 = vxor.u32 2147483648, %v10525_v48  ;;  %v3397_v56 = vadd.f32 -0.16666654, %v3396_v17  ;;  %v3533_v32 = vmul.f32 %v3532_v50, %v3530_v25  ;;  %v3816_v30 = vadd.s32 1, %v3812_v2 }
 0x3de   : > { %v10544_v20 = vadd.s32 %v10425_v49, %v12875_v43  ;;  %v3925_v31 = vand.u32 65535, %v10507_v41  ;;  %v3947_v49 = vand.u32 65535, %v10503_v10  ;;  %v4032_v37 = vshrl.u32 %v4031_v16, 23 }
 0x3df   : > { %v10561_v39 = vsel %vm3253_vm12, %v3254_v35, %v10525_v48  ;;  %v3391_v18 = vmul.f32 %v3390_v7, %v10388_v55  ;;  %v3680_v28 = vsub.s32 4294967266, %v10532_v15  ;;  %v3759_v0 = vsel %vm3753_vm6, %v3756_v22, %v3758_v44 }
 0x3e0   : > { %vm3815_vm3 = vc.u32 %v10529_v63, %v10544_v20  ;;  %vm3250_vm2 = vcmp.eq.s32.totalorder %v10399_v9, 0  ;;  %v12877_v46 = vand.u32 2147483647, %v12874_v62  ;;  %v3924_v58 = vshrl.u32 %v10513_v52, 16 }
 0x3e1   : > { %v3931_v5 = vshll.u32 %v10546_v40, 16  ;;  %v3953_v1 = vshll.u32 %v10550_v11, 16  ;;  %v5600_v54 = vadd.s32 4294967169, %v4032_v37  ;;  %v3398_v51 = vmul.f32 %v3397_v56, %v10388_v55 }
 0x3e2   : > { %vm10570_vm0 = vcmp.le.f32.partialorder %v12877_v46, 0.7853982  ;;  %v3534_v59 = vxor.u32 2147483648, %v3533_v32  ;;  %v3676_v21 = vsub.s32 32, %v10532_v15  ;;  %v3817_v48 = vsel %vm3815_vm3, %v3816_v30, %v3812_v2 }
 0x3e3   : > { %v3927_v17 = vmul.u32 %v3925_v31, %v3923_v47  ;;  %v10582_v25 = vmul.u32 %v3925_v31, %v3924_v58  ;;  %v3949_v35 = vmul.u32 %v3947_v49, %v3923_v47  ;;  %v10584_v7 = vmul.u32 %v3947_v49, %v3924_v58 }
 0x3e4   : > { %v3660_v50 = vadd.s32 %v10249_v53, %v10236_v36  ;;  %v3681_v22 = vadd.s32 127, %v3680_v28  ;;  %v3813_v44 = vmul.u32 %v10336_v4, %v3759_v0  ;;  %v4038_v55 = vadd.s32 1, %v5600_v54 }
 0x3e5   : > { %vm3935_vm6 = vc.u32 %v3927_v17, %v3931_v5  ;;  %v3937_v43 = vadd.s32 %v3931_v5, %v3927_v17  ;;  %vm3957_vm1 = vc.u32 %v3949_v35, %v3953_v1  ;;  %v10589_v16 = vadd.s32 %v3953_v1, %v3949_v35 }
 0x3e6   : > { %v3399_v56 = vadd.f32 1.0, %v3398_v51  ;;  %v3535_v2 = vsel %vm3414_vm8, %v3534_v59, %v3533_v32  ;;  %v10593_v30 = vadd.s32 %v3817_v48, %v3813_v44  ;;  %vm4039_vm15 = vcmp.gt.s32.totalorder %v4038_v55, 0 }
 0x3e7   : > { %v3678_v47 = vshrl.u32 %v3660_v50, %v3676_v21  ;;  %v3933_v31 = vshll.u32 %v10582_v25, 16  ;;  %v3955_v36 = vshll.u32 %v10584_v7, 16  ;;  %v4040_v53 = vsel %vm4039_vm15, %v4038_v55, 0 }
 0x3e8   : > { %v3682_v4 = vshll.u32 %v3681_v22, 23  ;;  %v3930_v49 = vmul.u32 %v3926_v38, %v3924_v58  ;;  %v3936_v37 = vsel %vm3935_vm6, 1, %v12615_v34  ;;  %v3958_v28 = vsel %vm3957_vm1, 1, %v12615_v34 }
 0x3e9   : > { %vm3939_vm5 = vc.u32 %v3937_v43, %v3933_v31  ;;  %v3952_v0 = vmul.u32 %v3948_v60, %v3924_v58  ;;  %vm3961_vm4 = vc.u32 %v10589_v16, %v3955_v36  ;;  %v4042_v32 = vand.u32 31, %v4040_v53 }
 0x3ea   : > { %v10607_v46 = vsel %vm3250_vm2, %v10509_v61, %v3251_v24  ;;  %v10609_v5 = vadd.f32 1.0, %v3391_v18  ;;  %v10614_v38 = vsel %vm10570_vm0, %v12874_v62, %v3535_v2  ;;  %v3819_v10 = vadd.s32 536870912, %v10593_v30  ;;  %v12880_v2 = vld [vmem:[#allocation33_spill] sm:$0xff] }
 0x3eb   : > { %v3677_v60 = vshll.u32 %v10404_v57, %v10532_v15  ;;  %v3938_v58 = vadd.s32 %v3936_v37, %v3930_v49  ;;  %v3960_v1 = vadd.s32 %v3958_v28, %v3952_v0  ;;  %v10619_v54 = vsub.s32 32, %v4042_v32 }
 0x3ec   : > { %v10622_v51 = vmul.f32 %v3399_v56, %v10364_v12  ;;  %v3940_v24 = vsel %vm3939_vm5, 1, %v12615_v34  ;;  %v3962_v18 = vsel %vm3961_vm4, 1, %v12615_v34  ;;  %v10629_v59 = vmul.f32 %v10614_v38, %v10614_v38 }
 0x3ed   : > { %v10631_v21 = vor.u32 %v3678_v47, %v3677_v60  ;;  %v10633_v57 = vor.u32 4788187, %v3682_v4  ;;  %v12546_v15 = vand.u32 2147483647, %v12876_v3  ;;  %v10636_v48 = vshrl.u32 %v3819_v10, 30 }
 0x3ee   : > { %v3932_v12 = vshrl.u32 %v10546_v40, 16  ;;  %v4046_v17 = vshrl.u32 %v12724_v42, %v10619_v54  ;;  %v4049_v35 = vshrl.u32 %v12855_v19, %v10619_v54  ;;  %v3942_v50 = vadd.s32 %v3940_v24, %v3938_v58 }
 0x3ef   : > { %v3954_v22 = vshrl.u32 %v10550_v11, 16  ;;  %v3964_v44 = vadd.s32 %v3962_v18, %v3960_v1  ;;  %v4055_v55 = vshrl.u32 %v12722_v13, %v10619_v54  ;;  %v4045_v43 = vshll.u32 %v12623_v27, %v4042_v32 }
 0x3f0   : > { %v4048_v56 = vshll.u32 %v12724_v42, %v4042_v32  ;;  %v4052_v40 = vshrl.u32 %v12854_v45, %v10619_v54  ;;  %v4185_v47 = vand.u32 2139095040, %v12880_v2  ;;  %v4035_v31 = vand.u32 8388607, %v12546_v15 }
 0x3f1   : > { %v10653_v4 = vshrl.u32 %v4040_v53, 5  ;;  %v4054_v11 = vshll.u32 %v12854_v45, %v4042_v32  ;;  %v12881_v49 = vmov 1326507024   ;;  %v3821_v28 = vshll.u32 %v10636_v48, 30 }
 0x3f2   : > { %v4058_v37 = vshrl.u32 %v12881_v49, %v10619_v54  ;;  %v10659_v0 = vor.u32 %v4046_v17, %v4045_v43  ;;  %v10661_v10 = vor.u32 %v4049_v35, %v4048_v56  ;;  %v4051_v60 = vshll.u32 %v12855_v19, %v4042_v32 }
 0x3f3   : > { %v3943_v58 = vadd.s32 %v3942_v50, %v3932_v12  ;;  %v3965_v1 = vadd.s32 %v3964_v44, %v3954_v22  ;;  %v4056_v24 = vor.u32 %v4055_v55, %v4054_v11  ;;  %v4057_v18 = vshll.u32 %v12722_v13, %v4042_v32  ;;  %v12884_v55 = vld [vmem:[#allocation10_spill] sm:$0xff] }
 0x3f4   : > { %vm3249_vm13 = vcmp.lt.s32.totalorder %v10399_v9, 2  ;;  %v3890_v53 = vshrl.u32 %v12623_v27, %v10415_v8  ;;  %v3934_v15 = vshrl.u32 %v10582_v25, 16  ;;  %v10669_v61 = vor.u32 %v4052_v40, %v4051_v60 }
 0x3f5   : > { %v4186_v17 = vshrl.u32 %v4185_v47, 23  ;;  %v3956_v35 = vshrl.u32 %v10584_v7, 16  ;;  %v4036_v43 = vor.u32 8388608, %v4035_v31  ;;  %v4059_v56 = vor.u32 %v4058_v37, %v4057_v18 }
 0x3f6   : > { %vm4060_vm12 = vcmp.lt.s32.totalorder %v10653_v4, 1  ;;  %v10674_v12 = vsub.s32 %v10593_v30, %v3821_v28  ;;  %v3911_v32 = vsel %vm3909_vm11, %v10471_v23, 2102212464  ;;  %vm4063_vm10 = vcmp.lt.s32.totalorder %v10653_v4, 4 }
 0x3f7   : > { %v4068_v8 = vsel %vm4060_vm12, %v10659_v0, %v10661_v10  ;;  %v10684_v25 = vadd.s32 %v3943_v58, %v3934_v15  ;;  %v3966_v50 = vadd.s32 %v3965_v1, %v3956_v35  ;;  %vm4062_vm3 = vcmp.lt.s32.totalorder %v10653_v4, 3  ;;  %v12883_v15 = vld [vmem:[#allocation27_spill] sm:$0xff] }
 0x3f8   : > { %v4069_v30 = vsel %vm4063_vm10, %v4056_v24, 920167782  ;;  %vm4061_vm2 = vcmp.lt.s32.totalorder %v10653_v4, 2  ;;  %v4072_v22 = vsel %vm4060_vm12, %v10661_v10, %v10669_v61  ;;  %v5603_v44 = vadd.s32 4294967169, %v4186_v17 }
 0x3f9   : > { %12882 = vst [vmem:[#allocation12_spill] sm:$0xff] %v10684_v25  ;;  %v4070_v23 = vsel %vm4062_vm3, %v10669_v61, %v4069_v30  ;;  %vm3247_vm11 = vweird.f32 %v12883_v15  ;;  %vm3407_vm6 = vcmp.eq.s32.totalorder %v12884_v55, 2  ;;  %v3910_v40 = vsel %vm3906_vm9, %v3890_v53, %v10467_v6  ;;  %v12887_v30 = vld [vmem:[#allocation30_spill] sm:$0xff] }
 0x3fa   : > { %v10704_v47 = vsel %vm4061_vm2, %v4068_v8, %v4070_v23  ;;  %v4073_v31 = vsel %vm4063_vm10, %v4059_v56, 1326507024  ;;  %v10708_v11 = vshll.u32 %v4036_v43, 8  ;;  %v3824_v37 = vsub.s32 0, %v10674_v12 }
 0x3fb   : > { %v3912_v28 = vsel %vm3908_vm14, %v10469_v26, %v3911_v32  ;;  %v10717_v60 = vadd.s32 %v10589_v16, %v3955_v36  ;;  %v4074_v6 = vsel %vm4062_vm3, %v4056_v24, %v4073_v31  ;;  %vm3404_vm9 = vcmp.eq.s32.totalorder %v12884_v55, 0 }
 0x3fc   : > { %vm3823_vm1 = vcmp.lt.s32.totalorder %v10674_v12, 0  ;;  %v3970_v58 = vadd.s32 1, %v3966_v50  ;;  %v10725_v1 = vsel %vm4061_vm2, %v4072_v22, %v4074_v6  ;;  %v4102_v18 = vshrl.u32 %v10704_v47, 16 }
 0x3fd   : > { %12885 = vst [vmem:[#allocation8_spill] sm:$0xff] %v10717_v60  ;;  %v3541_v26 = vmul.f32 -0.001358992, %v10629_v59  ;;  %vm3969_vm14 = vc.u32 %v10684_v25, %v10717_v60  ;;  %v4080_v7 = vshrl.u32 %v10725_v1, 16  ;;  %v4192_v16 = vadd.s32 1, %v5603_v44 }
 0x3fe   : > { %v3256_v36 = vsel %vm3249_vm13, %v10607_v46, %v10561_v39  ;;  %v3684_v24 = vand.u32 2147483647, %v10633_v57  ;;  %v3913_v53 = vsel %vm3907_vm7, %v3910_v40, %v3912_v28  ;;  %v4077_v17 = vand.u32 65535, %v10708_v11 }
 0x3ff   : > { %v3405_v35 = vxor.u32 2147483648, %v10622_v51  ;;  %v3408_v43 = vxor.u32 2147483648, %v10609_v5  ;;  %v12886_v56 = vsub.s32 4, %v10209_v14  ;;  %v3825_v9 = vsel %vm3823_vm1, %v3824_v37, %v10674_v12 }
 0x400   : > { %v3548_v39 = vmul.f32 -0.00019511016, %v10629_v59  ;;  %v3686_v46 = vcvt.s32.f32 %v10631_v21  ;;  %v3971_v29 = vsel %vm3969_vm14, %v3970_v58, %v3966_v50  ;;  %v10750_v57 = vmul.u32 %v4102_v18, %v4077_v17 }
 0x401   : > { %v3537_v32 = vsel %vm3414_vm8, %v12886_v56, %v10209_v14  ;;  %v3542_v8 = vadd.f32 0.041655596, %v3541_v26  ;;  %vm3568_vm7 = vcmp.lt.s32.totalorder %v12887_v30, 0  ;;  %v3967_v23 = vmul.u32 %v10513_v52, %v3913_v53 }
 0x402   : > { %v10756_v22 = vmul.u32 %v4080_v7, %v4077_v17  ;;  %vm4193_vm15 = vcmp.gt.s32.totalorder %v4192_v16, 0  ;;  %v3539_v14 = vsel %vm10570_vm0, 0, %v3537_v32  ;;  %v3687_v44 = vmul.f32 %v3686_v46, %v3684_v24 }
 0x403   : > { %v3826_v40 = vclz %v3825_v9  ;;  %v4101_v21 = vand.u32 65535, %v10704_v47  ;;  %v10763_v50 = vsel %vm3247_vm11, nan, %v3256_v36  ;;  %v10768_v52 = vsel %vm3407_vm6, %v3408_v43, %v10622_v51 }
 0x404   : > { %12888 = vst [vmem:[#allocation15_spill] sm:$0xff] %v10763_v50  ;;  %v10770_v31 = vadd.s32 %v3971_v29, %v3967_v23  ;;  %v4079_v37 = vand.u32 65535, %v10725_v1  ;;  %v3549_v28 = vadd.f32 0.008332121, %v3548_v39  ;;  %v4078_v41 = vshrl.u32 %v10708_v11, 16  ;;  %v12889_v29 = vld [vmem:[#allocation25_spill] sm:$0xff] }
 0x405   : > { %v4107_v6 = vshll.u32 %v10750_v57, 16  ;;  %v4194_v58 = vsel %vm4193_vm15, %v4192_v16, 0  ;;  %v10778_v15 = vsel %vm3404_vm9, %v10609_v5, %v3405_v35  ;;  %v3543_v47 = vmul.f32 %v3542_v8, %v10629_v59 }
 0x406   : > { %v10781_v26 = vand.u32 3, %v3539_v14  ;;  %v4085_v51 = vshll.u32 %v10756_v22, 16  ;;  %v3688_v36 = vxor.u32 2147483648, %v3687_v44  ;;  %v5595_v24 = vadd.s32 4294967294, %v3826_v40 }
 0x407   : > { %v4103_v53 = vmul.u32 %v4101_v21, %v4077_v17  ;;  %v10784_v43 = vmul.u32 %v4101_v21, %v4078_v41  ;;  %v3973_v56 = vadd.s32 536870912, %v10770_v31  ;;  %v4081_v32 = vmul.u32 %v4079_v37, %v4077_v17 }
 0x408   : > { %v12547_v16 = vand.u32 2147483647, %v12880_v2  ;;  %v4196_v9 = vand.u32 31, %v4194_v58  ;;  %v3550_v5 = vmul.f32 %v3549_v28, %v10629_v59  ;;  %v10789_v35 = vmul.u32 %v4079_v37, %v4078_v41 }
 0x409   : > { %vm4111_vm8 = vc.u32 %v4103_v53, %v4107_v6  ;;  %v10791_v39 = vadd.s32 %v4107_v6, %v4103_v53  ;;  %v10793_v46 = vadd.f32 -0.4999988, %v3543_v47  ;;  %vm4089_vm0 = vc.u32 %v4081_v32, %v4085_v51 }
 0x40a   : > { %v10796_v23 = vsub.s32 32, %v4196_v9  ;;  %v12890_v14 = vand.u32 2147483647, %v12887_v30  ;;  %v3689_v40 = vsel %vm3568_vm7, %v3688_v36, %v3687_v44  ;;  %vm5596_vm4 = vcmp.lt.s32.totalorder %v5595_v24, 0 }
 0x40b   : > { %v4091_v21 = vadd.s32 %v4085_v51, %v4081_v32  ;;  %v12548_v37 = vshll.u32 %v10784_v43, 16  ;;  %v10807_v28 = vshrl.u32 %v3973_v56, 30  ;;  %v4106_v6 = vmul.u32 %v4102_v18, %v4078_v41 }
 0x40c   : > { %vm10800_vm5 = vcmp.le.f32.partialorder %v12890_v14, 0.7853982  ;;  %v4112_v47 = vsel %vm4111_vm8, 1, %v12615_v34  ;;  %v4189_v53 = vand.u32 8388607, %v12547_v16  ;;  %v4087_v14 = vshll.u32 %v10789_v35, 16 }
 0x40d   : > { %v4090_v8 = vsel %vm4089_vm0, 1, %v12615_v34  ;;  %vm10817_vm13 = vc.u32 %v10791_v39, %v12548_v37  ;;  %v4208_v51 = vshll.u32 %v12854_v45, %v4196_v9  ;;  %v4200_v18 = vshrl.u32 %v12724_v42, %v10796_v23 }
 0x40e   : > { %v4203_v36 = vshrl.u32 %v12855_v19, %v10796_v23  ;;  %v4206_v56 = vshrl.u32 %v12854_v45, %v10796_v23  ;;  %v4209_v32 = vshrl.u32 %v12722_v13, %v10796_v23  ;;  %vm3403_vm11 = vcmp.lt.s32.totalorder %v12884_v55, 2 }
 0x40f   : > { %v4084_v16 = vmul.u32 %v4080_v7, %v4078_v41  ;;  %vm4093_vm6 = vc.u32 %v4091_v21, %v4087_v14  ;;  %v4114_v37 = vadd.s32 %v4112_v47, %v4106_v6  ;;  %v10833_v50 = vshrl.u32 %v4194_v58, 5 }
 0x410   : > { %v4199_v2 = vshll.u32 %v12623_v27, %v4196_v9  ;;  %v4202_v3 = vshll.u32 %v12724_v42, %v4196_v9  ;;  %v4205_v62 = vshll.u32 %v12855_v19, %v4196_v9  ;;  %v4210_v33 = vor.u32 %v4209_v32, %v4208_v51 }
 0x411   : > { %v4092_v45 = vadd.s32 %v4090_v8, %v4084_v16  ;;  %v4116_v60 = vsel %vm10817_vm13, 1, %v12615_v34  ;;  %v4211_v25 = vshll.u32 %v12722_v13, %v4196_v9  ;;  %v4212_v1 = vshrl.u32 %v12881_v49, %v10796_v23 }
 0x412   : > { %v4094_v7 = vsel %vm4093_vm6, 1, %v12615_v34  ;;  %v10845_v41 = vor.u32 %v4200_v18, %v4199_v2  ;;  %v10847_v58 = vor.u32 %v4203_v36, %v4202_v3  ;;  %v10849_v21 = vor.u32 %v4206_v56, %v4205_v62 }
 0x413   : > { %v3551_v6 = vadd.f32 -0.16666654, %v3550_v5  ;;  %v3975_v16 = vshll.u32 %v10807_v28, 30  ;;  %v4213_v8 = vor.u32 %v4212_v1, %v4211_v25  ;;  %vm4217_vm9 = vcmp.lt.s32.totalorder %v10833_v50, 4 }
 0x414   : > { %v10856_v9 = vsel %vm10800_vm5, %v12887_v30, %v3689_v40  ;;  %v10859_v47 = vsel %vm5596_vm4, 0, %v5595_v24  ;;  %v4118_v2 = vadd.s32 %v4116_v60, %v4114_v37  ;;  %v4223_v3 = vsel %vm4217_vm9, %v4210_v33, 920167782 }
 0x415   : > { %v4096_v62 = vadd.s32 %v4094_v7, %v4092_v45  ;;  %v4190_v14 = vor.u32 8388608, %v4189_v53  ;;  %vm4214_vm1 = vcmp.lt.s32.totalorder %v10833_v50, 1  ;;  %vm4216_vm14 = vcmp.lt.s32.totalorder %v10833_v50, 3 }
 0x416   : > { %v4108_v25 = vshrl.u32 %v10750_v57, 16  ;;  %v4222_v5 = vsel %vm4214_vm1, %v10845_v41, %v10847_v58  ;;  %v4224_v60 = vsel %vm4216_vm14, %v10849_v21, %v4223_v3  ;;  %v4227_v24 = vsel %vm4217_vm9, %v4213_v8, 1326507024 }
 0x417   : > { %v3834_v45 = vsub.s32 4294967266, %v10859_v47  ;;  %v10877_v40 = vsub.s32 %v10770_v31, %v3975_v16  ;;  %v4086_v37 = vshrl.u32 %v10756_v22, 16  ;;  %v4226_v57 = vsel %vm4214_vm1, %v10847_v58, %v10849_v21 }
 0x418   : > { %v10888_v53 = vsel %vm3403_vm11, %v10778_v15, %v10768_v52  ;;  %v4119_v44 = vadd.s32 %v4118_v2, %v4108_v25  ;;  %vm4215_vm15 = vcmp.lt.s32.totalorder %v10833_v50, 2  ;;  %v4228_v31 = vsel %vm4216_vm14, %v4210_v33, %v4227_v24 }
 0x419   : > { %v3545_v22 = vmul.f32 %v10793_v46, %v10629_v59  ;;  %v4097_v51 = vadd.s32 %v4096_v62, %v4086_v37  ;;  %v10897_v18 = vsel %vm4215_vm15, %v4222_v5, %v4224_v60  ;;  %v10899_v36 = vshll.u32 %v4190_v14, 8 }
 0x41a   : > { %v3552_v55 = vmul.f32 %v3551_v6, %v10629_v59  ;;  %v10904_v52 = vmul.f32 %v10856_v9, %v10856_v9  ;;  %v4110_v15 = vshrl.u32 %v10784_v43, 16  ;;  %v10909_v33 = vsel %vm4215_vm15, %v4226_v57, %v4228_v31 }
 0x41b   : > { %v12895_v46 = vsub.s32 4, %v12889_v29  ;;  %v3835_v32 = vadd.s32 127, %v3834_v45  ;;  %v3978_v59 = vsub.s32 0, %v10877_v40  ;;  %v4088_v1 = vshrl.u32 %v10789_v35, 16 }
 0x41c   : > { %v4065_v7 = vsel %vm4063_vm10, %v10669_v61, 2102212464  ;;  %v4120_v6 = vadd.s32 %v4119_v44, %v4110_v15  ;;  %v4234_v16 = vshrl.u32 %v10909_v33, 16  ;;  %v4256_v8 = vshrl.u32 %v10897_v18, 16 }
 0x41d   : > { %v10916_v56 = vsel %vm3568_vm7, %v12895_v46, %v12889_v29  ;;  %vm3977_vm8 = vcmp.lt.s32.totalorder %v10877_v40, 0  ;;  %v4044_v29 = vshrl.u32 %v12623_v27, %v10619_v54  ;;  %v10928_v2 = vadd.s32 %v4097_v51, %v4088_v1 }
 0x41e   : > { %v4231_v3 = vand.u32 65535, %v10899_v36  ;;  %v10931_v62 = vadd.f32 1.0, %v3545_v22  ;;  %v3553_v35 = vadd.f32 1.0, %v3552_v55  ;;  %v3695_v14 = vmul.f32 -0.001358992, %v10904_v52 }
 0x41f   : > { %v3830_v61 = vsub.s32 32, %v10859_v47  ;;  %v4064_v25 = vsel %vm4060_vm12, %v4044_v29, %v10659_v0  ;;  %v4066_v5 = vsel %vm4062_vm3, %v10661_v10, %v4065_v7  ;;  %v12896_v54 = vshll.u32 %v10784_v43, 16 }
 0x420   : > { %v10946_v24 = vmul.u32 %v4234_v16, %v4231_v3  ;;  %v3979_v45 = vsel %vm3977_vm8, %v3978_v59, %v10877_v40  ;;  %v4124_v37 = vadd.s32 1, %v4120_v6  ;;  %v4233_v57 = vand.u32 65535, %v10909_v33 }
 0x421   : > { %v10944_v60 = vadd.s32 %v10791_v39, %v12896_v54  ;;  %v10952_v44 = vmul.u32 %v4256_v8, %v4231_v3  ;;  %v3702_v0 = vmul.f32 -0.00019511016, %v10904_v52  ;;  %v3814_v10 = vadd.s32 %v10544_v20, %v10529_v63 }
 0x422   : > { %v3836_v43 = vshll.u32 %v3835_v32, 23  ;;  %v4067_v39 = vsel %vm4061_vm2, %v4064_v25, %v4066_v5  ;;  %v4232_v31 = vshrl.u32 %v10899_v36, 16  ;;  %v4239_v22 = vshll.u32 %v10946_v24, 16 }
 0x423   : > { %vm4123_vm12 = vc.u32 %v10928_v2, %v10944_v60  ;;  %v4255_v51 = vand.u32 65535, %v10897_v18  ;;  %v3554_v55 = vmul.f32 %v3553_v35, %v10614_v38  ;;  %v3696_v15 = vadd.f32 0.041655596, %v3695_v14 }
 0x424   : > { %v3832_v33 = vshrl.u32 %v3814_v10, %v3830_v61  ;;  %v3980_v46 = vclz %v3979_v45  ;;  %v4125_v59 = vsel %vm4123_vm12, %v4124_v37, %v4120_v6  ;;  %v4235_v63 = vmul.u32 %v4233_v57, %v4231_v3  ;;  %v12899_v45 = vld [vmem:[#allocation28_spill] sm:$0xff]  ;;  %v12900_v10 = vld [vmem:[#allocation17_spill] sm:$0xff] }
 0x425   : > { %v10965_v20 = vmul.u32 %v4233_v57, %v4232_v31  ;;  %v4261_v32 = vshll.u32 %v10952_v44, 16  ;;  %vm3558_vm10 = vcmp.eq.s32.totalorder %v10781_v26, 0  ;;  %v3703_v4 = vadd.f32 0.008332121, %v3702_v0 }
 0x426   : > { %v3831_v1 = vshll.u32 %v10674_v12, %v10859_v47  ;;  %v3837_v7 = vor.u32 4788187, %v3836_v43  ;;  %v4121_v29 = vmul.u32 %v10708_v11, %v4067_v39  ;;  %vm10972_vm3 = vc.u32 %v4235_v63, %v4239_v22 }
 0x427   : > { %v4245_v35 = vadd.s32 %v4239_v22, %v4235_v63  ;;  %v4257_v6 = vmul.u32 %v4255_v51, %v4231_v3  ;;  %v10976_v14 = vmul.u32 %v4255_v51, %v4232_v31  ;;  %v3562_v61 = vxor.u32 2147483648, %v10931_v62  ;;  %v12901_v22 = vld [vmem:[#allocation34_spill] sm:$0xff] }
 0x428   : > { %v3833_v25 = vor.u32 %v3832_v33, %v3831_v1  ;;  %v5598_v5 = vadd.s32 4294967294, %v3980_v46  ;;  %v10979_v54 = vadd.s32 %v4125_v59, %v4121_v29  ;;  %vm3401_vm2 = vweird.f32 %v12899_v45 }
 0x429   : > { %vm3557_vm7 = vcmp.lt.s32.totalorder %v10781_v26, 2  ;;  %v3559_v12 = vxor.u32 2147483648, %v3554_v55  ;;  %v4241_v11 = vshll.u32 %v10965_v20, 16  ;;  %vm4265_vm0 = vc.u32 %v4257_v6, %v4261_v32 }
 0x42a   : > { %v10984_v47 = vadd.s32 %v4261_v32, %v4257_v6  ;;  %v3697_v3 = vmul.f32 %v3696_v15, %v10904_v52  ;;  %v3704_v37 = vmul.f32 %v3703_v4, %v10904_v52  ;;  %v3838_v57 = vand.u32 2147483647, %v3837_v7 }
 0x42b   : > { %v4244_v0 = vsel %vm10972_vm3, 1, %v12615_v34  ;;  %vm3722_vm4 = vcmp.lt.s32.totalorder %v12900_v10, 0  ;;  %v4238_v43 = vmul.u32 %v4234_v16, %v4232_v31  ;;  %vm4247_vm13 = vc.u32 %v4245_v35, %v4241_v11 }
 0x42c   : > { %v4263_v39 = vshll.u32 %v10976_v14, 16  ;;  %v4339_v51 = vand.u32 2139095040, %v12901_v22  ;;  %v3840_v33 = vcvt.s32.f32 %v3833_v25  ;;  %vm5599_vm11 = vcmp.lt.s32.totalorder %v5598_v5, 0 }
 0x42d   : > { %v4127_v46 = vadd.s32 536870912, %v10979_v54  ;;  %v4266_v15 = vsel %vm4265_vm0, 1, %v12615_v34  ;;  %v4246_v59 = vadd.s32 %v4244_v0, %v4238_v43  ;;  %v4260_v63 = vmul.u32 %v4256_v8, %v4232_v31 }
 0x42e   : > { %vm4269_vm6 = vc.u32 %v10984_v47, %v4263_v39  ;;  %v4340_v16 = vshrl.u32 %v4339_v51, 23  ;;  %vm3561_vm8 = vcmp.eq.s32.totalorder %v10781_v26, 2  ;;  %v3693_v32 = vsel %vm10800_vm5, 0, %v10916_v56 }
 0x42f   : > { %v3841_v4 = vmul.f32 %v3840_v33, %v3838_v57  ;;  %v4248_v1 = vsel %vm4247_vm13, 1, %v12615_v34  ;;  %v3560_v7 = vsel %vm3558_vm10, %v10931_v62, %v3559_v12  ;;  %v3698_v18 = vadd.f32 -0.4999988, %v3697_v3 }
 0x430   : > { %v4268_v8 = vadd.s32 %v4266_v15, %v4260_v63  ;;  %v5606_v31 = vadd.s32 4294967169, %v4340_v16  ;;  %v3705_v29 = vadd.f32 -0.16666654, %v3704_v37  ;;  %v3844_v38 = vsub.s32 4, %v10636_v48 }
 0x431   : > { %v11011_v35 = vsel %vm5599_vm11, 0, %v5598_v5  ;;  %v4270_v6 = vsel %vm4269_vm6, 1, %v12615_v34  ;;  %v3563_v17 = vsel %vm3561_vm8, %v3562_v61, %v3554_v55  ;;  %v12902_v56 = vand.u32 2147483647, %v12900_v10 }
 0x432   : > { %v11020_v11 = vshrl.u32 %v4127_v46, 30  ;;  %v4250_v62 = vadd.s32 %v4248_v1, %v4246_v59  ;;  %v4346_v12 = vadd.s32 1, %v5606_v31  ;;  %v11025_v3 = vsel %vm3401_vm2, nan, %v10888_v53 }
 0x433   : > { %vm11016_vm5 = vcmp.le.f32.partialorder %v12902_v56, 0.7853982  ;;  %12905 = vst [vmem:[#allocation11_spill] sm:$0xff] %v11025_v3  ;;  %v11029_v5 = vsel %vm3557_vm7, %v3560_v7, %v3563_v17  ;;  %v11031_v55 = vand.u32 3, %v3693_v32  ;;  %v3842_v61 = vxor.u32 2147483648, %v3841_v4  ;;  %v12906_v7 = vld [vmem:[#allocation12_spill] sm:$0xff] }
 0x434   : > { %v3988_v37 = vsub.s32 4294967266, %v11011_v35  ;;  %v4240_v57 = vshrl.u32 %v10946_v24, 16  ;;  %v4272_v0 = vadd.s32 %v4270_v6, %v4268_v8  ;;  %vm4347_vm12 = vcmp.gt.s32.totalorder %v4346_v12, 0 }
 0x435   : > { %v3699_v43 = vmul.f32 %v3698_v18, %v10904_v52  ;;  %v3706_v51 = vmul.f32 %v3705_v29, %v10904_v52  ;;  %v11040_v53 = vsel %vm3722_vm4, %v3844_v38, %v10636_v48  ;;  %v4348_v26 = vsel %vm4347_vm12, %v4346_v12, 0  ;;  %v12907_v18 = vld [vmem:[#allocation8_spill] sm:$0xff] }
 0x436   : > { %v4129_v45 = vshll.u32 %v11020_v11, 30  ;;  %v4251_v33 = vadd.s32 %v4250_v62, %v4240_v57  ;;  %v4262_v46 = vshrl.u32 %v10952_v44, 16  ;;  %v4350_v15 = vand.u32 31, %v4348_v26 }
 0x437   : > { %v3843_v24 = vsel %vm3722_vm4, %v3842_v61, %v3841_v4  ;;  %v3984_v59 = vsub.s32 32, %v11011_v35  ;;  %v4198_v52 = vshrl.u32 %v12623_v27, %v10796_v23  ;;  %v4219_v48 = vsel %vm4217_vm9, %v10849_v21, 2102212464 }
 0x438   : > { %v3989_v63 = vadd.s32 127, %v3988_v37  ;;  %v4242_v16 = vshrl.u32 %v10965_v20, 16  ;;  %v4273_v32 = vadd.s32 %v4272_v0, %v4262_v46  ;;  %v12556_v1 = vand.u32 2147483647, %v12901_v22 }
 0x439   : > { %v11054_v44 = vadd.f32 1.0, %v3699_v43  ;;  %v3968_v4 = vadd.s32 %v12907_v18, %v12906_v7  ;;  %v4218_v8 = vsel %vm4214_vm1, %v4198_v52, %v10845_v41  ;;  %v11061_v23 = vsub.s32 32, %v4350_v15 }
 0x43a   : > { %v11064_v31 = vsub.s32 %v10979_v54, %v4129_v45  ;;  %v4220_v21 = vsel %vm4216_vm14, %v10847_v58, %v4219_v48  ;;  %v11069_v20 = vadd.s32 %v4251_v33, %v4242_v16  ;;  %v4264_v29 = vshrl.u32 %v10976_v14, 16 }
 0x43b   : > { %v3707_v38 = vadd.f32 1.0, %v3706_v51  ;;  %v11075_v6 = vsel %vm11016_vm5, %v12900_v10, %v3843_v24  ;;  %v3985_v41 = vshll.u32 %v10877_v40, %v11011_v35  ;;  %v3986_v17 = vshrl.u32 %v3968_v4, %v3984_v59 }
 0x43c   : > { %v3990_v54 = vshll.u32 %v3989_v63, 23  ;;  %v11082_v56 = vadd.s32 %v10984_v47, %v4263_v39  ;;  %v4274_v58 = vadd.s32 %v4273_v32, %v4264_v29  ;;  %v4343_v62 = vand.u32 8388607, %v12556_v1  ;;  %v12909_v32 = vld [vmem:[#allocation35_spill] sm:$0xff] }
 0x43d   : > { %v4221_v12 = vsel %vm4215_vm15, %v4218_v8, %v4220_v21  ;;  %v4354_v61 = vshrl.u32 %v12724_v42, %v11061_v23  ;;  %v4357_v40 = vshrl.u32 %v12855_v19, %v11061_v23  ;;  %v4363_v35 = vshrl.u32 %v12722_v13, %v11061_v23 }
 0x43e   : > { %vm4131_vm9 = vcmp.lt.s32.totalorder %v11064_v31, 0  ;;  %v4132_v14 = vsub.s32 0, %v11064_v31  ;;  %vm4277_vm1 = vc.u32 %v11069_v20, %v11082_v56  ;;  %v12908_v47 = vmov 2102212464  }
 0x43f   : > { %v4360_v50 = vshrl.u32 %v12908_v47, %v11061_v23  ;;  %v4353_v39 = vshll.u32 %v12623_v27, %v4350_v15  ;;  %v4356_v37 = vshll.u32 %v12724_v42, %v4350_v15  ;;  %v4362_v57 = vshll.u32 %v12908_v47, %v4350_v15 }
 0x440   : > { %v4366_v0 = vshrl.u32 %v12881_v49, %v11061_v23  ;;  %v4278_v43 = vadd.s32 1, %v4274_v58  ;;  %v4344_v51 = vor.u32 8388608, %v4343_v62  ;;  %v11105_v45 = vshrl.u32 %v4348_v26, 5 }
 0x441   : > { %v4359_v33 = vshll.u32 %v12855_v19, %v4350_v15  ;;  %v11108_v46 = vor.u32 %v4354_v61, %v4353_v39  ;;  %v11110_v24 = vor.u32 %v4357_v40, %v4356_v37  ;;  %v4364_v59 = vor.u32 %v4363_v35, %v4362_v57 }
 0x442   : > { %v4365_v52 = vshll.u32 %v12722_v13, %v4350_v15  ;;  %v3708_v48 = vmul.f32 %v3707_v38, %v10856_v9  ;;  %v11116_v63 = vmul.f32 %v11075_v6, %v11075_v6  ;;  %v4493_v26 = vand.u32 2139095040, %v12909_v32 }
 0x443   : > { %v11118_v16 = vor.u32 %v4360_v50, %v4359_v33  ;;  %v3987_v7 = vor.u32 %v3986_v17, %v3985_v41  ;;  %v3991_v18 = vor.u32 4788187, %v3990_v54  ;;  %v4133_v4 = vsel %vm4131_vm9, %v4132_v14, %v11064_v31 }
 0x444   : > { %v4367_v8 = vor.u32 %v4366_v0, %v4365_v52  ;;  %vm3712_vm14 = vcmp.eq.s32.totalorder %v11031_v55, 0  ;;  %vm3715_vm15 = vcmp.eq.s32.totalorder %v11031_v55, 2  ;;  %v4275_v9 = vmul.u32 %v10899_v36, %v4221_v12 }
 0x445   : > { %v4279_v15 = vsel %vm4277_vm1, %v4278_v43, %v4274_v58  ;;  %vm4368_vm10 = vcmp.lt.s32.totalorder %v11105_v45, 1  ;;  %vm4371_vm3 = vcmp.lt.s32.totalorder %v11105_v45, 4  ;;  %vm4370_vm2 = vcmp.lt.s32.totalorder %v11105_v45, 3 }
 0x446   : > { %v4376_v21 = vsel %vm4368_vm10, %v11108_v46, %v11110_v24  ;;  %v4377_v29 = vsel %vm4371_vm3, %v4364_v59, 920167782  ;;  %v11139_v38 = vshll.u32 %v4344_v51, 8  ;;  %v3849_v36 = vmul.f32 -0.001358992, %v11116_v63 }
 0x447   : > { %vm4369_vm7 = vcmp.lt.s32.totalorder %v11105_v45, 2  ;;  %v4378_v41 = vsel %vm4370_vm2, %v11118_v16, %v4377_v29  ;;  %v4494_v17 = vshrl.u32 %v4493_v26, 23  ;;  %v11146_v54 = vadd.s32 %v4279_v15, %v4275_v9 }
 0x448   : > { %v4379_v58 = vsel %vm4369_vm7, %v4376_v21, %v4378_v41  ;;  %v4380_v62 = vsel %vm4368_vm10, %v11110_v24, %v11118_v16  ;;  %v4381_v12 = vsel %vm4371_vm3, %v4367_v8, 1326507024  ;;  %v3716_v61 = vxor.u32 2147483648, %v11054_v44 }
 0x449   : > { %v3992_v40 = vand.u32 2147483647, %v3991_v18  ;;  %v4134_v35 = vclz %v4133_v4  ;;  %v4382_v14 = vsel %vm4370_vm2, %v4364_v59, %v4381_v12  ;;  %v3713_v50 = vxor.u32 2147483648, %v3708_v48  ;;  %v12910_v59 = vld [vmem:[#allocation18_spill] sm:$0xff] }
 0x44a   : > { %v3856_v39 = vmul.f32 -0.00019511016, %v11116_v63  ;;  %v3994_v37 = vcvt.s32.f32 %v3987_v7  ;;  %v4385_v57 = vand.u32 65535, %v11139_v38  ;;  %v4383_v0 = vsel %vm4369_vm7, %v4380_v62, %v4382_v14 }
 0x44b   : > { %v4409_v43 = vand.u32 65535, %v4379_v58  ;;  %v4410_v51 = vshrl.u32 %v4379_v58, 16  ;;  %v5609_v33 = vadd.s32 4294967169, %v4494_v17  ;;  %v3850_v52 = vadd.f32 0.041655596, %v3849_v36 }
 0x44c   : > { %v4281_v26 = vadd.s32 536870912, %v11146_v54  ;;  %v4387_v18 = vand.u32 65535, %v4383_v0  ;;  %v4388_v4 = vshrl.u32 %v4383_v0, 16  ;;  %vm3711_vm0 = vcmp.lt.s32.totalorder %v11031_v55, 2 }
 0x44d   : > { %vm3876_vm4 = vcmp.lt.s32.totalorder %v12910_v59, 0  ;;  %v3995_v8 = vmul.f32 %v3994_v37, %v3992_v40  ;;  %v5601_v9 = vadd.s32 4294967294, %v4134_v35  ;;  %v4386_v7 = vshrl.u32 %v11139_v38, 16  ;;  %v12911_v40 = vld [vmem:[#allocation29_spill] sm:$0xff] }
 0x44e   : > { %v11167_v15 = vmul.u32 %v4410_v51, %v4385_v57  ;;  %v3714_v21 = vsel %vm3712_vm14, %v11054_v44, %v3713_v50  ;;  %v3717_v29 = vsel %vm3715_vm15, %v3716_v61, %v3708_v48  ;;  %v3847_v36 = vsel %vm11016_vm5, 0, %v11040_v53 }
 0x44f   : > { %v11177_v41 = vmul.u32 %v4388_v4, %v4385_v57  ;;  %v11179_v17 = vmul.u32 %v4387_v18, %v4386_v7  ;;  %v11181_v58 = vmul.u32 %v4409_v43, %v4386_v7  ;;  %v4500_v12 = vadd.s32 1, %v5609_v33 }
 0x450   : > { %v4415_v62 = vshll.u32 %v11167_v15, 16  ;;  %vm3555_vm13 = vweird.f32 %v12911_v40  ;;  %v11185_v35 = vshrl.u32 %v4281_v26, 30  ;;  %v4389_v44 = vmul.u32 %v4387_v18, %v4385_v57 }
 0x451   : > { %v4393_v48 = vshll.u32 %v11177_v41, 16  ;;  %v4411_v61 = vmul.u32 %v4409_v43, %v4385_v57  ;;  %vm3709_vm11 = vweird.f32 %v12887_v30  ;;  %v3851_v25 = vmul.f32 %v3850_v52, %v11116_v63 }
 0x452   : > { %v3857_v53 = vadd.f32 0.008332121, %v3856_v39  ;;  %v3996_v14 = vxor.u32 2147483648, %v3995_v8  ;;  %vm5602_vm6 = vcmp.lt.s32.totalorder %v5601_v9, 0  ;;  %v4395_v0 = vshll.u32 %v11179_v17, 16 }
 0x453   : > { %vm4397_vm8 = vc.u32 %v4389_v44, %v4393_v48  ;;  %v4399_v50 = vadd.s32 %v4393_v48, %v4389_v44  ;;  %vm4419_vm5 = vc.u32 %v4411_v61, %v4415_v62  ;;  %v12557_v33 = vshll.u32 %v11181_v58, 16 }
 0x454   : > { %v11193_v26 = vadd.s32 %v4415_v62, %v4411_v61  ;;  %vm4501_vm12 = vcmp.gt.s32.totalorder %v4500_v12, 0  ;;  %v4283_v57 = vshll.u32 %v11185_v35, 30  ;;  %v4398_v43 = vsel %vm4397_vm8, 1, %v12615_v34 }
 0x455   : > { %v4414_v52 = vmul.u32 %v4410_v51, %v4386_v7  ;;  %v4420_v39 = vsel %vm4419_vm5, 1, %v12615_v34  ;;  %v4392_v18 = vmul.u32 %v4388_v4, %v4386_v7  ;;  %vm4401_vm9 = vc.u32 %v4399_v50, %v4395_v0 }
 0x456   : > { %vm4423_vm1 = vc.u32 %v11193_v26, %v12557_v33  ;;  %v4502_v44 = vsel %vm4501_vm12, %v4500_v12, 0  ;;  %v3718_v48 = vsel %vm3711_vm0, %v3714_v21, %v3717_v29  ;;  %v3852_v62 = vadd.f32 -0.4999988, %v3851_v25 }
 0x457   : > { %v3858_v61 = vmul.f32 %v3857_v53, %v11116_v63  ;;  %v3997_v1 = vsel %vm3876_vm4, %v3996_v14, %v3995_v8  ;;  %v4400_v37 = vadd.s32 %v4398_v43, %v4392_v18  ;;  %v4422_v51 = vadd.s32 %v4420_v39, %v4414_v52 }
 0x458   : > { %v12912_v3 = vand.u32 2147483647, %v12909_v32  ;;  %v4504_v7 = vand.u32 31, %v4502_v44  ;;  %v11209_v50 = vsel %vm5602_vm6, 0, %v5601_v9  ;;  %v11212_v12 = vsub.s32 %v11146_v54, %v4283_v57 }
 0x459   : > { %v4402_v55 = vsel %vm4401_vm9, 1, %v12615_v34  ;;  %v4424_v21 = vsel %vm4423_vm1, 1, %v12615_v34  ;;  %v11219_v8 = vsel %vm3555_vm13, nan, %v11029_v5  ;;  %v11221_v29 = vand.u32 3, %v3847_v36 }
 0x45a   : > { %v4497_v4 = vand.u32 8388607, %v12912_v3  ;;  %12913 = vst [vmem:[#allocation27_spill] sm:$0xff] %v11219_v8  ;;  %v12914_v3 = vand.u32 2147483647, %v12910_v59  ;;  %v11229_v9 = vsub.s32 32, %v4504_v7  ;;  %v3853_v53 = vmul.f32 %v3852_v62, %v11116_v63 }
 0x45b   : > { %v11233_v54 = vsel %vm3709_vm11, nan, %v3718_v48  ;;  %v3859_v14 = vadd.f32 -0.16666654, %v3858_v61  ;;  %v4142_v36 = vsub.s32 4294967266, %v11209_v50  ;;  %v4404_v40 = vadd.s32 %v4402_v55, %v4400_v37 }
 0x45c   : > { %vm11225_vm14 = vcmp.le.f32.partialorder %v12914_v3, 0.7853982  ;;  %12917 = vst [vmem:[#allocation10_spill] sm:$0xff] %v11233_v54  ;;  %v4426_v0 = vadd.s32 %v4424_v21, %v4422_v51  ;;  %v4498_v57 = vor.u32 8388608, %v4497_v4  ;;  %vm4285_vm15 = vcmp.lt.s32.totalorder %v11212_v12, 0 }
 0x45d   : > { %v11239_v5 = vsel %vm11225_vm14, %v12910_v59, %v3997_v1  ;;  %v4286_v43 = vsub.s32 0, %v11212_v12  ;;  %v4416_v30 = vshrl.u32 %v11167_v15, 16  ;;  %v4511_v52 = vshrl.u32 %v12855_v19, %v11229_v9 }
 0x45e   : > { %v4394_v39 = vshrl.u32 %v11177_v41, 16  ;;  %v11248_v18 = vshrl.u32 %v4502_v44, 5  ;;  %v4510_v1 = vshll.u32 %v12724_v42, %v4504_v7  ;;  %v4514_v37 = vshrl.u32 %v12908_v47, %v11229_v9 }
 0x45f   : > { %v4508_v48 = vshrl.u32 %v12724_v42, %v11229_v9  ;;  %v4513_v62 = vshll.u32 %v12855_v19, %v4504_v7  ;;  %v4516_v61 = vshll.u32 %v12908_v47, %v4504_v7  ;;  %v4517_v15 = vshrl.u32 %v12722_v13, %v11229_v9 }
 0x460   : > { %v4405_v51 = vadd.s32 %v4404_v40, %v4394_v39  ;;  %v4427_v4 = vadd.s32 %v4426_v0, %v4416_v30  ;;  %v4519_v41 = vshll.u32 %v12722_v13, %v4504_v7  ;;  %v4520_v44 = vshrl.u32 %v12881_v49, %v11229_v9 }
 0x461   : > { %v4507_v55 = vshll.u32 %v12623_v27, %v4504_v7  ;;  %v11263_v21 = vor.u32 %v4511_v52, %v4510_v1  ;;  %v11265_v3 = vor.u32 %v4514_v37, %v4513_v62  ;;  %v4518_v33 = vor.u32 %v4517_v15, %v4516_v61 }
 0x462   : > { %v4287_v54 = vsel %vm4285_vm15, %v4286_v43, %v11212_v12  ;;  %v4352_v40 = vshrl.u32 %v12623_v27, %v11061_v23  ;;  %v4418_v0 = vshrl.u32 %v11181_v58, 16  ;;  %v4521_v30 = vor.u32 %v4520_v44, %v4519_v41 }
 0x463   : > { %v4373_v39 = vsel %vm4371_vm3, %v11118_v16, 2102212464  ;;  %v4396_v7 = vshrl.u32 %v11179_v17, 16  ;;  %v11277_v52 = vor.u32 %v4508_v48, %v4507_v55  ;;  %vm4525_vm0 = vcmp.lt.s32.totalorder %v11248_v18, 4 }
 0x464   : > { %v4428_v1 = vadd.s32 %v4427_v4, %v4418_v0  ;;  %vm4522_vm13 = vcmp.lt.s32.totalorder %v11248_v18, 1  ;;  %v4531_v43 = vsel %vm4525_vm0, %v4518_v33, 920167782  ;;  %v4535_v23 = vsel %vm4525_vm0, %v4521_v30, 1326507024 }
 0x465   : > { %v4288_v37 = vclz %v4287_v54  ;;  %v11285_v62 = vadd.s32 %v4405_v51, %v4396_v7  ;;  %vm4524_vm3 = vcmp.lt.s32.totalorder %v11248_v18, 3  ;;  %v4534_v16 = vsel %vm4522_vm13, %v11263_v21, %v11265_v3 }
 0x466   : > { %v4372_v17 = vsel %vm4368_vm10, %v4352_v40, %v11108_v46  ;;  %v4374_v48 = vsel %vm4370_vm2, %v11110_v24, %v4373_v39  ;;  %v4536_v54 = vsel %vm4524_vm3, %v4518_v33, %v4535_v23  ;;  %v11300_v61 = vshll.u32 %v4498_v57, 8  ;;  %v12919_v39 = vld [vmem:[#allocation19_spill] sm:$0xff] }
 0x467   : > { %v12918_v15 = vshll.u32 %v11181_v58, 16  ;;  %vm4523_vm11 = vcmp.lt.s32.totalorder %v11248_v18, 2  ;;  %v4530_v46 = vsel %vm4522_vm13, %v11277_v52, %v11263_v21  ;;  %v4532_v24 = vsel %vm4524_vm3, %v11265_v3, %v4531_v43 }
 0x468   : > { %v3860_v33 = vmul.f32 %v3859_v14, %v11116_v63  ;;  %v4143_v57 = vadd.s32 127, %v4142_v36  ;;  %v4432_v4 = vadd.s32 1, %v4428_v1  ;;  %v4537_v58 = vsel %vm4523_vm11, %v4534_v16, %v4536_v54 }
 0x469   : > { %v11305_v51 = vadd.s32 %v11193_v26, %v12918_v15  ;;  %v3998_v26 = vsub.s32 4, %v10807_v28  ;;  %v11321_v41 = vmul.f32 %v11239_v5, %v11239_v5  ;;  %v4138_v44 = vsub.s32 32, %v11209_v50 }
 0x46a   : > { %v4375_v55 = vsel %vm4369_vm7, %v4372_v17, %v4374_v48  ;;  %v4533_v63 = vsel %vm4523_vm11, %v4530_v46, %v4532_v24  ;;  %v4539_v14 = vand.u32 65535, %v11300_v61  ;;  %v4542_v36 = vshrl.u32 %v4537_v58, 16 }
 0x46b   : > { %vm4431_vm10 = vc.u32 %v11285_v62, %v11305_v51  ;;  %v11331_v40 = vadd.f32 1.0, %v3853_v53  ;;  %v4122_v0 = vadd.s32 %v10944_v60, %v10928_v2  ;;  %v5604_v30 = vadd.s32 4294967294, %v4288_v37 }
 0x46c   : > { %v4647_v7 = vand.u32 2139095040, %v12919_v39  ;;  %v4144_v43 = vshll.u32 %v4143_v57, 23  ;;  %v4433_v23 = vsel %vm4431_vm10, %v4432_v4, %v4428_v1  ;;  %v4541_v16 = vand.u32 65535, %v4537_v58 }
 0x46d   : > { %v11336_v54 = vmul.u32 %v4542_v36, %v4539_v14  ;;  %v3861_v45 = vadd.f32 1.0, %v3860_v33  ;;  %v4003_v17 = vmul.f32 -0.001358992, %v11321_v41  ;;  %v4429_v48 = vmul.u32 %v11139_v38, %v4375_v55 }
 0x46e   : > { %v4564_v15 = vshrl.u32 %v4533_v63, 16  ;;  %v11343_v53 = vsel %vm3876_vm4, %v3998_v26, %v10807_v28  ;;  %v4140_v2 = vshrl.u32 %v4122_v0, %v4138_v44  ;;  %v4540_v60 = vshrl.u32 %v11300_v61, 16 }
 0x46f   : > { %v4563_v37 = vand.u32 65535, %v4533_v63  ;;  %vm5605_vm2 = vcmp.lt.s32.totalorder %v5604_v30, 0  ;;  %v11346_v1 = vadd.s32 %v4433_v23, %v4429_v48  ;;  %v4547_v46 = vshll.u32 %v11336_v54, 16 }
 0x470   : > { %v4648_v24 = vshrl.u32 %v4647_v7, 23  ;;  %v4010_v33 = vmul.f32 -0.00019511016, %v11321_v41  ;;  %v4145_v57 = vor.u32 4788187, %v4144_v43  ;;  %v4543_v38 = vmul.u32 %v4541_v16, %v4539_v14 }
 0x471   : > { %v11350_v4 = vmul.u32 %v4541_v16, %v4540_v60  ;;  %v11353_v58 = vmul.f32 %v3861_v45, %v11075_v6  ;;  %v4004_v28 = vadd.f32 0.041655596, %v4003_v17  ;;  %v4139_v26 = vshll.u32 %v11064_v31, %v11209_v50 }
 0x472   : > { %v4566_v44 = vmul.u32 %v4564_v15, %v4539_v14  ;;  %v11357_v55 = vsel %vm5605_vm2, 0, %v5604_v30  ;;  %vm4551_vm7 = vc.u32 %v4543_v38, %v4547_v46  ;;  %v4553_v63 = vadd.s32 %v4547_v46, %v4543_v38 }
 0x473   : > { %v11359_v0 = vmul.u32 %v4563_v37, %v4540_v60  ;;  %v4141_v7 = vor.u32 %v4140_v2, %v4139_v26  ;;  %v4435_v43 = vadd.s32 536870912, %v11346_v1  ;;  %v5612_v16 = vadd.s32 4294967169, %v4648_v24 }
 0x474   : > { %v4569_v23 = vshll.u32 %v4566_v44, 16  ;;  %v4011_v48 = vadd.f32 0.008332121, %v4010_v33  ;;  %v4146_v8 = vand.u32 2147483647, %v4145_v57  ;;  %v4549_v6 = vshll.u32 %v11350_v4, 16 }
 0x475   : > { %v4565_v45 = vmul.u32 %v4563_v37, %v4539_v14  ;;  %v4296_v17 = vsub.s32 4294967266, %v11357_v55  ;;  %v4546_v31 = vmul.u32 %v4542_v36, %v4540_v60  ;;  %v4552_v50 = vsel %vm4551_vm7, 1, %v12615_v34 }
 0x476   : > { %v4568_v30 = vmul.u32 %v4564_v15, %v4540_v60  ;;  %vm4555_vm4 = vc.u32 %v4553_v63, %v4549_v6  ;;  %v12559_v46 = vshll.u32 %v11359_v0, 16  ;;  %v4148_v38 = vcvt.s32.f32 %v4141_v7 }
 0x477   : > { %vm4573_vm6 = vc.u32 %v4565_v45, %v4569_v23  ;;  %v11366_v2 = vadd.s32 %v4569_v23, %v4565_v45  ;;  %v11368_v26 = vshrl.u32 %v4435_v43, 30  ;;  %v4654_v33 = vadd.s32 1, %v5612_v16 }
 0x478   : > { %v4574_v24 = vsel %vm4573_vm6, 1, %v12615_v34  ;;  %v4012_v14 = vmul.f32 %v4011_v48, %v11321_v41  ;;  %v4554_v37 = vadd.s32 %v4552_v50, %v4546_v31  ;;  %v11375_v36 = vmul.f32 %v4148_v38, %v4146_v8 }
 0x479   : > { %12920 = vst [vmem:[#allocation30_spill] sm:$0xff] %v11368_v26  ;;  %v4576_v57 = vadd.s32 %v4574_v24, %v4568_v30  ;;  %vm4577_vm8 = vc.u32 %v11366_v2, %v12559_v46  ;;  %v4292_v15 = vsub.s32 32, %v11357_v55  ;;  %v4556_v60 = vsel %vm4555_vm4, 1, %v12615_v34 }
 0x47a   : > { %v4578_v63 = vsel %vm4577_vm8, 1, %v12615_v34  ;;  %v4297_v23 = vadd.s32 127, %v4296_v17  ;;  %vm4655_vm5 = vcmp.gt.s32.totalorder %v4654_v33, 0  ;;  %v11385_v16 = vmul.f32 %v4004_v28, %v11321_v41 }
 0x47b   : > { %v4276_v8 = vadd.s32 %v11082_v56, %v11069_v20  ;;  %v4437_v48 = vshll.u32 %v11368_v26, 30  ;;  %v4656_v6 = vsel %vm4655_vm5, %v4654_v33, 0  ;;  %v4558_v45 = vadd.s32 %v4556_v60, %v4554_v37 }
 0x47c   : > { %v4580_v31 = vadd.s32 %v4578_v63, %v4576_v57  ;;  %v12558_v50 = vand.u32 2147483647, %v12919_v39  ;;  %v4658_v30 = vand.u32 31, %v4656_v6  ;;  %v11391_v38 = vadd.f32 -0.16666654, %v4012_v14  ;;  %v12921_v39 = vld [vmem:[#allocation32_spill] sm:$0xff] }
 0x47d   : > { %v11396_v28 = vshrl.u32 %v4276_v8, %v4292_v15  ;;  %v4298_v43 = vshll.u32 %v4297_v23, 23  ;;  %v4548_v20 = vshrl.u32 %v11336_v54, 16  ;;  %v4570_v56 = vshrl.u32 %v4566_v44, 16 }
 0x47e   : > { %v11399_v7 = vsub.s32 32, %v4658_v30  ;;  %v11402_v33 = vsub.s32 %v11346_v1, %v4437_v48  ;;  %v4506_v14 = vshrl.u32 %v12623_v27, %v11229_v9  ;;  %v4527_v37 = vsel %vm4525_vm0, %v11265_v3, 2102212464 }
 0x47f   : > { %v4572_v57 = vshrl.u32 %v11359_v0, 16  ;;  %v4559_v15 = vadd.s32 %v4558_v45, %v4548_v20  ;;  %v4581_v60 = vadd.s32 %v4580_v31, %v4570_v56  ;;  %v4651_v54 = vand.u32 8388607, %v12558_v50 }
 0x480   : > { %v4662_v44 = vshrl.u32 %v12724_v42, %v11399_v7  ;;  %v4665_v1 = vshrl.u32 %v12855_v19, %v11399_v7  ;;  %v4668_v9 = vshrl.u32 %v12908_v47, %v11399_v7  ;;  %v4671_v63 = vshrl.u32 %v12722_v13, %v11399_v7 }
 0x481   : > { %v4674_v3 = vshrl.u32 %v12881_v49, %v11399_v7  ;;  %vm3866_vm12 = vcmp.eq.s32.totalorder %v11221_v29, 0  ;;  %v11423_v23 = vshrl.u32 %v4656_v6, 5  ;;  %v4664_v8 = vshll.u32 %v12724_v42, %v4658_v30 }
 0x482   : > { %v4667_v48 = vshll.u32 %v12855_v19, %v4658_v30  ;;  %v4670_v45 = vshll.u32 %v12908_v47, %v4658_v30  ;;  %v4440_v31 = vsub.s32 0, %v11402_v33  ;;  %v4550_v20 = vshrl.u32 %v11350_v4, 16 }
 0x483   : > { %v4661_v56 = vshll.u32 %v12623_v27, %v4658_v30  ;;  %v4673_v50 = vshll.u32 %v12722_v13, %v4658_v30  ;;  %v4582_v24 = vadd.s32 %v4581_v60, %v4572_v57  ;;  %v11432_v17 = vor.u32 %v4665_v1, %v4664_v8 }
 0x484   : > { %v11434_v46 = vor.u32 %v4668_v9, %v4667_v48  ;;  %v4672_v6 = vor.u32 %v4671_v63, %v4670_v45  ;;  %vm4030_vm9 = vcmp.lt.s32.totalorder %v12921_v39, 0  ;;  %vm4439_vm1 = vcmp.lt.s32.totalorder %v11402_v33, 0 }
 0x485   : > { %v11438_v32 = vadd.s32 %v4559_v15, %v4550_v20  ;;  %v11440_v59 = vor.u32 %v4662_v44, %v4661_v56  ;;  %v4675_v26 = vor.u32 %v4674_v3, %v4673_v50  ;;  %v4299_v4 = vor.u32 4788187, %v4298_v43 }
 0x486   : > { %v4526_v30 = vsel %vm4522_vm13, %v4506_v14, %v11277_v52  ;;  %v4652_v57 = vor.u32 8388608, %v4651_v54  ;;  %vm4679_vm15 = vcmp.lt.s32.totalorder %v11423_v23, 4  ;;  %vm3869_vm0 = vcmp.eq.s32.totalorder %v11221_v29, 2 }
 0x487   : > { %v4528_v60 = vsel %vm4524_vm3, %v11263_v21, %v4527_v37  ;;  %v12922_v15 = vshll.u32 %v11359_v0, 16  ;;  %vm4676_vm10 = vcmp.lt.s32.totalorder %v11423_v23, 1  ;;  %v4685_v43 = vsel %vm4679_vm15, %v4672_v6, 920167782 }
 0x488   : > { %vm3865_vm13 = vcmp.lt.s32.totalorder %v11221_v29, 2  ;;  %v12923_v52 = vand.u32 2147483647, %v12921_v39  ;;  %v4441_v21 = vsel %vm4439_vm1, %v4440_v31, %v11402_v33  ;;  %v4586_v14 = vadd.s32 1, %v4582_v24 }
 0x489   : > { %v11453_v44 = vadd.s32 %v11366_v2, %v12922_v15  ;;  %vm4678_vm3 = vcmp.lt.s32.totalorder %v11423_v23, 3  ;;  %v4688_v0 = vsel %vm4676_vm10, %v11432_v17, %v11434_v46  ;;  %v4684_v2 = vsel %vm4676_vm10, %v11440_v59, %v11432_v17 }
 0x48a   : > { %vm11461_vm2 = vcmp.le.f32.partialorder %v12923_v52, 0.7853982  ;;  %v4686_v37 = vsel %vm4678_vm3, %v11434_v46, %v4685_v43  ;;  %v4689_v54 = vsel %vm4679_vm15, %v4675_v26, 1326507024  ;;  %v4529_v1 = vsel %vm4523_vm11, %v4526_v30, %v4528_v60 }
 0x48b   : > { %vm4585_vm7 = vc.u32 %v11438_v32, %v11453_v44  ;;  %vm4677_vm4 = vcmp.lt.s32.totalorder %v11423_v23, 2  ;;  %v4690_v9 = vsel %vm4678_vm3, %v4672_v6, %v4689_v54  ;;  %v11487_v63 = vshll.u32 %v4652_v57, 8 }
 0x48c   : > { %v12926_v3 = vxor.u32 2147483648, %v11353_v58  ;;  %v3870_v48 = vxor.u32 2147483648, %v11331_v40  ;;  %v12927_v18 = vsel %vm11225_vm14, 0, %v11343_v53  ;;  %v4691_v45 = vsel %vm4677_vm4, %v4688_v0, %v4690_v9 }
 0x48d   : > { %v11499_v26 = vand.u32 3, %v12927_v18  ;;  %v12928_v31 = vshll.u32 %v11212_v12, %v11357_v55  ;;  %v4442_v56 = vclz %v4441_v21  ;;  %v4587_v6 = vsel %vm4585_vm7, %v4586_v14, %v4582_v24 }
 0x48e   : > { %v3868_v8 = vsel %vm3866_vm12, %v11331_v40, %v12926_v3  ;;  %v4687_v30 = vsel %vm4677_vm4, %v4684_v2, %v4686_v37  ;;  %v4006_v40 = vadd.f32 -0.4999988, %v11385_v16  ;;  %v4583_v25 = vmul.u32 %v11300_v61, %v4529_v1  ;;  %v12930_v37 = vld [vmem:[#allocation33_spill] sm:$0xff] }
 0x48f   : > { %v4295_v20 = vor.u32 %v11396_v28, %v12928_v31  ;;  %v4695_v53 = vand.u32 65535, %v4691_v45  ;;  %v4696_v57 = vshrl.u32 %v4691_v45, 16  ;;  %v4014_v60 = vmul.f32 %v11391_v38, %v11321_v41 }
 0x490   : > { %v12929_v15 = vxor.u32 2147483648, %v11375_v36  ;;  %v4300_v55 = vand.u32 2147483647, %v4299_v4  ;;  %v4693_v24 = vand.u32 65535, %v11487_v63  ;;  %v4152_v28 = vsub.s32 4, %v11020_v11 }
 0x491   : > { %v11520_v43 = vadd.s32 %v4587_v6, %v4583_v25  ;;  %v4694_v61 = vshrl.u32 %v11487_v63, 16  ;;  %v4718_v16 = vshrl.u32 %v4687_v30, 16  ;;  %v3871_v38 = vsel %vm3869_vm0, %v3870_v48, %v11353_v58 }
 0x492   : > { %v4151_v12 = vsel %vm4030_vm9, %v12929_v15, %v11375_v36  ;;  %v4302_v52 = vcvt.s32.f32 %v4295_v20  ;;  %v5607_v21 = vadd.s32 4294967294, %v4442_v56  ;;  %v4698_v14 = vmul.u32 %v4696_v57, %v4693_v24 }
 0x493   : > { %v11528_v36 = vsel %vm3865_vm13, %v3868_v8, %v3871_v38  ;;  %v4007_v4 = vmul.f32 %v4006_v40, %v11321_v41  ;;  %v11534_v0 = vsel %vm11461_vm2, %v12921_v39, %v4151_v12  ;;  %v4699_v2 = vmul.u32 %v4695_v53, %v4694_v61 }
 0x494   : > { %vm4184_vm14 = vcmp.lt.s32.totalorder %v12930_v37, 0  ;;  %v4303_v54 = vmul.f32 %v4302_v52, %v4300_v55  ;;  %v4697_v1 = vmul.u32 %v4695_v53, %v4693_v24  ;;  %v4701_v58 = vshll.u32 %v4698_v14, 16 }
 0x495   : > { %v4717_v9 = vand.u32 65535, %v4687_v30  ;;  %v4015_v3 = vadd.f32 1.0, %v4014_v60  ;;  %v11540_v29 = vsel %vm4030_vm9, %v4152_v28, %v11020_v11  ;;  %v4589_v41 = vadd.s32 536870912, %v11520_v43 }
 0x496   : > { %v4720_v8 = vmul.u32 %v4718_v16, %v4693_v24  ;;  %v11545_v48 = vmul.f32 %v11534_v0, %v11534_v0  ;;  %vm5608_vm11 = vcmp.lt.s32.totalorder %v5607_v21, 0  ;;  %v4700_v18 = vmul.u32 %v4696_v57, %v4694_v61 }
 0x497   : > { %vm4705_vm6 = vc.u32 %v4697_v1, %v4701_v58  ;;  %v12931_v45 = vand.u32 2147483647, %v12930_v37  ;;  %v4703_v20 = vshll.u32 %v4699_v2, 16  ;;  %v4707_v56 = vadd.s32 %v4701_v58, %v4697_v1 }
 0x498   : > { %v4706_v11 = vsel %vm4705_vm6, 1, %v12615_v34  ;;  %v4723_v6 = vshll.u32 %v4720_v8, 16  ;;  %v11554_v30 = vadd.f32 1.0, %v4007_v4  ;;  %v4155_v40 = vsel %vm11461_vm2, 0, %v11540_v29 }
 0x499   : > { %vm11549_vm8 = vcmp.le.f32.partialorder %v12931_v45, 0.7853982  ;;  %v4304_v25 = vxor.u32 2147483648, %v4303_v54  ;;  %v4721_v53 = vmul.u32 %v4717_v9, %v4694_v61  ;;  %v11559_v57 = vshrl.u32 %v4589_v41, 30 }
 0x49a   : > { %v4708_v60 = vadd.s32 %v4706_v11, %v4700_v18  ;;  %vm4709_vm5 = vc.u32 %v4707_v56, %v4703_v20  ;;  %v4719_v15 = vmul.u32 %v4717_v9, %v4693_v24  ;;  %v11562_v12 = vmul.f32 %v4015_v3, %v11239_v5  ;;  %v12934_v11 = vld [vmem:[#allocation20_spill] sm:$0xff] }
 0x49b   : > { %v4164_v55 = vmul.f32 -0.00019511016, %v11545_v48  ;;  %v11566_v28 = vsel %vm5608_vm11, 0, %v5607_v21  ;;  %v4710_v38 = vsel %vm4709_vm5, 1, %v12615_v34  ;;  %v4702_v52 = vshrl.u32 %v4698_v14, 16 }
 0x49c   : > { %v4712_v4 = vadd.s32 %v4710_v38, %v4708_v60  ;;  %v4722_v1 = vmul.u32 %v4718_v16, %v4694_v61  ;;  %vm4727_vm12 = vc.u32 %v4719_v15, %v4723_v6  ;;  %v4157_v58 = vmul.f32 -0.001358992, %v11545_v48 }
 0x49d   : > { %v4725_v41 = vshll.u32 %v4721_v53, 16  ;;  %v4728_v18 = vsel %vm4727_vm12, 1, %v12615_v34  ;;  %v4729_v24 = vadd.s32 %v4723_v6, %v4719_v15  ;;  %v4305_v5 = vsel %vm4184_vm14, %v4304_v25, %v4303_v54 }
 0x49e   : > { %v4591_v9 = vshll.u32 %v11559_v57, 30  ;;  %v4713_v3 = vadd.s32 %v4712_v4, %v4702_v52  ;;  %v4730_v21 = vadd.s32 %v4728_v18, %v4722_v1  ;;  %vm4020_vm9 = vcmp.eq.s32.totalorder %v11499_v26, 0 }
 0x49f   : > { %v4450_v14 = vsub.s32 4294967266, %v11566_v28  ;;  %v4660_v61 = vshrl.u32 %v12623_v27, %v11399_v7  ;;  %v4681_v16 = vsel %vm4679_vm15, %v11434_v46, 2102212464  ;;  %vm4731_vm1 = vc.u32 %v4729_v24, %v4725_v41 }
 0x4a0   : > { %v4165_v45 = vadd.f32 0.008332121, %v4164_v55  ;;  %v4704_v20 = vshrl.u32 %v4699_v2, 16  ;;  %v4732_v54 = vsel %vm4731_vm1, 1, %v12615_v34  ;;  %v4801_v56 = vand.u32 2139095040, %v12934_v11 }
 0x4a1   : > { %v11586_v6 = vsel %vm11549_vm8, %v12930_v37, %v4305_v5  ;;  %v4680_v7 = vsel %vm4676_vm10, %v4660_v61, %v11440_v59  ;;  %v4724_v25 = vshrl.u32 %v4720_v8, 16  ;;  %v4734_v60 = vadd.s32 %v4732_v54, %v4730_v21 }
 0x4a2   : > { %v11592_v46 = vsub.s32 %v11520_v43, %v4591_v9  ;;  %v4682_v2 = vsel %vm4678_vm3, %v11432_v17, %v4681_v16  ;;  %v11597_v15 = vadd.s32 %v4713_v3, %v4704_v20  ;;  %v4802_v55 = vshrl.u32 %v4801_v56, 23 }
 0x4a3   : > { %vm3863_vm15 = vweird.f32 %v12900_v10  ;;  %v4024_v38 = vxor.u32 2147483648, %v11554_v30  ;;  %v4451_v52 = vadd.s32 127, %v4450_v14  ;;  %v4726_v4 = vshrl.u32 %v4721_v53, 16 }
 0x4a4   : > { %v4735_v1 = vadd.s32 %v4734_v60, %v4724_v25  ;;  %v4021_v59 = vxor.u32 2147483648, %v11562_v12  ;;  %vm4023_vm0 = vcmp.eq.s32.totalorder %v11499_v26, 2  ;;  %v11605_v43 = vmul.f32 %v11586_v6, %v11586_v6 }
 0x4a5   : > { %v11607_v8 = vadd.s32 %v4729_v24, %v4725_v41  ;;  %v5615_v17 = vadd.s32 4294967169, %v4802_v55  ;;  %vm4019_vm10 = vcmp.lt.s32.totalorder %v11499_v26, 2  ;;  %v4158_v18 = vadd.f32 0.041655596, %v4157_v58 }
 0x4a6   : > { %v4446_v5 = vsub.s32 32, %v11566_v28  ;;  %v4683_v53 = vsel %vm4677_vm4, %v4680_v7, %v4682_v2  ;;  %v4736_v9 = vadd.s32 %v4735_v1, %v4726_v4  ;;  %v4166_v3 = vmul.f32 %v4165_v45, %v11545_v48 }
 0x4a7   : > { %v4594_v21 = vsub.s32 0, %v11592_v46  ;;  %vm4739_vm13 = vc.u32 %v11597_v15, %v11607_v8  ;;  %v4808_v14 = vadd.s32 1, %v5615_v17  ;;  %v4430_v41 = vadd.s32 %v11305_v51, %v11285_v62 }
 0x4a8   : > { %v4452_v24 = vshll.u32 %v4451_v52, 23  ;;  %vm4593_vm3 = vcmp.lt.s32.totalorder %v11592_v46, 0  ;;  %v4740_v58 = vadd.s32 1, %v4736_v9  ;;  %v4022_v23 = vsel %vm4020_vm9, %v11554_v30, %v4021_v59 }
 0x4a9   : > { %v4318_v61 = vmul.f32 -0.00019511016, %v11605_v43  ;;  %v4737_v16 = vmul.u32 %v11487_v63, %v4683_v53  ;;  %vm4809_vm7 = vcmp.gt.s32.totalorder %v4808_v14, 0  ;;  %v4159_v45 = vmul.f32 %v4158_v18, %v11545_v48 }
 0x4aa   : > { %v4448_v20 = vshrl.u32 %v4430_v41, %v4446_v5  ;;  %v4741_v54 = vsel %vm4739_vm13, %v4740_v58, %v4736_v9  ;;  %v4810_v56 = vsel %vm4809_vm7, %v4808_v14, 0  ;;  %v4306_v62 = vsub.s32 4, %v11185_v35 }
 0x4ab   : > { %v4595_v51 = vsel %vm4593_vm3, %v4594_v21, %v11592_v46  ;;  %v4742_v7 = vadd.s32 %v4741_v54, %v4737_v16  ;;  %v4812_v25 = vand.u32 31, %v4810_v56  ;;  %v4167_v60 = vadd.f32 -0.16666654, %v4166_v3 }
 0x4ac   : > { %v4311_v2 = vmul.f32 -0.001358992, %v11605_v43  ;;  %v4447_v30 = vshll.u32 %v11402_v33, %v11566_v28  ;;  %v4453_v55 = vor.u32 4788187, %v4452_v24  ;;  %v11634_v63 = vsel %vm3863_vm15, nan, %v11528_v36 }
 0x4ad   : > { %12935 = vst [vmem:[#allocation25_spill] sm:$0xff] %v11634_v63  ;;  %v4319_v52 = vadd.f32 0.008332121, %v4318_v61  ;;  %v4743_v4 = vadd.s32 536870912, %v4742_v7  ;;  %v11636_v1 = vsub.s32 32, %v4812_v25  ;;  %v4025_v59 = vsel %vm4023_vm0, %v4024_v38, %v11562_v12 }
 0x4ae   : > { %v4449_v17 = vor.u32 %v4448_v20, %v4447_v30  ;;  %v4596_v18 = vclz %v4595_v51  ;;  %v12565_v5 = vand.u32 2147483647, %v12934_v11  ;;  %v11644_v33 = vsel %vm4019_vm10, %v4022_v23, %v4025_v59 }
 0x4af   : > { %v4160_v28 = vadd.f32 -0.4999988, %v4159_v45  ;;  %v11650_v10 = vand.u32 3, %v4155_v40  ;;  %v4307_v36 = vsel %vm4184_vm14, %v4306_v62, %v11185_v35  ;;  %v4168_v12 = vmul.f32 %v4167_v60, %v11545_v48 }
 0x4b0   : > { %v4312_v38 = vadd.f32 0.041655596, %v4311_v2  ;;  %v4454_v53 = vand.u32 2147483647, %v4453_v55  ;;  %v11656_v9 = vshrl.u32 %v4743_v4, 30  ;;  %v4320_v26 = vmul.f32 %v4319_v52, %v11605_v43 }
 0x4b1   : > { %v4816_v3 = vshrl.u32 %v12724_v42, %v11636_v1  ;;  %v4819_v50 = vshrl.u32 %v12855_v19, %v11636_v1  ;;  %v4825_v29 = vshrl.u32 %v12722_v13, %v11636_v1  ;;  %v4456_v40 = vcvt.s32.f32 %v4449_v17 }
 0x4b2   : > { %v5610_v21 = vadd.s32 4294967294, %v4596_v18  ;;  %v4805_v35 = vand.u32 8388607, %v12565_v5  ;;  %v4815_v14 = vshll.u32 %v12623_v27, %v4812_v25  ;;  %v4818_v41 = vshll.u32 %v12724_v42, %v4812_v25 }
 0x4b3   : > { %v4822_v24 = vshrl.u32 %v12908_v47, %v11636_v1  ;;  %v4824_v58 = vshll.u32 %v12908_v47, %v4812_v25  ;;  %v4828_v23 = vshrl.u32 %v12881_v49, %v11636_v1  ;;  %v4457_v61 = vmul.f32 %v4456_v40, %v4454_v53 }
 0x4b4   : > { %v4745_v16 = vshll.u32 %v11656_v9, 30  ;;  %v11675_v45 = vshrl.u32 %v4810_v56, 5  ;;  %v4821_v20 = vshll.u32 %v12855_v19, %v4812_v25  ;;  %v11678_v54 = vor.u32 %v4816_v3, %v4815_v14 }
 0x4b5   : > { %v11680_v62 = vor.u32 %v4819_v50, %v4818_v41  ;;  %v4826_v51 = vor.u32 %v4825_v29, %v4824_v58  ;;  %v4827_v60 = vshll.u32 %v12722_v13, %v4812_v25  ;;  %v4169_v2 = vadd.f32 1.0, %v4168_v12 }
 0x4b6   : > { %v4309_v30 = vsel %vm11549_vm8, 0, %v4307_v36  ;;  %vm4338_vm2 = vcmp.lt.s32.totalorder %v12901_v22, 0  ;;  %v4806_v55 = vor.u32 8388608, %v4805_v35  ;;  %v4161_v52 = vmul.f32 %v4160_v28, %v11545_v48 }
 0x4b7   : > { %vm5611_vm4 = vcmp.lt.s32.totalorder %v5610_v21, 0  ;;  %v11687_v56 = vor.u32 %v4822_v24, %v4821_v20  ;;  %v4829_v4 = vor.u32 %v4828_v23, %v4827_v60  ;;  %v4313_v59 = vmul.f32 %v4312_v38, %v11605_v43 }
 0x4b8   : > { %v4321_v17 = vadd.f32 -0.16666654, %v4320_v26  ;;  %vm4830_vm14 = vcmp.lt.s32.totalorder %v11675_v45, 1  ;;  %vm4833_vm11 = vcmp.lt.s32.totalorder %v11675_v45, 4  ;;  %v12936_v25 = vand.u32 2147483647, %v12901_v22 }
 0x4b9   : > { %v4458_v18 = vxor.u32 2147483648, %v4457_v61  ;;  %v11698_v36 = vsub.s32 %v4742_v7, %v4745_v16  ;;  %v4838_v48 = vsel %vm4830_vm14, %v11678_v54, %v11680_v62  ;;  %v4839_v28 = vsel %vm4833_vm11, %v4826_v51, 920167782 }
 0x4ba   : > { %vm11694_vm6 = vcmp.le.f32.partialorder %v12936_v25, 0.7853982  ;;  %v11707_v12 = vmul.f32 %v4169_v2, %v11534_v0  ;;  %v11709_v38 = vsel %vm5611_vm4, 0, %v5610_v21  ;;  %vm4832_vm8 = vcmp.lt.s32.totalorder %v11675_v45, 3 }
 0x4bb   : > { %v11712_v53 = vshll.u32 %v4806_v55, 8  ;;  %vm4831_vm5 = vcmp.lt.s32.totalorder %v11675_v45, 2  ;;  %v4840_v7 = vsel %vm4832_vm8, %v11687_v56, %v4839_v28  ;;  %v4842_v26 = vsel %vm4830_vm14, %v11680_v62, %v11687_v56 }
 0x4bc   : > { %v4843_v0 = vsel %vm4833_vm11, %v4829_v4, 1326507024  ;;  %v4314_v3 = vadd.f32 -0.4999988, %v4313_v59  ;;  %v4322_v50 = vmul.f32 %v4321_v17, %v11605_v43  ;;  %v4841_v29 = vsel %vm4831_vm5, %v4838_v48, %v4840_v7  ;;  %v12939_v4 = vld [vmem:[#allocation30_spill] sm:$0xff] }
 0x4bd   : > { %v4844_v40 = vsel %vm4832_vm8, %v4826_v51, %v4843_v0  ;;  %v11729_v21 = vand.u32 3, %v4309_v30  ;;  %v4459_v35 = vsel %vm4338_vm2, %v4458_v18, %v4457_v61  ;;  %v4748_v14 = vsub.s32 0, %v11698_v36 }
 0x4be   : > { %v4845_v41 = vsel %vm4831_vm5, %v4842_v26, %v4844_v40  ;;  %v4604_v24 = vsub.s32 4294967266, %v11709_v38  ;;  %vm4747_vm12 = vcmp.lt.s32.totalorder %v11698_v36, 0  ;;  %v4847_v58 = vand.u32 65535, %v11712_v53 }
 0x4bf   : > { %v4871_v23 = vand.u32 65535, %v4841_v29  ;;  %v4848_v16 = vshrl.u32 %v11712_v53, 16  ;;  %v4849_v20 = vand.u32 65535, %v4845_v41  ;;  %v4850_v51 = vshrl.u32 %v4845_v41, 16 }
 0x4c0   : > { %v4872_v60 = vshrl.u32 %v4841_v29, 16  ;;  %v11740_v2 = vadd.f32 1.0, %v4161_v52  ;;  %v11744_v30 = vmul.f32 %v4314_v3, %v11605_v43  ;;  %v4323_v55 = vadd.f32 1.0, %v4322_v50 }
 0x4c1   : > { %v4460_v59 = vsub.s32 4, %v12939_v4  ;;  %v4749_v17 = vsel %vm4747_vm12, %v4748_v14, %v11698_v36  ;;  %v4852_v25 = vmul.u32 %v4850_v51, %v4847_v58  ;;  %v4853_v18 = vmul.u32 %v4849_v20, %v4848_v16 }
 0x4c2   : > { %v11751_v48 = vsel %vm11694_vm6, %v12901_v22, %v4459_v35  ;;  %v4584_v52 = vadd.s32 %v11453_v44, %v11438_v32  ;;  %v4874_v28 = vmul.u32 %v4872_v60, %v4847_v58  ;;  %v4875_v7 = vmul.u32 %v4871_v23, %v4848_v16 }
 0x4c3   : > { %v4600_v43 = vsub.s32 32, %v11709_v38  ;;  %v4605_v26 = vadd.s32 127, %v4604_v24  ;;  %v4851_v0 = vmul.u32 %v4849_v20, %v4847_v58  ;;  %v4855_v3 = vshll.u32 %v4852_v25, 16 }
 0x4c4   : > { %v4750_v50 = vclz %v4749_v17  ;;  %v4854_v29 = vmul.u32 %v4850_v51, %v4848_v16  ;;  %v4873_v40 = vmul.u32 %v4871_v23, %v4847_v58  ;;  %v4877_v14 = vshll.u32 %v4874_v28, 16 }
 0x4c5   : > { %v4857_v41 = vshll.u32 %v4853_v18, 16  ;;  %vm4859_vm9 = vc.u32 %v4851_v0, %v4855_v3  ;;  %v4861_v5 = vadd.s32 %v4855_v3, %v4851_v0  ;;  %v4876_v61 = vmul.u32 %v4872_v60, %v4848_v16  ;;  %v12940_v3 = vld [vmem:[#allocation36_spill] sm:$0xff] }
 0x4c6   : > { %v4860_v35 = vsel %vm4859_vm9, 1, %v12615_v34  ;;  %v4879_v63 = vshll.u32 %v4875_v7, 16  ;;  %vm4881_vm1 = vc.u32 %v4873_v40, %v4877_v14  ;;  %v4883_v32 = vadd.s32 %v4877_v14, %v4873_v40 }
 0x4c7   : > { %v4606_v44 = vshll.u32 %v4605_v26, 23  ;;  %v4862_v37 = vadd.s32 %v4860_v35, %v4854_v29  ;;  %vm4863_vm15 = vc.u32 %v4861_v5, %v4857_v41  ;;  %v4882_v24 = vsel %vm4881_vm1, 1, %v12615_v34 }
 0x4c8   : > { %vm4174_vm0 = vcmp.eq.s32.totalorder %v11650_v10, 0  ;;  %v4835_v58 = vsel %vm4833_vm11, %v11687_v56, 2102212464  ;;  %v4864_v23 = vsel %vm4863_vm15, 1, %v12615_v34  ;;  %v4884_v20 = vadd.s32 %v4882_v24, %v4876_v61 }
 0x4c9   : > { %vm4885_vm10 = vc.u32 %v4883_v32, %v4879_v63  ;;  %v4814_v16 = vshrl.u32 %v12623_v27, %v11636_v1  ;;  %v4856_v51 = vshrl.u32 %v4852_v25, 16  ;;  %v4866_v60 = vadd.s32 %v4864_v23, %v4862_v37  ;;  %v12941_v1 = vld [vmem:[#allocation18_spill] sm:$0xff] }
 0x4ca   : > { %v4886_v17 = vsel %vm4885_vm10, 1, %v12615_v34  ;;  %v5613_v5 = vadd.s32 4294967294, %v4750_v50  ;;  %v4878_v26 = vshrl.u32 %v4874_v28, 16  ;;  %v4955_v29 = vand.u32 2139095040, %v12940_v3 }
 0x4cb   : > { %v4888_v0 = vadd.s32 %v4886_v17, %v4884_v20  ;;  %v4834_v56 = vsel %vm4830_vm14, %v4814_v16, %v11678_v54  ;;  %v4836_v61 = vsel %vm4832_vm8, %v11680_v62, %v4835_v58  ;;  %v4858_v40 = vshrl.u32 %v4853_v18, 16 }
 0x4cc   : > { %v4867_v14 = vadd.s32 %v4866_v60, %v4856_v51  ;;  %vm4017_vm13 = vweird.f32 %v12941_v1  ;;  %vm4177_vm3 = vcmp.eq.s32.totalorder %v11650_v10, 2  ;;  %v4602_v37 = vshrl.u32 %v4584_v52, %v4600_v43 }
 0x4cd   : > { %v4880_v25 = vshrl.u32 %v4875_v7, 16  ;;  %v4889_v28 = vadd.s32 %v4888_v0, %v4878_v26  ;;  %v4956_v50 = vshrl.u32 %v4955_v29, 23  ;;  %vm4173_vm7 = vcmp.lt.s32.totalorder %v11650_v10, 2 }
 0x4ce   : > { %v4601_v41 = vshll.u32 %v11592_v46, %v11709_v38  ;;  %v4607_v54 = vor.u32 4788187, %v4606_v44  ;;  %v11778_v35 = vadd.s32 %v4867_v14, %v4858_v40  ;;  %v11780_v24 = vadd.s32 %v4883_v32, %v4879_v63 }
 0x4cf   : > { %vm5614_vm4 = vcmp.lt.s32.totalorder %v5613_v5, 0  ;;  %v4837_v62 = vsel %vm4831_vm5, %v4834_v56, %v4836_v61  ;;  %v4890_v18 = vadd.s32 %v4889_v28, %v4880_v25  ;;  %v5618_v58 = vadd.s32 4294967169, %v4956_v50  ;;  %v12946_v50 = vld [vmem:[#allocation37_spill] sm:$0xff] }
 0x4d0   : > { %v11785_v52 = vmul.f32 %v4323_v55, %v11586_v6  ;;  %v4461_v7 = vsel %vm4338_vm2, %v4460_v59, %v12939_v4  ;;  %v11792_v46 = vmul.f32 %v11751_v48, %v11751_v48  ;;  %vm4893_vm14 = vc.u32 %v11778_v35, %v11780_v24 }
 0x4d1   : > { %v4178_v63 = vxor.u32 2147483648, %v11740_v2  ;;  %v4603_v45 = vor.u32 %v4602_v37, %v4601_v41  ;;  %v4894_v38 = vadd.s32 1, %v4890_v18  ;;  %v4962_v43 = vadd.s32 1, %v5618_v58 }
 0x4d2   : > { %v12942_v32 = vxor.u32 2147483648, %v11707_v12  ;;  %v11803_v55 = vadd.f32 1.0, %v11744_v30  ;;  %v11805_v4 = vsel %vm5614_vm4, 0, %v5613_v5  ;;  %v4891_v59 = vmul.u32 %v11712_v53, %v4837_v62 }
 0x4d3   : > { %v4463_v44 = vsel %vm11694_vm6, 0, %v4461_v7  ;;  %v4608_v23 = vand.u32 2147483647, %v4607_v54  ;;  %v4895_v20 = vsel %vm4893_vm14, %v4894_v38, %v4890_v18  ;;  %vm4963_vm2 = vcmp.gt.s32.totalorder %v4962_v43, 0 }
 0x4d4   : > { %v4176_v6 = vsel %vm4174_vm0, %v11740_v2, %v12942_v32  ;;  %v4329_v16 = vxor.u32 2147483648, %v11785_v52  ;;  %v4465_v51 = vmul.f32 -0.001358992, %v11792_v46  ;;  %v4896_v60 = vadd.s32 %v4895_v20, %v4891_v59 }
 0x4d5   : > { %v4964_v17 = vsel %vm4963_vm2, %v4962_v43, 0  ;;  %v4610_v2 = vcvt.s32.f32 %v4603_v45  ;;  %v4758_v30 = vsub.s32 4294967266, %v11805_v4  ;;  %v12567_v5 = vand.u32 2147483647, %v12940_v3 }
 0x4d6   : > { %v4966_v26 = vand.u32 31, %v4964_v17  ;;  %v11817_v31 = vsel %vm4017_vm13, nan, %v11644_v33  ;;  %v4179_v53 = vsel %vm4177_vm3, %v4178_v63, %v11707_v12  ;;  %v4472_v0 = vmul.f32 -0.00019511016, %v11792_v46  ;;  %v12944_v12 = vld [vmem:[#allocation35_spill] sm:$0xff] }
 0x4d7   : > { %12943 = vst [vmem:[#allocation28_spill] sm:$0xff] %v11817_v31  ;;  %v4897_v29 = vadd.s32 536870912, %v4896_v60  ;;  %v11825_v56 = vsel %vm4173_vm7, %v4176_v6, %v4179_v53  ;;  %vm4328_vm11 = vcmp.eq.s32.totalorder %v11729_v21, 0  ;;  %v4611_v61 = vmul.f32 %v4610_v2, %v4608_v23 }
 0x4d8   : > { %v11828_v40 = vsub.s32 32, %v4966_v26  ;;  %v11831_v14 = vsel %vm4328_vm11, %v11803_v55, %v4329_v16  ;;  %v11834_v1 = vand.u32 3, %v4463_v44  ;;  %vm4492_vm6 = vcmp.lt.s32.totalorder %v12944_v12, 0 }
 0x4d9   : > { %v11837_v37 = vshrl.u32 %v4897_v29, 30  ;;  %v4466_v25 = vadd.f32 0.041655596, %v4465_v51  ;;  %v4759_v10 = vadd.s32 127, %v4758_v30  ;;  %v4959_v28 = vand.u32 8388607, %v12567_v5 }
 0x4da   : > { %v5109_v41 = vand.u32 2139095040, %v12946_v50  ;;  %v4473_v54 = vadd.f32 0.008332121, %v4472_v0  ;;  %v4614_v62 = vsub.s32 4, %v11559_v57  ;;  %v4970_v58 = vshrl.u32 %v12724_v42, %v11828_v40 }
 0x4db   : > { %12945 = vst [vmem:[#allocation17_spill] sm:$0xff] %v11837_v37  ;;  %v4899_v18 = vshll.u32 %v11837_v37, 30  ;;  %v4612_v7 = vxor.u32 2147483648, %v4611_v61  ;;  %v4738_v63 = vadd.s32 %v11607_v8, %v11597_v15  ;;  %v4754_v45 = vsub.s32 32, %v11805_v4 }
 0x4dc   : > { %v4973_v38 = vshrl.u32 %v12855_v19, %v11828_v40  ;;  %v4969_v32 = vshll.u32 %v12623_v27, %v4966_v26  ;;  %v4976_v6 = vshrl.u32 %v12908_v47, %v11828_v40  ;;  %v4979_v59 = vshrl.u32 %v12722_v13, %v11828_v40 }
 0x4dd   : > { %v11851_v43 = vsub.s32 %v4896_v60, %v4899_v18  ;;  %v4760_v44 = vshll.u32 %v4759_v10, 23  ;;  %v4960_v23 = vor.u32 8388608, %v4959_v28  ;;  %v4972_v20 = vshll.u32 %v12724_v42, %v4966_v26 }
 0x4de   : > { %v5110_v15 = vshrl.u32 %v5109_v41, 23  ;;  %v11859_v8 = vshrl.u32 %v4964_v17, 5  ;;  %v4971_v16 = vor.u32 %v4970_v58, %v4969_v32  ;;  %v4975_v51 = vshll.u32 %v12855_v19, %v4966_v26 }
 0x4df   : > { %v4978_v60 = vshll.u32 %v12908_v47, %v4966_v26  ;;  %v4902_v2 = vsub.s32 0, %v11851_v43  ;;  %v11864_v30 = vor.u32 %v4973_v38, %v4972_v20  ;;  %v4981_v53 = vshll.u32 %v12722_v13, %v4966_v26 }
 0x4e0   : > { %v4982_v0 = vshrl.u32 %v12881_v49, %v11828_v40  ;;  %v11870_v29 = vmul.f32 %v4466_v25, %v11792_v46  ;;  %v12947_v17 = vand.u32 2147483647, %v12944_v12  ;;  %vm4901_vm5 = vcmp.lt.s32.totalorder %v11851_v43, 0 }
 0x4e1   : > { %v4977_v28 = vor.u32 %v4976_v6, %v4975_v51  ;;  %v4980_v41 = vor.u32 %v4979_v59, %v4978_v60  ;;  %v11880_v18 = vmul.f32 %v4473_v54, %v11792_v46  ;;  %v4613_v26 = vsel %vm4492_vm6, %v4612_v7, %v4611_v61 }
 0x4e2   : > { %vm11874_vm8 = vcmp.le.f32.partialorder %v12947_v17, 0.7853982  ;;  %v4756_v58 = vshrl.u32 %v4738_v63, %v4754_v45  ;;  %v4983_v38 = vor.u32 %v4982_v0, %v4981_v53  ;;  %v4755_v25 = vshll.u32 %v11698_v36, %v11805_v4 }
 0x4e3   : > { %v4761_v32 = vor.u32 4788187, %v4760_v44  ;;  %vm4984_vm12 = vcmp.lt.s32.totalorder %v11859_v8, 1  ;;  %v5621_v20 = vadd.s32 4294967169, %v5110_v15  ;;  %v4903_v17 = vsel %vm4901_vm5, %v4902_v2, %v11851_v43 }
 0x4e4   : > { %vm4987_vm9 = vcmp.lt.s32.totalorder %v11859_v8, 4  ;;  %v4992_v54 = vsel %vm4984_vm12, %v4971_v16, %v11864_v30  ;;  %v11892_v6 = vshll.u32 %v4960_v23, 8  ;;  %vm4986_vm1 = vcmp.lt.s32.totalorder %v11859_v8, 3 }
 0x4e5   : > { %v4993_v61 = vsel %vm4987_vm9, %v4980_v41, 920167782  ;;  %v4996_v36 = vsel %vm4984_vm12, %v11864_v30, %v4977_v28  ;;  %v4997_v4 = vsel %vm4987_vm9, %v4983_v38, 1326507024  ;;  %v4757_v7 = vor.u32 %v4756_v58, %v4755_v25 }
 0x4e6   : > { %vm4985_vm15 = vcmp.lt.s32.totalorder %v11859_v8, 2  ;;  %v4994_v63 = vsel %vm4986_vm1, %v4977_v28, %v4993_v61  ;;  %v4998_v45 = vsel %vm4986_vm1, %v4980_v41, %v4997_v4  ;;  %v4762_v59 = vand.u32 2147483647, %v4761_v32 }
 0x4e7   : > { %v4995_v44 = vsel %vm4985_vm15, %v4992_v54, %v4994_v63  ;;  %v4999_v23 = vsel %vm4985_vm15, %v4996_v36, %v4998_v45  ;;  %v5116_v15 = vadd.s32 1, %v5621_v20  ;;  %v4904_v51 = vclz %v4903_v17 }
 0x4e8   : > { %v5001_v60 = vand.u32 65535, %v11892_v6  ;;  %v5003_v2 = vand.u32 65535, %v4999_v23  ;;  %v12568_v53 = vand.u32 2147483647, %v12946_v50  ;;  %v5002_v0 = vshrl.u32 %v11892_v6, 16 }
 0x4e9   : > { %v5004_v58 = vshrl.u32 %v4999_v23, 16  ;;  %v5025_v38 = vand.u32 65535, %v4995_v44  ;;  %v5026_v25 = vshrl.u32 %v4995_v44, 16  ;;  %v11917_v41 = vsel %vm4492_vm6, %v4614_v62, %v11559_v57 }
 0x4ea   : > { %v11922_v32 = vsel %vm11874_vm8, %v12944_v12, %v4613_v26  ;;  %v4764_v20 = vcvt.s32.f32 %v4757_v7  ;;  %v4968_v17 = vshrl.u32 %v12623_v27, %v11828_v40  ;;  %v5007_v61 = vmul.u32 %v5003_v2, %v5002_v0 }
 0x4eb   : > { %v5006_v54 = vmul.u32 %v5004_v58, %v5001_v60  ;;  %v5028_v36 = vmul.u32 %v5026_v25, %v5001_v60  ;;  %vm5117_vm0 = vcmp.gt.s32.totalorder %v5116_v15, 0  ;;  %v5616_v63 = vadd.s32 4294967294, %v4904_v51 }
 0x4ec   : > { %v11926_v4 = vmul.f32 %v4764_v20, %v4762_v59  ;;  %v4988_v57 = vsel %vm4984_vm12, %v4968_v17, %v4971_v16  ;;  %v11932_v62 = vand.u32 8388607, %v12568_v53  ;;  %v4989_v26 = vsel %vm4987_vm9, %v4977_v28, 2102212464 }
 0x4ed   : > { %v5005_v7 = vmul.u32 %v5003_v2, %v5001_v60  ;;  %v5009_v45 = vshll.u32 %v5006_v54, 16  ;;  %v5029_v40 = vmul.u32 %v5025_v38, %v5002_v0  ;;  %v5008_v44 = vmul.u32 %v5004_v58, %v5002_v0 }
 0x4ee   : > { %v5027_v23 = vmul.u32 %v5025_v38, %v5001_v60  ;;  %v5031_v33 = vshll.u32 %v5028_v36, 16  ;;  %v5118_v5 = vsel %vm5117_vm0, %v5116_v15, 0  ;;  %v5011_v59 = vshll.u32 %v5007_v61, 16 }
 0x4ef   : > { %vm5013_vm10 = vc.u32 %v5005_v7, %v5009_v45  ;;  %v5015_v51 = vadd.s32 %v5009_v45, %v5005_v7  ;;  %v5030_v20 = vmul.u32 %v5026_v25, %v5002_v0  ;;  %v5033_v17 = vshll.u32 %v5029_v40, 16 }
 0x4f0   : > { %v5014_v16 = vsel %vm5013_vm10, 1, %v12615_v34  ;;  %vm5035_vm13 = vc.u32 %v5027_v23, %v5031_v33  ;;  %v5037_v53 = vadd.s32 %v5031_v33, %v5027_v23  ;;  %v4990_v28 = vsel %vm4986_vm1, %v11864_v30, %v4989_v26 }
 0x4f1   : > { %v5016_v2 = vadd.s32 %v5014_v16, %v5008_v44  ;;  %vm5017_vm3 = vc.u32 %v5015_v51, %v5011_v59  ;;  %v5036_v58 = vsel %vm5035_vm13, 1, %v12615_v34  ;;  %vm5617_vm7 = vcmp.lt.s32.totalorder %v5616_v63, 0  ;;  %v12950_v44 = vld [vmem:[#allocation19_spill] sm:$0xff] }
 0x4f2   : > { %v5018_v15 = vsel %vm5017_vm3, 1, %v12615_v34  ;;  %v5038_v60 = vadd.s32 %v5036_v58, %v5030_v20  ;;  %vm5039_vm4 = vc.u32 %v5037_v53, %v5033_v17  ;;  %v5010_v38 = vshrl.u32 %v5006_v54, 16 }
 0x4f3   : > { %v5020_v0 = vadd.s32 %v5018_v15, %v5016_v2  ;;  %v5040_v25 = vsel %vm5039_vm4, 1, %v12615_v34  ;;  %v5120_v7 = vand.u32 31, %v5118_v5  ;;  %v11944_v33 = vadd.f32 -0.4999988, %v11870_v29 }
 0x4f4   : > { %v4991_v30 = vsel %vm4985_vm15, %v4988_v57, %v4990_v28  ;;  %v5032_v26 = vshrl.u32 %v5028_v36, 16  ;;  %v5042_v45 = vadd.s32 %v5040_v25, %v5038_v60  ;;  %vm4646_vm14 = vcmp.lt.s32.totalorder %v12950_v44, 0 }
 0x4f5   : > { %v11949_v23 = vsel %vm5617_vm7, 0, %v5616_v63  ;;  %v5012_v59 = vshrl.u32 %v5007_v61, 16  ;;  %v5021_v51 = vadd.s32 %v5020_v0, %v5010_v38  ;;  %v11951_v20 = vsub.s32 32, %v5120_v7 }
 0x4f6   : > { %v11955_v54 = vmul.f32 %v11922_v32, %v11922_v32  ;;  %v4766_v29 = vxor.u32 2147483648, %v11926_v4  ;;  %v5034_v16 = vshrl.u32 %v5029_v40, 16  ;;  %v5043_v2 = vadd.s32 %v5042_v45, %v5032_v26 }
 0x4f7   : > { %v11958_v8 = vadd.s32 %v5021_v51, %v5012_v59  ;;  %v11960_v36 = vadd.s32 %v5037_v53, %v5033_v17  ;;  %v5045_v57 = vmul.u32 %v11892_v6, %v4991_v30  ;;  %v5114_v63 = vor.u32 8388608, %v11932_v62 }
 0x4f8   : > { %v4912_v61 = vsub.s32 4294967266, %v11949_v23  ;;  %v5044_v28 = vadd.s32 %v5043_v2, %v5034_v16  ;;  %v5127_v58 = vshrl.u32 %v12855_v19, %v11951_v20  ;;  %v5130_v15 = vshrl.u32 %v12908_v47, %v11951_v20 }
 0x4f9   : > { %vm5047_vm2 = vc.u32 %v11958_v8, %v11960_v36  ;;  %v5124_v53 = vshrl.u32 %v12724_v42, %v11951_v20  ;;  %v5132_v40 = vshll.u32 %v12908_v47, %v5120_v7  ;;  %v5133_v6 = vshrl.u32 %v12722_v13, %v11951_v20 }
 0x4fa   : > { %v12951_v62 = vand.u32 2147483647, %v12950_v44  ;;  %v12952_v17 = vmov 0  ;;  %v5048_v60 = vadd.s32 1, %v5044_v28  ;;  %v11982_v38 = vshrl.u32 %v5118_v5, 5 }
 0x4fb   : > { %v5126_v0 = vshll.u32 %v12724_v42, %v5120_v7  ;;  %v5129_v25 = vshll.u32 %v12855_v19, %v5120_v7  ;;  %v5123_v30 = vshll.u32 %v12623_v27, %v5120_v7  ;;  %v5134_v26 = vor.u32 %v5133_v6, %v5132_v40 }
 0x4fc   : > { %vm11978_vm11 = vcmp.le.f32.partialorder %v12951_v62, 0.7853982  ;;  %v5135_v47 = vshll.u32 %v12722_v13, %v5120_v7  ;;  %v5136_v45 = vshrl.u32 %v12881_v49, %v11951_v20  ;;  %v4913_v59 = vadd.s32 127, %v4912_v61 }
 0x4fd   : > { %v12953_v17 = vsel %vm11978_vm11, 4294967295, %v12952_v17  ;;  %v5049_v51 = vsel %vm5047_vm2, %v5048_v60, %v5044_v28  ;;  %v11990_v16 = vor.u32 %v5127_v58, %v5126_v0  ;;  %v11992_v2 = vor.u32 %v5130_v15, %v5129_v25 }
 0x4fe   : > { %12954 = vst [vmem:[#allocation12_spill] sm:$0xff] %v12953_v17  ;;  %v4619_v5 = vmul.f32 -0.001358992, %v11955_v54  ;;  %v5050_v62 = vadd.s32 %v5049_v51, %v5045_v57  ;;  %v11995_v42 = vor.u32 %v5124_v53, %v5123_v30  ;;  %v5137_v19 = vor.u32 %v5136_v45, %v5135_v47 }
 0x4ff   : > { %v4626_v31 = vmul.f32 -0.00019511016, %v11955_v54  ;;  %v4767_v13 = vsel %vm4646_vm14, %v4766_v29, %v11926_v4  ;;  %v4908_v49 = vsub.s32 32, %v11949_v23  ;;  %vm5141_vm6 = vcmp.lt.s32.totalorder %v11982_v38, 4 }
 0x500   : > { %v4892_v7 = vadd.s32 %v11780_v24, %v11778_v35  ;;  %v5051_v61 = vadd.s32 536870912, %v5050_v62  ;;  %vm5138_vm5 = vcmp.lt.s32.totalorder %v11982_v38, 1  ;;  %v5147_v57 = vsel %vm5141_vm6, %v5134_v26, 920167782 }
 0x501   : > { %v4914_v28 = vshll.u32 %v4913_v59, 23  ;;  %vm5140_vm12 = vcmp.lt.s32.totalorder %v11982_v38, 3  ;;  %v5150_v4 = vsel %vm5138_vm5, %v11990_v16, %v11992_v2  ;;  %v12013_v29 = vshll.u32 %v5114_v63, 8 }
 0x502   : > { %v12015_v58 = vshrl.u32 %v5051_v61, 30  ;;  %v5146_v35 = vsel %vm5138_vm5, %v11995_v42, %v11990_v16  ;;  %v5148_v24 = vsel %vm5140_vm12, %v11992_v2, %v5147_v57  ;;  %v5151_v15 = vsel %vm5141_vm6, %v5137_v19, 1326507024 }
 0x503   : > { %v4627_v53 = vadd.f32 0.008332121, %v4626_v31  ;;  %v4910_v40 = vshrl.u32 %v4892_v7, %v4908_v49  ;;  %vm5139_vm9 = vcmp.lt.s32.totalorder %v11982_v38, 2  ;;  %v5152_v63 = vsel %vm5140_vm12, %v5134_v26, %v5151_v15 }
 0x504   : > { %12955 = vst [vmem:[#allocation8_spill] sm:$0xff] %v12015_v58  ;;  %v4475_v6 = vadd.f32 -0.16666654, %v11880_v18  ;;  %v12033_v60 = vsel %vm11978_vm11, %v12950_v44, %v4767_v13  ;;  %v5053_v0 = vshll.u32 %v12015_v58, 30  ;;  %v5153_v25 = vsel %vm5139_vm9, %v5150_v4, %v5152_v63 }
 0x505   : > { %12956 = vst [vmem:[#allocation29_spill] sm:$0xff] %v12033_v60  ;;  %v4909_v31 = vshll.u32 %v11851_v43, %v11949_v23  ;;  %v5149_v30 = vsel %vm5139_vm9, %v5146_v35, %v5148_v24  ;;  %v5157_v47 = vand.u32 65535, %v5153_v25  ;;  %v5158_v26 = vshrl.u32 %v5153_v25, 16 }
 0x506   : > { %v4620_v45 = vadd.f32 0.041655596, %v4619_v5  ;;  %v4915_v18 = vor.u32 4788187, %v4914_v28  ;;  %v5054_v59 = vsub.s32 %v5050_v62, %v5053_v0  ;;  %v5155_v51 = vand.u32 65535, %v12013_v29 }
 0x507   : > { %v4628_v19 = vmul.f32 %v4627_v53, %v11955_v54  ;;  %v12046_v13 = vmul.f32 %v12033_v60, %v12033_v60  ;;  %v4911_v49 = vor.u32 %v4910_v40, %v4909_v31  ;;  %v5156_v7 = vshrl.u32 %v12013_v29, 16 }
 0x508   : > { %vm5055_vm1 = vcmp.lt.s32.totalorder %v5054_v59, 0  ;;  %v5056_v43 = vsub.s32 0, %v5054_v59  ;;  %v5160_v23 = vmul.u32 %v5158_v26, %v5155_v51  ;;  %v5180_v61 = vshrl.u32 %v5149_v30, 16 }
 0x509   : > { %v12051_v5 = vmul.f32 %v11944_v33, %v11792_v46  ;;  %v12054_v62 = vmul.f32 %v4475_v6, %v11792_v46  ;;  %v5161_v28 = vmul.u32 %v5157_v47, %v5156_v7  ;;  %v12060_v4 = vmul.f32 %v4620_v45, %v11955_v54 }
 0x50a   : > { %v4916_v35 = vand.u32 2147483647, %v4915_v18  ;;  %v5057_v24 = vsel %vm5055_vm1, %v5056_v43, %v5054_v59  ;;  %v5179_v15 = vand.u32 65535, %v5149_v30  ;;  %v4629_v53 = vadd.f32 -0.16666654, %v4628_v19 }
 0x50b   : > { %v5058_v40 = vclz %v5057_v24  ;;  %v5159_v63 = vmul.u32 %v5157_v47, %v5155_v51  ;;  %v5163_v0 = vshll.u32 %v5160_v23, 16  ;;  %v4780_v33 = vmul.f32 -0.00019511016, %v12046_v13 }
 0x50c   : > { %v4918_v25 = vcvt.s32.f32 %v4911_v49  ;;  %v5162_v46 = vmul.u32 %v5158_v26, %v5156_v7  ;;  %v5182_v6 = vmul.u32 %v5180_v61, %v5155_v51  ;;  %v5165_v50 = vshll.u32 %v5161_v28, 16 }
 0x50d   : > { %v5619_v31 = vadd.s32 4294967294, %v5058_v40  ;;  %vm5167_vm15 = vc.u32 %v5159_v63, %v5163_v0  ;;  %v5169_v57 = vadd.s32 %v5163_v0, %v5159_v63  ;;  %v5183_v12 = vmul.u32 %v5179_v15, %v5156_v7 }
 0x50e   : > { %v4919_v58 = vmul.f32 %v4918_v25, %v4916_v35  ;;  %v5168_v45 = vsel %vm5167_vm15, 1, %v12615_v34  ;;  %v5185_v18 = vshll.u32 %v5182_v6, 16  ;;  %v5046_v30 = vadd.s32 %v11960_v36, %v11958_v8 }
 0x50f   : > { %vm5620_vm0 = vcmp.lt.s32.totalorder %v5619_v31, 0  ;;  %v5170_v47 = vadd.s32 %v5168_v45, %v5162_v46  ;;  %vm5171_vm10 = vc.u32 %v5169_v57, %v5165_v50  ;;  %v5164_v43 = vshrl.u32 %v5160_v23, 16 }
 0x510   : > { %v5061_v19 = vsel %vm5620_vm0, 0, %v5619_v31  ;;  %v5172_v26 = vsel %vm5171_vm10, 1, %v12615_v34  ;;  %v5181_v49 = vmul.u32 %v5179_v15, %v5155_v51  ;;  %v5184_v63 = vmul.u32 %v5180_v61, %v5156_v7 }
 0x511   : > { %v5062_v24 = vsub.s32 32, %v5061_v19  ;;  %v5066_v40 = vsub.s32 4294967266, %v5061_v19  ;;  %v5174_v60 = vadd.s32 %v5172_v26, %v5170_v47  ;;  %v5063_v35 = vshll.u32 %v5054_v59, %v5061_v19 }
 0x512   : > { %v5187_v0 = vshll.u32 %v5183_v12, 16  ;;  %vm5189_vm13 = vc.u32 %v5181_v49, %v5185_v18  ;;  %v5191_v25 = vadd.s32 %v5185_v18, %v5181_v49  ;;  %v5122_v50 = vshrl.u32 %v12623_v27, %v11951_v20 }
 0x513   : > { %v5064_v37 = vshrl.u32 %v5046_v30, %v5062_v24  ;;  %v5067_v17 = vadd.s32 127, %v5066_v40  ;;  %v5175_v22 = vadd.s32 %v5174_v60, %v5164_v43  ;;  %v5190_v8 = vsel %vm5189_vm13, 1, %v12615_v34  ;;  %v12100_v43 = vpop.permute.xlu1 %5278 }
 0x514   : > { %v5143_v36 = vsel %vm5141_vm6, %v11992_v2, 2102212464  ;;  %v5192_v51 = vadd.s32 %v5190_v8, %v5184_v63  ;;  %vm5193_vm3 = vc.u32 %v5191_v25, %v5187_v0  ;;  %v5166_v59 = vshrl.u32 %v5161_v28, 16 }
 0x515   : > { %v5065_v23 = vor.u32 %v5064_v37, %v5063_v35  ;;  %v5068_v7 = vshll.u32 %v5067_v17, 23  ;;  %v5194_v61 = vsel %vm5193_vm3, 1, %v12615_v34  ;;  %v4630_v57 = vmul.f32 %v4629_v53, %v11955_v54 }
 0x516   : > { %v4920_v15 = vxor.u32 2147483648, %v4919_v58  ;;  %v5186_v60 = vshrl.u32 %v5182_v6, 16  ;;  %v5196_v46 = vadd.s32 %v5194_v61, %v5192_v51  ;;  %v5142_v27 = vsel %vm5138_vm5, %v5122_v50, %v11995_v42 }
 0x517   : > { %v5069_v31 = vor.u32 4788187, %v5068_v7  ;;  %v5144_v20 = vsel %vm5140_vm12, %v11990_v16, %v5143_v36  ;;  %v12081_v2 = vadd.s32 %v5175_v22, %v5166_v59  ;;  %vm4171_vm7 = vweird.f32 %v12921_v39 }
 0x518   : > { %v4773_v34 = vmul.f32 -0.001358992, %v12046_v13  ;;  %v4781_v37 = vadd.f32 0.008332121, %v4780_v33  ;;  %v5188_v17 = vshrl.u32 %v5183_v12, 16  ;;  %v5197_v28 = vadd.s32 %v5196_v46, %v5186_v60 }
 0x519   : > { %vm4331_vm4 = vcmp.eq.s32.totalorder %v11729_v21, 2  ;;  %v4477_v53 = vadd.f32 1.0, %v12054_v62  ;;  %v5070_v6 = vand.u32 2147483647, %v5069_v31  ;;  %v5072_v45 = vcvt.s32.f32 %v5065_v23 }
 0x51a   : > { %v12087_v42 = vadd.s32 %v5191_v25, %v5187_v0  ;;  %vm4327_vm2 = vcmp.lt.s32.totalorder %v11729_v21, 2  ;;  %v4470_v22 = vadd.f32 1.0, %v12051_v5  ;;  %vm4800_vm6 = vcmp.lt.s32.totalorder %v12934_v11, 0 }
 0x51b   : > { %v5145_v16 = vsel %vm5139_vm9, %v5142_v27, %v5144_v20  ;;  %v5198_v33 = vadd.s32 %v5197_v28, %v5188_v17  ;;  %v4622_v12 = vadd.f32 -0.4999988, %v12060_v4  ;;  %v4921_v18 = vsel %vm4800_vm6, %v4920_v15, %v4919_v58  ;;  %v12165_v20 = vpop.permute.xlu2 %5283  ;;  %v12173_v17 = vpop.permute.xlu0 %5288 }
 0x51c   : > { %v5073_v62 = vmul.f32 %v5072_v45, %v5070_v6  ;;  %vm5201_vm5 = vc.u32 %v12081_v2, %v12087_v42  ;;  %v4631_v30 = vadd.f32 1.0, %v4630_v57  ;;  %v4774_v47 = vadd.f32 0.041655596, %v4773_v34  ;;  %v12966_v34 = vld [vmem:[#allocation34_spill] sm:$0xff] }
 0x51d   : > { %v4782_v19 = vmul.f32 %v4781_v37, %v12046_v13  ;;  %v5202_v5 = vadd.s32 1, %v5198_v33  ;;  %v4478_v38 = vmul.f32 %v4477_v53, %v11751_v48  ;;  %v12957_v26 = vand.u32 2147483647, %v12934_v11  ;;  %v12178_v53 = vpop.permute.xlu1 %5293  ;;  %v12972_v45 = vld [vmem:[#allocation6_spill] sm:$0xff] }
 0x51e   : > { %v5074_v58 = vxor.u32 2147483648, %v5073_v62  ;;  %v5199_v49 = vmul.u32 %v12013_v29, %v5145_v16  ;;  %v4768_v24 = vsub.s32 4, %v11656_v9  ;;  %vm4954_vm9 = vcmp.lt.s32.totalorder %v12940_v3, 0 }
 0x51f   : > { %vm12105_vm12 = vcmp.le.f32.partialorder %v12957_v26, 0.7853982  ;;  %v5203_v63 = vsel %vm5201_vm5, %v5202_v5, %v5198_v33  ;;  %v4623_v48 = vmul.f32 %v4622_v12, %v11955_v54  ;;  %v12960_v35 = vand.u32 2147483647, %v12940_v3 }
 0x520   : > { %v12114_v40 = vsel %vm12105_vm12, %v12934_v11, %v4921_v18  ;;  %v5075_v29 = vsel %vm4954_vm9, %v5074_v58, %v5073_v62  ;;  %v5204_v25 = vadd.s32 %v5203_v63, %v5199_v49  ;;  %v4632_v8 = vmul.f32 %v4631_v30, %v11922_v32 }
 0x521   : > { %vm12120_vm1 = vcmp.le.f32.partialorder %v12960_v35, 0.7853982  ;;  %v4775_v50 = vmul.f32 %v4774_v47, %v12046_v13  ;;  %v4783_v36 = vadd.f32 -0.16666654, %v4782_v19  ;;  %v12136_v54 = vsel %vm4171_vm7, nan, %v11825_v56  ;;  %v12968_v47 = vld [vmem:[#allocation17_spill] sm:$0xff] }
 0x522   : > { %v12131_v51 = vsel %vm12120_vm1, %v12940_v3, %v5075_v29  ;;  %v12140_v23 = vmul.f32 %v12114_v40, %v12114_v40  ;;  %v5205_v7 = vadd.s32 536870912, %v5204_v25  ;;  %v12963_v59 = vxor.u32 2147483648, %v11803_v55  ;;  %v12969_v29 = vld [vmem:[#allocation29_spill] sm:$0xff] }
 0x523   : > { %v12144_v32 = vmul.f32 %v12131_v51, %v12131_v51  ;;  %v4483_v57 = vxor.u32 2147483648, %v4478_v38  ;;  %v4486_v15 = vxor.u32 2147483648, %v4470_v22  ;;  %v12964_v39 = vsel %vm11874_vm8, 0, %v11917_v41  ;;  %v12965_v41 = vld [vmem:[#allocation33_spill] sm:$0xff] }
 0x524   : > { %v4333_v61 = vsel %vm4331_vm4, %v12963_v59, %v11785_v52  ;;  %v4634_v56 = vand.u32 3, %v12964_v39  ;;  %vm4482_vm15 = vcmp.eq.s32.totalorder %v11834_v1, 0  ;;  %v4624_v46 = vadd.f32 1.0, %v4623_v48 }
 0x525   : > { %v4334_v60 = vsel %vm4327_vm2, %v11831_v14, %v4333_v61  ;;  %v12159_v31 = vshrl.u32 %v5205_v7, 30  ;;  %v4637_v55 = vxor.u32 2147483648, %v4632_v8  ;;  %v4769_v52 = vsel %vm4646_vm14, %v4768_v24, %v11656_v9 }
 0x526   : > { %v4776_v27 = vadd.f32 -0.4999988, %v4775_v50  ;;  %v4784_v10 = vmul.f32 %v4783_v36, %v12046_v13  ;;  %vm4325_vm8 = vweird.f32 %v12965_v41  ;;  %vm4479_vm0 = vweird.f32 %v12966_v34  ;;  %v12970_v36 = vld [vmem:[#allocation35_spill] sm:$0xff]  ;;  %v12971_v34 = vld [vmem:[#allocation8_spill] sm:$0xff] }
 0x527   : > { %vm4485_vm10 = vcmp.eq.s32.totalorder %v11834_v1, 2  ;;  %v4934_v21 = vmul.f32 -0.00019511016, %v12140_v23  ;;  %v5088_v14 = vmul.f32 -0.00019511016, %v12144_v32  ;;  %v5207_v37 = vshll.u32 %v12159_v31, 30 }
 0x528   : > { %vm4481_vm14 = vcmp.lt.s32.totalorder %v11834_v1, 2  ;;  %v4484_v9 = vsel %vm4482_vm15, %v4470_v22, %v4483_v57  ;;  %v4487_v28 = vsel %vm4485_vm10, %v4486_v15, %v4478_v38  ;;  %vm4636_vm13 = vcmp.eq.s32.totalorder %v4634_v56, 0  ;;  %v5299_v15 = vpop.permute.xlu2 %5298 }
 0x529   : > { %v4640_v6 = vxor.u32 2147483648, %v4624_v46  ;;  %v4771_v16 = vsel %vm11978_vm11, 0, %v4769_v52  ;;  %v4927_v33 = vmul.f32 -0.001358992, %v12140_v23  ;;  %v5208_v12 = vsub.s32 %v5204_v25, %v5207_v37 }
 0x52a   : > { %v4638_v18 = vsel %vm4636_vm13, %v4624_v46, %v4637_v55  ;;  %v4777_v62 = vmul.f32 %v4776_v27, %v12046_v13  ;;  %v4785_v30 = vadd.f32 1.0, %v4784_v10  ;;  %v4922_v19 = vsub.s32 4, %v12968_v47  ;;  %v12210_v55 = vpop.permute.xlu0 %5303  ;;  %v12214_v10 = vpop.permute.xlu1 %5308 }
 0x52b   : > { %v4935_v5 = vadd.f32 0.008332121, %v4934_v21  ;;  %v5089_v26 = vadd.f32 0.008332121, %v5088_v14  ;;  %vm5209_vm3 = vcmp.lt.s32.totalorder %v5208_v12, 0  ;;  %v5210_v22 = vsub.s32 0, %v5208_v12 }
 0x52c   : > { %v4488_v38 = vsel %vm4481_vm14, %v4484_v9, %v4487_v28  ;;  %vm4635_vm7 = vcmp.lt.s32.totalorder %v4634_v56, 2  ;;  %vm4639_vm4 = vcmp.eq.s32.totalorder %v4634_v56, 2  ;;  %v12187_v58 = vand.u32 3, %v4771_v16 }
 0x52d   : > { %v4641_v49 = vsel %vm4639_vm4, %v4640_v6, %v4632_v8  ;;  %v4928_v24 = vadd.f32 0.041655596, %v4927_v33  ;;  %v5081_v63 = vmul.f32 -0.001358992, %v12144_v32  ;;  %v5211_v48 = vsel %vm5209_vm3, %v5210_v22, %v5208_v12 }
 0x52e   : > { %v4642_v13 = vsel %vm4635_vm7, %v4638_v18, %v4641_v49  ;;  %v4778_v35 = vadd.f32 1.0, %v4777_v62  ;;  %v4786_v25 = vmul.f32 %v4785_v30, %v12969_v29  ;;  %v5212_v50 = vclz %v5211_v48  ;;  %v12973_v18 = vld [vmem:[#allocation9_spill] sm:$0xff]  ;;  %v12974_v30 = vld [vmem:[#allocation7_spill] sm:$0xff] }
 0x52f   : > { %vm4633_vm11 = vweird.f32 %v12970_v36  ;;  %v4923_v1 = vsel %vm4800_vm6, %v4922_v19, %v12968_v47  ;;  %v4936_v7 = vmul.f32 %v4935_v5, %v12140_v23  ;;  %v5090_v59 = vmul.f32 %v5089_v26, %v12144_v32  ;;  %v12976_v36 = vld [vmem:[#allocation37_spill] sm:$0xff] }
 0x530   : > { %v12199_v8 = vsel %vm4325_vm8, nan, %v4334_v60  ;;  %v12203_v61 = vsel %vm4479_vm0, nan, %v4488_v38  ;;  %vm4790_vm2 = vcmp.eq.s32.totalorder %v12187_v58, 0  ;;  %v5622_v57 = vadd.s32 4294967294, %v5212_v50 }
 0x531   : > { %v12206_v39 = vsel %vm4633_vm11, nan, %v4642_v13  ;;  %vm4793_vm6 = vcmp.eq.s32.totalorder %v12187_v58, 2  ;;  %v4929_v56 = vmul.f32 %v4928_v24, %v12140_v23  ;;  %v5082_v46 = vadd.f32 0.041655596, %v5081_v63 }
 0x532   : > { %v4791_v52 = vxor.u32 2147483648, %v4786_v25  ;;  %v4794_v60 = vxor.u32 2147483648, %v4778_v35  ;;  %v4925_v27 = vsel %vm12105_vm12, 0, %v4923_v1  ;;  %vm5623_vm5 = vcmp.lt.s32.totalorder %v5622_v57, 0 }
 0x533   : > { %v4937_v41 = vadd.f32 -0.16666654, %v4936_v7  ;;  %v5076_v21 = vsub.s32 4, %v12971_v34  ;;  %v5091_v14 = vadd.f32 -0.16666654, %v5090_v59  ;;  %v5215_v37 = vsel %vm5623_vm5, 0, %v5622_v57 }
 0x534   : > { %v5200_v9 = vadd.s32 %v12087_v42, %v12081_v2  ;;  %v5216_v28 = vsub.s32 32, %v5215_v37  ;;  %v5220_v6 = vsub.s32 4294967266, %v5215_v37  ;;  %v5358_v16 = vmul.f32 %v12165_v20, %v12972_v45  ;;  %v12975_v2 = vld [vmem:[#allocation31_spill] sm:$0xff] }
 0x535   : > { %v4930_v33 = vadd.f32 -0.4999988, %v4929_v56  ;;  %v5083_v4 = vmul.f32 %v5082_v46, %v12144_v32  ;;  %v5356_v62 = vmul.f32 %v12100_v43, %v12973_v18  ;;  %v5359_v47 = vmul.f32 %v12165_v20, %v12974_v30  ;;  %v12980_v56 = vld [vmem:[#allocation39_spill] sm:$0xff]  ;;  %v12981_v46 = vld [vmem:[#allocation40_spill] sm:$0xff] }
 0x536   : > { %vm4789_vm12 = vcmp.lt.s32.totalorder %v12187_v58, 2  ;;  %v5217_v19 = vshll.u32 %v5208_v12, %v5215_v37  ;;  %v5218_v5 = vshrl.u32 %v5200_v9, %v5216_v28  ;;  %v5221_v26 = vadd.s32 127, %v5220_v6  ;;  %v5324_v6 = vpop.permute.xlu1 %5323  ;;  %v12988_v58 = vld [vmem:[#allocation14_spill] sm:$0xff] }
 0x537   : > { %v5357_v42 = vmul.f32 %v12100_v43, %v12975_v2  ;;  %v4938_v22 = vmul.f32 %v4937_v41, %v12140_v23  ;;  %v12230_v38 = vand.u32 3, %v4925_v27  ;;  %v5077_v49 = vsel %vm4954_vm9, %v5076_v21, %v12971_v34  ;;  %v12982_v27 = vld [vmem:[#allocation41_spill] sm:$0xff]  ;;  %v12983_v41 = vld [vmem:[#allocation24_spill] sm:$0xff]  ;;  %v5319_v21 = vpop.permute.xlu0 %5318  ;;  %v12986_v2 = vld [vmem:[#allocation43_spill] sm:$0xff] }
 0x538   : > { %v5092_v24 = vmul.f32 %v5091_v14, %v12144_v32  ;;  %v5219_v63 = vor.u32 %v5218_v5, %v5217_v19  ;;  %v5222_v20 = vshll.u32 %v5221_v26, 23  ;;  %v5388_v48 = vadd.f32 %v5358_v16, %v5356_v62  ;;  %v12985_v62 = vld [vmem:[#allocation42_spill] sm:$0xff] }
 0x539   : > { %v5409_v13 = vadd.f32 %v5359_v47, %v5357_v42  ;;  %v4792_v12 = vsel %vm4790_vm2, %v4778_v35, %v4791_v52  ;;  %v4795_v43 = vsel %vm4793_vm6, %v4794_v60, %v4786_v25  ;;  %v4931_v29 = vmul.f32 %v4930_v33, %v12140_v23  ;;  %v5314_v23 = vpop.permute.xlu2 %5313  ;;  %v12984_v33 = vld [vmem:[#allocation13_spill] sm:$0xff] }
 0x53a   : > { %v5084_v50 = vadd.f32 -0.4999988, %v5083_v4  ;;  %vm5108_vm15 = vcmp.lt.s32.totalorder %v12976_v36, 0  ;;  %v5079_v1 = vsel %vm12120_vm1, 0, %v5077_v49  ;;  %v12977_v7 = vand.u32 2147483647, %v12976_v36 }
 0x53b   : > { %v5223_v57 = vor.u32 4788187, %v5222_v20  ;;  %v5360_v35 = vmul.f32 %v12173_v17, %v12980_v56  ;;  %v5361_v25 = vmul.f32 %v12173_v17, %v12981_v46  ;;  %v4939_v52 = vadd.f32 1.0, %v4938_v22  ;;  %v12987_v22 = vld [vmem:[#allocation22_spill] sm:$0xff] }
 0x53c   : > { %vm12246_vm9 = vcmp.le.f32.partialorder %v12977_v7, 0.7853982  ;;  %v5093_v60 = vadd.f32 1.0, %v5092_v24  ;;  %v5362_v0 = vmul.f32 %v12178_v53, %v12982_v27  ;;  %v5363_v34 = vmul.f32 %v12178_v53, %v12983_v41  ;;  %v12991_v7 = vld [vmem:[#allocation38_spill] sm:$0xff]  ;;  %v12993_v27 = vld [vmem:[#allocation16_spill] sm:$0xff]  ;;  %v12994_v41 = vld [vmem:[#allocation15_spill] sm:$0xff] }
 0x53d   : > { %v5224_v14 = vand.u32 2147483647, %v5223_v57  ;;  %v5226_v37 = vcvt.s32.f32 %v5219_v63  ;;  %v5389_v9 = vadd.f32 %v5388_v48, %v5360_v35  ;;  %v5410_v28 = vadd.f32 %v5409_v13, %v5361_v25  ;;  %v12989_v48 = vld [vmem:[#allocation23_spill] sm:$0xff] }
 0x53e   : > { %v12258_v45 = vadd.f32 1.0, %v4931_v29  ;;  %v5085_v16 = vmul.f32 %v5084_v50, %v12144_v32  ;;  %v12261_v17 = vand.u32 3, %v5079_v1  ;;  %v5364_v4 = vmul.f32 %v5299_v15, %v12984_v33  ;;  %v12990_v50 = vld [vmem:[#allocation21_spill] sm:$0xff] }
 0x53f   : > { %v5227_v18 = vmul.f32 %v5226_v37, %v5224_v14  ;;  %v5365_v30 = vmul.f32 %v5299_v15, %v12985_v62  ;;  %v5390_v47 = vadd.f32 %v5389_v9, %v5362_v0  ;;  %v5411_v19 = vadd.f32 %v5410_v28, %v5363_v34  ;;  %v12995_v14 = vld [vmem:[#allocation11_spill] sm:$0xff]  ;;  %v5334_v9 = vpop.permute.xlu0 %5333 }
 0x540   : > { %v12267_v53 = vsel %vm4789_vm12, %v4792_v12, %v4795_v43  ;;  %v12270_v5 = vmul.f32 %v4939_v52, %v12114_v40  ;;  %v5094_v26 = vmul.f32 %v5093_v60, %v12131_v51  ;;  %v5366_v32 = vmul.f32 %v12210_v55, %v12986_v2 }
 0x541   : > { %v5228_v42 = vxor.u32 2147483648, %v5227_v18  ;;  %v5367_v49 = vmul.f32 %v12210_v55, %v12987_v22  ;;  %v5391_v24 = vadd.f32 %v5390_v47, %v5364_v4  ;;  %v5412_v15 = vadd.f32 %v5411_v19, %v5365_v30  ;;  %v5329_v52 = vpop.permute.xlu2 %5328  ;;  %v12997_v22 = vld [vmem:[#allocation10_spill] sm:$0xff] }
 0x542   : > { %v4948_v63 = vxor.u32 2147483648, %v12258_v45  ;;  %v5086_v20 = vadd.f32 1.0, %v5085_v16  ;;  %vm5098_vm1 = vcmp.eq.s32.totalorder %v12261_v17, 0  ;;  %v5368_v40 = vmul.f32 %v12214_v10, %v12988_v58 }
 0x543   : > { %v5229_v51 = vsel %vm5108_vm15, %v5228_v42, %v5227_v18  ;;  %v5369_v13 = vmul.f32 %v12214_v10, %v12989_v48  ;;  %v5392_v12 = vadd.f32 %v5391_v24, %v5366_v32  ;;  %v5413_v43 = vadd.f32 %v5412_v15, %v5367_v49  ;;  %v12992_v10 = vld [vmem:[#allocation26_spill] sm:$0xff]  ;;  %v12996_v32 = vld [vmem:[#allocation27_spill] sm:$0xff]  ;;  %v12998_v48 = vld [vmem:[#allocation25_spill] sm:$0xff] }
 0x544   : > { %v5099_v29 = vxor.u32 2147483648, %v5094_v26  ;;  %v12288_v55 = vsel %vm12246_vm9, %v12976_v36, %v5229_v51  ;;  %v5370_v1 = vmul.f32 %v5314_v23, %v12990_v50  ;;  %v5372_v57 = vmul.f32 %v5319_v21, %v12991_v7  ;;  %v12999_v7 = vld [vmem:[#allocation28_spill] sm:$0xff] }
 0x545   : > { %vm4787_vm8 = vweird.f32 %v12950_v44  ;;  %vm4944_vm0 = vcmp.eq.s32.totalorder %v12230_v38, 0  ;;  %v5234_v56 = vmul.f32 %v12288_v55, %v12288_v55  ;;  %v5371_v35 = vmul.f32 %v5314_v23, %v12992_v10  ;;  %v5339_v23 = vpop.permute.xlu1 %5338 }
 0x546   : > { %v5393_v46 = vadd.f32 %v5392_v12, %v5368_v40  ;;  %v5414_v25 = vadd.f32 %v5413_v43, %v5369_v13  ;;  %v5102_v60 = vxor.u32 2147483648, %v5086_v20  ;;  %v5373_v0 = vmul.f32 %v5319_v21, %v12993_v27 }
 0x547   : > { %v5374_v34 = vmul.f32 %v5324_v6, %v12994_v41  ;;  %v5375_v37 = vmul.f32 %v5324_v6, %v12995_v14  ;;  %vm4947_vm10 = vcmp.eq.s32.totalorder %v12230_v38, 2  ;;  %vm5095_vm14 = vweird.f32 %v12940_v3 }
 0x548   : > { %v5235_v28 = vmul.f32 -0.001358992, %v5234_v56  ;;  %v5242_v16 = vmul.f32 -0.00019511016, %v5234_v56  ;;  %v5394_v33 = vadd.f32 %v5393_v46, %v5370_v1  ;;  %v5415_v4 = vadd.f32 %v5414_v25, %v5371_v35 }
 0x549   : > { %v4945_v18 = vxor.u32 2147483648, %v12270_v5  ;;  %v5100_v62 = vsel %vm5098_vm1, %v5086_v20, %v5099_v29  ;;  %vm5101_vm13 = vcmp.eq.s32.totalorder %v12261_v17, 2  ;;  %v5230_v21 = vsub.s32 4, %v12159_v31  ;;  %v5344_v25 = vpop.permute.xlu2 %5343 }
 0x54a   : > { %v5236_v6 = vadd.f32 0.041655596, %v5235_v28  ;;  %v5243_v30 = vadd.f32 0.008332121, %v5242_v16  ;;  %v5395_v47 = vadd.f32 %v5394_v33, %v5372_v57  ;;  %v5416_v19 = vadd.f32 %v5415_v4, %v5373_v0 }
 0x54b   : > { %vm5097_vm3 = vcmp.lt.s32.totalorder %v12261_v17, 2  ;;  %v5103_v2 = vsel %vm5101_vm13, %v5102_v60, %v5094_v26  ;;  %v5376_v42 = vmul.f32 %v5329_v52, %v12996_v32  ;;  %v5377_v49 = vmul.f32 %v5329_v52, %v12997_v22 }
 0x54c   : > { %v5237_v24 = vmul.f32 %v5236_v6, %v5234_v56  ;;  %v5244_v15 = vmul.f32 %v5243_v30, %v5234_v56  ;;  %v5396_v58 = vadd.f32 %v5395_v47, %v5374_v34  ;;  %v5417_v40 = vadd.f32 %v5416_v19, %v5375_v37 }
 0x54d   : > { %v5104_v20 = vsel %vm5097_vm3, %v5100_v62, %v5103_v2  ;;  %v5231_v51 = vsel %vm5108_vm15, %v5230_v21, %v12159_v31  ;;  %v5378_v13 = vmul.f32 %v5334_v9, %v12998_v48  ;;  %v5380_v12 = vmul.f32 %v5339_v23, %v12136_v54  ;;  %v5354_v0 = vpop.permute.xlu1 %5353 }
 0x54e   : > { %v5238_v43 = vadd.f32 -0.4999988, %v5237_v24  ;;  %v5245_v17 = vadd.f32 -0.16666654, %v5244_v15  ;;  %v5397_v26 = vadd.f32 %v5396_v58, %v5376_v42  ;;  %v5418_v29 = vadd.f32 %v5417_v40, %v5377_v49 }
 0x54f   : > { %v4797_v50 = vsel %vm4787_vm8, nan, %v12267_v53  ;;  %v4946_v1 = vsel %vm4944_vm0, %v12258_v45, %v4945_v18  ;;  %v5379_v57 = vmul.f32 %v5334_v9, %v12999_v7  ;;  %v5381_v31 = vmul.f32 %v5339_v23, %v12199_v8  ;;  %v5349_v8 = vpop.permute.xlu0 %5348 }
 0x550   : > { %v5233_v10 = vsel %vm12246_vm9, 0, %v5231_v51  ;;  %v5239_v54 = vmul.f32 %v5238_v43, %v5234_v56  ;;  %v5246_v35 = vmul.f32 %v5245_v17, %v5234_v56  ;;  %v5398_v46 = vadd.f32 %v5397_v26, %v5378_v13 }
 0x551   : > { %vm4943_vm7 = vcmp.lt.s32.totalorder %v12230_v38, 2  ;;  %v4949_v44 = vsel %vm4947_vm10, %v4948_v63, %v12270_v5  ;;  %v5105_v53 = vsel %vm5095_vm14, nan, %v5104_v20  ;;  %v5419_v52 = vadd.f32 %v5418_v29, %v5379_v57  ;;  %v5434_v24 = vpop.permute.xlu2 %5433 }
 0x552   : > { %v5240_v60 = vadd.f32 1.0, %v5239_v54  ;;  %v5247_v59 = vadd.f32 1.0, %v5246_v35  ;;  %v5382_v27 = vmul.f32 %v5344_v25, %v12203_v61  ;;  %v5399_v56 = vadd.f32 %v5398_v46, %v5380_v12 }
 0x553   : > { %v4950_v41 = vsel %vm4943_vm7, %v4946_v1, %v4949_v44  ;;  %v5250_v34 = vand.u32 3, %v5233_v10  ;;  %v5384_v14 = vmul.f32 %v5349_v8, %v4797_v50  ;;  %v5420_v37 = vadd.f32 %v5419_v52, %v5381_v31 }
 0x554   : > { %v5248_v45 = vmul.f32 %v5247_v59, %v12288_v55  ;;  %v5256_v9 = vxor.u32 2147483648, %v5240_v60  ;;  %v5386_v38 = vmul.f32 %v5354_v0, %v5105_v53  ;;  %v5400_v5 = vadd.f32 %v5399_v56, %v5382_v27 }
 0x555   : > { %vm4941_vm4 = vweird.f32 %v12934_v11  ;;  %v5383_v3 = vmul.f32 %v5344_v25, %v12206_v39  ;;  %vm5252_vm11 = vcmp.eq.s32.totalorder %v5250_v34, 0  ;;  %vm5255_vm2 = vcmp.eq.s32.totalorder %v5250_v34, 2 }
 0x556   : > { %v4951_v63 = vsel %vm4941_vm4, nan, %v4950_v41  ;;  %v5253_v28 = vxor.u32 2147483648, %v5248_v45  ;;  %v5401_v16 = vadd.f32 %v5400_v5, %v5384_v14  ;;  %vm5251_vm6 = vcmp.lt.s32.totalorder %v5250_v34, 2 }
 0x557   : > { %v5421_v61 = vadd.f32 %v5420_v37, %v5383_v3  ;;  %v5257_v4 = vsel %vm5255_vm2, %v5256_v9, %v5248_v45  ;;  %vm5249_vm5 = vweird.f32 %v12976_v36  ;;  %v5385_v18 = vmul.f32 %v5349_v8, %v4951_v63 }
 0x558   : > { %v5254_v33 = vsel %vm5252_vm11, %v5240_v60, %v5253_v28  ;;  %v5402_v23 = vadd.f32 %v5401_v16, %v5386_v38  ;;  %v5436_v40 = vperm.slane %v5434_v24, 0  ;;  %v5445_v20 = vlaneseq }
 0x559   : > { %v5258_v55 = vsel %vm5251_vm6, %v5254_v33, %v5257_v4  ;;  %v5422_v39 = vadd.f32 %v5421_v61, %v5385_v18  ;;  %vm5442_vm12 = vcmask 1040384  }
 0x55a   : > { %v5259_v62 = vsel %vm5249_vm5, nan, %v5258_v55  ;;  %v5403_v21 = vrot.slane %v5402_v23, 4  ;;  %vm5447_vm15 = vcmp.lt.s32.totalorder %v5445_v20, 256 }
 0x55b   : > { %v5387_v11 = vmul.f32 %v5354_v0, %v5259_v62 }
 0x55c   : > { %v5404_v6 = vadd.f32 %v5403_v21, %v5402_v23 }
 0x55d   : > { %v5423_v30 = vadd.f32 %v5422_v39, %v5387_v11 }
 0x55e   : > { %v5405_v47 = vrot.slane %v5404_v6, 2 }
 0x55f   : > { %v5424_v19 = vrot.slane %v5423_v30, 4 }
 0x560   : > { %v5406_v2 = vadd.f32 %v5405_v47, %v5404_v6 }
 0x561   : > { %v5425_v32 = vadd.f32 %v5424_v19, %v5423_v30 }
 0x562   : > { %v5407_v22 = vrot.slane %v5406_v2, 1 }
 0x563   : > { %v5426_v42 = vrot.slane %v5425_v32, 2 }
 0x564   : > { %v5408_v15 = vadd.f32 %v5407_v22, %v5406_v2 }
 0x565   : > { %v5427_v49 = vadd.f32 %v5426_v42, %v5425_v32 }
 0x566   : > { %v5437_v48 = vadd.f32 %v5436_v40, %v5408_v15 }
 0x567   : > { %v5428_v36 = vrot.slane %v5427_v49, 1 }
 0x569   : > { %v5429_v58 = vadd.f32 %v5428_v36, %v5427_v49 }
 0x56b   : > { %v5438_v51 = vadd.f32 %v5436_v40, %v5429_v58 }
 0x56d   : > { %v5441_v13 = vrot.slane %v5438_v51, 7 }
 0x56f   : > { %v5443_v12 = vsel %vm5442_vm12, %v5437_v48, %v5441_v13 }
 0x570   : > { %5449 = vst.msk [vmem:[%s191_s29] sm:$0x3] %vm5447_vm15, %v5443_v12 }
 0x571   : > { %5704 = shalt.err (!%p5701_p3)
}
 0x572   : > { %5628 = dma.vmem_to_hbm [thread:$0]  (%p5813_p5), %s5464_s30, 32, %s5466_s5, %s5451_s6  }
 0x573 PF: > { %p5634_p4 = scmp.ge.s32.totalorder %s5739_s20, 2  ;;  %s5477_s14 = sand.u32 1, %s5727_s17  }
 0x574   : > { %s5478_s15 = scalar_lea.sflag [#allocation4], %s5477_s14 }
 0x575   : > { %p5631_p7 = pnand %p5634_p4, %p5817_p6 }
 0x577   : > { %p5632_p8 = pneg %p5631_p7 }
 0x579   : > { %5722 = dma.done.wait (%p5632_p8), %s5478_s15, 32  }
 0x57a   : > { %5724 = vsyncadd (%p5632_p8), %s5478_s15, 4294967264  ;;  %p16_p9 = scmp.ge.s32.totalorder %s5799_s22, 6   ;;  %s13000_s17 = smov %s5731_s18 }
 0x57b   : > { %s13001_s18 = smov %s5735_s19  ;;  %s13002_s19 = smov %s5811_s25 }
 0x57c   : > { %s13003_s20 = smov %s5799_s22  ;;  %18 = sbr.rel (!%p16_p9) target bundleno = 6 (0x6), region = 71 }
 0x581   :  { %5484 = vsyncpa [#allocation4], 1 }
 0x582   :  { %5486 = vsyncpa [#allocation4 + $0x1], 1 }

</bundles_post_ra>
